<compile_context>
chip_gen: v7x
topology: tpu7x:2x2x1
jax: 0.10.0
libtpu: 0.0.40
codegen_flags: <defaults>
</compile_context>

<pallas_src>
import math
from functools import partial

import jax
import jax.numpy as jnp
from jax import lax
from jax.experimental import pallas as pl
from jax.experimental.pallas import tpu as pltpu


# ----------------------------------------------------------------------------
# Tiling helpers
# ----------------------------------------------------------------------------
def _round_up(x, m):
    return ((x + m - 1) // m) * m


def _choose_kp(K):
    # Padded K: single k-step if it fits in <=2048, else 512-aligned k-loop.
    Kp = _round_up(K, 128)
    if Kp > 2048:
        Kp = _round_up(K, 512)
    return Kp


def _choose_np(N):
    Np = _round_up(N, 128)
    if Np > 512:
        Np = _round_up(N, 256)
    return Np


def _choose_tm(M):
    # Small M (late stages / final Linear): one block, padded only to 16 rows.
    Mp = _round_up(M, 16)
    if Mp <= 512:
        return Mp, Mp
    TM = 256
    return _round_up(M, TM), TM


# ----------------------------------------------------------------------------
# Pallas fused matmul kernels
# ----------------------------------------------------------------------------
def _fused_mm_kernel_1k(x_ref, w_ref, s_ref, b_ref, o_ref, *, relu):
    # Single reduction step: no accumulator scratch needed.
    acc = jnp.dot(x_ref[...], w_ref[...], preferred_element_type=jnp.float32)
    y = acc * s_ref[...] + b_ref[...]
    if relu:
        y = jnp.maximum(y, 0.0)
    o_ref[...] = y.astype(o_ref.dtype)


def _fused_mm_kernel_nk(x_ref, w_ref, s_ref, b_ref, o_ref, acc_ref, *, relu):
    k = pl.program_id(2)

    @pl.when(k == 0)
    def _():
        acc_ref[...] = jnp.zeros_like(acc_ref)

    acc_ref[...] += jnp.dot(x_ref[...], w_ref[...],
                            preferred_element_type=jnp.float32)

    @pl.when(k == pl.num_programs(2) - 1)
    def _():
        y = acc_ref[...] * s_ref[...] + b_ref[...]
        if relu:
            y = jnp.maximum(y, 0.0)
        o_ref[...] = y.astype(o_ref.dtype)


def fused_matmul(x, w, scale, bias, relu=True, out_dtype=jnp.bfloat16):
    """out = [relu]((x @ w) * scale + bias)[:M, :N].

    x: (M, K) bf16.  w: (Kp, Np) bf16, pre-padded at init.
    scale/bias: (1, N) f32 (unpadded; N = true output channels).
    """
    M, K = x.shape
    Kp, Np = w.shape
    N = scale.shape[-1]

    Mp, TM = _choose_tm(M)
    TK = Kp if Kp <= 2048 else 512
    TN = Np if Np <= 512 else 256
    assert Kp % TK == 0 and Np % TN == 0 and Mp % TM == 0

    xp = x if (M == Mp and K == Kp) else jnp.pad(x, ((0, Mp - M), (0, Kp - K)))
    sp = scale if N == Np else jnp.pad(scale, ((0, 0), (0, Np - N)))
    bp = bias if N == Np else jnp.pad(bias, ((0, 0), (0, Np - N)))

    nk = Kp // TK
    if nk == 1:
        out = pl.pallas_call(
            partial(_fused_mm_kernel_1k, relu=relu),
            out_shape=jax.ShapeDtypeStruct((Mp, Np), out_dtype),
            grid_spec=pltpu.PrefetchScalarGridSpec(
                num_scalar_prefetch=0,
                grid=(Mp // TM, Np // TN),
                in_specs=[
                    pl.BlockSpec((TM, TK), lambda i, j: (i, 0)),
                    pl.BlockSpec((TK, TN), lambda i, j: (0, j)),
                    pl.BlockSpec((1, TN), lambda i, j: (0, j)),
                    pl.BlockSpec((1, TN), lambda i, j: (0, j)),
                ],
                out_specs=pl.BlockSpec((TM, TN), lambda i, j: (i, j)),
            ),
            compiler_params=pltpu.CompilerParams(
                dimension_semantics=("parallel", "parallel")),
        )(xp, w, sp, bp)
    else:
        out = pl.pallas_call(
            partial(_fused_mm_kernel_nk, relu=relu),
            out_shape=jax.ShapeDtypeStruct((Mp, Np), out_dtype),
            grid_spec=pltpu.PrefetchScalarGridSpec(
                num_scalar_prefetch=0,
                grid=(Mp // TM, Np // TN, nk),
                in_specs=[
                    pl.BlockSpec((TM, TK), lambda i, j, k: (i, k)),
                    pl.BlockSpec((TK, TN), lambda i, j, k: (k, j)),
                    pl.BlockSpec((1, TN), lambda i, j, k: (0, j)),
                    pl.BlockSpec((1, TN), lambda i, j, k: (0, j)),
                ],
                out_specs=pl.BlockSpec((TM, TN), lambda i, j, k: (i, j)),
                scratch_shapes=[pltpu.VMEM((TM, TN), jnp.float32)],
            ),
            compiler_params=pltpu.CompilerParams(
                dimension_semantics=("parallel", "parallel", "arbitrary")),
        )(xp, w, sp, bp)

    if Mp != M or Np != N:
        out = out[:M, :N]
    return out


# ----------------------------------------------------------------------------
# Conv2d + BatchNorm2d (eval) + ReLU via (optional) im2col + fused Pallas MM
# ----------------------------------------------------------------------------
def conv_bn_relu(x, p, kh=1, kw=1, stride=(1, 1), padding=(0, 0),
                 relu=True, out_dtype=jnp.bfloat16):
    # x: (N, H, W, C) NHWC bf16
    N, H, W, C = x.shape
    sh, sw = stride
    ph, pw = padding
    OH = (H + 2 * ph - kh) // sh + 1
    OW = (W + 2 * pw - kw) // sw + 1

    if kh == 1 and kw == 1 and (sh, sw) == (1, 1) and (ph, pw) == (0, 0):
        # 1x1 conv: no im2col, just a reshape (free for NHWC).
        lhs = x.reshape(N * H * W, C).astype(jnp.bfloat16)
    else:
        xp = jnp.pad(x, ((0, 0), (ph, ph), (pw, pw), (0, 0)))
        cols = [xp[:, i:i + (OH - 1) * sh + 1:sh,
                   j:j + (OW - 1) * sw + 1:sw, :]
                for i in range(kh) for j in range(kw)]
        lhs = jnp.concatenate(cols, axis=-1).reshape(
            N * OH * OW, kh * kw * C).astype(jnp.bfloat16)

    y = fused_matmul(lhs, p["w"], p["scale"], p["bias"],
                     relu=relu, out_dtype=out_dtype)
    return y.reshape(N, OH, OW, -1)


def avg_pool3(x):
    # AvgPool2d(kernel=3, stride=1, padding=1); PyTorch default
    # count_include_pad=True -> divide by 9 everywhere.
    s = lax.reduce_window(x.astype(jnp.float32), 0.0, lax.add,
                          (1, 3, 3, 1), (1, 1, 1, 1),
                          ((0, 0), (1, 1), (1, 1), (0, 0)))
    return (s / 9.0).astype(x.dtype)


def max_pool3_s2(x):
    return lax.reduce_window(x, jnp.array(-jnp.inf, x.dtype), lax.max,
                             (1, 3, 3, 1), (1, 2, 2, 1), "VALID")


def avg_pool_k(x, k):
    s = lax.reduce_window(x.astype(jnp.float32), 0.0, lax.add,
                          (1, k, k, 1), (1, k, k, 1), "VALID")
    return (s / float(k * k)).astype(x.dtype)


# ----------------------------------------------------------------------------
# Parameter construction: conv bias + BN folded into (scale, bias); weights
# reshaped to 2-D, cast to bf16 and K/N padded once at init.
# ----------------------------------------------------------------------------
class KeyGen:
    def __init__(self, key):
        self.key = key
        self.i = 0

    def __call__(self):
        self.i += 1
        return jax.random.fold_in(self.key, self.i)


def make_basic(kg, cin, cout, kh, kw):
    fan_in = cin * kh * kw
    w = jax.random.normal(kg(), (kh, kw, cin, cout), jnp.float32) / math.sqrt(fan_in)
    b_conv = jax.random.normal(kg(), (cout,), jnp.float32) * 0.01
    # BatchNorm2d default init, eval-mode running stats (mean=0, var=1).
    gamma = jnp.ones((cout,), jnp.float32)
    beta = jnp.zeros((cout,), jnp.float32)
    rmean = jnp.zeros((cout,), jnp.float32)
    rvar = jnp.ones((cout,), jnp.float32)
    eps = 1e-5
    scale = gamma / jnp.sqrt(rvar + eps)
    bias = beta + scale * (b_conv - rmean)
    return dict(w4=w, scale=scale, bias=bias)


def pack_mm(w2, scale, bias):
    K, N = w2.shape
    Kp, Np = _choose_kp(K), _choose_np(N)
    wp = jnp.pad(w2.astype(jnp.bfloat16), ((0, Kp - K), (0, Np - N)))
    return dict(w=wp,
                scale=scale.reshape(1, N).astype(jnp.float32),
                bias=bias.reshape(1, N).astype(jnp.float32))


def pack_conv(c):
    KH, KW, Cin, Cout = c["w4"].shape
    return pack_mm(c["w4"].reshape(KH * KW * Cin, Cout), c["scale"], c["bias"])


def fuse_convs(convs):
    # Fuse parallel 1x1 branch heads sharing the same input: concat along Cout.
    w4 = jnp.concatenate([c["w4"] for c in convs], axis=-1)
    scale = jnp.concatenate([c["scale"] for c in convs])
    bias = jnp.concatenate([c["bias"] for c in convs])
    return pack_conv(dict(w4=w4, scale=scale, bias=bias))


def init_googlenetv4(key, num_classes=1000):
    kg = KeyGen(key)
    p = {}
    # Stem(3, 384); conv5_1_1 / conv5_2_1 (both 1x1 on y1) fused.
    c511 = make_basic(kg, 160, 64, 1, 1)
    c521 = make_basic(kg, 160, 64, 1, 1)
    p["stem"] = dict(
        conv1=pack_conv(make_basic(kg, 3, 32, 3, 3)),
        conv2=pack_conv(make_basic(kg, 32, 32, 3, 3)),
        conv3=pack_conv(make_basic(kg, 32, 64, 3, 3)),
        conv4=pack_conv(make_basic(kg, 64, 96, 3, 3)),
        conv5_heads=fuse_convs([c511, c521]),                    # 64 + 64
        conv5_1_2=pack_conv(make_basic(kg, 64, 96, 3, 3)),
        conv5_2_2=pack_conv(make_basic(kg, 64, 64, 7, 1)),
        conv5_2_3=pack_conv(make_basic(kg, 64, 64, 1, 7)),
        conv5_2_4=pack_conv(make_basic(kg, 64, 96, 3, 3)),
        conv6=pack_conv(make_basic(kg, 192, 192, 3, 3)),
    )
    # InceptionA(384) -- reused 4x; b2/b3_1/b4_1 1x1 heads fused.
    a_b2 = make_basic(kg, 384, 96, 1, 1)
    a_b3_1 = make_basic(kg, 384, 64, 1, 1)
    a_b4_1 = make_basic(kg, 384, 64, 1, 1)
    p["icpA"] = dict(
        b1_2=pack_conv(make_basic(kg, 384, 96, 1, 1)),
        heads=fuse_convs([a_b2, a_b3_1, a_b4_1]),                # 96+64+64
        b3_2=pack_conv(make_basic(kg, 64, 96, 3, 3)),
        b4_2=pack_conv(make_basic(kg, 64, 96, 3, 3)),
        b4_3=pack_conv(make_basic(kg, 96, 96, 3, 3)),
    )
    # ReductionA(384, 1024, k=192, l=224, m=256, n=384)
    p["redA"] = dict(
        b2=pack_conv(make_basic(kg, 384, 384, 3, 3)),
        b3_1=pack_conv(make_basic(kg, 384, 192, 1, 1)),
        b3_2=pack_conv(make_basic(kg, 192, 224, 3, 3)),
        b3_3=pack_conv(make_basic(kg, 224, 256, 3, 3)),
    )
    # InceptionB(1024) -- reused 7x; heads fused.
    b_b2 = make_basic(kg, 1024, 384, 1, 1)
    b_b3_1 = make_basic(kg, 1024, 192, 1, 1)
    b_b4_1 = make_basic(kg, 1024, 192, 1, 1)
    p["icpB"] = dict(
        b1_2=pack_conv(make_basic(kg, 1024, 128, 1, 1)),
        heads=fuse_convs([b_b2, b_b3_1, b_b4_1]),                # 384+192+192
        b3_2=pack_conv(make_basic(kg, 192, 224, 1, 7)),
        b3_3=pack_conv(make_basic(kg, 224, 256, 1, 7)),
        b4_2=pack_conv(make_basic(kg, 192, 192, 1, 7)),
        b4_3=pack_conv(make_basic(kg, 192, 224, 7, 1)),
        b4_4=pack_conv(make_basic(kg, 224, 224, 1, 7)),
        b4_5=pack_conv(make_basic(kg, 224, 256, 7, 1)),
    )
    # ReductionB(1024); b2_1/b3_1 1x1 heads fused.
    rb_b2_1 = make_basic(kg, 1024, 192, 1, 1)
    rb_b3_1 = make_basic(kg, 1024, 256, 1, 1)
    p["redB"] = dict(
        heads=fuse_convs([rb_b2_1, rb_b3_1]),                    # 192+256
        b2_2=pack_conv(make_basic(kg, 192, 192, 3, 3)),
        b3_2=pack_conv(make_basic(kg, 256, 256, 1, 7)),
        b3_3=pack_conv(make_basic(kg, 256, 320, 7, 1)),
        b3_4=pack_conv(make_basic(kg, 320, 320, 3, 3)),
    )
    # InceptionC(1536) -- reused 3x; heads fused.
    c_b2 = make_basic(kg, 1536, 256, 1, 1)
    c_b3_1 = make_basic(kg, 1536, 384, 1, 1)
    c_b4_1 = make_basic(kg, 1536, 384, 1, 1)
    p["icpC"] = dict(
        b1_2=pack_conv(make_basic(kg, 1536, 256, 1, 1)),
        heads=fuse_convs([c_b2, c_b3_1, c_b4_1]),                # 256+384+384
        b3_2_1=pack_conv(make_basic(kg, 384, 256, 1, 3)),
        b3_2_2=pack_conv(make_basic(kg, 384, 256, 3, 1)),
        b4_2=pack_conv(make_basic(kg, 384, 448, 1, 3)),
        b4_3=pack_conv(make_basic(kg, 448, 512, 3, 1)),
        b4_4_1=pack_conv(make_basic(kg, 512, 256, 3, 1)),
        b4_4_2=pack_conv(make_basic(kg, 512, 256, 1, 3)),
    )
    # Linear(1536, num_classes)
    lw = jax.random.normal(kg(), (1536, num_classes), jnp.float32) / math.sqrt(1536)
    lb = jax.random.normal(kg(), (num_classes,), jnp.float32) * 0.01
    p["head"] = dict(linear=pack_mm(lw, jnp.ones((num_classes,), jnp.float32), lb))
    return p


# ----------------------------------------------------------------------------
# Forward blocks (shared subexpressions computed once; identical semantics to
# the PyTorch module in eval mode).
# ----------------------------------------------------------------------------
def stem_fwd(x, p):
    t = conv_bn_relu(x, p["conv1"], kh=3, kw=3, stride=(2, 2))
    t = conv_bn_relu(t, p["conv2"], kh=3, kw=3)
    t = conv_bn_relu(t, p["conv3"], kh=3, kw=3, padding=(1, 1))
    y1 = jnp.concatenate(
        [max_pool3_s2(t),
         conv_bn_relu(t, p["conv4"], kh=3, kw=3, stride=(2, 2))], axis=-1)
    h = conv_bn_relu(y1, p["conv5_heads"])          # fused 1x1: 64 | 64
    y2_1 = conv_bn_relu(h[..., :64], p["conv5_1_2"], kh=3, kw=3)
    t2 = conv_bn_relu(h[..., 64:128], p["conv5_2_2"], kh=7, kw=1, padding=(3, 0))
    t2 = conv_bn_relu(t2, p["conv5_2_3"], kh=1, kw=7, padding=(0, 3))
    y2_2 = conv_bn_relu(t2, p["conv5_2_4"], kh=3, kw=3)
    y2 = jnp.concatenate([y2_1, y2_2], axis=-1)
    y3_1 = conv_bn_relu(y2, p["conv6"], kh=3, kw=3, stride=(2, 2))
    return jnp.concatenate([y3_1, max_pool3_s2(y2)], axis=-1)


def icpA_fwd(x, p):
    y1 = conv_bn_relu(avg_pool3(x), p["b1_2"])
    h = conv_bn_relu(x, p["heads"])                 # fused 1x1: 96 | 64 | 64
    y2 = h[..., :96]
    t3 = h[..., 96:160]
    t4 = h[..., 160:224]
    y3 = conv_bn_relu(t3, p["b3_2"], kh=3, kw=3, padding=(1, 1))
    y4 = conv_bn_relu(
        conv_bn_relu(t4, p["b4_2"], kh=3, kw=3, padding=(1, 1)),
        p["b4_3"], kh=3, kw=3, padding=(1, 1))
    return jnp.concatenate([y1, y2, y3, y4], axis=-1)


def redA_fwd(x, p):
    y1 = max_pool3_s2(x)
    y2 = conv_bn_relu(x, p["b2"], kh=3, kw=3, stride=(2, 2))
    y3 = conv_bn_relu(
        conv_bn_relu(conv_bn_relu(x, p["b3_1"]),
                     p["b3_2"], kh=3, kw=3, padding=(1, 1)),
        p["b3_3"], kh=3, kw=3, stride=(2, 2))
    return jnp.concatenate([y1, y2, y3], axis=-1)


def icpB_fwd(x, p):
    y1 = conv_bn_relu(avg_pool3(x), p["b1_2"])
    h = conv_bn_relu(x, p["heads"])                 # fused 1x1: 384 | 192 | 192
    y2 = h[..., :384]
    t3 = h[..., 384:576]
    t4 = h[..., 576:768]
    y3 = conv_bn_relu(
        conv_bn_relu(t3, p["b3_2"], kh=1, kw=7, padding=(0, 3)),
        p["b3_3"], kh=1, kw=7, padding=(0, 3))
    t4 = conv_bn_relu(t4, p["b4_2"], kh=1, kw=7, padding=(0, 3))
    t4 = conv_bn_relu(t4, p["b4_3"], kh=7, kw=1, padding=(3, 0))
    t4 = conv_bn_relu(t4, p["b4_4"], kh=1, kw=7, padding=(0, 3))
    y4 = conv_bn_relu(t4, p["b4_5"], kh=7, kw=1, padding=(3, 0))
    return jnp.concatenate([y1, y2, y3, y4], axis=-1)


def redB_fwd(x, p):
    y1 = max_pool3_s2(x)
    h = conv_bn_relu(x, p["heads"])                 # fused 1x1: 192 | 256
    y2 = conv_bn_relu(h[..., :192], p["b2_2"], kh=3, kw=3, stride=(2, 2))
    t3 = conv_bn_relu(h[..., 192:448], p["b3_2"], kh=1, kw=7, padding=(0, 3))
    t3 = conv_bn_relu(t3, p["b3_3"], kh=7, kw=1, padding=(3, 0))
    y3 = conv_bn_relu(t3, p["b3_4"], kh=3, kw=3, stride=(2, 2))
    return jnp.concatenate([y1, y2, y3], axis=-1)


def icpC_fwd(x, p):
    y1 = conv_bn_relu(avg_pool3(x), p["b1_2"])
    h = conv_bn_relu(x, p["heads"])                 # fused 1x1: 256 | 384 | 384
    y2 = h[..., :256]
    t3 = h[..., 256:640]
    t4 = h[..., 640:1024]
    y3_1 = conv_bn_relu(t3, p["b3_2_1"], kh=1, kw=3, padding=(0, 1))
    y3_2 = conv_bn_relu(t3, p["b3_2_2"], kh=3, kw=1, padding=(1, 0))
    t4 = conv_bn_relu(t4, p["b4_2"], kh=1, kw=3, padding=(0, 1))
    t4 = conv_bn_relu(t4, p["b4_3"], kh=3, kw=1, padding=(1, 0))
    y4_1 = conv_bn_relu(t4, p["b4_4_1"], kh=3, kw=1, padding=(1, 0))
    y4_2 = conv_bn_relu(t4, p["b4_4_2"], kh=1, kw=3, padding=(0, 1))
    return jnp.concatenate([y1, y2, y3_1, y3_2, y4_1, y4_2], axis=-1)


def head_fwd(x, p):
    x = avg_pool_k(x, 8)                            # (N, 1, 1, 1536)
    x = x.reshape(x.shape[0], -1).astype(jnp.bfloat16)
    # TODO(synk): Dropout(p=0.8) / BatchNorm batch-statistics act only in
    # training mode; eval mode (identity dropout, running-stats BN) implemented.
    return fused_matmul(x, p["linear"]["w"], p["linear"]["scale"],
                        p["linear"]["bias"], relu=False, out_dtype=jnp.float32)


# One compiled program per block type (reused 4x/7x/3x for A/B/C).
_stem_j = jax.jit(stem_fwd)
_icpA_j = jax.jit(icpA_fwd)
_redA_j = jax.jit(redA_fwd)
_icpB_j = jax.jit(icpB_fwd)
_redB_j = jax.jit(redB_fwd)
_icpC_j = jax.jit(icpC_fwd)
_head_j = jax.jit(head_fwd)


def googlenetv4_forward(x_nchw, params):
    # layout: NCHW -> NHWC once at the boundary; bf16 activations internally.
    x = jnp.transpose(x_nchw, (0, 2, 3, 1)).astype(jnp.bfloat16)
    out = _stem_j(x, params["stem"])                 # (N, 35, 35, 384)
    for _ in range(4):
        out = _icpA_j(out, params["icpA"])
    out = _redA_j(out, params["redA"])               # (N, 17, 17, 1024)
    for _ in range(7):
        out = _icpB_j(out, params["icpB"])
    out = _redB_j(out, params["redB"])               # (N, 8, 8, 1536)
    for _ in range(3):
        out = _icpC_j(out, params["icpC"])
    return _head_j(out, params["head"])              # (N, num_classes) f32


if __name__ == "__main__":
    root = jax.random.PRNGKey(0)
    # Architecture (AvgPool2d(kernel=8) after three stride-2 reductions)
    # requires at least 299x299 spatial input; keep batch=1 for a small run.
    x = jax.random.normal(jax.random.fold_in(root, 999),
                          (1, 3, 299, 299), jnp.float32)
    params = init_googlenetv4(root, num_classes=1000)
    out = googlenetv4_forward(x, params)
    out = jax.block_until_ready(out)
    assert out.shape == (1, 1000) and out.dtype == jnp.float32
    print("KERNEL_OK")
</pallas_src>

<mosaic_0001>
module attributes {stable_mosaic.version = 11 : i64} {
  func.func @_fused_mm_kernel_1k(%arg0: i32, %arg1: i32, %arg2: memref<256x128xbf16, #tpu.memory_space<vmem>>, %arg3: memref<128x128xbf16, #tpu.memory_space<vmem>>, %arg4: memref<1x128xf32, #tpu.memory_space<vmem>>, %arg5: memref<1x128xf32, #tpu.memory_space<vmem>>, %arg6: memref<256x128xbf16, #tpu.memory_space<vmem>>) attributes {dimension_semantics = [#tpu.dimension_semantics<parallel>, #tpu.dimension_semantics<parallel>], iteration_bounds = array<i64: 87, 1>, scalar_prefetch = 0 : i64, scratch_operands = 0 : i64, tpu.core_type = #tpu.core_type<tc>, window_params = [{transform_indices = @transform_0, window_bounds = array<i64: 256, 128>}, {transform_indices = @transform_1, window_bounds = array<i64: 128, 128>}, {transform_indices = @transform_2, window_bounds = array<i64: 1, 128>}, {transform_indices = @transform_3, window_bounds = array<i64: 1, 128>}, {transform_indices = @transform_4, window_bounds = array<i64: 256, 128>}]} {
    %c0 = arith.constant 0 : index
    %c0_0 = arith.constant 0 : index
    %0 = vector.load %arg2[%c0, %c0_0] : memref<256x128xbf16, #tpu.memory_space<vmem>>, vector<256x128xbf16>
    %c0_1 = arith.constant 0 : index
    %c0_2 = arith.constant 0 : index
    %1 = vector.load %arg3[%c0_1, %c0_2] : memref<128x128xbf16, #tpu.memory_space<vmem>>, vector<128x128xbf16>
    %cst = arith.constant dense<0.000000e+00> : vector<256x128xf32>
    %2 = tpu.matmul %0, %1, %cst {dimension_numbers = #tpu.dot_dimension_numbers<[1], [0], [0], [1], [0, 0, 1, 1], [], []>} : vector<256x128xbf16>, vector<128x128xbf16>, vector<256x128xf32> -> vector<256x128xf32>
    %c0_3 = arith.constant 0 : index
    %c0_4 = arith.constant 0 : index
    %3 = vector.load %arg4[%c0_3, %c0_4] : memref<1x128xf32, #tpu.memory_space<vmem>>, vector<1x128xf32>
    %4 = vector.broadcast %3 : vector<1x128xf32> to vector<256x128xf32>
    %5 = arith.mulf %2, %4 : vector<256x128xf32>
    %c0_5 = arith.constant 0 : index
    %c0_6 = arith.constant 0 : index
    %6 = vector.load %arg5[%c0_5, %c0_6] : memref<1x128xf32, #tpu.memory_space<vmem>>, vector<1x128xf32>
    %7 = vector.broadcast %6 : vector<1x128xf32> to vector<256x128xf32>
    %8 = arith.addf %5, %7 : vector<256x128xf32>
    %cst_7 = arith.constant 0.000000e+00 : f32
    %9 = vector.broadcast %cst_7 : f32 to vector<256x128xf32>
    %10 = arith.maximumf %8, %9 : vector<256x128xf32>
    %11 = arith.truncf %10 : vector<256x128xf32> to vector<256x128xbf16>
    %c0_8 = arith.constant 0 : index
    %c0_9 = arith.constant 0 : index
    %12 = vector.load %arg6[%c0_8, %c0_9] : memref<256x128xbf16, #tpu.memory_space<vmem>>, vector<256x128xbf16>
    tpu.vector_store %arg6[%c0_8, %c0_9], %11 {strides = array<i32>} : memref<256x128xbf16, #tpu.memory_space<vmem>>, vector<256x128xbf16>,
    return
  }
  func.func @transform_0(%arg0: i32, %arg1: i32) -> (i32, i32) {
    %c0_i32 = arith.constant 0 : i32
    %c0_i32_0 = arith.constant 0 : i32
    return %arg0, %c0_i32 : i32, i32
  }
  func.func @transform_1(%arg0: i32, %arg1: i32) -> (i32, i32) {
    %c0_i32 = arith.constant 0 : i32
    %c0_i32_0 = arith.constant 0 : i32
    return %c0_i32, %arg1 : i32, i32
  }
  func.func @transform_2(%arg0: i32, %arg1: i32) -> (i32, i32) {
    %c0_i32 = arith.constant 0 : i32
    %c0_i32_0 = arith.constant 0 : i32
    return %c0_i32, %arg1 : i32, i32
  }
  func.func @transform_3(%arg0: i32, %arg1: i32) -> (i32, i32) {
    %c0_i32 = arith.constant 0 : i32
    %c0_i32_0 = arith.constant 0 : i32
    return %c0_i32, %arg1 : i32, i32
  }
  func.func @transform_4(%arg0: i32, %arg1: i32) -> (i32, i32) {
    %c0_i32 = arith.constant 0 : i32
    return %arg0, %arg1 : i32, i32
  }
}

module attributes {stable_mosaic.version = 11 : i64} {
  func.func @_fused_mm_kernel_1k(%arg0: i32, %arg1: i32, %arg2: memref<256x384xbf16, #tpu.memory_space<vmem>>, %arg3: memref<384x128xbf16, #tpu.memory_space<vmem>>, %arg4: memref<1x128xf32, #tpu.memory_space<vmem>>, %arg5: memref<1x128xf32, #tpu.memory_space<vmem>>, %arg6: memref<256x128xbf16, #tpu.memory_space<vmem>>) attributes {dimension_semantics = [#tpu.dimension_semantics<parallel>, #tpu.dimension_semantics<parallel>], iteration_bounds = array<i64: 85, 1>, scalar_prefetch = 0 : i64, scratch_operands = 0 : i64, tpu.core_type = #tpu.core_type<tc>, window_params = [{transform_indices = @transform_0, window_bounds = array<i64: 256, 384>}, {transform_indices = @transform_1, window_bounds = array<i64: 384, 128>}, {transform_indices = @transform_2, window_bounds = array<i64: 1, 128>}, {transform_indices = @transform_3, window_bounds = array<i64: 1, 128>}, {transform_indices = @transform_4, window_bounds = array<i64: 256, 128>}]} {
    %c0 = arith.constant 0 : index
    %c0_0 = arith.constant 0 : index
    %0 = vector.load %arg2[%c0, %c0_0] : memref<256x384xbf16, #tpu.memory_space<vmem>>, vector<256x384xbf16>
    %c0_1 = arith.constant 0 : index
    %c0_2 = arith.constant 0 : index
    %1 = vector.load %arg3[%c0_1, %c0_2] : memref<384x128xbf16, #tpu.memory_space<vmem>>, vector<384x128xbf16>
    %cst = arith.constant dense<0.000000e+00> : vector<256x128xf32>
    %2 = tpu.matmul %0, %1, %cst {dimension_numbers = #tpu.dot_dimension_numbers<[1], [0], [0], [1], [0, 0, 1, 1], [], []>} : vector<256x384xbf16>, vector<384x128xbf16>, vector<256x128xf32> -> vector<256x128xf32>
    %c0_3 = arith.constant 0 : index
    %c0_4 = arith.constant 0 : index
    %3 = vector.load %arg4[%c0_3, %c0_4] : memref<1x128xf32, #tpu.memory_space<vmem>>, vector<1x128xf32>
    %4 = vector.broadcast %3 : vector<1x128xf32> to vector<256x128xf32>
    %5 = arith.mulf %2, %4 : vector<256x128xf32>
    %c0_5 = arith.constant 0 : index
    %c0_6 = arith.constant 0 : index
    %6 = vector.load %arg5[%c0_5, %c0_6] : memref<1x128xf32, #tpu.memory_space<vmem>>, vector<1x128xf32>
    %7 = vector.broadcast %6 : vector<1x128xf32> to vector<256x128xf32>
    %8 = arith.addf %5, %7 : vector<256x128xf32>
    %cst_7 = arith.constant 0.000000e+00 : f32
    %9 = vector.broadcast %cst_7 : f32 to vector<256x128xf32>
    %10 = arith.maximumf %8, %9 : vector<256x128xf32>
    %11 = arith.truncf %10 : vector<256x128xf32> to vector<256x128xbf16>
    %c0_8 = arith.constant 0 : index
    %c0_9 = arith.constant 0 : index
    %12 = vector.load %arg6[%c0_8, %c0_9] : memref<256x128xbf16, #tpu.memory_space<vmem>>, vector<256x128xbf16>
    tpu.vector_store %arg6[%c0_8, %c0_9], %11 {strides = array<i32>} : memref<256x128xbf16, #tpu.memory_space<vmem>>, vector<256x128xbf16>,
    return
  }
  func.func @transform_0(%arg0: i32, %arg1: i32) -> (i32, i32) {
    %c0_i32 = arith.constant 0 : i32
    %c0_i32_0 = arith.constant 0 : i32
    return %arg0, %c0_i32 : i32, i32
  }
  func.func @transform_1(%arg0: i32, %arg1: i32) -> (i32, i32) {
    %c0_i32 = arith.constant 0 : i32
    %c0_i32_0 = arith.constant 0 : i32
    return %c0_i32, %arg1 : i32, i32
  }
  func.func @transform_2(%arg0: i32, %arg1: i32) -> (i32, i32) {
    %c0_i32 = arith.constant 0 : i32
    %c0_i32_0 = arith.constant 0 : i32
    return %c0_i32, %arg1 : i32, i32
  }
  func.func @transform_3(%arg0: i32, %arg1: i32) -> (i32, i32) {
    %c0_i32 = arith.constant 0 : i32
    %c0_i32_0 = arith.constant 0 : i32
    return %c0_i32, %arg1 : i32, i32
  }
  func.func @transform_4(%arg0: i32, %arg1: i32) -> (i32, i32) {
    %c0_i32 = arith.constant 0 : i32
    return %arg0, %arg1 : i32, i32
  }
}

module attributes {stable_mosaic.version = 11 : i64} {
  func.func @_fused_mm_kernel_1k(%arg0: i32, %arg1: i32, %arg2: memref<256x640xbf16, #tpu.memory_space<vmem>>, %arg3: memref<640x128xbf16, #tpu.memory_space<vmem>>, %arg4: memref<1x128xf32, #tpu.memory_space<vmem>>, %arg5: memref<1x128xf32, #tpu.memory_space<vmem>>, %arg6: memref<256x128xbf16, #tpu.memory_space<vmem>>) attributes {dimension_semantics = [#tpu.dimension_semantics<parallel>, #tpu.dimension_semantics<parallel>], iteration_bounds = array<i64: 21, 1>, scalar_prefetch = 0 : i64, scratch_operands = 0 : i64, tpu.core_type = #tpu.core_type<tc>, window_params = [{transform_indices = @transform_0, window_bounds = array<i64: 256, 640>}, {transform_indices = @transform_1, window_bounds = array<i64: 640, 128>}, {transform_indices = @transform_2, window_bounds = array<i64: 1, 128>}, {transform_indices = @transform_3, window_bounds = array<i64: 1, 128>}, {transform_indices = @transform_4, window_bounds = array<i64: 256, 128>}]} {
    %c0 = arith.constant 0 : index
    %c0_0 = arith.constant 0 : index
    %0 = vector.load %arg2[%c0, %c0_0] : memref<256x640xbf16, #tpu.memory_space<vmem>>, vector<256x640xbf16>
    %c0_1 = arith.constant 0 : index
    %c0_2 = arith.constant 0 : index
    %1 = vector.load %arg3[%c0_1, %c0_2] : memref<640x128xbf16, #tpu.memory_space<vmem>>, vector<640x128xbf16>
    %cst = arith.constant dense<0.000000e+00> : vector<256x128xf32>
    %2 = tpu.matmul %0, %1, %cst {dimension_numbers = #tpu.dot_dimension_numbers<[1], [0], [0], [1], [0, 0, 1, 1], [], []>} : vector<256x640xbf16>, vector<640x128xbf16>, vector<256x128xf32> -> vector<256x128xf32>
    %c0_3 = arith.constant 0 : index
    %c0_4 = arith.constant 0 : index
    %3 = vector.load %arg4[%c0_3, %c0_4] : memref<1x128xf32, #tpu.memory_space<vmem>>, vector<1x128xf32>
    %4 = vector.broadcast %3 : vector<1x128xf32> to vector<256x128xf32>
    %5 = arith.mulf %2, %4 : vector<256x128xf32>
    %c0_5 = arith.constant 0 : index
    %c0_6 = arith.constant 0 : index
    %6 = vector.load %arg5[%c0_5, %c0_6] : memref<1x128xf32, #tpu.memory_space<vmem>>, vector<1x128xf32>
    %7 = vector.broadcast %6 : vector<1x128xf32> to vector<256x128xf32>
    %8 = arith.addf %5, %7 : vector<256x128xf32>
    %cst_7 = arith.constant 0.000000e+00 : f32
    %9 = vector.broadcast %cst_7 : f32 to vector<256x128xf32>
    %10 = arith.maximumf %8, %9 : vector<256x128xf32>
    %11 = arith.truncf %10 : vector<256x128xf32> to vector<256x128xbf16>
    %c0_8 = arith.constant 0 : index
    %c0_9 = arith.constant 0 : index
    %12 = vector.load %arg6[%c0_8, %c0_9] : memref<256x128xbf16, #tpu.memory_space<vmem>>, vector<256x128xbf16>
    tpu.vector_store %arg6[%c0_8, %c0_9], %11 {strides = array<i32>} : memref<256x128xbf16, #tpu.memory_space<vmem>>, vector<256x128xbf16>,
    return
  }
  func.func @transform_0(%arg0: i32, %arg1: i32) -> (i32, i32) {
    %c0_i32 = arith.constant 0 : i32
    %c0_i32_0 = arith.constant 0 : i32
    return %arg0, %c0_i32 : i32, i32
  }
  func.func @transform_1(%arg0: i32, %arg1: i32) -> (i32, i32) {
    %c0_i32 = arith.constant 0 : i32
    %c0_i32_0 = arith.constant 0 : i32
    return %c0_i32, %arg1 : i32, i32
  }
  func.func @transform_2(%arg0: i32, %arg1: i32) -> (i32, i32) {
    %c0_i32 = arith.constant 0 : i32
    %c0_i32_0 = arith.constant 0 : i32
    return %c0_i32, %arg1 : i32, i32
  }
  func.func @transform_3(%arg0: i32, %arg1: i32) -> (i32, i32) {
    %c0_i32 = arith.constant 0 : i32
    %c0_i32_0 = arith.constant 0 : i32
    return %c0_i32, %arg1 : i32, i32
  }
  func.func @transform_4(%arg0: i32, %arg1: i32) -> (i32, i32) {
    %c0_i32 = arith.constant 0 : i32
    return %arg0, %arg1 : i32, i32
  }
}

module attributes {stable_mosaic.version = 11 : i64} {
  func.func @_fused_mm_kernel_1k(%arg0: i32, %arg1: i32, %arg2: memref<256x256xbf16, #tpu.memory_space<vmem>>, %arg3: memref<256x128xbf16, #tpu.memory_space<vmem>>, %arg4: memref<1x128xf32, #tpu.memory_space<vmem>>, %arg5: memref<1x128xf32, #tpu.memory_space<vmem>>, %arg6: memref<256x128xbf16, #tpu.memory_space<vmem>>) attributes {dimension_semantics = [#tpu.dimension_semantics<parallel>, #tpu.dimension_semantics<parallel>], iteration_bounds = array<i64: 21, 1>, scalar_prefetch = 0 : i64, scratch_operands = 0 : i64, tpu.core_type = #tpu.core_type<tc>, window_params = [{transform_indices = @transform_0, window_bounds = array<i64: 256, 256>}, {transform_indices = @transform_1, window_bounds = array<i64: 256, 128>}, {transform_indices = @transform_2, window_bounds = array<i64: 1, 128>}, {transform_indices = @transform_3, window_bounds = array<i64: 1, 128>}, {transform_indices = @transform_4, window_bounds = array<i64: 256, 128>}]} {
    %c0 = arith.constant 0 : index
    %c0_0 = arith.constant 0 : index
    %0 = vector.load %arg2[%c0, %c0_0] : memref<256x256xbf16, #tpu.memory_space<vmem>>, vector<256x256xbf16>
    %c0_1 = arith.constant 0 : index
    %c0_2 = arith.constant 0 : index
    %1 = vector.load %arg3[%c0_1, %c0_2] : memref<256x128xbf16, #tpu.memory_space<vmem>>, vector<256x128xbf16>
    %cst = arith.constant dense<0.000000e+00> : vector<256x128xf32>
    %2 = tpu.matmul %0, %1, %cst {dimension_numbers = #tpu.dot_dimension_numbers<[1], [0], [0], [1], [0, 0, 1, 1], [], []>} : vector<256x256xbf16>, vector<256x128xbf16>, vector<256x128xf32> -> vector<256x128xf32>
    %c0_3 = arith.constant 0 : index
    %c0_4 = arith.constant 0 : index
    %3 = vector.load %arg4[%c0_3, %c0_4] : memref<1x128xf32, #tpu.memory_space<vmem>>, vector<1x128xf32>
    %4 = vector.broadcast %3 : vector<1x128xf32> to vector<256x128xf32>
    %5 = arith.mulf %2, %4 : vector<256x128xf32>
    %c0_5 = arith.constant 0 : index
    %c0_6 = arith.constant 0 : index
    %6 = vector.load %arg5[%c0_5, %c0_6] : memref<1x128xf32, #tpu.memory_space<vmem>>, vector<1x128xf32>
    %7 = vector.broadcast %6 : vector<1x128xf32> to vector<256x128xf32>
    %8 = arith.addf %5, %7 : vector<256x128xf32>
    %cst_7 = arith.constant 0.000000e+00 : f32
    %9 = vector.broadcast %cst_7 : f32 to vector<256x128xf32>
    %10 = arith.maximumf %8, %9 : vector<256x128xf32>
    %11 = arith.truncf %10 : vector<256x128xf32> to vector<256x128xbf16>
    %c0_8 = arith.constant 0 : index
    %c0_9 = arith.constant 0 : index
    %12 = vector.load %arg6[%c0_8, %c0_9] : memref<256x128xbf16, #tpu.memory_space<vmem>>, vector<256x128xbf16>
    tpu.vector_store %arg6[%c0_8, %c0_9], %11 {strides = array<i32>} : memref<256x128xbf16, #tpu.memory_space<vmem>>, vector<256x128xbf16>,
    return
  }
  func.func @transform_0(%arg0: i32, %arg1: i32) -> (i32, i32) {
    %c0_i32 = arith.constant 0 : i32
    %c0_i32_0 = arith.constant 0 : i32
    return %arg0, %c0_i32 : i32, i32
  }
  func.func @transform_1(%arg0: i32, %arg1: i32) -> (i32, i32) {
    %c0_i32 = arith.constant 0 : i32
    %c0_i32_0 = arith.constant 0 : i32
    return %c0_i32, %arg1 : i32, i32
  }
  func.func @transform_2(%arg0: i32, %arg1: i32) -> (i32, i32) {
    %c0_i32 = arith.constant 0 : i32
    %c0_i32_0 = arith.constant 0 : i32
    return %c0_i32, %arg1 : i32, i32
  }
  func.func @transform_3(%arg0: i32, %arg1: i32) -> (i32, i32) {
    %c0_i32 = arith.constant 0 : i32
    %c0_i32_0 = arith.constant 0 : i32
    return %c0_i32, %arg1 : i32, i32
  }
  func.func @transform_4(%arg0: i32, %arg1: i32) -> (i32, i32) {
    %c0_i32 = arith.constant 0 : i32
    return %arg0, %arg1 : i32, i32
  }
}

module attributes {stable_mosaic.version = 11 : i64} {
  func.func @_fused_mm_kernel_1k(%arg0: i32, %arg1: i32, %arg2: memref<256x640xbf16, #tpu.memory_space<vmem>>, %arg3: memref<640x128xbf16, #tpu.memory_space<vmem>>, %arg4: memref<1x128xf32, #tpu.memory_space<vmem>>, %arg5: memref<1x128xf32, #tpu.memory_space<vmem>>, %arg6: memref<256x128xbf16, #tpu.memory_space<vmem>>) attributes {dimension_semantics = [#tpu.dimension_semantics<parallel>, #tpu.dimension_semantics<parallel>], iteration_bounds = array<i64: 20, 1>, scalar_prefetch = 0 : i64, scratch_operands = 0 : i64, tpu.core_type = #tpu.core_type<tc>, window_params = [{transform_indices = @transform_0, window_bounds = array<i64: 256, 640>}, {transform_indices = @transform_1, window_bounds = array<i64: 640, 128>}, {transform_indices = @transform_2, window_bounds = array<i64: 1, 128>}, {transform_indices = @transform_3, window_bounds = array<i64: 1, 128>}, {transform_indices = @transform_4, window_bounds = array<i64: 256, 128>}]} {
    %c0 = arith.constant 0 : index
    %c0_0 = arith.constant 0 : index
    %0 = vector.load %arg2[%c0, %c0_0] : memref<256x640xbf16, #tpu.memory_space<vmem>>, vector<256x640xbf16>
    %c0_1 = arith.constant 0 : index
    %c0_2 = arith.constant 0 : index
    %1 = vector.load %arg3[%c0_1, %c0_2] : memref<640x128xbf16, #tpu.memory_space<vmem>>, vector<640x128xbf16>
    %cst = arith.constant dense<0.000000e+00> : vector<256x128xf32>
    %2 = tpu.matmul %0, %1, %cst {dimension_numbers = #tpu.dot_dimension_numbers<[1], [0], [0], [1], [0, 0, 1, 1], [], []>} : vector<256x640xbf16>, vector<640x128xbf16>, vector<256x128xf32> -> vector<256x128xf32>
    %c0_3 = arith.constant 0 : index
    %c0_4 = arith.constant 0 : index
    %3 = vector.load %arg4[%c0_3, %c0_4] : memref<1x128xf32, #tpu.memory_space<vmem>>, vector<1x128xf32>
    %4 = vector.broadcast %3 : vector<1x128xf32> to vector<256x128xf32>
    %5 = arith.mulf %2, %4 : vector<256x128xf32>
    %c0_5 = arith.constant 0 : index
    %c0_6 = arith.constant 0 : index
    %6 = vector.load %arg5[%c0_5, %c0_6] : memref<1x128xf32, #tpu.memory_space<vmem>>, vector<1x128xf32>
    %7 = vector.broadcast %6 : vector<1x128xf32> to vector<256x128xf32>
    %8 = arith.addf %5, %7 : vector<256x128xf32>
    %cst_7 = arith.constant 0.000000e+00 : f32
    %9 = vector.broadcast %cst_7 : f32 to vector<256x128xf32>
    %10 = arith.maximumf %8, %9 : vector<256x128xf32>
    %11 = arith.truncf %10 : vector<256x128xf32> to vector<256x128xbf16>
    %c0_8 = arith.constant 0 : index
    %c0_9 = arith.constant 0 : index
    %12 = vector.load %arg6[%c0_8, %c0_9] : memref<256x128xbf16, #tpu.memory_space<vmem>>, vector<256x128xbf16>
    tpu.vector_store %arg6[%c0_8, %c0_9], %11 {strides = array<i32>} : memref<256x128xbf16, #tpu.memory_space<vmem>>, vector<256x128xbf16>,
    return
  }
  func.func @transform_0(%arg0: i32, %arg1: i32) -> (i32, i32) {
    %c0_i32 = arith.constant 0 : i32
    %c0_i32_0 = arith.constant 0 : i32
    return %arg0, %c0_i32 : i32, i32
  }
  func.func @transform_1(%arg0: i32, %arg1: i32) -> (i32, i32) {
    %c0_i32 = arith.constant 0 : i32
    %c0_i32_0 = arith.constant 0 : i32
    return %c0_i32, %arg1 : i32, i32
  }
  func.func @transform_2(%arg0: i32, %arg1: i32) -> (i32, i32) {
    %c0_i32 = arith.constant 0 : i32
    %c0_i32_0 = arith.constant 0 : i32
    return %c0_i32, %arg1 : i32, i32
  }
  func.func @transform_3(%arg0: i32, %arg1: i32) -> (i32, i32) {
    %c0_i32 = arith.constant 0 : i32
    %c0_i32_0 = arith.constant 0 : i32
    return %c0_i32, %arg1 : i32, i32
  }
  func.func @transform_4(%arg0: i32, %arg1: i32) -> (i32, i32) {
    %c0_i32 = arith.constant 0 : i32
    return %arg0, %arg1 : i32, i32
  }
}

module attributes {stable_mosaic.version = 11 : i64} {
  func.func @_fused_mm_kernel_1k(%arg0: i32, %arg1: i32, %arg2: memref<256x512xbf16, #tpu.memory_space<vmem>>, %arg3: memref<512x128xbf16, #tpu.memory_space<vmem>>, %arg4: memref<1x128xf32, #tpu.memory_space<vmem>>, %arg5: memref<1x128xf32, #tpu.memory_space<vmem>>, %arg6: memref<256x128xbf16, #tpu.memory_space<vmem>>) attributes {dimension_semantics = [#tpu.dimension_semantics<parallel>, #tpu.dimension_semantics<parallel>], iteration_bounds = array<i64: 21, 1>, scalar_prefetch = 0 : i64, scratch_operands = 0 : i64, tpu.core_type = #tpu.core_type<tc>, window_params = [{transform_indices = @transform_0, window_bounds = array<i64: 256, 512>}, {transform_indices = @transform_1, window_bounds = array<i64: 512, 128>}, {transform_indices = @transform_2, window_bounds = array<i64: 1, 128>}, {transform_indices = @transform_3, window_bounds = array<i64: 1, 128>}, {transform_indices = @transform_4, window_bounds = array<i64: 256, 128>}]} {
    %c0 = arith.constant 0 : index
    %c0_0 = arith.constant 0 : index
    %0 = vector.load %arg2[%c0, %c0_0] : memref<256x512xbf16, #tpu.memory_space<vmem>>, vector<256x512xbf16>
    %c0_1 = arith.constant 0 : index
    %c0_2 = arith.constant 0 : index
    %1 = vector.load %arg3[%c0_1, %c0_2] : memref<512x128xbf16, #tpu.memory_space<vmem>>, vector<512x128xbf16>
    %cst = arith.constant dense<0.000000e+00> : vector<256x128xf32>
    %2 = tpu.matmul %0, %1, %cst {dimension_numbers = #tpu.dot_dimension_numbers<[1], [0], [0], [1], [0, 0, 1, 1], [], []>} : vector<256x512xbf16>, vector<512x128xbf16>, vector<256x128xf32> -> vector<256x128xf32>
    %c0_3 = arith.constant 0 : index
    %c0_4 = arith.constant 0 : index
    %3 = vector.load %arg4[%c0_3, %c0_4] : memref<1x128xf32, #tpu.memory_space<vmem>>, vector<1x128xf32>
    %4 = vector.broadcast %3 : vector<1x128xf32> to vector<256x128xf32>
    %5 = arith.mulf %2, %4 : vector<256x128xf32>
    %c0_5 = arith.constant 0 : index
    %c0_6 = arith.constant 0 : index
    %6 = vector.load %arg5[%c0_5, %c0_6] : memref<1x128xf32, #tpu.memory_space<vmem>>, vector<1x128xf32>
    %7 = vector.broadcast %6 : vector<1x128xf32> to vector<256x128xf32>
    %8 = arith.addf %5, %7 : vector<256x128xf32>
    %cst_7 = arith.constant 0.000000e+00 : f32
    %9 = vector.broadcast %cst_7 : f32 to vector<256x128xf32>
    %10 = arith.maximumf %8, %9 : vector<256x128xf32>
    %11 = arith.truncf %10 : vector<256x128xf32> to vector<256x128xbf16>
    %c0_8 = arith.constant 0 : index
    %c0_9 = arith.constant 0 : index
    %12 = vector.load %arg6[%c0_8, %c0_9] : memref<256x128xbf16, #tpu.memory_space<vmem>>, vector<256x128xbf16>
    tpu.vector_store %arg6[%c0_8, %c0_9], %11 {strides = array<i32>} : memref<256x128xbf16, #tpu.memory_space<vmem>>, vector<256x128xbf16>,
    return
  }
  func.func @transform_0(%arg0: i32, %arg1: i32) -> (i32, i32) {
    %c0_i32 = arith.constant 0 : i32
    %c0_i32_0 = arith.constant 0 : i32
    return %arg0, %c0_i32 : i32, i32
  }
  func.func @transform_1(%arg0: i32, %arg1: i32) -> (i32, i32) {
    %c0_i32 = arith.constant 0 : i32
    %c0_i32_0 = arith.constant 0 : i32
    return %c0_i32, %arg1 : i32, i32
  }
  func.func @transform_2(%arg0: i32, %arg1: i32) -> (i32, i32) {
    %c0_i32 = arith.constant 0 : i32
    %c0_i32_0 = arith.constant 0 : i32
    return %c0_i32, %arg1 : i32, i32
  }
  func.func @transform_3(%arg0: i32, %arg1: i32) -> (i32, i32) {
    %c0_i32 = arith.constant 0 : i32
    %c0_i32_0 = arith.constant 0 : i32
    return %c0_i32, %arg1 : i32, i32
  }
  func.func @transform_4(%arg0: i32, %arg1: i32) -> (i32, i32) {
    %c0_i32 = arith.constant 0 : i32
    return %arg0, %arg1 : i32, i32
  }
}

module attributes {stable_mosaic.version = 11 : i64} {
  func.func @_fused_mm_kernel_1k(%arg0: i32, %arg1: i32, %arg2: memref<256x1792xbf16, #tpu.memory_space<vmem>>, %arg3: memref<1792x256xbf16, #tpu.memory_space<vmem>>, %arg4: memref<1x256xf32, #tpu.memory_space<vmem>>, %arg5: memref<1x256xf32, #tpu.memory_space<vmem>>, %arg6: memref<256x256xbf16, #tpu.memory_space<vmem>>) attributes {dimension_semantics = [#tpu.dimension_semantics<parallel>, #tpu.dimension_semantics<parallel>], iteration_bounds = array<i64: 5, 1>, scalar_prefetch = 0 : i64, scratch_operands = 0 : i64, tpu.core_type = #tpu.core_type<tc>, window_params = [{transform_indices = @transform_0, window_bounds = array<i64: 256, 1792>}, {transform_indices = @transform_1, window_bounds = array<i64: 1792, 256>}, {transform_indices = @transform_2, window_bounds = array<i64: 1, 256>}, {transform_indices = @transform_3, window_bounds = array<i64: 1, 256>}, {transform_indices = @transform_4, window_bounds = array<i64: 256, 256>}]} {
    %c0 = arith.constant 0 : index
    %c0_0 = arith.constant 0 : index
    %0 = vector.load %arg2[%c0, %c0_0] : memref<256x1792xbf16, #tpu.memory_space<vmem>>, vector<256x1792xbf16>
    %c0_1 = arith.constant 0 : index
    %c0_2 = arith.constant 0 : index
    %1 = vector.load %arg3[%c0_1, %c0_2] : memref<1792x256xbf16, #tpu.memory_space<vmem>>, vector<1792x256xbf16>
    %cst = arith.constant dense<0.000000e+00> : vector<256x256xf32>
    %2 = tpu.matmul %0, %1, %cst {dimension_numbers = #tpu.dot_dimension_numbers<[1], [0], [0], [1], [0, 0, 1, 1], [], []>} : vector<256x1792xbf16>, vector<1792x256xbf16>, vector<256x256xf32> -> vector<256x256xf32>
    %c0_3 = arith.constant 0 : index
    %c0_4 = arith.constant 0 : index
    %3 = vector.load %arg4[%c0_3, %c0_4] : memref<1x256xf32, #tpu.memory_space<vmem>>, vector<1x256xf32>
    %4 = vector.broadcast %3 : vector<1x256xf32> to vector<256x256xf32>
    %5 = arith.mulf %2, %4 : vector<256x256xf32>
    %c0_5 = arith.constant 0 : index
    %c0_6 = arith.constant 0 : index
    %6 = vector.load %arg5[%c0_5, %c0_6] : memref<1x256xf32, #tpu.memory_space<vmem>>, vector<1x256xf32>
    %7 = vector.broadcast %6 : vector<1x256xf32> to vector<256x256xf32>
    %8 = arith.addf %5, %7 : vector<256x256xf32>
    %cst_7 = arith.constant 0.000000e+00 : f32
    %9 = vector.broadcast %cst_7 : f32 to vector<256x256xf32>
    %10 = arith.maximumf %8, %9 : vector<256x256xf32>
    %11 = arith.truncf %10 : vector<256x256xf32> to vector<256x256xbf16>
    %c0_8 = arith.constant 0 : index
    %c0_9 = arith.constant 0 : index
    %12 = vector.load %arg6[%c0_8, %c0_9] : memref<256x256xbf16, #tpu.memory_space<vmem>>, vector<256x256xbf16>
    tpu.vector_store %arg6[%c0_8, %c0_9], %11 {strides = array<i32>} : memref<256x256xbf16, #tpu.memory_space<vmem>>, vector<256x256xbf16>,
    return
  }
  func.func @transform_0(%arg0: i32, %arg1: i32) -> (i32, i32) {
    %c0_i32 = arith.constant 0 : i32
    %c0_i32_0 = arith.constant 0 : i32
    return %arg0, %c0_i32 : i32, i32
  }
  func.func @transform_1(%arg0: i32, %arg1: i32) -> (i32, i32) {
    %c0_i32 = arith.constant 0 : i32
    %c0_i32_0 = arith.constant 0 : i32
    return %c0_i32, %arg1 : i32, i32
  }
  func.func @transform_2(%arg0: i32, %arg1: i32) -> (i32, i32) {
    %c0_i32 = arith.constant 0 : i32
    %c0_i32_0 = arith.constant 0 : i32
    return %c0_i32, %arg1 : i32, i32
  }
  func.func @transform_3(%arg0: i32, %arg1: i32) -> (i32, i32) {
    %c0_i32 = arith.constant 0 : i32
    %c0_i32_0 = arith.constant 0 : i32
    return %c0_i32, %arg1 : i32, i32
  }
  func.func @transform_4(%arg0: i32, %arg1: i32) -> (i32, i32) {
    %c0_i32 = arith.constant 0 : i32
    return %arg0, %arg1 : i32, i32
  }
}

</mosaic_0001>

<bundles_post_ra>
// kernel: stem_fwd.10
= control target key start
LH: loop header
LB: loop body
LE: loop exit
PB: predicated region body
PF: predicated region fallthrough
CT: control target
= control target key end

     0   :  { %s1388_s15 = smov 0   ;;  %s1390_s16 = smov 0   ;;  %s1562_s0 = inlined_call_operand.vmem [shape: bf16[22272,128], index: 0, kind: input, shape index: {}]   ;;  %s1563_s1 = inlined_call_operand.vmem [shape: bf16[128,128], index: 1, kind: input, shape index: {}]   ;;  %s1564_s2 = inlined_call_operand.vmem [shape: f32[1,128], index: 2, kind: input, shape index: {}]   ;;  %s1565_s3 = inlined_call_operand.vmem [shape: f32[1,128], index: 3, kind: input, shape index: {}]   ;;  %s1566_s4 = inlined_call_operand.vmem [shape: bf16[22272,128], index: 4, kind: output, shape index: {}]  }
   0x1   :  { %s1392_s17 = smov 0  }
   0x2 LB: > { %s26_s18 = sadd.s32 1, %s1357_s16  ;;  %p1011_p0 = scmp.ge.s32.totalorder %s1361_s17, 1  ;;  %s1361_s17 = sphi %s1392_s17, %s14_s17   ;;  %s1357_s16 = sphi %s1390_s16, %s1568_s16   ;;  %s1353_s15 = sphi %s1388_s15, %s1567_s15  }
   0x3   : > { %p28_p1 = scmp.ge.s32.totalorder %s26_s18, 87  ;;  %p202_p2 = scmp.lt.s32.totalorder %s1361_s17, 88 }
   0x5   : > { %s1570_s18 = smov (%p28_p1, %s26_s18), 0  ;;  %p203_p3 = pnand %p1011_p0, %p202_p2 }
   0x6   : > { %v1315_v0 = vld [vmem:[%s1563_s1] sm:$0xff] (!%p203_p3)   ;;  %s1012_s21 = sshll.u32 (!%p203_p3), %s1353_s15, 5  ;;  %v1316_v1 = vld [vmem:[%s1563_s1 + $0x8] sm:$0xff] (!%p203_p3)   ;;  %v1317_v2 = vld [vmem:[%s1563_s1 + $0x10] sm:$0xff] (!%p203_p3)  }
   0x7   : > { %206 = sbr.rel (%p203_p3) target bundleno = 288 (0x120), region = 36  ;;  %p242_p4 = scmp.lt.s32.totalorder (!%p203_p3), %s1012_s21, 2783  ;;  %1227 = vmatprep.subr.bf16.mxu0 (!%p203_p3), %v1315_v0  ;;  %1275 = vmatprep.subr.bf16.mxu1 (!%p203_p3), %v1315_v0  ;;  %v1318_v3 = vld [vmem:[%s1563_s1 + $0x18] sm:$0xff] (!%p203_p3)   ;;  %v1319_v6 = vld [vmem:[%s1563_s1 + $0x20] sm:$0xff] (!%p203_p3)   ;;  %v1320_v7 = vld [vmem:[%s1563_s1 + $0x28] sm:$0xff] (!%p203_p3)  }
   0x8   : > { %1228 = vmatpush3.bf16.msra.mxu0 (!%p203_p3), %v1315_v0  ;;  %1283 = vmatpush3.bf16.msra.mxu1 (!%p203_p3), %v1315_v0  ;;  %v1321_v8 = vld [vmem:[%s1563_s1 + $0x30] sm:$0xff] (!%p203_p3)   ;;  %v1322_v9 = vld [vmem:[%s1563_s1 + $0x38] sm:$0xff] (!%p203_p3)   ;;  %v1459_v24 = vld [vmem:[%s1564_s2] ss:$0 sm:$0xff] (!%p203_p3) }
   0x9   : > { %1229 = vmatprep.subr.bf16.mxu0 (!%p203_p3), %v1316_v1  ;;  %1276 = vmatprep.subr.bf16.mxu1 (!%p203_p3), %v1316_v1  ;;  %v1464_v26 = vld [vmem:[%s1565_s3] ss:$0 sm:$0xff] (!%p203_p3) }
   0xc   : > { %1230 = vmatpush3.bf16.msra.mxu0 (!%p203_p3), %v1316_v1  ;;  %1284 = vmatpush3.bf16.msra.mxu1 (!%p203_p3), %v1316_v1 }
   0xd   : > { %1231 = vmatprep.subr.bf16.mxu0 (!%p203_p3), %v1317_v2  ;;  %1277 = vmatprep.subr.bf16.mxu1 (!%p203_p3), %v1317_v2 }
   0xe   : > { %s1572_s21 = smov (!%p242_p4, %s1012_s21), 2783 }
   0xf   : > { %s1013_s26 = sshll.u32 %s1572_s21, 2 }
  0x10   : > { %s1423_s29 = scalar_lea.vmem %s1562_s0, %s1013_s26  ;;  %1232 = vmatpush3.bf16.msra.mxu0 %v1317_v2  ;;  %1285 = vmatpush3.bf16.msra.mxu1 %v1317_v2  ;;  %s1487_s24 = scalar_lea.vmem %s1566_s4, %s1013_s26 }
  0x11   : > { %v1323_v4 = vld [vmem:[%s1423_s29] sm:$0xff]   ;;  %1233 = vmatprep.subr.bf16.mxu0 %v1318_v3  ;;  %1278 = vmatprep.subr.bf16.mxu1 %v1318_v3  ;;  %v1325_v10 = vld [vmem:[%s1423_s29 + $0x8] sm:$0xff]   ;;  %v1327_v12 = vld [vmem:[%s1423_s29 + $0x10] sm:$0xff]  }
  0x12   : > { %v1324_v5 = vld [vmem:[%s1423_s29 + $0x40] sm:$0xff]   ;;  %1243 = vmatprep.mubr.bf16.mxu0 %v1323_v4  ;;  %v1326_v11 = vld [vmem:[%s1423_s29 + $0x48] sm:$0xff]   ;;  %v1328_v13 = vld [vmem:[%s1423_s29 + $0x50] sm:$0xff]  }
  0x13   : > { %1259 = vmatprep.mubr.bf16.mxu1 %v1324_v5  ;;  %v1329_v14 = vld [vmem:[%s1423_s29 + $0x18] sm:$0xff]   ;;  %v1331_v16 = vld [vmem:[%s1423_s29 + $0x20] sm:$0xff]   ;;  %v1333_v18 = vld [vmem:[%s1423_s29 + $0x28] sm:$0xff]  }
  0x14   : > { %1234 = vmatpush3.bf16.msra.mxu0 %v1318_v3  ;;  %1286 = vmatpush3.bf16.msra.mxu1 %v1318_v3  ;;  %v1330_v15 = vld [vmem:[%s1423_s29 + $0x58] sm:$0xff]   ;;  %v1332_v17 = vld [vmem:[%s1423_s29 + $0x60] sm:$0xff]   ;;  %v1334_v19 = vld [vmem:[%s1423_s29 + $0x68] sm:$0xff]  }
  0x15   : > { %1235 = vmatprep.subr.bf16.mxu0 %v1319_v6  ;;  %1279 = vmatprep.subr.bf16.mxu1 %v1319_v6  ;;  %v1335_v20 = vld [vmem:[%s1423_s29 + $0x30] sm:$0xff]   ;;  %v1337_v22 = vld [vmem:[%s1423_s29 + $0x38] sm:$0xff]  }
  0x16   : > { %v1336_v21 = vld [vmem:[%s1423_s29 + $0x70] sm:$0xff]   ;;  %v1338_v23 = vld [vmem:[%s1423_s29 + $0x78] sm:$0xff]  }
  0x18   : > { %1236 = vmatpush3.bf16.msra.mxu0 %v1319_v6  ;;  %1287 = vmatpush3.bf16.msra.mxu1 %v1319_v6 }
  0x19   : > { %1237 = vmatprep.subr.bf16.mxu0 %v1320_v7  ;;  %1280 = vmatprep.subr.bf16.mxu1 %v1320_v7 }
  0x1c   : > { %1238 = vmatpush3.bf16.msra.mxu0 %v1320_v7  ;;  %1288 = vmatpush3.bf16.msra.mxu1 %v1320_v7 }
  0x1d   : > { %1239 = vmatprep.subr.bf16.mxu0 %v1321_v8  ;;  %1281 = vmatprep.subr.bf16.mxu1 %v1321_v8 }
  0x20   : > { %1240 = vmatpush3.bf16.msra.mxu0 %v1321_v8  ;;  %1289 = vmatpush3.bf16.msra.mxu1 %v1321_v8 }
  0x21   : > { %1241 = vmatprep.subr.bf16.mxu0 %v1322_v9  ;;  %1282 = vmatprep.subr.bf16.mxu1 %v1322_v9 }
  0x24   : > { %1242 = vmatpush3.bf16.msra.mxu0 %v1322_v9  ;;  %1290 = vmatpush3.bf16.msra.mxu1 %v1322_v9 }
  0x27   : > { %1244 = vmatmul.mubr.bf16.vlgmr.msra.gmra.mrb[0].mxu0 %v1325_v10  ;;  %1260 = vmatmul.mubr.bf16.vlgmr.msra.gmra.mrb[0].mxu1 %v1326_v11 }
  0x28   : > { %1247 = vmatprep.mubr.bf16.mxu0 %v1327_v12  ;;  %1263 = vmatprep.mubr.bf16.mxu1 %v1328_v13 }
  0x2f   : > { %1248 = vmatmul.mubr.bf16.gmra.mrb[4].mxu0 %v1329_v14  ;;  %1264 = vmatmul.mubr.bf16.gmra.mrb[4].mxu1 %v1330_v15 }
  0x30   : > { %1251 = vmatprep.mubr.bf16.mxu0 %v1331_v16  ;;  %1267 = vmatprep.mubr.bf16.mxu1 %v1332_v17 }
  0x37   : > { %1252 = vmatmul.mubr.bf16.gmra.mrb[8].mxu0 %v1333_v18  ;;  %1268 = vmatmul.mubr.bf16.gmra.mrb[8].mxu1 %v1334_v19 }
  0x38   : > { %1255 = vmatprep.mubr.bf16.mxu0 %v1335_v20  ;;  %1271 = vmatprep.mubr.bf16.mxu1 %v1336_v21 }
  0x3f   : > { %1256 = vmatmul.mubr.bf16.gmra.mrb[12].mxu0 %v1337_v22  ;;  %1272 = vmatmul.mubr.bf16.gmra.mrb[12].mxu1 %v1338_v23 }
  0xfa   : > { %v1245_v25 = vpop.f32.mrb[0].mxu0  ;;  %v1261_v27 = vpop.f32.mrb[0].mxu1 }
  0xfb   : > { %v629_v28 = vmul.f32 %v1245_v25, %v1459_v24  ;;  %v645_v29 = vmul.f32 %v1261_v27, %v1459_v24  ;;  %v493_v30 = vpop.f32.mrb[1].mxu0  ;;  %v557_v31 = vpop.f32.mrb[1].mxu1 }
  0xfc   : > { %v627_v32 = vmul.f32 %v1459_v24, %v493_v30  ;;  %v643_v33 = vmul.f32 %v1459_v24, %v557_v31  ;;  %v1246_v34 = vpop.f32.mrb[2].mxu0  ;;  %v1262_v35 = vpop.f32.mrb[2].mxu1 }
  0xfd   : > { %v668_v36 = vadd.f32 %v1464_v26, %v629_v28  ;;  %v684_v37 = vadd.f32 %v1464_v26, %v645_v29  ;;  %v630_v38 = vmul.f32 %v1246_v34, %v1459_v24  ;;  %v646_v39 = vmul.f32 %v1262_v35, %v1459_v24  ;;  %v496_v40 = vpop.f32.mrb[3].mxu0  ;;  %v560_v41 = vpop.f32.mrb[3].mxu1 }
  0xfe   : > { %v666_v42 = vadd.f32 %v1464_v26, %v627_v32  ;;  %v682_v43 = vadd.f32 %v1464_v26, %v643_v33  ;;  %v628_v44 = vmul.f32 %v1459_v24, %v496_v40  ;;  %v644_v45 = vmul.f32 %v1459_v24, %v560_v41 }
  0xff   : > { %v669_v46 = vadd.f32 %v1464_v26, %v630_v38  ;;  %v685_v47 = vadd.f32 %v1464_v26, %v646_v39  ;;  %v700_v50 = vmax.f32 %v668_v36, 0.0  ;;  %v716_v51 = vmax.f32 %v684_v37, 0.0 }
 0x100   : > { %v667_v48 = vadd.f32 %v1464_v26, %v628_v44  ;;  %v683_v49 = vadd.f32 %v1464_v26, %v644_v45  ;;  %v698_v54 = vmax.f32 %v666_v42, 0.0  ;;  %v714_v55 = vmax.f32 %v682_v43, 0.0 }
 0x101   : > { %v701_v52 = vmax.f32 %v669_v46, 0.0  ;;  %v717_v53 = vmax.f32 %v685_v47, 0.0 }
 0x102   : > { %v699_v56 = vmax.f32 %v667_v48, 0.0  ;;  %v715_v57 = vmax.f32 %v683_v49, 0.0  ;;  %v1249_v58 = vpop.f32.mrb[4].mxu0  ;;  %v1265_v59 = vpop.f32.mrb[4].mxu1 }
 0x103   : > { %v1116_v60 = vpack.c.bf16 %v701_v52, %v700_v50  ;;  %v1156_v61 = vpack.c.bf16 %v717_v53, %v716_v51  ;;  %v633_v62 = vmul.f32 %v1249_v58, %v1459_v24  ;;  %v649_v63 = vmul.f32 %v1265_v59, %v1459_v24  ;;  %v509_v0 = vpop.f32.mrb[5].mxu0  ;;  %v573_v1 = vpop.f32.mrb[5].mxu1 }
 0x104   : > { %v1111_v2 = vpack.c.bf16 %v699_v56, %v698_v54  ;;  %v1151_v3 = vpack.c.bf16 %v715_v57, %v714_v55  ;;  %v631_v4 = vmul.f32 %v1459_v24, %v509_v0  ;;  %v647_v5 = vmul.f32 %v1459_v24, %v573_v1  ;;  %v1250_v6 = vpop.f32.mrb[6].mxu0  ;;  %v1266_v7 = vpop.f32.mrb[6].mxu1 }
 0x105   : > { %1188 = vst [vmem:[%s1487_s24 + $0x8] sm:$0xff] %v1116_v60   ;;  %1196 = vst [vmem:[%s1487_s24 + $0x48] sm:$0xff] %v1156_v61   ;;  %v672_v8 = vadd.f32 %v1464_v26, %v633_v62  ;;  %v688_v9 = vadd.f32 %v1464_v26, %v649_v63  ;;  %v634_v10 = vmul.f32 %v1250_v6, %v1459_v24  ;;  %v512_v12 = vpop.f32.mrb[7].mxu0  ;;  %v576_v13 = vpop.f32.mrb[7].mxu1 }
 0x106   : > { %v650_v11 = vmul.f32 %v1266_v7, %v1459_v24  ;;  %1112 = vst [vmem:[%s1487_s24] sm:$0xff] %v1111_v2   ;;  %1195 = vst [vmem:[%s1487_s24 + $0x40] sm:$0xff] %v1151_v3   ;;  %v670_v14 = vadd.f32 %v1464_v26, %v631_v4  ;;  %v686_v15 = vadd.f32 %v1464_v26, %v647_v5 }
 0x107   : > { %v632_v16 = vmul.f32 %v1459_v24, %v512_v12  ;;  %v648_v17 = vmul.f32 %v1459_v24, %v576_v13  ;;  %v673_v18 = vadd.f32 %v1464_v26, %v634_v10  ;;  %v704_v22 = vmax.f32 %v672_v8, 0.0 }
 0x108   : > { %v689_v19 = vadd.f32 %v1464_v26, %v650_v11  ;;  %v720_v23 = vmax.f32 %v688_v9, 0.0  ;;  %v702_v28 = vmax.f32 %v670_v14, 0.0  ;;  %v718_v29 = vmax.f32 %v686_v15, 0.0 }
 0x109   : > { %v671_v20 = vadd.f32 %v1464_v26, %v632_v16  ;;  %v687_v21 = vadd.f32 %v1464_v26, %v648_v17  ;;  %v705_v25 = vmax.f32 %v673_v18, 0.0 }
 0x10a   : > { %v721_v27 = vmax.f32 %v689_v19, 0.0  ;;  %v1253_v32 = vpop.f32.mrb[8].mxu0  ;;  %v1269_v33 = vpop.f32.mrb[8].mxu1 }
 0x10b   : > { %v703_v30 = vmax.f32 %v671_v20, 0.0  ;;  %v719_v31 = vmax.f32 %v687_v21, 0.0  ;;  %v1126_v34 = vpack.c.bf16 %v705_v25, %v704_v22  ;;  %v637_v36 = vmul.f32 %v1253_v32, %v1459_v24  ;;  %v525_v38 = vpop.f32.mrb[9].mxu0  ;;  %v589_v39 = vpop.f32.mrb[9].mxu1 }
 0x10c   : > { %v1166_v35 = vpack.c.bf16 %v721_v27, %v720_v23  ;;  %v653_v37 = vmul.f32 %v1269_v33, %v1459_v24  ;;  %v635_v42 = vmul.f32 %v1459_v24, %v525_v38  ;;  %v651_v43 = vmul.f32 %v1459_v24, %v589_v39  ;;  %v1254_v44 = vpop.f32.mrb[10].mxu0  ;;  %v1270_v45 = vpop.f32.mrb[10].mxu1 }
 0x10d   : > { %v1121_v40 = vpack.c.bf16 %v703_v30, %v702_v28  ;;  %v1161_v41 = vpack.c.bf16 %v719_v31, %v718_v29  ;;  %1190 = vst [vmem:[%s1487_s24 + $0x18] sm:$0xff] %v1126_v34   ;;  %v676_v46 = vadd.f32 %v1464_v26, %v637_v36  ;;  %v638_v48 = vmul.f32 %v1254_v44, %v1459_v24  ;;  %v528_v50 = vpop.f32.mrb[11].mxu0  ;;  %v592_v51 = vpop.f32.mrb[11].mxu1 }
 0x10e   : > { %1198 = vst [vmem:[%s1487_s24 + $0x58] sm:$0xff] %v1166_v35   ;;  %v692_v47 = vadd.f32 %v1464_v26, %v653_v37  ;;  %v654_v49 = vmul.f32 %v1270_v45, %v1459_v24  ;;  %v674_v52 = vadd.f32 %v1464_v26, %v635_v42  ;;  %v690_v53 = vadd.f32 %v1464_v26, %v651_v43 }
 0x10f   : > { %1189 = vst [vmem:[%s1487_s24 + $0x10] sm:$0xff] %v1121_v40   ;;  %1197 = vst [vmem:[%s1487_s24 + $0x50] sm:$0xff] %v1161_v41   ;;  %v636_v54 = vmul.f32 %v1459_v24, %v528_v50  ;;  %v652_v55 = vmul.f32 %v1459_v24, %v592_v51  ;;  %v677_v56 = vadd.f32 %v1464_v26, %v638_v48  ;;  %v708_v60 = vmax.f32 %v676_v46, 0.0 }
 0x110   : > { %v693_v57 = vadd.f32 %v1464_v26, %v654_v49  ;;  %v724_v61 = vmax.f32 %v692_v47, 0.0  ;;  %v706_v0 = vmax.f32 %v674_v52, 0.0  ;;  %v722_v1 = vmax.f32 %v690_v53, 0.0 }
 0x111   : > { %v675_v58 = vadd.f32 %v1464_v26, %v636_v54  ;;  %v691_v59 = vadd.f32 %v1464_v26, %v652_v55  ;;  %v709_v62 = vmax.f32 %v677_v56, 0.0 }
 0x112   : > { %v725_v63 = vmax.f32 %v693_v57, 0.0  ;;  %v1257_v4 = vpop.f32.mrb[12].mxu0  ;;  %v1273_v5 = vpop.f32.mrb[12].mxu1 }
 0x113   : > { %v707_v2 = vmax.f32 %v675_v58, 0.0  ;;  %v723_v3 = vmax.f32 %v691_v59, 0.0  ;;  %v1136_v6 = vpack.c.bf16 %v709_v62, %v708_v60  ;;  %v641_v8 = vmul.f32 %v1257_v4, %v1459_v24  ;;  %v541_v10 = vpop.f32.mrb[13].mxu0  ;;  %v605_v11 = vpop.f32.mrb[13].mxu1 }
 0x114   : > { %v1176_v7 = vpack.c.bf16 %v725_v63, %v724_v61  ;;  %v657_v9 = vmul.f32 %v1273_v5, %v1459_v24  ;;  %v639_v14 = vmul.f32 %v1459_v24, %v541_v10  ;;  %v655_v15 = vmul.f32 %v1459_v24, %v605_v11  ;;  %v1258_v16 = vpop.f32.mrb[14].mxu0  ;;  %v1274_v17 = vpop.f32.mrb[14].mxu1 }
 0x115   : > { %v1131_v12 = vpack.c.bf16 %v707_v2, %v706_v0  ;;  %v1171_v13 = vpack.c.bf16 %v723_v3, %v722_v1  ;;  %1192 = vst [vmem:[%s1487_s24 + $0x28] sm:$0xff] %v1136_v6   ;;  %v680_v18 = vadd.f32 %v1464_v26, %v641_v8  ;;  %v642_v20 = vmul.f32 %v1258_v16, %v1459_v24  ;;  %v544_v22 = vpop.f32.mrb[15].mxu0  ;;  %v608_v23 = vpop.f32.mrb[15].mxu1 }
 0x116   : > { %1200 = vst [vmem:[%s1487_s24 + $0x68] sm:$0xff] %v1176_v7   ;;  %v696_v19 = vadd.f32 %v1464_v26, %v657_v9  ;;  %v658_v21 = vmul.f32 %v1274_v17, %v1459_v24  ;;  %v678_v25 = vadd.f32 %v1464_v26, %v639_v14  ;;  %v694_v27 = vadd.f32 %v1464_v26, %v655_v15 }
 0x117   : > { %1191 = vst [vmem:[%s1487_s24 + $0x20] sm:$0xff] %v1131_v12   ;;  %1199 = vst [vmem:[%s1487_s24 + $0x60] sm:$0xff] %v1171_v13   ;;  %v640_v28 = vmul.f32 %v1459_v24, %v544_v22  ;;  %v656_v29 = vmul.f32 %v1459_v24, %v608_v23  ;;  %v681_v30 = vadd.f32 %v1464_v26, %v642_v20  ;;  %v712_v34 = vmax.f32 %v680_v18, 0.0 }
 0x118   : > { %v697_v31 = vadd.f32 %v1464_v26, %v658_v21  ;;  %v728_v35 = vmax.f32 %v696_v19, 0.0  ;;  %v710_v38 = vmax.f32 %v678_v25, 0.0  ;;  %v726_v39 = vmax.f32 %v694_v27, 0.0 }
 0x119   : > { %v679_v32 = vadd.f32 %v1464_v26, %v640_v28  ;;  %v695_v33 = vadd.f32 %v1464_v26, %v656_v29  ;;  %v713_v36 = vmax.f32 %v681_v30, 0.0 }
 0x11a   : > { %v729_v37 = vmax.f32 %v697_v31, 0.0 }
 0x11b   : > { %v711_v40 = vmax.f32 %v679_v32, 0.0  ;;  %v727_v24 = vmax.f32 %v695_v33, 0.0  ;;  %v1146_v41 = vpack.c.bf16 %v713_v36, %v712_v34 }
 0x11c   : > { %v1186_v42 = vpack.c.bf16 %v729_v37, %v728_v35 }
 0x11d   : > { %v1141_v43 = vpack.c.bf16 %v711_v40, %v710_v38  ;;  %v1181_v44 = vpack.c.bf16 %v727_v24, %v726_v39  ;;  %1194 = vst [vmem:[%s1487_s24 + $0x38] sm:$0xff] %v1146_v41  }
 0x11e   : > { %1202 = vst [vmem:[%s1487_s24 + $0x78] sm:$0xff] %v1186_v42  }
 0x11f   : > { %1193 = vst [vmem:[%s1487_s24 + $0x30] sm:$0xff] %v1141_v43   ;;  %1201 = vst [vmem:[%s1487_s24 + $0x70] sm:$0xff] %v1181_v44  }
 0x120 PF: > { %s14_s17 = sadd.s32 1, %s1361_s17   ;;  %s1567_s15 = smov %s1357_s16 }
 0x121   : > { %p11_p5 = scmp.ge.s32.totalorder %s14_s17, 89   ;;  %s1568_s16 = smov %s1570_s18 }
 0x123   :  { %13 = sbr.rel (!%p11_p5) target bundleno = 2 (0x2), region = 75 }

// kernel: stem_fwd.11
= control target key start
LH: loop header
LB: loop body
LE: loop exit
PB: predicated region body
PF: predicated region fallthrough
CT: control target
= control target key end

     0   :  { %s2097_s15 = smov 0   ;;  %s2099_s16 = smov 0   ;;  %s2378_s0 = inlined_call_operand.vmem [shape: bf16[21760,384], index: 0, kind: input, shape index: {}]   ;;  %s2379_s1 = inlined_call_operand.vmem [shape: bf16[384,128], index: 1, kind: input, shape index: {}]   ;;  %s2380_s2 = inlined_call_operand.vmem [shape: f32[1,128], index: 2, kind: input, shape index: {}]   ;;  %s2381_s3 = inlined_call_operand.vmem [shape: f32[1,128], index: 3, kind: input, shape index: {}]   ;;  %s2382_s4 = inlined_call_operand.vmem [shape: bf16[21760,128], index: 4, kind: output, shape index: {}]  }
   0x1   :  { %s2101_s17 = smov 0  }
   0x2 LB: > { %s26_s18 = sadd.s32 1, %s2066_s16  ;;  %p1495_p0 = scmp.ge.s32.totalorder %s2070_s17, 1  ;;  %s2070_s17 = sphi %s2101_s17, %s14_s17   ;;  %s2066_s16 = sphi %s2099_s16, %s2384_s16   ;;  %s2062_s15 = sphi %s2097_s15, %s2383_s15  }
   0x3   : > { %p28_p1 = scmp.ge.s32.totalorder %s26_s18, 85  ;;  %p203_p2 = scmp.lt.s32.totalorder %s2070_s17, 86 }
   0x5   : > { %s2386_s18 = smov (%p28_p1, %s26_s18), 0  ;;  %p204_p3 = pnand %p1495_p0, %p203_p2 }
   0x6   : > { %v1960_v0 = vld [vmem:[%s2379_s1 + $0x40] sm:$0xff] (!%p204_p3)   ;;  %s1496_s21 = sshll.u32 (!%p204_p3), %s2062_s15, 5  ;;  %v1962_v2 = vld [vmem:[%s2379_s1 + $0x48] sm:$0xff] (!%p204_p3)   ;;  %v1964_v4 = vld [vmem:[%s2379_s1 + $0x50] sm:$0xff] (!%p204_p3)  }
   0x7   : > { %207 = sbr.rel (%p204_p3) target bundleno = 355 (0x163), region = 36  ;;  %v1961_v1 = vld [vmem:[%s2379_s1] sm:$0xff] (!%p204_p3)   ;;  %1735 = vmatprep.subr.bf16.mxu0 (!%p204_p3), %v1960_v0  ;;  %1919 = vmatprep.subr.bf16.mxu1 (!%p204_p3), %v1960_v0  ;;  %p244_p4 = scmp.lt.s32.totalorder (!%p204_p3), %s1496_s21, 2719  ;;  %v1963_v3 = vld [vmem:[%s2379_s1 + $0x8] sm:$0xff] (!%p204_p3)   ;;  %v1965_v5 = vld [vmem:[%s2379_s1 + $0x10] sm:$0xff] (!%p204_p3)  }
   0x8   : > { %1736 = vmatpush3.bf16.msra.mxu0 (!%p204_p3), %v1961_v1  ;;  %1927 = vmatpush3.bf16.msra.mxu1 (!%p204_p3), %v1961_v1  ;;  %v1966_v6 = vld [vmem:[%s2379_s1 + $0x58] sm:$0xff] (!%p204_p3)   ;;  %v1968_v8 = vld [vmem:[%s2379_s1 + $0x60] sm:$0xff] (!%p204_p3)   ;;  %v1970_v10 = vld [vmem:[%s2379_s1 + $0x68] sm:$0xff] (!%p204_p3)  }
   0x9   : > { %1737 = vmatprep.subr.bf16.mxu0 (!%p204_p3), %v1962_v2  ;;  %1920 = vmatprep.subr.bf16.mxu1 (!%p204_p3), %v1962_v2  ;;  %v1967_v7 = vld [vmem:[%s2379_s1 + $0x18] sm:$0xff] (!%p204_p3)   ;;  %v1969_v9 = vld [vmem:[%s2379_s1 + $0x20] sm:$0xff] (!%p204_p3)   ;;  %v1971_v13 = vld [vmem:[%s2379_s1 + $0x28] sm:$0xff] (!%p204_p3)  }
   0xa   : > { %v1972_v14 = vld [vmem:[%s2379_s1 + $0x70] sm:$0xff] (!%p204_p3)   ;;  %v1974_v16 = vld [vmem:[%s2379_s1 + $0x78] sm:$0xff] (!%p204_p3)   ;;  %v1982_v18 = vld [vmem:[%s2379_s1 + $0x80] sm:$0xff] (!%p204_p3)  }
   0xb   : > { %v1973_v15 = vld [vmem:[%s2379_s1 + $0x30] sm:$0xff] (!%p204_p3)   ;;  %v1975_v17 = vld [vmem:[%s2379_s1 + $0x38] sm:$0xff] (!%p204_p3)   ;;  %v1983_v22 = vld [vmem:[%s2379_s1 + $0x88] sm:$0xff] (!%p204_p3)  }
   0xc   : > { %1738 = vmatpush3.bf16.msra.mxu0 (!%p204_p3), %v1963_v3  ;;  %1928 = vmatpush3.bf16.msra.mxu1 (!%p204_p3), %v1963_v3  ;;  %v1990_v25 = vld [vmem:[%s2379_s1 + $0x90] sm:$0xff] (!%p204_p3)   ;;  %v1991_v27 = vld [vmem:[%s2379_s1 + $0x98] sm:$0xff] (!%p204_p3)   ;;  %v1998_v30 = vld [vmem:[%s2379_s1 + $0xa0] sm:$0xff] (!%p204_p3)  }
   0xd   : > { %1739 = vmatprep.subr.bf16.mxu0 (!%p204_p3), %v1964_v4  ;;  %1921 = vmatprep.subr.bf16.mxu1 (!%p204_p3), %v1964_v4  ;;  %v1999_v33 = vld [vmem:[%s2379_s1 + $0xa8] sm:$0xff] (!%p204_p3)   ;;  %v2006_v36 = vld [vmem:[%s2379_s1 + $0xb0] sm:$0xff] (!%p204_p3)   ;;  %v2007_v40 = vld [vmem:[%s2379_s1 + $0xb8] sm:$0xff] (!%p204_p3)  }
   0xe   : > { %s2388_s21 = smov (!%p244_p4, %s1496_s21), 2719 }
   0xf   : > { %s1935_s8 = smul.u32 12, %s2388_s21  ;;  %s1499_s6 = sshll.u32 %s2388_s21, 2 }
  0x10   : > { %1740 = vmatpush3.bf16.msra.mxu0 %v1965_v5  ;;  %1929 = vmatpush3.bf16.msra.mxu1 %v1965_v5  ;;  %s2281_s9 = scalar_lea.vmem %s2382_s4, %s1499_s6 }
  0x11   : > { %1741 = vmatprep.subr.bf16.mxu0 %v1966_v6  ;;  %1922 = vmatprep.subr.bf16.mxu1 %v1966_v6  ;;  %s2148_s15 = scalar_lea.vmem %s2378_s0, %s1935_s8 }
  0x12   : > { %v1978_v11 = vld [vmem:[%s2148_s15 + $0x4] ss:$12 sps:$4 sm:$0xff]   ;;  %v1976_v19 = vld [vmem:[%s2148_s15] ss:$12 sps:$4 sm:$0xff]   ;;  %v1984_v21 = vld [vmem:[%s2148_s15 + $0x1c] ss:$12 sps:$4 sm:$0xff]  }
  0x13   : > { %v1981_v12 = vld [vmem:[%s2148_s15 + $0x124] ss:$12 sps:$4 sm:$0xff]   ;;  %814 = vmatprep.mubr.bf16.mxu0 %v1978_v11  ;;  %v1979_v20 = vld [vmem:[%s2148_s15 + $0x120] ss:$12 sps:$4 sm:$0xff]   ;;  %v1986_v23 = vld [vmem:[%s2148_s15 + $0x13c] ss:$12 sps:$4 sm:$0xff]  }
  0x14   : > { %1742 = vmatpush3.bf16.msra.mxu0 %v1967_v7  ;;  %1930 = vmatpush3.bf16.msra.mxu1 %v1967_v7  ;;  %v1988_v24 = vld [vmem:[%s2148_s15 + $0x18] ss:$12 sps:$4 sm:$0xff]   ;;  %v1992_v28 = vld [vmem:[%s2148_s15 + $0x34] ss:$12 sps:$4 sm:$0xff]   ;;  %v1996_v31 = vld [vmem:[%s2148_s15 + $0x30] ss:$12 sps:$4 sm:$0xff]  }
  0x15   : > { %1743 = vmatprep.subr.bf16.mxu0 %v1968_v8  ;;  %1923 = vmatprep.subr.bf16.mxu1 %v1968_v8  ;;  %v1989_v26 = vld [vmem:[%s2148_s15 + $0x138] ss:$12 sps:$4 sm:$0xff]   ;;  %v1994_v29 = vld [vmem:[%s2148_s15 + $0x154] ss:$12 sps:$4 sm:$0xff]   ;;  %v1997_v32 = vld [vmem:[%s2148_s15 + $0x150] ss:$12 sps:$4 sm:$0xff]  }
  0x16   : > { %910 = vmatprep.mubr.bf16.mxu1 %v1981_v12  ;;  %v2000_v34 = vld [vmem:[%s2148_s15 + $0x4c] ss:$12 sps:$4 sm:$0xff]   ;;  %v2004_v37 = vld [vmem:[%s2148_s15 + $0x48] ss:$12 sps:$4 sm:$0xff]   ;;  %v2008_v39 = vld [vmem:[%s2148_s15 + $0x64] ss:$12 sps:$4 sm:$0xff]  }
  0x17   : > { %v2002_v35 = vld [vmem:[%s2148_s15 + $0x16c] ss:$12 sps:$4 sm:$0xff]   ;;  %v2005_v38 = vld [vmem:[%s2148_s15 + $0x168] ss:$12 sps:$4 sm:$0xff]   ;;  %v2017_v47 = vld [vmem:[%s2148_s15 + $0x50] ss:$12 sps:$4 sm:$0xff]  }
  0x18   : > { %1744 = vmatpush3.bf16.msra.mxu0 %v1969_v9  ;;  %1931 = vmatpush3.bf16.msra.mxu1 %v1969_v9  ;;  %v2010_v41 = vld [vmem:[%s2148_s15 + $0x8] ss:$12 sps:$4 sm:$0xff]   ;;  %v2011_v42 = vld [vmem:[%s2148_s15 + $0x60] ss:$12 sps:$4 sm:$0xff]   ;;  %v2015_v45 = vld [vmem:[%s2148_s15 + $0x38] ss:$12 sps:$4 sm:$0xff]  }
  0x19   : > { %1745 = vmatprep.subr.bf16.mxu0 %v1970_v10  ;;  %1924 = vmatprep.subr.bf16.mxu1 %v1970_v10  ;;  %v2012_v43 = vld [vmem:[%s2148_s15 + $0x20] ss:$12 sps:$4 sm:$0xff]   ;;  %v2013_v44 = vld [vmem:[%s2148_s15 + $0x7c] ss:$12 sps:$4 sm:$0xff]   ;;  %v2016_v46 = vld [vmem:[%s2148_s15 + $0x78] ss:$12 sps:$4 sm:$0xff]  }
  0x1a   : > { %v2018_v48 = vld [vmem:[%s2148_s15 + $0x94] ss:$12 sps:$4 sm:$0xff]   ;;  %v2021_v50 = vld [vmem:[%s2148_s15 + $0x90] ss:$12 sps:$4 sm:$0xff]   ;;  %v2023_v52 = vld [vmem:[%s2148_s15 + $0xac] ss:$12 sps:$4 sm:$0xff]  }
  0x1b   : > { %v2020_v49 = vld [vmem:[%s2148_s15 + $0x68] ss:$12 sps:$4 sm:$0xff]   ;;  %v2022_v51 = vld [vmem:[%s2148_s15 + $0x80] ss:$12 sps:$4 sm:$0xff]   ;;  %v2025_v53 = vld [vmem:[%s2148_s15 + $0x98] ss:$12 sps:$4 sm:$0xff]  }
  0x1c   : > { %1746 = vmatpush3.bf16.msra.mxu0 %v1971_v13  ;;  %1932 = vmatpush3.bf16.msra.mxu1 %v1971_v13  ;;  %v2026_v54 = vld [vmem:[%s2148_s15 + $0xa8] ss:$12 sps:$4 sm:$0xff]   ;;  %v2027_v55 = vld [vmem:[%s2148_s15 + $0xb0] ss:$12 sps:$4 sm:$0xff]   ;;  %v2031_v58 = vld [vmem:[%s2148_s15 + $0xc0] ss:$12 sps:$4 sm:$0xff]  }
  0x1d   : > { %1747 = vmatprep.subr.bf16.mxu0 %v1972_v14  ;;  %1925 = vmatprep.subr.bf16.mxu1 %v1972_v14  ;;  %v2028_v56 = vld [vmem:[%s2148_s15 + $0xc4] ss:$12 sps:$4 sm:$0xff]   ;;  %v2030_v57 = vld [vmem:[%s2148_s15 + $0xc8] ss:$12 sps:$4 sm:$0xff]   ;;  %v2032_v59 = vld [vmem:[%s2148_s15 + $0xe0] ss:$12 sps:$4 sm:$0xff]  }
  0x1e   : > { %v2033_v60 = vld [vmem:[%s2148_s15 + $0xdc] ss:$12 sps:$4 sm:$0xff]   ;;  %v2035_v61 = vld [vmem:[%s2148_s15 + $0xf8] ss:$12 sps:$4 sm:$0xff]   ;;  %v2038_v0 = vld [vmem:[%s2148_s15 + $0xf4] ss:$12 sps:$4 sm:$0xff]  }
  0x1f   : > { %v2036_v62 = vld [vmem:[%s2148_s15 + $0xd8] ss:$12 sps:$4 sm:$0xff]   ;;  %v2037_v63 = vld [vmem:[%s2148_s15 + $0x110] ss:$12 sps:$4 sm:$0xff]   ;;  %v2040_v1 = vld [vmem:[%s2148_s15 + $0x128] ss:$12 sps:$4 sm:$0xff]  }
  0x20   : > { %1748 = vmatpush3.bf16.msra.mxu0 %v1973_v15  ;;  %1933 = vmatpush3.bf16.msra.mxu1 %v1973_v15  ;;  %v2041_v2 = vld [vmem:[%s2148_s15 + $0xf0] ss:$12 sps:$4 sm:$0xff]   ;;  %v2042_v3 = vld [vmem:[%s2148_s15 + $0x140] ss:$12 sps:$4 sm:$0xff]   ;;  %v2045_v5 = vld [vmem:[%s2148_s15 + $0x158] ss:$12 sps:$4 sm:$0xff]  }
  0x21   : > { %1749 = vmatprep.subr.bf16.mxu0 %v1974_v16  ;;  %1926 = vmatprep.subr.bf16.mxu1 %v1974_v16  ;;  %v2043_v4 = vld [vmem:[%s2148_s15 + $0x10c] ss:$12 sps:$4 sm:$0xff]   ;;  %v2046_v6 = vld [vmem:[%s2148_s15 + $0x108] ss:$12 sps:$4 sm:$0xff]   ;;  %v2047_v7 = vld [vmem:[%s2148_s15 + $0x170] ss:$12 sps:$4 sm:$0xff]  }
  0x24   : > { %1750 = vmatpush3.bf16.msra.mxu0 %v1975_v17  ;;  %1934 = vmatpush3.bf16.msra.mxu1 %v1975_v17 }
  0x25   : > { %1871 = vmatprep.subr.bf16.mxu1 %v1982_v18 }
  0x27   : > { %815 = vmatmul.mubr.bf16.vlgmr.msra.gmra.mrb[0].mxu0 %v1976_v19  ;;  %911 = vmatmul.mubr.bf16.vlgmr.msra.gmra.mrb[0].mxu1 %v1979_v20 }
  0x28   : > { %1872 = vmatpush3.bf16.msra.mxu1 %v1982_v18  ;;  %822 = vmatprep.mubr.bf16.mxu0 %v1984_v21 }
  0x29   : > { %1873 = vmatprep.subr.bf16.mxu1 %v1983_v22  ;;  %918 = vmatprep.mubr.bf16.mxu1 %v1986_v23 }
  0x2c   : > { %1874 = vmatpush3.bf16.msra.mxu1 %v1983_v22 }
  0x2d   : > { %1875 = vmatprep.subr.bf16.mxu1 %v1990_v25 }
  0x2f   : > { %823 = vmatmul.mubr.bf16.gmra.mrb[4].mxu0 %v1988_v24  ;;  %919 = vmatmul.mubr.bf16.gmra.mrb[4].mxu1 %v1989_v26 }
  0x30   : > { %1876 = vmatpush3.bf16.msra.mxu1 %v1990_v25  ;;  %830 = vmatprep.mubr.bf16.mxu0 %v1992_v28 }
  0x31   : > { %1877 = vmatprep.subr.bf16.mxu1 %v1991_v27  ;;  %926 = vmatprep.mubr.bf16.mxu1 %v1994_v29 }
  0x34   : > { %1878 = vmatpush3.bf16.msra.mxu1 %v1991_v27 }
  0x35   : > { %1879 = vmatprep.subr.bf16.mxu1 %v1998_v30 }
  0x37   : > { %831 = vmatmul.mubr.bf16.gmra.mrb[8].mxu0 %v1996_v31  ;;  %927 = vmatmul.mubr.bf16.gmra.mrb[8].mxu1 %v1997_v32 }
  0x38   : > { %1880 = vmatpush3.bf16.msra.mxu1 %v1998_v30  ;;  %838 = vmatprep.mubr.bf16.mxu0 %v2000_v34 }
  0x39   : > { %1881 = vmatprep.subr.bf16.mxu1 %v1999_v33  ;;  %934 = vmatprep.mubr.bf16.mxu1 %v2002_v35 }
  0x3c   : > { %1882 = vmatpush3.bf16.msra.mxu1 %v1999_v33 }
  0x3d   : > { %1883 = vmatprep.subr.bf16.mxu1 %v2006_v36 }
  0x3f   : > { %839 = vmatmul.mubr.bf16.gmra.mrb[12].mxu0 %v2004_v37  ;;  %935 = vmatmul.mubr.bf16.gmra.mrb[12].mxu1 %v2005_v38 }
  0x40   : > { %1884 = vmatpush3.bf16.msra.mxu1 %v2006_v36  ;;  %846 = vmatprep.mubr.bf16.mxu0 %v2008_v39 }
  0x41   : > { %1885 = vmatprep.subr.bf16.mxu1 %v2007_v40  ;;  %1887 = vmatprep.mubr.bf16.mxu1 %v2010_v41 }
  0x44   : > { %1886 = vmatpush3.bf16.msra.mxu1 %v2007_v40 }
  0x47   : > { %847 = vmatmul.mubr.bf16.gmra.mrb[16].mxu0 %v2011_v42  ;;  %1888 = vmatmul.mubr.bf16.vlgmr.msra.gmra.mrb[16].mxu1 %v2012_v43 }
  0x48   : > { %854 = vmatprep.mubr.bf16.mxu0 %v2013_v44  ;;  %1891 = vmatprep.mubr.bf16.mxu1 %v2015_v45 }
  0x4f   : > { %855 = vmatmul.mubr.bf16.gmra.mrb[20].mxu0 %v2016_v46  ;;  %1892 = vmatmul.mubr.bf16.gmra.mrb[20].mxu1 %v2017_v47 }
  0x50   : > { %862 = vmatprep.mubr.bf16.mxu0 %v2018_v48  ;;  %1895 = vmatprep.mubr.bf16.mxu1 %v2020_v49 }
  0x57   : > { %863 = vmatmul.mubr.bf16.gmra.mrb[24].mxu0 %v2021_v50  ;;  %1896 = vmatmul.mubr.bf16.gmra.mrb[24].mxu1 %v2022_v51 }
  0x58   : > { %870 = vmatprep.mubr.bf16.mxu0 %v2023_v52  ;;  %1899 = vmatprep.mubr.bf16.mxu1 %v2025_v53 }
  0x5f   : > { %871 = vmatmul.mubr.bf16.gmra.mrb[28].mxu0 %v2026_v54  ;;  %1900 = vmatmul.mubr.bf16.gmra.mrb[28].mxu1 %v2027_v55 }
  0x60   : > { %878 = vmatprep.mubr.bf16.mxu0 %v2028_v56  ;;  %1903 = vmatprep.mubr.bf16.mxu1 %v2030_v57 }
  0x67   : > { %879 = vmatmul.mubr.bf16.gmra.mrb[32].mxu0 %v2031_v58  ;;  %1904 = vmatmul.mubr.bf16.gmra.mrb[32].mxu1 %v2032_v59  ;;  %v2262_v58 = vld [vmem:[%s2380_s2] ss:$0 sm:$0xff] }
  0x68   : > { %886 = vmatprep.mubr.bf16.mxu0 %v2033_v60  ;;  %1907 = vmatprep.mubr.bf16.mxu1 %v2035_v61 }
  0x6f   : > { %887 = vmatmul.mubr.bf16.gmra.mrb[36].mxu0 %v2036_v62  ;;  %1908 = vmatmul.mubr.bf16.gmra.mrb[36].mxu1 %v2037_v63  ;;  %v2267_v62 = vld [vmem:[%s2381_s3] ss:$0 sm:$0xff] }
  0x70   : > { %894 = vmatprep.mubr.bf16.mxu0 %v2038_v0  ;;  %1911 = vmatprep.mubr.bf16.mxu1 %v2040_v1 }
  0x77   : > { %895 = vmatmul.mubr.bf16.gmra.mrb[40].mxu0 %v2041_v2  ;;  %1912 = vmatmul.mubr.bf16.gmra.mrb[40].mxu1 %v2042_v3 }
  0x78   : > { %902 = vmatprep.mubr.bf16.mxu0 %v2043_v4  ;;  %1915 = vmatprep.mubr.bf16.mxu1 %v2045_v5 }
  0x7f   : > { %903 = vmatmul.mubr.bf16.gmra.mrb[44].mxu0 %v2046_v6  ;;  %1916 = vmatmul.mubr.bf16.gmra.mrb[44].mxu1 %v2047_v7 }
  0xfa   : > { %v1751_v8 = vpop.f32.mrb[0].mxu0  ;;  %v1823_v9 = vpop.f32.mrb[0].mxu1 }
  0xfb   : > { %v1752_v10 = vpop.f32.mrb[1].mxu0  ;;  %v1824_v11 = vpop.f32.mrb[1].mxu1 }
  0xfc   : > { %v1753_v12 = vadd.f32 %v1752_v10, %v1751_v8  ;;  %v2243_v13 = vadd.f32 %v1824_v11, %v1823_v9  ;;  %v1754_v14 = vpop.f32.mrb[2].mxu0  ;;  %v1826_v15 = vpop.f32.mrb[2].mxu1 }
  0xfd   : > { %v1755_v16 = vpop.f32.mrb[3].mxu0  ;;  %v1827_v17 = vpop.f32.mrb[3].mxu1 }
  0xfe   : > { %v1756_v18 = vadd.f32 %v1755_v16, %v1754_v14  ;;  %v2245_v19 = vadd.f32 %v1827_v17, %v1826_v15 }
 0x102   : > { %v1757_v20 = vpop.f32.mrb[4].mxu0  ;;  %v1829_v21 = vpop.f32.mrb[4].mxu1 }
 0x103   : > { %v1758_v22 = vpop.f32.mrb[5].mxu0  ;;  %v1830_v23 = vpop.f32.mrb[5].mxu1 }
 0x104   : > { %v1759_v24 = vadd.f32 %v1758_v22, %v1757_v20  ;;  %v2247_v25 = vadd.f32 %v1830_v23, %v1829_v21  ;;  %v1760_v26 = vpop.f32.mrb[6].mxu0  ;;  %v1832_v27 = vpop.f32.mrb[6].mxu1 }
 0x105   : > { %v1761_v28 = vpop.f32.mrb[7].mxu0  ;;  %v1833_v29 = vpop.f32.mrb[7].mxu1 }
 0x106   : > { %v1762_v30 = vadd.f32 %v1761_v28, %v1760_v26  ;;  %v2249_v31 = vadd.f32 %v1833_v29, %v1832_v27 }
 0x10a   : > { %v1763_v32 = vpop.f32.mrb[8].mxu0  ;;  %v1835_v33 = vpop.f32.mrb[8].mxu1 }
 0x10b   : > { %v1764_v34 = vpop.f32.mrb[9].mxu0  ;;  %v1836_v35 = vpop.f32.mrb[9].mxu1 }
 0x10c   : > { %v1765_v36 = vadd.f32 %v1764_v34, %v1763_v32  ;;  %v2251_v37 = vadd.f32 %v1836_v35, %v1835_v33  ;;  %v1766_v38 = vpop.f32.mrb[10].mxu0  ;;  %v1838_v39 = vpop.f32.mrb[10].mxu1 }
 0x10d   : > { %v1767_v40 = vpop.f32.mrb[11].mxu0  ;;  %v1839_v41 = vpop.f32.mrb[11].mxu1 }
 0x10e   : > { %v1768_v42 = vadd.f32 %v1767_v40, %v1766_v38  ;;  %v2253_v43 = vadd.f32 %v1839_v41, %v1838_v39 }
 0x112   : > { %v1769_v44 = vpop.f32.mrb[12].mxu0  ;;  %v1841_v45 = vpop.f32.mrb[12].mxu1 }
 0x113   : > { %v1770_v46 = vpop.f32.mrb[13].mxu0  ;;  %v1842_v47 = vpop.f32.mrb[13].mxu1 }
 0x114   : > { %v1771_v48 = vadd.f32 %v1770_v46, %v1769_v44  ;;  %v2255_v49 = vadd.f32 %v1842_v47, %v1841_v45  ;;  %v1772_v50 = vpop.f32.mrb[14].mxu0  ;;  %v1844_v51 = vpop.f32.mrb[14].mxu1 }
 0x115   : > { %v1773_v52 = vpop.f32.mrb[15].mxu0  ;;  %v1845_v53 = vpop.f32.mrb[15].mxu1 }
 0x116   : > { %v1774_v54 = vadd.f32 %v1773_v52, %v1772_v50  ;;  %v2257_v55 = vadd.f32 %v1845_v53, %v1844_v51 }
 0x11a   : > { %v1775_v56 = vpop.f32.mrb[16].mxu0  ;;  %v1889_v57 = vpop.f32.mrb[16].mxu1 }
 0x11b   : > { %v986_v59 = vadd.f32 %v1889_v57, %v1759_v24  ;;  %v1776_v60 = vpop.f32.mrb[17].mxu0  ;;  %v977_v61 = vpop.f32.mrb[17].mxu1 }
 0x11c   : > { %v1777_v63 = vadd.f32 %v1776_v60, %v1775_v56  ;;  %v978_v0 = vadd.f32 %v1753_v12, %v977_v61  ;;  %v1778_v1 = vpop.f32.mrb[18].mxu0  ;;  %v1890_v2 = vpop.f32.mrb[18].mxu1 }
 0x11d   : > { %v1113_v3 = vmul.f32 %v2262_v58, %v986_v59  ;;  %v989_v4 = vadd.f32 %v1890_v2, %v1762_v30  ;;  %v1779_v5 = vpop.f32.mrb[19].mxu0  ;;  %v980_v6 = vpop.f32.mrb[19].mxu1 }
 0x11e   : > { %v1111_v7 = vmul.f32 %v2262_v58, %v978_v0  ;;  %v1780_v8 = vadd.f32 %v1779_v5, %v1778_v1  ;;  %v981_v9 = vadd.f32 %v1756_v18, %v980_v6 }
 0x11f   : > { %v1152_v10 = vadd.f32 %v2267_v62, %v1113_v3  ;;  %v1114_v11 = vmul.f32 %v2262_v58, %v989_v4 }
 0x120   : > { %v1150_v14 = vadd.f32 %v2267_v62, %v1111_v7  ;;  %v1112_v15 = vmul.f32 %v2262_v58, %v981_v9 }
 0x121   : > { %v1153_v12 = vadd.f32 %v2267_v62, %v1114_v11  ;;  %v1184_v21 = vmax.f32 %v1152_v10, 0.0 }
 0x122   : > { %v1151_v16 = vadd.f32 %v2267_v62, %v1112_v15  ;;  %v1781_v17 = vpop.f32.mrb[20].mxu0  ;;  %v1893_v20 = vpop.f32.mrb[20].mxu1  ;;  %v1182_v26 = vmax.f32 %v1150_v14, 0.0 }
 0x123   : > { %v1185_v22 = vmax.f32 %v1153_v12, 0.0  ;;  %v1002_v23 = vadd.f32 %v1893_v20, %v1771_v48  ;;  %v1782_v24 = vpop.f32.mrb[21].mxu0  ;;  %v993_v18 = vpop.f32.mrb[21].mxu1 }
 0x124   : > { %v1183_v27 = vmax.f32 %v1151_v16, 0.0  ;;  %v1783_v28 = vadd.f32 %v1782_v24, %v1781_v17  ;;  %v994_v29 = vadd.f32 %v1765_v36, %v993_v18  ;;  %v1784_v30 = vpop.f32.mrb[22].mxu0  ;;  %v1894_v32 = vpop.f32.mrb[22].mxu1 }
 0x125   : > { %v1648_v33 = vpack.c.bf16 %v1185_v22, %v1184_v21  ;;  %v1117_v34 = vmul.f32 %v2262_v58, %v1002_v23  ;;  %v1005_v35 = vadd.f32 %v1894_v32, %v1774_v54  ;;  %v1785_v38 = vpop.f32.mrb[23].mxu0  ;;  %v996_v39 = vpop.f32.mrb[23].mxu1 }
 0x126   : > { %v1643_v40 = vpack.c.bf16 %v1183_v27, %v1182_v26  ;;  %v1115_v41 = vmul.f32 %v2262_v58, %v994_v29  ;;  %v1786_v44 = vadd.f32 %v1785_v38, %v1784_v30  ;;  %v997_v45 = vadd.f32 %v1768_v42, %v996_v39 }
 0x127   : > { %1720 = vst [vmem:[%s2281_s9 + $0x8] sm:$0xff] %v1648_v33   ;;  %v1156_v46 = vadd.f32 %v2267_v62, %v1117_v34  ;;  %v1118_v47 = vmul.f32 %v2262_v58, %v1005_v35 }
 0x128   : > { %1644 = vst [vmem:[%s2281_s9] sm:$0xff] %v1643_v40   ;;  %v1154_v36 = vadd.f32 %v2267_v62, %v1115_v41  ;;  %v1116_v48 = vmul.f32 %v2262_v58, %v997_v45 }
 0x129   : > { %v1157_v50 = vadd.f32 %v2267_v62, %v1118_v47  ;;  %v1188_v54 = vmax.f32 %v1156_v46, 0.0 }
 0x12a   : > { %v1155_v51 = vadd.f32 %v2267_v62, %v1116_v48  ;;  %v1787_v52 = vpop.f32.mrb[24].mxu0  ;;  %v1897_v53 = vpop.f32.mrb[24].mxu1  ;;  %v1186_v60 = vmax.f32 %v1154_v36, 0.0 }
 0x12b   : > { %v1189_v56 = vmax.f32 %v1157_v50, 0.0  ;;  %v1018_v57 = vadd.f32 %v1897_v53, %v1783_v28  ;;  %v1788_v42 = vpop.f32.mrb[25].mxu0  ;;  %v1009_v59 = vpop.f32.mrb[25].mxu1 }
 0x12c   : > { %v1187_v61 = vmax.f32 %v1155_v51, 0.0  ;;  %v1789_v0 = vadd.f32 %v1788_v42, %v1787_v52  ;;  %v1010_v1 = vadd.f32 %v1777_v63, %v1009_v59  ;;  %v1790_v2 = vpop.f32.mrb[26].mxu0  ;;  %v1898_v3 = vpop.f32.mrb[26].mxu1 }
 0x12d   : > { %v1658_v4 = vpack.c.bf16 %v1189_v56, %v1188_v54  ;;  %v1121_v5 = vmul.f32 %v2262_v58, %v1018_v57  ;;  %v1021_v6 = vadd.f32 %v1898_v3, %v1786_v44  ;;  %v1791_v7 = vpop.f32.mrb[27].mxu0  ;;  %v1012_v9 = vpop.f32.mrb[27].mxu1 }
 0x12e   : > { %v1653_v10 = vpack.c.bf16 %v1187_v61, %v1186_v60  ;;  %v1119_v11 = vmul.f32 %v2262_v58, %v1010_v1  ;;  %v1792_v14 = vadd.f32 %v1791_v7, %v1790_v2  ;;  %v1013_v15 = vadd.f32 %v1780_v8, %v1012_v9 }
 0x12f   : > { %1722 = vst [vmem:[%s2281_s9 + $0x18] sm:$0xff] %v1658_v4   ;;  %v1160_v12 = vadd.f32 %v2267_v62, %v1121_v5  ;;  %v1122_v16 = vmul.f32 %v2262_v58, %v1021_v6 }
 0x130   : > { %1721 = vst [vmem:[%s2281_s9 + $0x10] sm:$0xff] %v1653_v10   ;;  %v1158_v63 = vadd.f32 %v2267_v62, %v1119_v11  ;;  %v1120_v17 = vmul.f32 %v2262_v58, %v1013_v15 }
 0x131   : > { %v1161_v20 = vadd.f32 %v2267_v62, %v1122_v16  ;;  %v1192_v24 = vmax.f32 %v1160_v12, 0.0 }
 0x132   : > { %v1159_v21 = vadd.f32 %v2267_v62, %v1120_v17  ;;  %v1793_v22 = vpop.f32.mrb[28].mxu0  ;;  %v1901_v23 = vpop.f32.mrb[28].mxu1  ;;  %v1190_v27 = vmax.f32 %v1158_v63, 0.0 }
 0x133   : > { %v1193_v18 = vmax.f32 %v1161_v20, 0.0  ;;  %v1794_v8 = vpop.f32.mrb[29].mxu0  ;;  %v1025_v26 = vpop.f32.mrb[29].mxu1 }
 0x134   : > { %v1191_v28 = vmax.f32 %v1159_v21, 0.0  ;;  %v1795_v29 = vadd.f32 %v1794_v8, %v1793_v22  ;;  %v1026_v30 = vadd.f32 %v1789_v0, %v1025_v26  ;;  %v1796_v32 = vpop.f32.mrb[30].mxu0  ;;  %v1902_v33 = vpop.f32.mrb[30].mxu1 }
 0x135   : > { %v1668_v34 = vpack.c.bf16 %v1193_v18, %v1192_v24  ;;  %v1797_v35 = vpop.f32.mrb[31].mxu0  ;;  %v1028_v38 = vpop.f32.mrb[31].mxu1 }
 0x136   : > { %v1663_v39 = vpack.c.bf16 %v1191_v28, %v1190_v27  ;;  %v1034_v40 = vadd.f32 %v1901_v23, %v1795_v29  ;;  %v1123_v41 = vmul.f32 %v2262_v58, %v1026_v30  ;;  %v1798_v44 = vadd.f32 %v1797_v35, %v1796_v32 }
 0x137   : > { %1724 = vst [vmem:[%s2281_s9 + $0x28] sm:$0xff] %v1668_v34   ;;  %v1029_v45 = vadd.f32 %v1792_v14, %v1028_v38 }
 0x138   : > { %1723 = vst [vmem:[%s2281_s9 + $0x20] sm:$0xff] %v1663_v39   ;;  %v1125_v46 = vmul.f32 %v2262_v58, %v1034_v40  ;;  %v1037_v47 = vadd.f32 %v1902_v33, %v1798_v44  ;;  %v1162_v36 = vadd.f32 %v2267_v62, %v1123_v41 }
 0x139   : > { %v1124_v48 = vmul.f32 %v2262_v58, %v1029_v45 }
 0x13a   : > { %v1164_v50 = vadd.f32 %v2267_v62, %v1125_v46  ;;  %v1126_v51 = vmul.f32 %v2262_v58, %v1037_v47  ;;  %v1799_v52 = vpop.f32.mrb[32].mxu0  ;;  %v1905_v53 = vpop.f32.mrb[32].mxu1  ;;  %v1194_v0 = vmax.f32 %v1162_v36, 0.0 }
 0x13b   : > { %v1163_v54 = vadd.f32 %v2267_v62, %v1124_v48  ;;  %v1800_v56 = vpop.f32.mrb[33].mxu0  ;;  %v1041_v57 = vpop.f32.mrb[33].mxu1 }
 0x13c   : > { %v1165_v42 = vadd.f32 %v2267_v62, %v1126_v51  ;;  %v1801_v59 = vadd.f32 %v1800_v56, %v1799_v52  ;;  %v1802_v60 = vpop.f32.mrb[34].mxu0  ;;  %v1906_v61 = vpop.f32.mrb[34].mxu1  ;;  %v1196_v4 = vmax.f32 %v1164_v50, 0.0 }
 0x13d   : > { %v1195_v1 = vmax.f32 %v1163_v54, 0.0  ;;  %v1803_v2 = vpop.f32.mrb[35].mxu0  ;;  %v1044_v3 = vpop.f32.mrb[35].mxu1 }
 0x13e   : > { %v1197_v5 = vmax.f32 %v1165_v42, 0.0  ;;  %v1042_v6 = vadd.f32 %v1801_v59, %v1041_v57  ;;  %v1804_v7 = vadd.f32 %v1803_v2, %v1802_v60 }
 0x13f   : > { %v1673_v9 = vpack.c.bf16 %v1195_v1, %v1194_v0 }
 0x140   : > { %v1678_v10 = vpack.c.bf16 %v1197_v5, %v1196_v4  ;;  %v1127_v11 = vmul.f32 %v2262_v58, %v1042_v6  ;;  %v1045_v14 = vadd.f32 %v1804_v7, %v1044_v3 }
 0x141   : > { %1725 = vst [vmem:[%s2281_s9 + $0x30] sm:$0xff] %v1673_v9  }
 0x142   : > { %1726 = vst [vmem:[%s2281_s9 + $0x38] sm:$0xff] %v1678_v10   ;;  %v1166_v15 = vadd.f32 %v2267_v62, %v1127_v11  ;;  %v1128_v12 = vmul.f32 %v2262_v58, %v1045_v14  ;;  %v1805_v16 = vpop.f32.mrb[36].mxu0  ;;  %v2318_v63 = vpop.f32.mrb[36].mxu1 }
 0x143   : > { %v1806_v17 = vpop.f32.mrb[37].mxu0  ;;  %v1057_v20 = vpop.f32.mrb[37].mxu1 }
 0x144   : > { %v1167_v21 = vadd.f32 %v2267_v62, %v1128_v12  ;;  %v1807_v22 = vadd.f32 %v1806_v17, %v1805_v16  ;;  %v1808_v23 = vpop.f32.mrb[38].mxu0  ;;  %v2321_v24 = vpop.f32.mrb[38].mxu1  ;;  %v1198_v26 = vmax.f32 %v1166_v15, 0.0 }
 0x145   : > { %v1809_v18 = vpop.f32.mrb[39].mxu0  ;;  %v1060_v8 = vpop.f32.mrb[39].mxu1 }
 0x146   : > { %v1199_v27 = vmax.f32 %v1167_v21, 0.0  ;;  %v1050_v28 = vadd.f32 %v1905_v53, %v1807_v22  ;;  %v1810_v29 = vadd.f32 %v1809_v18, %v1808_v23 }
 0x148   : > { %v1683_v30 = vpack.c.bf16 %v1199_v27, %v1198_v26  ;;  %v1129_v32 = vmul.f32 %v2262_v58, %v1050_v28  ;;  %v1053_v33 = vadd.f32 %v1906_v61, %v1810_v29 }
 0x14a   : > { %1727 = vst [vmem:[%s2281_s9 + $0x40] sm:$0xff] %v1683_v30   ;;  %v1168_v34 = vadd.f32 %v2267_v62, %v1129_v32  ;;  %v1130_v35 = vmul.f32 %v2262_v58, %v1053_v33  ;;  %v1811_v38 = vpop.f32.mrb[40].mxu0  ;;  %v1913_v39 = vpop.f32.mrb[40].mxu1 }
 0x14b   : > { %v1082_v40 = vadd.f32 %v1913_v39, %v2247_v25  ;;  %v1812_v41 = vpop.f32.mrb[41].mxu0  ;;  %v1073_v44 = vpop.f32.mrb[41].mxu1 }
 0x14c   : > { %v1169_v45 = vadd.f32 %v2267_v62, %v1130_v35  ;;  %v1813_v46 = vadd.f32 %v1812_v41, %v1811_v38  ;;  %v1074_v47 = vadd.f32 %v2243_v13, %v1073_v44  ;;  %v1814_v36 = vpop.f32.mrb[42].mxu0  ;;  %v1914_v48 = vpop.f32.mrb[42].mxu1  ;;  %v1200_v50 = vmax.f32 %v1168_v34, 0.0 }
 0x14d   : > { %v1137_v51 = vmul.f32 %v2262_v58, %v1082_v40  ;;  %v1085_v52 = vadd.f32 %v1914_v48, %v2249_v31  ;;  %v1815_v53 = vpop.f32.mrb[43].mxu0  ;;  %v1076_v54 = vpop.f32.mrb[43].mxu1 }
 0x14e   : > { %v1201_v56 = vmax.f32 %v1169_v45, 0.0  ;;  %v1058_v57 = vadd.f32 %v1813_v46, %v1057_v20  ;;  %v1135_v25 = vmul.f32 %v2262_v58, %v1074_v47  ;;  %v1816_v42 = vadd.f32 %v1815_v53, %v1814_v36 }
 0x14f   : > { %v1176_v59 = vadd.f32 %v2267_v62, %v1137_v51  ;;  %v1138_v60 = vmul.f32 %v2262_v58, %v1085_v52  ;;  %v1077_v13 = vadd.f32 %v2245_v19, %v1076_v54 }
 0x150   : > { %v1688_v61 = vpack.c.bf16 %v1201_v56, %v1200_v50  ;;  %v1131_v0 = vmul.f32 %v2262_v58, %v1058_v57  ;;  %v1174_v1 = vadd.f32 %v2267_v62, %v1135_v25  ;;  %v1061_v31 = vadd.f32 %v1816_v42, %v1060_v8 }
 0x151   : > { %v1177_v2 = vadd.f32 %v2267_v62, %v1138_v60  ;;  %v1136_v3 = vmul.f32 %v2262_v58, %v1077_v13  ;;  %v1208_v4 = vmax.f32 %v1176_v59, 0.0 }
 0x152   : > { %1728 = vst [vmem:[%s2281_s9 + $0x48] sm:$0xff] %v1688_v61   ;;  %v1170_v5 = vadd.f32 %v2267_v62, %v1131_v0  ;;  %v1132_v6 = vmul.f32 %v2262_v58, %v1061_v31  ;;  %v1817_v7 = vpop.f32.mrb[44].mxu0  ;;  %v1917_v9 = vpop.f32.mrb[44].mxu1  ;;  %v1206_v10 = vmax.f32 %v1174_v1, 0.0 }
 0x153   : > { %v1209_v19 = vmax.f32 %v1177_v2, 0.0  ;;  %v1175_v11 = vadd.f32 %v2267_v62, %v1136_v3  ;;  %v1098_v14 = vadd.f32 %v1917_v9, %v2255_v49  ;;  %v1818_v15 = vpop.f32.mrb[45].mxu0  ;;  %v1089_v12 = vpop.f32.mrb[45].mxu1 }
 0x154   : > { %v1202_v16 = vmax.f32 %v1170_v5, 0.0  ;;  %v1171_v17 = vadd.f32 %v2267_v62, %v1132_v6  ;;  %v1819_v20 = vadd.f32 %v1818_v15, %v1817_v7  ;;  %v1090_v21 = vadd.f32 %v2251_v37, %v1089_v12  ;;  %v1820_v22 = vpop.f32.mrb[46].mxu0  ;;  %v1918_v23 = vpop.f32.mrb[46].mxu1 }
 0x155   : > { %v1708_v18 = vpack.c.bf16 %v1209_v19, %v1208_v4  ;;  %v1207_v8 = vmax.f32 %v1175_v11, 0.0  ;;  %v1141_v26 = vmul.f32 %v2262_v58, %v1098_v14  ;;  %v1101_v27 = vadd.f32 %v1918_v23, %v2257_v55  ;;  %v1821_v28 = vpop.f32.mrb[47].mxu0  ;;  %v1092_v49 = vpop.f32.mrb[47].mxu1 }
 0x156   : > { %v1203_v29 = vmax.f32 %v1171_v17, 0.0  ;;  %v1066_v30 = vadd.f32 %v2318_v63, %v1819_v20  ;;  %v1139_v32 = vmul.f32 %v2262_v58, %v1090_v21  ;;  %v1822_v33 = vadd.f32 %v1821_v28, %v1820_v22 }
 0x157   : > { %1732 = vst [vmem:[%s2281_s9 + $0x68] sm:$0xff] %v1708_v18   ;;  %v1703_v37 = vpack.c.bf16 %v1207_v8, %v1206_v10  ;;  %v1180_v34 = vadd.f32 %v2267_v62, %v1141_v26  ;;  %v1142_v35 = vmul.f32 %v2262_v58, %v1101_v27  ;;  %v1093_v38 = vadd.f32 %v2253_v43, %v1092_v49 }
 0x158   : > { %v1693_v39 = vpack.c.bf16 %v1203_v29, %v1202_v16  ;;  %v1133_v55 = vmul.f32 %v2262_v58, %v1066_v30  ;;  %v1069_v40 = vadd.f32 %v2321_v24, %v1822_v33  ;;  %v1178_v63 = vadd.f32 %v2267_v62, %v1139_v32 }
 0x159   : > { %1731 = vst [vmem:[%s2281_s9 + $0x60] sm:$0xff] %v1703_v37   ;;  %v1181_v41 = vadd.f32 %v2267_v62, %v1142_v35  ;;  %v1140_v44 = vmul.f32 %v2262_v58, %v1093_v38  ;;  %v1212_v46 = vmax.f32 %v1180_v34, 0.0 }
 0x15a   : > { %1729 = vst [vmem:[%s2281_s9 + $0x50] sm:$0xff] %v1693_v39   ;;  %v1172_v45 = vadd.f32 %v2267_v62, %v1133_v55  ;;  %v1134_v43 = vmul.f32 %v2262_v58, %v1069_v40  ;;  %v1210_v48 = vmax.f32 %v1178_v63, 0.0 }
 0x15b   : > { %v1213_v47 = vmax.f32 %v1181_v41, 0.0  ;;  %v1179_v36 = vadd.f32 %v2267_v62, %v1140_v44 }
 0x15c   : > { %v1173_v24 = vadd.f32 %v2267_v62, %v1134_v43  ;;  %v1204_v52 = vmax.f32 %v1172_v45, 0.0 }
 0x15d   : > { %v1718_v50 = vpack.c.bf16 %v1213_v47, %v1212_v46  ;;  %v1211_v51 = vmax.f32 %v1179_v36, 0.0 }
 0x15e   : > { %v1205_v53 = vmax.f32 %v1173_v24, 0.0 }
 0x15f   : > { %1734 = vst [vmem:[%s2281_s9 + $0x78] sm:$0xff] %v1718_v50   ;;  %v1713_v54 = vpack.c.bf16 %v1211_v51, %v1210_v48 }
 0x160   : > { %v1698_v56 = vpack.c.bf16 %v1205_v53, %v1204_v52 }
 0x161   : > { %1733 = vst [vmem:[%s2281_s9 + $0x70] sm:$0xff] %v1713_v54  }
 0x162   : > { %1730 = vst [vmem:[%s2281_s9 + $0x58] sm:$0xff] %v1698_v56  }
 0x163 PF: > { %s14_s17 = sadd.s32 1, %s2070_s17   ;;  %s2383_s15 = smov %s2066_s16 }
 0x164   : > { %p11_p5 = scmp.ge.s32.totalorder %s14_s17, 87   ;;  %s2384_s16 = smov %s2386_s18 }
 0x166   :  { %13 = sbr.rel (!%p11_p5) target bundleno = 2 (0x2), region = 75 }

// kernel: stem_fwd.13
= control target key start
LH: loop header
LB: loop body
LE: loop exit
PB: predicated region body
PF: predicated region fallthrough
CT: control target
= control target key end

     0   :  { %s2802_s15 = smov 0   ;;  %s2804_s16 = smov 0   ;;  %s3247_s0 = inlined_call_operand.vmem [shape: bf16[5376,640], index: 0, kind: input, shape index: {}]   ;;  %s3248_s1 = inlined_call_operand.vmem [shape: bf16[640,128], index: 1, kind: input, shape index: {}]   ;;  %s3249_s2 = inlined_call_operand.vmem [shape: f32[1,128], index: 2, kind: input, shape index: {}]   ;;  %s3250_s3 = inlined_call_operand.vmem [shape: f32[1,128], index: 3, kind: input, shape index: {}]   ;;  %s3251_s4 = inlined_call_operand.vmem [shape: bf16[5376,128], index: 4, kind: output, shape index: {}]  }
   0x1   :  { %s2806_s17 = smov 0  }
   0x2 LB: > { %s26_s18 = sadd.s32 1, %s2771_s16  ;;  %p1976_p0 = scmp.ge.s32.totalorder %s2775_s17, 1  ;;  %s2775_s17 = sphi %s2806_s17, %s14_s17   ;;  %s2771_s16 = sphi %s2804_s16, %s3253_s16   ;;  %s2767_s15 = sphi %s2802_s15, %s3252_s15  }
   0x3   : > { %p28_p1 = scmp.ge.s32.totalorder %s26_s18, 21  ;;  %p203_p2 = scmp.lt.s32.totalorder %s2775_s17, 22 }
   0x5   : > { %s3255_s18 = smov (%p28_p1, %s26_s18), 0  ;;  %p204_p3 = pnand %p1976_p0, %p203_p2 }
   0x6   : > { %v2601_v0 = vld [vmem:[%s3248_s1 + $0x40] sm:$0xff] (!%p204_p3)   ;;  %s1977_s21 = sshll.u32 (!%p204_p3), %s2767_s15, 5  ;;  %v2603_v2 = vld [vmem:[%s3248_s1 + $0x48] sm:$0xff] (!%p204_p3)   ;;  %v2605_v4 = vld [vmem:[%s3248_s1 + $0x50] sm:$0xff] (!%p204_p3)  }
   0x7   : > { %207 = sbr.rel (%p204_p3) target bundleno = 421 (0x1a5), region = 36  ;;  %v2602_v1 = vld [vmem:[%s3248_s1] sm:$0xff] (!%p204_p3)   ;;  %2264 = vmatprep.subr.bf16.mxu0 (!%p204_p3), %v2601_v0  ;;  %2560 = vmatprep.subr.bf16.mxu1 (!%p204_p3), %v2601_v0  ;;  %p244_p4 = scmp.lt.s32.totalorder (!%p204_p3), %s1977_s21, 671  ;;  %v2604_v3 = vld [vmem:[%s3248_s1 + $0x8] sm:$0xff] (!%p204_p3)   ;;  %v2606_v5 = vld [vmem:[%s3248_s1 + $0x10] sm:$0xff] (!%p204_p3)  }
   0x8   : > { %2265 = vmatpush3.bf16.msra.mxu0 (!%p204_p3), %v2602_v1  ;;  %2568 = vmatpush3.bf16.msra.mxu1 (!%p204_p3), %v2602_v1  ;;  %v2607_v6 = vld [vmem:[%s3248_s1 + $0x58] sm:$0xff] (!%p204_p3)   ;;  %v2609_v8 = vld [vmem:[%s3248_s1 + $0x60] sm:$0xff] (!%p204_p3)   ;;  %v2611_v10 = vld [vmem:[%s3248_s1 + $0x68] sm:$0xff] (!%p204_p3)  }
   0x9   : > { %2266 = vmatprep.subr.bf16.mxu0 (!%p204_p3), %v2603_v2  ;;  %2561 = vmatprep.subr.bf16.mxu1 (!%p204_p3), %v2603_v2  ;;  %v2608_v7 = vld [vmem:[%s3248_s1 + $0x18] sm:$0xff] (!%p204_p3)   ;;  %v2610_v9 = vld [vmem:[%s3248_s1 + $0x20] sm:$0xff] (!%p204_p3)   ;;  %v2612_v13 = vld [vmem:[%s3248_s1 + $0x28] sm:$0xff] (!%p204_p3)  }
   0xa   : > { %v2613_v14 = vld [vmem:[%s3248_s1 + $0x70] sm:$0xff] (!%p204_p3)   ;;  %v2615_v16 = vld [vmem:[%s3248_s1 + $0x78] sm:$0xff] (!%p204_p3)   ;;  %v2623_v18 = vld [vmem:[%s3248_s1 + $0xc0] sm:$0xff] (!%p204_p3)  }
   0xb   : > { %v2614_v15 = vld [vmem:[%s3248_s1 + $0x30] sm:$0xff] (!%p204_p3)   ;;  %v2616_v17 = vld [vmem:[%s3248_s1 + $0x38] sm:$0xff] (!%p204_p3)   ;;  %v2626_v19 = vld [vmem:[%s3248_s1 + $0x100] sm:$0xff] (!%p204_p3)  }
   0xc   : > { %2267 = vmatpush3.bf16.msra.mxu0 (!%p204_p3), %v2604_v3  ;;  %2569 = vmatpush3.bf16.msra.mxu1 (!%p204_p3), %v2604_v3  ;;  %v2624_v22 = vld [vmem:[%s3248_s1 + $0x80] sm:$0xff] (!%p204_p3)   ;;  %v2625_v23 = vld [vmem:[%s3248_s1 + $0xc8] sm:$0xff] (!%p204_p3)   ;;  %v2634_v29 = vld [vmem:[%s3248_s1 + $0xd0] sm:$0xff] (!%p204_p3)  }
   0xd   : > { %2268 = vmatprep.subr.bf16.mxu0 (!%p204_p3), %v2605_v4  ;;  %2562 = vmatprep.subr.bf16.mxu1 (!%p204_p3), %v2605_v4  ;;  %v2645_v26 = vld [vmem:[%s3248_s1 + $0x108] sm:$0xff] (!%p204_p3)   ;;  %v2635_v31 = vld [vmem:[%s3248_s1 + $0x90] sm:$0xff] (!%p204_p3)   ;;  %v2636_v33 = vld [vmem:[%s3248_s1 + $0xd8] sm:$0xff] (!%p204_p3)  }
   0xe   : > { %s3257_s21 = smov (!%p244_p4, %s1977_s21), 671  ;;  %v2627_v27 = vld [vmem:[%s3248_s1 + $0x88] sm:$0xff]   ;;  %v2637_v35 = vld [vmem:[%s3248_s1 + $0x98] sm:$0xff]   ;;  %v2644_v36 = vld [vmem:[%s3248_s1 + $0xe0] sm:$0xff]  }
   0xf   : > { %s2576_s8 = smul.u32 20, %s3257_s21  ;;  %v2658_v38 = vld [vmem:[%s3248_s1 + $0x110] sm:$0xff]   ;;  %v2646_v40 = vld [vmem:[%s3248_s1 + $0xa0] sm:$0xff]   ;;  %v2647_v41 = vld [vmem:[%s3248_s1 + $0xe8] sm:$0xff]   ;;  %s1980_s22 = sshll.u32 %s3257_s21, 2 }
  0x10   : > { %2269 = vmatpush3.bf16.msra.mxu0 %v2606_v5  ;;  %2570 = vmatpush3.bf16.msra.mxu1 %v2606_v5  ;;  %v2648_v44 = vld [vmem:[%s3248_s1 + $0xa8] sm:$0xff]   ;;  %v2672_v45 = vld [vmem:[%s3248_s1 + $0x118] sm:$0xff]   ;;  %v2655_v48 = vld [vmem:[%s3248_s1 + $0xf0] sm:$0xff]   ;;  %s3125_s25 = scalar_lea.vmem %s3251_s4, %s1980_s22 }
  0x11   : > { %2270 = vmatprep.subr.bf16.mxu0 %v2607_v6  ;;  %2563 = vmatprep.subr.bf16.mxu1 %v2607_v6  ;;  %s2853_s15 = scalar_lea.vmem %s3247_s0, %s2576_s8  ;;  %v2656_v49 = vld [vmem:[%s3248_s1 + $0xb0] sm:$0xff]   ;;  %v2657_v50 = vld [vmem:[%s3248_s1 + $0xf8] sm:$0xff]   ;;  %v2679_v52 = vld [vmem:[%s3248_s1 + $0x120] sm:$0xff]  }
  0x12   : > { %v2619_v11 = vld [vmem:[%s2853_s15 + $0x4] ss:$20 sps:$4 sm:$0xff]   ;;  %v2617_v20 = vld [vmem:[%s2853_s15] ss:$20 sps:$4 sm:$0xff]   ;;  %v2632_v28 = vld [vmem:[%s2853_s15 + $0x28] ss:$20 sps:$4 sm:$0xff]  }
  0x13   : > { %v2622_v12 = vld [vmem:[%s2853_s15 + $0x1e4] ss:$20 sps:$4 sm:$0xff]   ;;  %1134 = vmatprep.mubr.bf16.mxu0 %v2619_v11  ;;  %v2620_v21 = vld [vmem:[%s2853_s15 + $0x1e0] ss:$20 sps:$4 sm:$0xff]   ;;  %v2633_v30 = vld [vmem:[%s2853_s15 + $0x208] ss:$20 sps:$4 sm:$0xff]  }
  0x14   : > { %2271 = vmatpush3.bf16.msra.mxu0 %v2608_v7  ;;  %2571 = vmatpush3.bf16.msra.mxu1 %v2608_v7  ;;  %v2628_v24 = vld [vmem:[%s2853_s15 + $0x2c] ss:$20 sps:$4 sm:$0xff]   ;;  %v2638_v32 = vld [vmem:[%s2853_s15 + $0x54] ss:$20 sps:$4 sm:$0xff]   ;;  %v2642_v37 = vld [vmem:[%s2853_s15 + $0x50] ss:$20 sps:$4 sm:$0xff]  }
  0x15   : > { %2272 = vmatprep.subr.bf16.mxu0 %v2609_v8  ;;  %2564 = vmatprep.subr.bf16.mxu1 %v2609_v8  ;;  %v2630_v25 = vld [vmem:[%s2853_s15 + $0x20c] ss:$20 sps:$4 sm:$0xff]   ;;  %v2640_v34 = vld [vmem:[%s2853_s15 + $0x234] ss:$20 sps:$4 sm:$0xff]   ;;  %v2643_v39 = vld [vmem:[%s2853_s15 + $0x230] ss:$20 sps:$4 sm:$0xff]  }
  0x16   : > { %1230 = vmatprep.mubr.bf16.mxu1 %v2622_v12  ;;  %v2649_v42 = vld [vmem:[%s2853_s15 + $0x7c] ss:$20 sps:$4 sm:$0xff]   ;;  %v2653_v46 = vld [vmem:[%s2853_s15 + $0x78] ss:$20 sps:$4 sm:$0xff]   ;;  %v2665_v56 = vld [vmem:[%s2853_s15 + $0xa0] ss:$20 sps:$4 sm:$0xff]  }
  0x17   : > { %v2651_v43 = vld [vmem:[%s2853_s15 + $0x25c] ss:$20 sps:$4 sm:$0xff]   ;;  %v2654_v47 = vld [vmem:[%s2853_s15 + $0x258] ss:$20 sps:$4 sm:$0xff]   ;;  %v2668_v59 = vld [vmem:[%s2853_s15 + $0x34] ss:$20 sps:$4 sm:$0xff]  }
  0x18   : > { %2273 = vmatpush3.bf16.msra.mxu0 %v2610_v9  ;;  %2572 = vmatpush3.bf16.msra.mxu1 %v2610_v9  ;;  %v2660_v51 = vld [vmem:[%s2853_s15 + $0xa4] ss:$20 sps:$4 sm:$0xff]   ;;  %v2664_v53 = vld [vmem:[%s2853_s15 + $0xc] ss:$20 sps:$4 sm:$0xff]   ;;  %v2662_v55 = vld [vmem:[%s2853_s15 + $0x8] ss:$20 sps:$4 sm:$0xff]  }
  0x19   : > { %2274 = vmatprep.subr.bf16.mxu0 %v2611_v10  ;;  %2565 = vmatprep.subr.bf16.mxu1 %v2611_v10  ;;  %v2659_v54 = vld [vmem:[%s3248_s1 + $0xb8] sm:$0xff]   ;;  %v2692_v57 = vld [vmem:[%s3248_s1 + $0x128] sm:$0xff]   ;;  %v2699_v60 = vld [vmem:[%s3248_s1 + $0x130] sm:$0xff]  }
  0x1a   : > { %v2666_v58 = vld [vmem:[%s2853_s15 + $0xcc] ss:$20 sps:$4 sm:$0xff]   ;;  %v2670_v61 = vld [vmem:[%s2853_s15 + $0xc8] ss:$20 sps:$4 sm:$0xff]   ;;  %v2671_v62 = vld [vmem:[%s2853_s15 + $0x30] ss:$20 sps:$4 sm:$0xff]  }
  0x1b   : > { %v2673_v63 = vld [vmem:[%s2853_s15 + $0xf4] ss:$20 sps:$4 sm:$0xff]   ;;  %v2675_v0 = vld [vmem:[%s2853_s15 + $0x5c] ss:$20 sps:$4 sm:$0xff]   ;;  %v2678_v3 = vld [vmem:[%s2853_s15 + $0x58] ss:$20 sps:$4 sm:$0xff]  }
  0x1c   : > { %2275 = vmatpush3.bf16.msra.mxu0 %v2612_v13  ;;  %2573 = vmatpush3.bf16.msra.mxu1 %v2612_v13  ;;  %v2712_v1 = vld [vmem:[%s3248_s1 + $0x138] sm:$0xff]   ;;  %v2677_v2 = vld [vmem:[%s2853_s15 + $0xf0] ss:$20 sps:$4 sm:$0xff]   ;;  %v2685_v7 = vld [vmem:[%s2853_s15 + $0x80] ss:$20 sps:$4 sm:$0xff]  }
  0x1d   : > { %2276 = vmatprep.subr.bf16.mxu0 %v2613_v14  ;;  %2566 = vmatprep.subr.bf16.mxu1 %v2613_v14  ;;  %v2680_v4 = vld [vmem:[%s2853_s15 + $0x11c] ss:$20 sps:$4 sm:$0xff]   ;;  %v2682_v5 = vld [vmem:[%s2853_s15 + $0x84] ss:$20 sps:$4 sm:$0xff]   ;;  %v2688_v9 = vld [vmem:[%s2853_s15 + $0xac] ss:$20 sps:$4 sm:$0xff]  }
  0x1e   : > { %v2684_v6 = vld [vmem:[%s2853_s15 + $0x118] ss:$20 sps:$4 sm:$0xff]   ;;  %v2690_v10 = vld [vmem:[%s2853_s15 + $0x140] ss:$20 sps:$4 sm:$0xff]   ;;  %v2691_v11 = vld [vmem:[%s2853_s15 + $0xa8] ss:$20 sps:$4 sm:$0xff]  }
  0x1f   : > { %v2686_v8 = vld [vmem:[%s2853_s15 + $0x144] ss:$20 sps:$4 sm:$0xff]   ;;  %v2693_v12 = vld [vmem:[%s2853_s15 + $0x16c] ss:$20 sps:$4 sm:$0xff]   ;;  %v2695_v13 = vld [vmem:[%s2853_s15 + $0xd4] ss:$20 sps:$4 sm:$0xff]  }
  0x20   : > { %2277 = vmatpush3.bf16.msra.mxu0 %v2614_v15  ;;  %2574 = vmatpush3.bf16.msra.mxu1 %v2614_v15  ;;  %v2697_v14 = vld [vmem:[%s2853_s15 + $0x168] ss:$20 sps:$4 sm:$0xff]   ;;  %v2698_v15 = vld [vmem:[%s2853_s15 + $0xd0] ss:$20 sps:$4 sm:$0xff]  }
  0x21   : > { %2278 = vmatprep.subr.bf16.mxu0 %v2615_v16  ;;  %2567 = vmatprep.subr.bf16.mxu1 %v2615_v16  ;;  %v2700_v16 = vld [vmem:[%s2853_s15 + $0x194] ss:$20 sps:$4 sm:$0xff]  }
  0x24   : > { %2279 = vmatpush3.bf16.msra.mxu0 %v2616_v17  ;;  %2575 = vmatpush3.bf16.msra.mxu1 %v2616_v17  ;;  %v2702_v17 = vld [vmem:[%s2853_s15 + $0xfc] ss:$20 sps:$4 sm:$0xff]  }
  0x25   : > { %2376 = vmatprep.subr.bf16.mxu1 %v2623_v18  ;;  %2512 = vmatprep.subr.bf16.mxu0 %v2626_v19  ;;  %v2704_v18 = vld [vmem:[%s2853_s15 + $0x190] ss:$20 sps:$4 sm:$0xff]  }
  0x27   : > { %1135 = vmatmul.mubr.bf16.vlgmr.msra.gmra.mrb[0].mxu0 %v2617_v20  ;;  %1231 = vmatmul.mubr.bf16.vlgmr.msra.gmra.mrb[0].mxu1 %v2620_v21  ;;  %v2706_v20 = vld [vmem:[%s2853_s15 + $0x1bc] ss:$20 sps:$4 sm:$0xff]   ;;  %v2708_v21 = vld [vmem:[%s2853_s15 + $0x124] ss:$20 sps:$4 sm:$0xff]  }
  0x28   : > { %2377 = vmatpush3.bf16.msra.mxu1 %v2624_v22  ;;  %2513 = vmatpush3.bf16.msra.mxu0 %v2626_v19  ;;  %v2705_v19 = vld [vmem:[%s2853_s15 + $0xf8] ss:$20 sps:$4 sm:$0xff]  }
  0x29   : > { %2378 = vmatprep.subr.bf16.mxu1 %v2625_v23  ;;  %1142 = vmatprep.mubr.bf16.mxu0 %v2628_v24  ;;  %v2710_v22 = vld [vmem:[%s2853_s15 + $0x1b8] ss:$20 sps:$4 sm:$0xff]   ;;  %v2711_v23 = vld [vmem:[%s2853_s15 + $0x120] ss:$20 sps:$4 sm:$0xff]  }
  0x2a   : > { %1238 = vmatprep.mubr.bf16.mxu1 %v2630_v25  ;;  %2514 = vmatprep.subr.bf16.mxu0 %v2645_v26  ;;  %v2713_v24 = vld [vmem:[%s2853_s15 + $0x14c] ss:$20 sps:$4 sm:$0xff]   ;;  %v2715_v25 = vld [vmem:[%s2853_s15 + $0x10] ss:$20 sps:$4 sm:$0xff]  }
  0x2c   : > { %2379 = vmatpush3.bf16.msra.mxu1 %v2627_v27  ;;  %2515 = vmatpush3.bf16.msra.mxu0 %v2645_v26  ;;  %v2716_v26 = vld [vmem:[%s2853_s15 + $0x148] ss:$20 sps:$4 sm:$0xff]   ;;  %v2717_v27 = vld [vmem:[%s2853_s15 + $0x38] ss:$20 sps:$4 sm:$0xff]  }
  0x2d   : > { %2380 = vmatprep.subr.bf16.mxu1 %v2634_v29  ;;  %2516 = vmatprep.subr.bf16.mxu0 %v2658_v38  ;;  %v2720_v29 = vld [vmem:[%s2853_s15 + $0x60] ss:$20 sps:$4 sm:$0xff]  }
  0x2f   : > { %1143 = vmatmul.mubr.bf16.gmra.mrb[4].mxu0 %v2632_v28  ;;  %1239 = vmatmul.mubr.bf16.gmra.mrb[4].mxu1 %v2633_v30  ;;  %v2718_v28 = vld [vmem:[%s2853_s15 + $0x174] ss:$20 sps:$4 sm:$0xff]   ;;  %v2721_v30 = vld [vmem:[%s2853_s15 + $0x170] ss:$20 sps:$4 sm:$0xff]  }
  0x30   : > { %2381 = vmatpush3.bf16.msra.mxu1 %v2635_v31  ;;  %1150 = vmatprep.mubr.bf16.mxu0 %v2638_v32  ;;  %v2722_v31 = vld [vmem:[%s2853_s15 + $0x88] ss:$20 sps:$4 sm:$0xff]  }
  0x31   : > { %2382 = vmatprep.subr.bf16.mxu1 %v2636_v33  ;;  %1246 = vmatprep.mubr.bf16.mxu1 %v2640_v34  ;;  %v2723_v32 = vld [vmem:[%s2853_s15 + $0x19c] ss:$20 sps:$4 sm:$0xff]   ;;  %v2726_v34 = vld [vmem:[%s2853_s15 + $0x198] ss:$20 sps:$4 sm:$0xff]  }
  0x32   : > { %2517 = vmatpush3.bf16.msra.mxu0 %v2658_v38  ;;  %v2725_v33 = vld [vmem:[%s2853_s15 + $0xb0] ss:$20 sps:$4 sm:$0xff]   ;;  %v2731_v38 = vld [vmem:[%s2853_s15 + $0x1c0] ss:$20 sps:$4 sm:$0xff]  }
  0x33   : > { %2518 = vmatprep.subr.bf16.mxu0 %v2672_v45 }
  0x34   : > { %2383 = vmatpush3.bf16.msra.mxu1 %v2637_v35  ;;  %v2727_v35 = vld [vmem:[%s2853_s15 + $0xd8] ss:$20 sps:$4 sm:$0xff]  }
  0x35   : > { %2384 = vmatprep.subr.bf16.mxu1 %v2644_v36  ;;  %v2728_v36 = vld [vmem:[%s2853_s15 + $0x1c4] ss:$20 sps:$4 sm:$0xff]  }
  0x36   : > { %2519 = vmatpush3.bf16.msra.mxu0 %v2672_v45  ;;  %v2740_v45 = vld [vmem:[%s2853_s15 + $0x1a0] ss:$20 sps:$4 sm:$0xff]  }
  0x37   : > { %1151 = vmatmul.mubr.bf16.gmra.mrb[8].mxu0 %v2642_v37  ;;  %1247 = vmatmul.mubr.bf16.gmra.mrb[8].mxu1 %v2643_v39  ;;  %v2730_v37 = vld [vmem:[%s2853_s15 + $0x100] ss:$20 sps:$4 sm:$0xff]   ;;  %v2732_v39 = vld [vmem:[%s2853_s15 + $0x128] ss:$20 sps:$4 sm:$0xff]  }
  0x38   : > { %2385 = vmatpush3.bf16.msra.mxu1 %v2646_v40  ;;  %1158 = vmatprep.mubr.bf16.mxu0 %v2649_v42  ;;  %v2733_v40 = vld [vmem:[%s2853_s15 + $0x1ec] ss:$20 sps:$4 sm:$0xff]   ;;  %v2736_v42 = vld [vmem:[%s2853_s15 + $0x1e8] ss:$20 sps:$4 sm:$0xff]  }
  0x39   : > { %2386 = vmatprep.subr.bf16.mxu1 %v2647_v41  ;;  %1254 = vmatprep.mubr.bf16.mxu1 %v2651_v43  ;;  %v2735_v41 = vld [vmem:[%s2853_s15 + $0x150] ss:$20 sps:$4 sm:$0xff]   ;;  %v2737_v43 = vld [vmem:[%s2853_s15 + $0x178] ss:$20 sps:$4 sm:$0xff]  }
  0x3a   : > { %2520 = vmatprep.subr.bf16.mxu0 %v2679_v52 }
  0x3b   : > { %2521 = vmatpush3.bf16.msra.mxu0 %v2679_v52  ;;  %v2748_v52 = vld [vmem:[%s2853_s15 + $0x264] ss:$20 sps:$4 sm:$0xff]  }
  0x3c   : > { %2387 = vmatpush3.bf16.msra.mxu1 %v2648_v44  ;;  %2522 = vmatprep.subr.bf16.mxu0 %v2692_v57  ;;  %v2738_v44 = vld [vmem:[%s2853_s15 + $0x214] ss:$20 sps:$4 sm:$0xff]  }
  0x3d   : > { %2388 = vmatprep.subr.bf16.mxu1 %v2655_v48  ;;  %v2743_v48 = vld [vmem:[%s2853_s15 + $0x23c] ss:$20 sps:$4 sm:$0xff]  }
  0x3f   : > { %1159 = vmatmul.mubr.bf16.gmra.mrb[12].mxu0 %v2653_v46  ;;  %1255 = vmatmul.mubr.bf16.gmra.mrb[12].mxu1 %v2654_v47  ;;  %v2741_v46 = vld [vmem:[%s2853_s15 + $0x210] ss:$20 sps:$4 sm:$0xff]   ;;  %v2742_v47 = vld [vmem:[%s2853_s15 + $0x1c8] ss:$20 sps:$4 sm:$0xff]  }
  0x40   : > { %2389 = vmatpush3.bf16.msra.mxu1 %v2656_v49  ;;  %1166 = vmatprep.mubr.bf16.mxu0 %v2660_v51  ;;  %v2745_v49 = vld [vmem:[%s2853_s15 + $0x1f0] ss:$20 sps:$4 sm:$0xff]   ;;  %v2747_v51 = vld [vmem:[%s2853_s15 + $0x218] ss:$20 sps:$4 sm:$0xff]  }
  0x41   : > { %2390 = vmatprep.subr.bf16.mxu1 %v2657_v50  ;;  %1295 = vmatprep.mubr.bf16.mxu1 %v2664_v53  ;;  %v2746_v50 = vld [vmem:[%s2853_s15 + $0x238] ss:$20 sps:$4 sm:$0xff]   ;;  %v2750_v53 = vld [vmem:[%s2853_s15 + $0x240] ss:$20 sps:$4 sm:$0xff]  }
  0x42   : > { %2523 = vmatpush3.bf16.msra.mxu0 %v2692_v57 }
  0x43   : > { %2524 = vmatprep.subr.bf16.mxu0 %v2699_v60 }
  0x44   : > { %2391 = vmatpush3.bf16.msra.mxu1 %v2659_v54  ;;  %v2751_v54 = vld [vmem:[%s2853_s15 + $0x260] ss:$20 sps:$4 sm:$0xff]  }
  0x46   : > { %2525 = vmatpush3.bf16.msra.mxu0 %v2699_v60 }
  0x47   : > { %1167 = vmatmul.mubr.bf16.gmra.mrb[16].mxu0 %v2665_v56  ;;  %1296 = vmatmul.mubr.bf16.vlgmr.msra.gmra.mrb[16].mxu1 %v2662_v55  ;;  %v2752_v55 = vld [vmem:[%s2853_s15 + $0x268] ss:$20 sps:$4 sm:$0xff]  }
  0x48   : > { %1174 = vmatprep.mubr.bf16.mxu0 %v2666_v58  ;;  %1303 = vmatprep.mubr.bf16.mxu1 %v2668_v59 }
  0x49   : > { %2526 = vmatprep.subr.bf16.mxu0 %v2712_v1 }
  0x4a   : > { %2527 = vmatpush3.bf16.msra.mxu0 %v2712_v1 }
  0x4f   : > { %1175 = vmatmul.mubr.bf16.gmra.mrb[20].mxu0 %v2670_v61  ;;  %1304 = vmatmul.mubr.bf16.gmra.mrb[20].mxu1 %v2671_v62 }
  0x50   : > { %1182 = vmatprep.mubr.bf16.mxu0 %v2673_v63  ;;  %1311 = vmatprep.mubr.bf16.mxu1 %v2675_v0 }
  0x57   : > { %1183 = vmatmul.mubr.bf16.gmra.mrb[24].mxu0 %v2677_v2  ;;  %1312 = vmatmul.mubr.bf16.gmra.mrb[24].mxu1 %v2678_v3 }
  0x58   : > { %1190 = vmatprep.mubr.bf16.mxu0 %v2680_v4  ;;  %1319 = vmatprep.mubr.bf16.mxu1 %v2682_v5 }
  0x5f   : > { %1191 = vmatmul.mubr.bf16.gmra.mrb[28].mxu0 %v2684_v6  ;;  %1320 = vmatmul.mubr.bf16.gmra.mrb[28].mxu1 %v2685_v7 }
  0x60   : > { %1198 = vmatprep.mubr.bf16.mxu0 %v2686_v8  ;;  %1327 = vmatprep.mubr.bf16.mxu1 %v2688_v9 }
  0x67   : > { %1199 = vmatmul.mubr.bf16.gmra.mrb[32].mxu0 %v2690_v10  ;;  %1328 = vmatmul.mubr.bf16.gmra.mrb[32].mxu1 %v2691_v11 }
  0x68   : > { %1206 = vmatprep.mubr.bf16.mxu0 %v2693_v12  ;;  %1335 = vmatprep.mubr.bf16.mxu1 %v2695_v13 }
  0x6f   : > { %1207 = vmatmul.mubr.bf16.gmra.mrb[36].mxu0 %v2697_v14  ;;  %1336 = vmatmul.mubr.bf16.gmra.mrb[36].mxu1 %v2698_v15 }
  0x70   : > { %1214 = vmatprep.mubr.bf16.mxu0 %v2700_v16  ;;  %1343 = vmatprep.mubr.bf16.mxu1 %v2702_v17 }
  0x77   : > { %1215 = vmatmul.mubr.bf16.gmra.mrb[40].mxu0 %v2704_v18  ;;  %1344 = vmatmul.mubr.bf16.gmra.mrb[40].mxu1 %v2705_v19 }
  0x78   : > { %1222 = vmatprep.mubr.bf16.mxu0 %v2706_v20  ;;  %1351 = vmatprep.mubr.bf16.mxu1 %v2708_v21 }
  0x7f   : > { %1223 = vmatmul.mubr.bf16.gmra.mrb[44].mxu0 %v2710_v22  ;;  %1352 = vmatmul.mubr.bf16.gmra.mrb[44].mxu1 %v2711_v23 }
  0x80   : > { %1359 = vmatprep.mubr.bf16.mxu1 %v2713_v24  ;;  %2528 = vmatprep.mubr.bf16.mxu0 %v2715_v25 }
  0x87   : > { %1360 = vmatmul.mubr.bf16.gmra.mrb[48].mxu1 %v2716_v26  ;;  %2529 = vmatmul.mubr.bf16.vlgmr.msra.gmra.mrb[48].mxu0 %v2717_v27 }
  0x88   : > { %1367 = vmatprep.mubr.bf16.mxu1 %v2718_v28  ;;  %2532 = vmatprep.mubr.bf16.mxu0 %v2720_v29 }
  0x8f   : > { %1368 = vmatmul.mubr.bf16.gmra.mrb[52].mxu1 %v2721_v30  ;;  %2533 = vmatmul.mubr.bf16.gmra.mrb[52].mxu0 %v2722_v31 }
  0x90   : > { %1375 = vmatprep.mubr.bf16.mxu1 %v2723_v32  ;;  %2536 = vmatprep.mubr.bf16.mxu0 %v2725_v33 }
  0x97   : > { %1376 = vmatmul.mubr.bf16.gmra.mrb[56].mxu1 %v2726_v34  ;;  %2537 = vmatmul.mubr.bf16.gmra.mrb[56].mxu0 %v2727_v35 }
  0x98   : > { %1383 = vmatprep.mubr.bf16.mxu1 %v2728_v36  ;;  %2540 = vmatprep.mubr.bf16.mxu0 %v2730_v37 }
  0x9f   : > { %1384 = vmatmul.mubr.bf16.gmra.mrb[60].mxu1 %v2731_v38  ;;  %2541 = vmatmul.mubr.bf16.gmra.mrb[60].mxu0 %v2732_v39 }
  0xa0   : > { %1391 = vmatprep.mubr.bf16.mxu1 %v2733_v40  ;;  %2544 = vmatprep.mubr.bf16.mxu0 %v2735_v41 }
  0xa7   : > { %1392 = vmatmul.mubr.bf16.gmra.mrb[64].mxu1 %v2736_v42  ;;  %2545 = vmatmul.mubr.bf16.gmra.mrb[64].mxu0 %v2737_v43 }
  0xa8   : > { %1399 = vmatprep.mubr.bf16.mxu1 %v2738_v44  ;;  %2548 = vmatprep.mubr.bf16.mxu0 %v2740_v45 }
  0xaf   : > { %1400 = vmatmul.mubr.bf16.gmra.mrb[68].mxu1 %v2741_v46  ;;  %2549 = vmatmul.mubr.bf16.gmra.mrb[68].mxu0 %v2742_v47 }
  0xb0   : > { %1407 = vmatprep.mubr.bf16.mxu1 %v2743_v48  ;;  %2552 = vmatprep.mubr.bf16.mxu0 %v2745_v49 }
  0xb7   : > { %1408 = vmatmul.mubr.bf16.gmra.mrb[72].mxu1 %v2746_v50  ;;  %2553 = vmatmul.mubr.bf16.gmra.mrb[72].mxu0 %v2747_v51 }
  0xb8   : > { %1415 = vmatprep.mubr.bf16.mxu1 %v2748_v52  ;;  %2556 = vmatprep.mubr.bf16.mxu0 %v2750_v53 }
  0xbf   : > { %1416 = vmatmul.mubr.bf16.gmra.mrb[76].mxu1 %v2751_v54  ;;  %2557 = vmatmul.mubr.bf16.gmra.mrb[76].mxu0 %v2752_v55 }
  0xfa   : > { %v2352_v56 = vpop.f32.mrb[0].mxu1  ;;  %v2280_v57 = vpop.f32.mrb[0].mxu0 }
  0xfb   : > { %v2353_v58 = vpop.f32.mrb[1].mxu1  ;;  %v2281_v59 = vpop.f32.mrb[1].mxu0 }
  0xfc   : > { %v3028_v60 = vadd.f32 %v2353_v58, %v2352_v56  ;;  %v2355_v61 = vpop.f32.mrb[2].mxu1  ;;  %v2282_v62 = vadd.f32 %v2281_v59, %v2280_v57  ;;  %v2283_v63 = vpop.f32.mrb[2].mxu0 }
  0xfd   : > { %v2356_v0 = vpop.f32.mrb[3].mxu1  ;;  %v2284_v1 = vpop.f32.mrb[3].mxu0 }
  0xfe   : > { %v3030_v2 = vadd.f32 %v2356_v0, %v2355_v61  ;;  %v2285_v3 = vadd.f32 %v2284_v1, %v2283_v63 }
 0x102   : > { %v2358_v4 = vpop.f32.mrb[4].mxu1  ;;  %v2286_v5 = vpop.f32.mrb[4].mxu0 }
 0x103   : > { %v2359_v6 = vpop.f32.mrb[5].mxu1  ;;  %v2287_v7 = vpop.f32.mrb[5].mxu0 }
 0x104   : > { %v3032_v8 = vadd.f32 %v2359_v6, %v2358_v4  ;;  %v2361_v9 = vpop.f32.mrb[6].mxu1  ;;  %v2288_v10 = vadd.f32 %v2287_v7, %v2286_v5  ;;  %v2289_v11 = vpop.f32.mrb[6].mxu0 }
 0x105   : > { %v2362_v12 = vpop.f32.mrb[7].mxu1  ;;  %v2290_v13 = vpop.f32.mrb[7].mxu0 }
 0x106   : > { %v3034_v14 = vadd.f32 %v2362_v12, %v2361_v9  ;;  %v2291_v15 = vadd.f32 %v2290_v13, %v2289_v11 }
 0x10a   : > { %v2364_v16 = vpop.f32.mrb[8].mxu1  ;;  %v2292_v17 = vpop.f32.mrb[8].mxu0 }
 0x10b   : > { %v2365_v18 = vpop.f32.mrb[9].mxu1  ;;  %v2293_v19 = vpop.f32.mrb[9].mxu0 }
 0x10c   : > { %v3036_v20 = vadd.f32 %v2365_v18, %v2364_v16  ;;  %v2367_v21 = vpop.f32.mrb[10].mxu1  ;;  %v2294_v22 = vadd.f32 %v2293_v19, %v2292_v17  ;;  %v2295_v23 = vpop.f32.mrb[10].mxu0 }
 0x10d   : > { %v2368_v24 = vpop.f32.mrb[11].mxu1  ;;  %v2296_v25 = vpop.f32.mrb[11].mxu0 }
 0x10e   : > { %v3038_v26 = vadd.f32 %v2368_v24, %v2367_v21  ;;  %v2297_v27 = vadd.f32 %v2296_v25, %v2295_v23 }
 0x112   : > { %v2370_v28 = vpop.f32.mrb[12].mxu1  ;;  %v2298_v29 = vpop.f32.mrb[12].mxu0 }
 0x113   : > { %v2371_v30 = vpop.f32.mrb[13].mxu1  ;;  %v2299_v31 = vpop.f32.mrb[13].mxu0 }
 0x114   : > { %v3040_v32 = vadd.f32 %v2371_v30, %v2370_v28  ;;  %v2373_v33 = vpop.f32.mrb[14].mxu1  ;;  %v2300_v34 = vadd.f32 %v2299_v31, %v2298_v29  ;;  %v2301_v35 = vpop.f32.mrb[14].mxu0 }
 0x115   : > { %v2374_v36 = vpop.f32.mrb[15].mxu1  ;;  %v2302_v37 = vpop.f32.mrb[15].mxu0 }
 0x116   : > { %v3042_v38 = vadd.f32 %v2374_v36, %v2373_v33  ;;  %v2303_v39 = vadd.f32 %v2302_v37, %v2301_v35 }
 0x11a   : > { %v2392_v40 = vpop.f32.mrb[16].mxu1  ;;  %v2304_v41 = vpop.f32.mrb[16].mxu0 }
 0x11b   : > { %v2393_v42 = vpop.f32.mrb[17].mxu1  ;;  %v2305_v43 = vpop.f32.mrb[17].mxu0 }
 0x11c   : > { %v2394_v44 = vadd.f32 %v2393_v42, %v2392_v40  ;;  %v2395_v45 = vpop.f32.mrb[18].mxu1  ;;  %v2306_v46 = vadd.f32 %v2305_v43, %v2304_v41  ;;  %v2307_v47 = vpop.f32.mrb[18].mxu0 }
 0x11d   : > { %v2396_v48 = vpop.f32.mrb[19].mxu1  ;;  %v2308_v49 = vpop.f32.mrb[19].mxu0 }
 0x11e   : > { %v2397_v50 = vadd.f32 %v2396_v48, %v2395_v45  ;;  %v2309_v51 = vadd.f32 %v2308_v49, %v2307_v47  ;;  %v3044_v52 = vadd.f32 %v2394_v44, %v2282_v62 }
 0x120   : > { %v3046_v53 = vadd.f32 %v2397_v50, %v2285_v3 }
 0x122   : > { %v2398_v54 = vpop.f32.mrb[20].mxu1  ;;  %v2310_v55 = vpop.f32.mrb[20].mxu0 }
 0x123   : > { %v2399_v56 = vpop.f32.mrb[21].mxu1  ;;  %v2311_v57 = vpop.f32.mrb[21].mxu0 }
 0x124   : > { %v2400_v58 = vadd.f32 %v2399_v56, %v2398_v54  ;;  %v2401_v59 = vpop.f32.mrb[22].mxu1  ;;  %v2312_v61 = vadd.f32 %v2311_v57, %v2310_v55  ;;  %v2313_v63 = vpop.f32.mrb[22].mxu0 }
 0x125   : > { %v2402_v0 = vpop.f32.mrb[23].mxu1  ;;  %v2314_v1 = vpop.f32.mrb[23].mxu0 }
 0x126   : > { %v2403_v4 = vadd.f32 %v2402_v0, %v2401_v59  ;;  %v2315_v5 = vadd.f32 %v2314_v1, %v2313_v63  ;;  %v3048_v6 = vadd.f32 %v2400_v58, %v2288_v10 }
 0x128   : > { %v3050_v7 = vadd.f32 %v2403_v4, %v2291_v15 }
 0x12a   : > { %v2404_v62 = vpop.f32.mrb[24].mxu1  ;;  %v2316_v9 = vpop.f32.mrb[24].mxu0 }
 0x12b   : > { %v2405_v3 = vpop.f32.mrb[25].mxu1  ;;  %v2317_v11 = vpop.f32.mrb[25].mxu0 }
 0x12c   : > { %v2406_v12 = vadd.f32 %v2405_v3, %v2404_v62  ;;  %v2407_v13 = vpop.f32.mrb[26].mxu1  ;;  %v2318_v16 = vadd.f32 %v2317_v11, %v2316_v9  ;;  %v2319_v17 = vpop.f32.mrb[26].mxu0 }
 0x12d   : > { %v2408_v18 = vpop.f32.mrb[27].mxu1  ;;  %v2320_v19 = vpop.f32.mrb[27].mxu0 }
 0x12e   : > { %v2409_v21 = vadd.f32 %v2408_v18, %v2407_v13  ;;  %v2321_v23 = vadd.f32 %v2320_v19, %v2319_v17  ;;  %v3052_v24 = vadd.f32 %v2406_v12, %v2294_v22 }
 0x130   : > { %v3054_v25 = vadd.f32 %v2409_v21, %v2297_v27 }
 0x132   : > { %v2410_v10 = vpop.f32.mrb[28].mxu1  ;;  %v2322_v28 = vpop.f32.mrb[28].mxu0 }
 0x133   : > { %v2411_v15 = vpop.f32.mrb[29].mxu1  ;;  %v2323_v29 = vpop.f32.mrb[29].mxu0 }
 0x134   : > { %v2412_v30 = vadd.f32 %v2411_v15, %v2410_v10  ;;  %v2413_v31 = vpop.f32.mrb[30].mxu1  ;;  %v2324_v33 = vadd.f32 %v2323_v29, %v2322_v28  ;;  %v2325_v35 = vpop.f32.mrb[30].mxu0 }
 0x135   : > { %v2414_v36 = vpop.f32.mrb[31].mxu1  ;;  %v2326_v37 = vpop.f32.mrb[31].mxu0 }
 0x136   : > { %v2415_v40 = vadd.f32 %v2414_v36, %v2413_v31  ;;  %v2327_v41 = vadd.f32 %v2326_v37, %v2325_v35  ;;  %v3056_v42 = vadd.f32 %v2412_v30, %v2300_v34 }
 0x138   : > { %v3058_v43 = vadd.f32 %v2415_v40, %v2303_v39 }
 0x13a   : > { %v2416_v22 = vpop.f32.mrb[32].mxu1  ;;  %v2328_v44 = vpop.f32.mrb[32].mxu0 }
 0x13b   : > { %v2417_v27 = vpop.f32.mrb[33].mxu1  ;;  %v2329_v45 = vpop.f32.mrb[33].mxu0 }
 0x13c   : > { %v2418_v47 = vadd.f32 %v2417_v27, %v2416_v22  ;;  %v2419_v48 = vpop.f32.mrb[34].mxu1  ;;  %v3060_v49 = vadd.f32 %v2329_v45, %v2328_v44  ;;  %v2331_v50 = vpop.f32.mrb[34].mxu0 }
 0x13d   : > { %v2420_v54 = vpop.f32.mrb[35].mxu1  ;;  %v2332_v55 = vpop.f32.mrb[35].mxu0 }
 0x13e   : > { %v2421_v56 = vadd.f32 %v2420_v54, %v2419_v48  ;;  %v3062_v57 = vadd.f32 %v2332_v55, %v2331_v50  ;;  %v3064_v58 = vadd.f32 %v2418_v47, %v2306_v46 }
 0x140   : > { %v3066_v34 = vadd.f32 %v2421_v56, %v2309_v51 }
 0x142   : > { %v2422_v39 = vpop.f32.mrb[36].mxu1  ;;  %v2334_v59 = vpop.f32.mrb[36].mxu0 }
 0x143   : > { %v2423_v63 = vpop.f32.mrb[37].mxu1  ;;  %v2335_v0 = vpop.f32.mrb[37].mxu0 }
 0x144   : > { %v2424_v1 = vadd.f32 %v2423_v63, %v2422_v39  ;;  %v2425_v4 = vpop.f32.mrb[38].mxu1  ;;  %v3068_v62 = vadd.f32 %v2335_v0, %v2334_v59  ;;  %v2337_v9 = vpop.f32.mrb[38].mxu0  ;;  %v3095_v63 = vld [vmem:[%s3249_s2] ss:$0 sm:$0xff] }
 0x145   : > { %v2426_v3 = vpop.f32.mrb[39].mxu1  ;;  %v2338_v11 = vpop.f32.mrb[39].mxu0 }
 0x146   : > { %v2427_v12 = vadd.f32 %v2426_v3, %v2425_v4  ;;  %v3070_v13 = vadd.f32 %v2338_v11, %v2337_v9  ;;  %v3072_v17 = vadd.f32 %v2424_v1, %v2312_v61  ;;  %v3101_v9 = vld [vmem:[%s3250_s3] ss:$0 sm:$0xff] }
 0x148   : > { %v3074_v46 = vadd.f32 %v2427_v12, %v2315_v5 }
 0x14a   : > { %v2428_v51 = vpop.f32.mrb[40].mxu1  ;;  %v2340_v18 = vpop.f32.mrb[40].mxu0 }
 0x14b   : > { %v2429_v19 = vpop.f32.mrb[41].mxu1  ;;  %v2341_v21 = vpop.f32.mrb[41].mxu0 }
 0x14c   : > { %v2430_v10 = vadd.f32 %v2429_v19, %v2428_v51  ;;  %v2431_v28 = vpop.f32.mrb[42].mxu1  ;;  %v3076_v15 = vadd.f32 %v2341_v21, %v2340_v18  ;;  %v2343_v29 = vpop.f32.mrb[42].mxu0 }
 0x14d   : > { %v2432_v30 = vpop.f32.mrb[43].mxu1  ;;  %v2344_v31 = vpop.f32.mrb[43].mxu0 }
 0x14e   : > { %v2433_v35 = vadd.f32 %v2432_v30, %v2431_v28  ;;  %v3078_v36 = vadd.f32 %v2344_v31, %v2343_v29  ;;  %v3080_v37 = vadd.f32 %v2430_v10, %v2318_v16 }
 0x150   : > { %v3082_v61 = vadd.f32 %v2433_v35, %v2321_v23 }
 0x152   : > { %v2434_v5 = vpop.f32.mrb[44].mxu1  ;;  %v2346_v40 = vpop.f32.mrb[44].mxu0 }
 0x153   : > { %v2435_v22 = vpop.f32.mrb[45].mxu1  ;;  %v2347_v44 = vpop.f32.mrb[45].mxu0 }
 0x154   : > { %v2436_v27 = vadd.f32 %v2435_v22, %v2434_v5  ;;  %v2437_v45 = vpop.f32.mrb[46].mxu1  ;;  %v3084_v47 = vadd.f32 %v2347_v44, %v2346_v40  ;;  %v2349_v48 = vpop.f32.mrb[46].mxu0 }
 0x155   : > { %v2438_v50 = vpop.f32.mrb[47].mxu1  ;;  %v2350_v54 = vpop.f32.mrb[47].mxu0 }
 0x156   : > { %v2439_v55 = vadd.f32 %v2438_v50, %v2437_v45  ;;  %v3086_v56 = vadd.f32 %v2350_v54, %v2349_v48  ;;  %v3088_v39 = vadd.f32 %v2436_v27, %v2324_v33 }
 0x158   : > { %v3090_v16 = vadd.f32 %v2439_v55, %v2327_v41 }
 0x15a   : > { %v2440_v23 = vpop.f32.mrb[48].mxu1  ;;  %v2530_v59 = vpop.f32.mrb[48].mxu0 }
 0x15b   : > { %v1467_v0 = vadd.f32 %v2530_v59, %v3048_v6  ;;  %v2441_v1 = vpop.f32.mrb[49].mxu1  ;;  %v1458_v4 = vpop.f32.mrb[49].mxu0 }
 0x15c   : > { %v2442_v33 = vadd.f32 %v2441_v1, %v2440_v23  ;;  %v1459_v41 = vadd.f32 %v1458_v4, %v3044_v52  ;;  %v2443_v3 = vpop.f32.mrb[50].mxu1  ;;  %v2531_v11 = vpop.f32.mrb[50].mxu0 }
 0x15d   : > { %v1594_v12 = vmul.f32 %v3095_v63, %v1467_v0  ;;  %v1470_v51 = vadd.f32 %v2531_v11, %v3050_v7  ;;  %v2444_v18 = vpop.f32.mrb[51].mxu1  ;;  %v1461_v19 = vpop.f32.mrb[51].mxu0 }
 0x15e   : > { %v1592_v6 = vmul.f32 %v3095_v63, %v1459_v41  ;;  %v2445_v21 = vadd.f32 %v2444_v18, %v2443_v3  ;;  %v1462_v10 = vadd.f32 %v1461_v19, %v3046_v53  ;;  %v3109_v28 = vadd.f32 %v2442_v33, %v3060_v49 }
 0x15f   : > { %v1633_v29 = vadd.f32 %v3101_v9, %v1594_v12  ;;  %v1595_v52 = vmul.f32 %v3095_v63, %v1470_v51 }
 0x160   : > { %v1631_v30 = vadd.f32 %v3101_v9, %v1592_v6  ;;  %v1593_v31 = vmul.f32 %v3095_v63, %v1462_v10  ;;  %v3116_v7 = vadd.f32 %v2445_v21, %v3062_v57 }
 0x161   : > { %v1634_v35 = vadd.f32 %v3101_v9, %v1595_v52  ;;  %v1665_v49 = vmax.f32 %v1633_v29, 0.0 }
 0x162   : > { %v1632_v5 = vadd.f32 %v3101_v9, %v1593_v31  ;;  %v2446_v53 = vpop.f32.mrb[52].mxu1  ;;  %v2534_v40 = vpop.f32.mrb[52].mxu0  ;;  %v1663_v48 = vmax.f32 %v1631_v30, 0.0 }
 0x163   : > { %v1666_v22 = vmax.f32 %v1634_v35, 0.0  ;;  %v1483_v44 = vadd.f32 %v2534_v40, %v3056_v42  ;;  %v2447_v27 = vpop.f32.mrb[53].mxu1  ;;  %v1474_v45 = vpop.f32.mrb[53].mxu0 }
 0x164   : > { %v1664_v57 = vmax.f32 %v1632_v5, 0.0  ;;  %v2448_v50 = vadd.f32 %v2447_v27, %v2446_v53  ;;  %v1475_v54 = vadd.f32 %v1474_v45, %v3052_v24  ;;  %v2449_v55 = vpop.f32.mrb[54].mxu1  ;;  %v2535_v23 = vpop.f32.mrb[54].mxu0 }
 0x165   : > { %v2177_v59 = vpack.c.bf16 %v1666_v22, %v1665_v49  ;;  %v1598_v0 = vmul.f32 %v3095_v63, %v1483_v44  ;;  %v1486_v42 = vadd.f32 %v2535_v23, %v3058_v43  ;;  %v2450_v1 = vpop.f32.mrb[55].mxu1  ;;  %v1477_v4 = vpop.f32.mrb[55].mxu0 }
 0x166   : > { %v2172_v33 = vpack.c.bf16 %v1664_v57, %v1663_v48  ;;  %v1596_v41 = vmul.f32 %v3095_v63, %v1475_v54  ;;  %v2451_v3 = vadd.f32 %v2450_v1, %v2449_v55  ;;  %v1478_v11 = vadd.f32 %v1477_v4, %v3054_v25 }
 0x167   : > { %2249 = vst [vmem:[%s3125_s25 + $0x8] sm:$0xff] %v2177_v59   ;;  %v1637_v12 = vadd.f32 %v3101_v9, %v1598_v0  ;;  %v1599_v24 = vmul.f32 %v3095_v63, %v1486_v42  ;;  %v3136_v51 = vadd.f32 %v2448_v50, %v3068_v62 }
 0x168   : > { %2173 = vst [vmem:[%s3125_s25] sm:$0xff] %v2172_v33   ;;  %v1635_v18 = vadd.f32 %v3101_v9, %v1596_v41  ;;  %v1597_v43 = vmul.f32 %v3095_v63, %v1478_v11  ;;  %v3142_v19 = vadd.f32 %v2451_v3, %v3070_v13 }
 0x169   : > { %v1638_v6 = vadd.f32 %v3101_v9, %v1599_v24  ;;  %v1669_v29 = vmax.f32 %v1637_v12, 0.0 }
 0x16a   : > { %v1636_v25 = vadd.f32 %v3101_v9, %v1597_v43  ;;  %v2452_v21 = vpop.f32.mrb[56].mxu1  ;;  %v2538_v10 = vpop.f32.mrb[56].mxu0  ;;  %v1667_v35 = vmax.f32 %v1635_v18, 0.0 }
 0x16b   : > { %v1670_v52 = vmax.f32 %v1638_v6, 0.0  ;;  %v1499_v30 = vadd.f32 %v2538_v10, %v3072_v17  ;;  %v2453_v62 = vpop.f32.mrb[57].mxu1  ;;  %v1490_v31 = vpop.f32.mrb[57].mxu0 }
 0x16c   : > { %v1668_v5 = vmax.f32 %v1636_v25, 0.0  ;;  %v2454_v53 = vadd.f32 %v2453_v62, %v2452_v21  ;;  %v1491_v40 = vadd.f32 %v1490_v31, %v3064_v58  ;;  %v2455_v13 = vpop.f32.mrb[58].mxu1  ;;  %v2539_v49 = vpop.f32.mrb[58].mxu0 }
 0x16d   : > { %v2187_v22 = vpack.c.bf16 %v1670_v52, %v1669_v29  ;;  %v1602_v44 = vmul.f32 %v3095_v63, %v1499_v30  ;;  %v1502_v27 = vadd.f32 %v2539_v49, %v3074_v46  ;;  %v2456_v45 = vpop.f32.mrb[59].mxu1  ;;  %v1493_v48 = vpop.f32.mrb[59].mxu0 }
 0x16e   : > { %v2182_v57 = vpack.c.bf16 %v1668_v5, %v1667_v35  ;;  %v1600_v17 = vmul.f32 %v3095_v63, %v1491_v40  ;;  %v2457_v50 = vadd.f32 %v2456_v45, %v2455_v13  ;;  %v1494_v54 = vadd.f32 %v1493_v48, %v3066_v34 }
 0x16f   : > { %2251 = vst [vmem:[%s3125_s25 + $0x18] sm:$0xff] %v2187_v22   ;;  %v1641_v55 = vadd.f32 %v3101_v9, %v1602_v44  ;;  %v1603_v58 = vmul.f32 %v3095_v63, %v1502_v27  ;;  %v3156_v23 = vadd.f32 %v2454_v53, %v3076_v15 }
 0x170   : > { %2250 = vst [vmem:[%s3125_s25 + $0x10] sm:$0xff] %v2182_v57   ;;  %v1639_v59 = vadd.f32 %v3101_v9, %v1600_v17  ;;  %v1601_v46 = vmul.f32 %v3095_v63, %v1494_v54  ;;  %v3162_v0 = vadd.f32 %v2457_v50, %v3078_v36 }
 0x171   : > { %v1642_v42 = vadd.f32 %v3101_v9, %v1603_v58  ;;  %v1673_v33 = vmax.f32 %v1641_v55, 0.0 }
 0x172   : > { %v1640_v34 = vadd.f32 %v3101_v9, %v1601_v46  ;;  %v2458_v1 = vpop.f32.mrb[60].mxu1  ;;  %v2542_v4 = vpop.f32.mrb[60].mxu0  ;;  %v1671_v12 = vmax.f32 %v1639_v59, 0.0 }
 0x173   : > { %v1674_v41 = vmax.f32 %v1642_v42, 0.0  ;;  %v1515_v3 = vadd.f32 %v2542_v4, %v3088_v39  ;;  %v2459_v15 = vpop.f32.mrb[61].mxu1  ;;  %v1506_v11 = vpop.f32.mrb[61].mxu0 }
 0x174   : > { %v1672_v24 = vmax.f32 %v1640_v34, 0.0  ;;  %v2460_v18 = vadd.f32 %v2459_v15, %v2458_v1  ;;  %v1507_v43 = vadd.f32 %v1506_v11, %v3080_v37  ;;  %v2461_v36 = vpop.f32.mrb[62].mxu1  ;;  %v2543_v6 = vpop.f32.mrb[62].mxu0 }
 0x175   : > { %v2197_v25 = vpack.c.bf16 %v1674_v41, %v1673_v33  ;;  %v1606_v21 = vmul.f32 %v3095_v63, %v1515_v3  ;;  %v1518_v10 = vadd.f32 %v2543_v6, %v3090_v16  ;;  %v2462_v29 = vpop.f32.mrb[63].mxu1  ;;  %v1509_v52 = vpop.f32.mrb[63].mxu0 }
 0x176   : > { %v2192_v30 = vpack.c.bf16 %v1672_v24, %v1671_v12  ;;  %v1604_v39 = vmul.f32 %v3095_v63, %v1507_v43  ;;  %v2463_v62 = vadd.f32 %v2462_v29, %v2461_v36  ;;  %v1510_v31 = vadd.f32 %v1509_v52, %v3082_v61 }
 0x177   : > { %2253 = vst [vmem:[%s3125_s25 + $0x28] sm:$0xff] %v2197_v25   ;;  %v1645_v35 = vadd.f32 %v3101_v9, %v1606_v21  ;;  %v1607_v37 = vmul.f32 %v3095_v63, %v1518_v10  ;;  %v1386_v5 = vadd.f32 %v2460_v18, %v3084_v47 }
 0x178   : > { %2252 = vst [vmem:[%s3125_s25 + $0x20] sm:$0xff] %v2192_v30   ;;  %v1643_v53 = vadd.f32 %v3101_v9, %v1604_v39  ;;  %v1605_v16 = vmul.f32 %v3095_v63, %v1510_v31  ;;  %v1389_v40 = vadd.f32 %v2463_v62, %v3086_v56 }
 0x179   : > { %v1646_v13 = vadd.f32 %v3101_v9, %v1607_v37  ;;  %v1677_v44 = vmax.f32 %v1645_v35, 0.0 }
 0x17a   : > { %v1644_v49 = vadd.f32 %v3101_v9, %v1605_v16  ;;  %v2464_v22 = vpop.f32.mrb[64].mxu1  ;;  %v2546_v61 = vpop.f32.mrb[64].mxu0  ;;  %v1675_v47 = vmax.f32 %v1643_v53, 0.0 }
 0x17b   : > { %v1678_v27 = vmax.f32 %v1646_v13, 0.0  ;;  %v1531_v45 = vadd.f32 %v2546_v61, %v3136_v51  ;;  %v2465_v48 = vpop.f32.mrb[65].mxu1  ;;  %v1522_v57 = vpop.f32.mrb[65].mxu0 }
 0x17c   : > { %v1676_v17 = vmax.f32 %v1644_v49, 0.0  ;;  %v2466_v50 = vadd.f32 %v2465_v48, %v2464_v22  ;;  %v1523_v54 = vadd.f32 %v1522_v57, %v3109_v28  ;;  %v2467_v56 = vpop.f32.mrb[66].mxu1  ;;  %v2547_v55 = vpop.f32.mrb[66].mxu0 }
 0x17d   : > { %v2207_v58 = vpack.c.bf16 %v1678_v27, %v1677_v44  ;;  %v1610_v59 = vmul.f32 %v3095_v63, %v1531_v45  ;;  %v1534_v46 = vadd.f32 %v2547_v55, %v3142_v19  ;;  %v2468_v42 = vpop.f32.mrb[67].mxu1  ;;  %v1525_v34 = vpop.f32.mrb[67].mxu0 }
 0x17e   : > { %v2202_v1 = vpack.c.bf16 %v1676_v17, %v1675_v47  ;;  %v1608_v51 = vmul.f32 %v3095_v63, %v1523_v54  ;;  %v2469_v4 = vadd.f32 %v2468_v42, %v2467_v56  ;;  %v1526_v33 = vadd.f32 %v1525_v34, %v3116_v7 }
 0x17f   : > { %2255 = vst [vmem:[%s3125_s25 + $0x38] sm:$0xff] %v2207_v58   ;;  %v1649_v41 = vadd.f32 %v3101_v9, %v1610_v59  ;;  %v1611_v28 = vmul.f32 %v3095_v63, %v1534_v46  ;;  %v1394_v3 = vadd.f32 %v2466_v50, %v3028_v60 }
 0x180   : > { %2254 = vst [vmem:[%s3125_s25 + $0x30] sm:$0xff] %v2202_v1   ;;  %v1647_v15 = vadd.f32 %v3101_v9, %v1608_v51  ;;  %v1609_v19 = vmul.f32 %v3095_v63, %v1526_v33  ;;  %v1397_v11 = vadd.f32 %v2469_v4, %v3030_v2 }
 0x181   : > { %v1650_v12 = vadd.f32 %v3101_v9, %v1611_v28  ;;  %v1681_v43 = vmax.f32 %v1649_v41, 0.0 }
 0x182   : > { %v1648_v24 = vadd.f32 %v3101_v9, %v1609_v19  ;;  %v2470_v18 = vpop.f32.mrb[68].mxu1  ;;  %v2550_v7 = vpop.f32.mrb[68].mxu0  ;;  %v1679_v60 = vmax.f32 %v1647_v15, 0.0 }
 0x183   : > { %v1682_v36 = vmax.f32 %v1650_v12, 0.0  ;;  %v1547_v6 = vadd.f32 %v2550_v7, %v1386_v5  ;;  %v2471_v25 = vpop.f32.mrb[69].mxu1  ;;  %v1538_v21 = vpop.f32.mrb[69].mxu0 }
 0x184   : > { %v1680_v10 = vmax.f32 %v1648_v24, 0.0  ;;  %v2472_v29 = vadd.f32 %v2471_v25, %v2470_v18  ;;  %v1539_v52 = vadd.f32 %v1538_v21, %v3156_v23  ;;  %v2473_v30 = vpop.f32.mrb[70].mxu1  ;;  %v2551_v2 = vpop.f32.mrb[70].mxu0 }
 0x185   : > { %v2217_v39 = vpack.c.bf16 %v1682_v36, %v1681_v43  ;;  %v1614_v62 = vmul.f32 %v3095_v63, %v1547_v6  ;;  %v1550_v31 = vadd.f32 %v2551_v2, %v1389_v40  ;;  %v2474_v35 = vpop.f32.mrb[71].mxu1  ;;  %v1541_v37 = vpop.f32.mrb[71].mxu0 }
 0x186   : > { %v2212_v53 = vpack.c.bf16 %v1680_v10, %v1679_v60  ;;  %v1612_v5 = vmul.f32 %v3095_v63, %v1539_v52  ;;  %v2475_v16 = vadd.f32 %v2474_v35, %v2473_v30  ;;  %v1542_v13 = vadd.f32 %v1541_v37, %v3162_v0 }
 0x187   : > { %2257 = vst [vmem:[%s3125_s25 + $0x48] sm:$0xff] %v2217_v39   ;;  %v1653_v49 = vadd.f32 %v3101_v9, %v1614_v62  ;;  %v1615_v23 = vmul.f32 %v3095_v63, %v1550_v31  ;;  %v1402_v22 = vadd.f32 %v2472_v29, %v3032_v8 }
 0x188   : > { %2256 = vst [vmem:[%s3125_s25 + $0x40] sm:$0xff] %v2212_v53   ;;  %v1651_v61 = vadd.f32 %v3101_v9, %v1612_v5  ;;  %v1613_v40 = vmul.f32 %v3095_v63, %v1542_v13  ;;  %v1405_v44 = vadd.f32 %v2475_v16, %v3034_v14 }
 0x189   : > { %v1654_v27 = vadd.f32 %v3101_v9, %v1615_v23  ;;  %v1685_v57 = vmax.f32 %v1653_v49, 0.0 }
 0x18a   : > { %v1652_v45 = vadd.f32 %v3101_v9, %v1613_v40  ;;  %v2476_v48 = vpop.f32.mrb[72].mxu1  ;;  %v2554_v0 = vpop.f32.mrb[72].mxu0  ;;  %v1683_v8 = vmax.f32 %v1651_v61, 0.0 }
 0x18b   : > { %v1686_v47 = vmax.f32 %v1654_v27, 0.0  ;;  %v1563_v17 = vadd.f32 %v2554_v0, %v1402_v22  ;;  %v2477_v50 = vpop.f32.mrb[73].mxu1  ;;  %v1554_v54 = vpop.f32.mrb[73].mxu0 }
 0x18c   : > { %v1684_v56 = vmax.f32 %v1652_v45, 0.0  ;;  %v2478_v55 = vadd.f32 %v2477_v50, %v2476_v48  ;;  %v1555_v58 = vadd.f32 %v1554_v54, %v1394_v3  ;;  %v2479_v59 = vpop.f32.mrb[74].mxu1  ;;  %v2555_v46 = vpop.f32.mrb[74].mxu0 }
 0x18d   : > { %v2227_v14 = vpack.c.bf16 %v1686_v47, %v1685_v57  ;;  %v1618_v42 = vmul.f32 %v3095_v63, %v1563_v17  ;;  %v1566_v34 = vadd.f32 %v2555_v46, %v1405_v44  ;;  %v2480_v1 = vpop.f32.mrb[75].mxu1  ;;  %v1557_v51 = vpop.f32.mrb[75].mxu0 }
 0x18e   : > { %v2222_v4 = vpack.c.bf16 %v1684_v56, %v1683_v8  ;;  %v1616_v33 = vmul.f32 %v3095_v63, %v1555_v58  ;;  %v2481_v41 = vadd.f32 %v2480_v1, %v2479_v59  ;;  %v1558_v28 = vadd.f32 %v1557_v51, %v1397_v11 }
 0x18f   : > { %2259 = vst [vmem:[%s3125_s25 + $0x58] sm:$0xff] %v2227_v14   ;;  %v1657_v15 = vadd.f32 %v3101_v9, %v1618_v42  ;;  %v1619_v19 = vmul.f32 %v3095_v63, %v1566_v34  ;;  %v1410_v3 = vadd.f32 %v2478_v55, %v3036_v20 }
 0x190   : > { %2258 = vst [vmem:[%s3125_s25 + $0x50] sm:$0xff] %v2222_v4   ;;  %v1655_v12 = vadd.f32 %v3101_v9, %v1616_v33  ;;  %v1617_v24 = vmul.f32 %v3095_v63, %v1558_v28  ;;  %v1413_v18 = vadd.f32 %v2481_v41, %v3038_v26 }
 0x191   : > { %v1658_v7 = vadd.f32 %v3101_v9, %v1619_v19  ;;  %v1689_v6 = vmax.f32 %v1657_v15, 0.0 }
 0x192   : > { %v1656_v43 = vadd.f32 %v3101_v9, %v1617_v24  ;;  %v2482_v36 = vpop.f32.mrb[76].mxu1  ;;  %v2558_v11 = vpop.f32.mrb[76].mxu0  ;;  %v1687_v20 = vmax.f32 %v1655_v12, 0.0 }
 0x193   : > { %v1690_v25 = vmax.f32 %v1658_v7, 0.0  ;;  %v2483_v21 = vpop.f32.mrb[77].mxu1  ;;  %v1570_v60 = vpop.f32.mrb[77].mxu0 }
 0x194   : > { %v1688_v10 = vmax.f32 %v1656_v43, 0.0  ;;  %v2484_v29 = vadd.f32 %v2483_v21, %v2482_v36  ;;  %v1571_v52 = vadd.f32 %v1570_v60, %v1410_v3  ;;  %v2485_v30 = vpop.f32.mrb[78].mxu1  ;;  %v2559_v2 = vpop.f32.mrb[78].mxu0 }
 0x195   : > { %v2237_v39 = vpack.c.bf16 %v1690_v25, %v1689_v6  ;;  %v2486_v26 = vpop.f32.mrb[79].mxu1  ;;  %v1573_v62 = vpop.f32.mrb[79].mxu0 }
 0x196   : > { %v2232_v31 = vpack.c.bf16 %v1688_v10, %v1687_v20  ;;  %v1418_v35 = vadd.f32 %v2484_v29, %v3040_v32  ;;  %v1620_v37 = vmul.f32 %v3095_v63, %v1571_v52  ;;  %v2487_v53 = vadd.f32 %v2486_v26, %v2485_v30 }
 0x197   : > { %2261 = vst [vmem:[%s3125_s25 + $0x68] sm:$0xff] %v2237_v39   ;;  %v1574_v5 = vadd.f32 %v1573_v62, %v1413_v18 }
 0x198   : > { %2260 = vst [vmem:[%s3125_s25 + $0x60] sm:$0xff] %v2232_v31   ;;  %v1579_v16 = vadd.f32 %v2558_v11, %v1418_v35  ;;  %v1421_v13 = vadd.f32 %v2487_v53, %v3042_v38  ;;  %v1659_v49 = vadd.f32 %v3101_v9, %v1620_v37 }
 0x199   : > { %v1621_v23 = vmul.f32 %v3095_v63, %v1574_v5 }
 0x19a   : > { %v1622_v22 = vmul.f32 %v3095_v63, %v1579_v16  ;;  %v1582_v61 = vadd.f32 %v2559_v2, %v1421_v13  ;;  %v1691_v27 = vmax.f32 %v1659_v49, 0.0 }
 0x19b   : > { %v1660_v32 = vadd.f32 %v3101_v9, %v1621_v23 }
 0x19c   : > { %v1661_v40 = vadd.f32 %v3101_v9, %v1622_v22  ;;  %v1623_v44 = vmul.f32 %v3095_v63, %v1582_v61 }
 0x19d   : > { %v1692_v45 = vmax.f32 %v1660_v32, 0.0 }
 0x19e   : > { %v1662_v48 = vadd.f32 %v3101_v9, %v1623_v44  ;;  %v1693_v38 = vmax.f32 %v1661_v40, 0.0 }
 0x19f   : > { %v2242_v0 = vpack.c.bf16 %v1692_v45, %v1691_v27 }
 0x1a0   : > { %v1694_v57 = vmax.f32 %v1662_v48, 0.0 }
 0x1a1   : > { %2262 = vst [vmem:[%s3125_s25 + $0x70] sm:$0xff] %v2242_v0  }
 0x1a2   : > { %v2247_v47 = vpack.c.bf16 %v1694_v57, %v1693_v38 }
 0x1a4   : > { %2263 = vst [vmem:[%s3125_s25 + $0x78] sm:$0xff] %v2247_v47  }
 0x1a5 PF: > { %s14_s17 = sadd.s32 1, %s2775_s17   ;;  %s3252_s15 = smov %s2771_s16 }
 0x1a6   : > { %p11_p5 = scmp.ge.s32.totalorder %s14_s17, 23   ;;  %s3253_s16 = smov %s3255_s18 }
 0x1a8   :  { %13 = sbr.rel (!%p11_p5) target bundleno = 2 (0x2), region = 75 }

// kernel: stem_fwd.14
= control target key start
LH: loop header
LB: loop body
LE: loop exit
PB: predicated region body
PF: predicated region fallthrough
CT: control target
= control target key end

     0   :  { %s1625_s15 = smov 0   ;;  %s1627_s16 = smov 0   ;;  %s1836_s0 = inlined_call_operand.vmem [shape: bf16[5376,256], index: 0, kind: input, shape index: {}]   ;;  %s1837_s1 = inlined_call_operand.vmem [shape: bf16[256,128], index: 1, kind: input, shape index: {}]   ;;  %s1838_s2 = inlined_call_operand.vmem [shape: f32[1,128], index: 2, kind: input, shape index: {}]   ;;  %s1839_s3 = inlined_call_operand.vmem [shape: f32[1,128], index: 3, kind: input, shape index: {}]   ;;  %s1840_s4 = inlined_call_operand.vmem [shape: bf16[5376,128], index: 4, kind: output, shape index: {}]  }
   0x1   :  { %s1629_s17 = smov 0  }
   0x2 LB: > { %s26_s18 = sadd.s32 1, %s1594_s16  ;;  %p1142_p0 = scmp.ge.s32.totalorder %s1598_s17, 1  ;;  %s1598_s17 = sphi %s1629_s17, %s14_s17   ;;  %s1594_s16 = sphi %s1627_s16, %s1842_s16   ;;  %s1590_s15 = sphi %s1625_s15, %s1841_s15  }
   0x3   : > { %p28_p1 = scmp.ge.s32.totalorder %s26_s18, 21  ;;  %p203_p2 = scmp.lt.s32.totalorder %s1598_s17, 22 }
   0x5   : > { %s1844_s18 = smov (%p28_p1, %s26_s18), 0  ;;  %p204_p3 = pnand %p1142_p0, %p203_p2 }
   0x6   : > { %v1512_v0 = vld [vmem:[%s1837_s1 + $0x40] sm:$0xff] (!%p204_p3)   ;;  %s1143_s21 = sshll.u32 (!%p204_p3), %s1590_s15, 5  ;;  %v1514_v2 = vld [vmem:[%s1837_s1 + $0x48] sm:$0xff] (!%p204_p3)   ;;  %v1516_v4 = vld [vmem:[%s1837_s1 + $0x50] sm:$0xff] (!%p204_p3)  }
   0x7   : > { %207 = sbr.rel (%p204_p3) target bundleno = 322 (0x142), region = 36  ;;  %v1513_v1 = vld [vmem:[%s1837_s1] sm:$0xff] (!%p204_p3)   ;;  %1360 = vmatprep.subr.bf16.mxu0 (!%p204_p3), %v1512_v0  ;;  %1472 = vmatprep.subr.bf16.mxu1 (!%p204_p3), %v1512_v0  ;;  %v1515_v3 = vld [vmem:[%s1837_s1 + $0x8] sm:$0xff] (!%p204_p3)   ;;  %p244_p4 = scmp.lt.s32.totalorder (!%p204_p3), %s1143_s21, 671  ;;  %v1517_v5 = vld [vmem:[%s1837_s1 + $0x10] sm:$0xff] (!%p204_p3)  }
   0x8   : > { %1361 = vmatpush3.bf16.msra.mxu0 (!%p204_p3), %v1513_v1  ;;  %1480 = vmatpush3.bf16.msra.mxu1 (!%p204_p3), %v1513_v1  ;;  %v1518_v6 = vld [vmem:[%s1837_s1 + $0x58] sm:$0xff] (!%p204_p3)   ;;  %v1520_v8 = vld [vmem:[%s1837_s1 + $0x60] sm:$0xff] (!%p204_p3)   ;;  %v1522_v10 = vld [vmem:[%s1837_s1 + $0x68] sm:$0xff] (!%p204_p3)  }
   0x9   : > { %1362 = vmatprep.subr.bf16.mxu0 (!%p204_p3), %v1514_v2  ;;  %1473 = vmatprep.subr.bf16.mxu1 (!%p204_p3), %v1514_v2  ;;  %v1519_v7 = vld [vmem:[%s1837_s1 + $0x18] sm:$0xff] (!%p204_p3)   ;;  %v1521_v9 = vld [vmem:[%s1837_s1 + $0x20] sm:$0xff] (!%p204_p3)   ;;  %v1523_v13 = vld [vmem:[%s1837_s1 + $0x28] sm:$0xff] (!%p204_p3)  }
   0xa   : > { %v1524_v14 = vld [vmem:[%s1837_s1 + $0x70] sm:$0xff] (!%p204_p3)   ;;  %v1526_v16 = vld [vmem:[%s1837_s1 + $0x78] sm:$0xff] (!%p204_p3)   ;;  %v1734_v51 = vld [vmem:[%s1838_s2] ss:$0 sm:$0xff] (!%p204_p3) }
   0xb   : > { %v1525_v15 = vld [vmem:[%s1837_s1 + $0x30] sm:$0xff] (!%p204_p3)   ;;  %v1527_v17 = vld [vmem:[%s1837_s1 + $0x38] sm:$0xff] (!%p204_p3)   ;;  %v1739_v57 = vld [vmem:[%s1839_s3] ss:$0 sm:$0xff] (!%p204_p3) }
   0xc   : > { %1363 = vmatpush3.bf16.msra.mxu0 (!%p204_p3), %v1515_v3  ;;  %1481 = vmatpush3.bf16.msra.mxu1 (!%p204_p3), %v1515_v3 }
   0xd   : > { %1364 = vmatprep.subr.bf16.mxu0 (!%p204_p3), %v1516_v4  ;;  %1474 = vmatprep.subr.bf16.mxu1 (!%p204_p3), %v1516_v4 }
   0xe   : > { %s1846_s21 = smov (!%p244_p4, %s1143_s21), 671 }
   0xf   : > { %s1232_s10 = sshll.u32 %s1846_s21, 3  ;;  %s1147_s12 = sshll.u32 %s1846_s21, 2 }
  0x10   : > { %1365 = vmatpush3.bf16.msra.mxu0 %v1517_v5  ;;  %1482 = vmatpush3.bf16.msra.mxu1 %v1517_v5  ;;  %s1676_s15 = scalar_lea.vmem %s1836_s0, %s1232_s10  ;;  %s1753_s21 = scalar_lea.vmem %s1840_s4, %s1147_s12 }
  0x11   : > { %1366 = vmatprep.subr.bf16.mxu0 %v1518_v6  ;;  %1475 = vmatprep.subr.bf16.mxu1 %v1518_v6  ;;  %v1530_v11 = vld [vmem:[%s1676_s15 + $0x4] ss:$8 sps:$4 sm:$0xff]   ;;  %v1528_v18 = vld [vmem:[%s1676_s15] ss:$8 sps:$4 sm:$0xff]   ;;  %v1534_v20 = vld [vmem:[%s1676_s15 + $0x14] ss:$8 sps:$4 sm:$0xff]  }
  0x12   : > { %v1533_v12 = vld [vmem:[%s1676_s15 + $0x84] ss:$8 sps:$4 sm:$0xff]   ;;  %622 = vmatprep.mubr.bf16.mxu0 %v1530_v11  ;;  %v1531_v19 = vld [vmem:[%s1676_s15 + $0x80] ss:$8 sps:$4 sm:$0xff]   ;;  %v1536_v21 = vld [vmem:[%s1676_s15 + $0x94] ss:$8 sps:$4 sm:$0xff]  }
  0x13   : > { %686 = vmatprep.mubr.bf16.mxu1 %v1533_v12  ;;  %v1538_v22 = vld [vmem:[%s1676_s15 + $0x10] ss:$8 sps:$4 sm:$0xff]   ;;  %v1540_v24 = vld [vmem:[%s1676_s15 + $0x24] ss:$8 sps:$4 sm:$0xff]   ;;  %v1544_v26 = vld [vmem:[%s1676_s15 + $0x20] ss:$8 sps:$4 sm:$0xff]  }
  0x14   : > { %1367 = vmatpush3.bf16.msra.mxu0 %v1519_v7  ;;  %1483 = vmatpush3.bf16.msra.mxu1 %v1519_v7  ;;  %v1539_v23 = vld [vmem:[%s1676_s15 + $0x90] ss:$8 sps:$4 sm:$0xff]   ;;  %v1542_v25 = vld [vmem:[%s1676_s15 + $0xa4] ss:$8 sps:$4 sm:$0xff]   ;;  %v1545_v27 = vld [vmem:[%s1676_s15 + $0xa0] ss:$8 sps:$4 sm:$0xff]  }
  0x15   : > { %1368 = vmatprep.subr.bf16.mxu0 %v1520_v8  ;;  %1476 = vmatprep.subr.bf16.mxu1 %v1520_v8  ;;  %v1546_v28 = vld [vmem:[%s1676_s15 + $0x34] ss:$8 sps:$4 sm:$0xff]   ;;  %v1550_v30 = vld [vmem:[%s1676_s15 + $0x30] ss:$8 sps:$4 sm:$0xff]   ;;  %v1552_v32 = vld [vmem:[%s1676_s15 + $0x44] ss:$8 sps:$4 sm:$0xff]  }
  0x16   : > { %v1548_v29 = vld [vmem:[%s1676_s15 + $0xb4] ss:$8 sps:$4 sm:$0xff]   ;;  %v1551_v31 = vld [vmem:[%s1676_s15 + $0xb0] ss:$8 sps:$4 sm:$0xff]   ;;  %v1554_v33 = vld [vmem:[%s1676_s15 + $0xc4] ss:$8 sps:$4 sm:$0xff]  }
  0x17   : > { %v1556_v34 = vld [vmem:[%s1676_s15 + $0x40] ss:$8 sps:$4 sm:$0xff]   ;;  %v1558_v36 = vld [vmem:[%s1676_s15 + $0x54] ss:$8 sps:$4 sm:$0xff]   ;;  %v1562_v38 = vld [vmem:[%s1676_s15 + $0x50] ss:$8 sps:$4 sm:$0xff]  }
  0x18   : > { %1369 = vmatpush3.bf16.msra.mxu0 %v1521_v9  ;;  %1484 = vmatpush3.bf16.msra.mxu1 %v1521_v9  ;;  %v1557_v35 = vld [vmem:[%s1676_s15 + $0xc0] ss:$8 sps:$4 sm:$0xff]   ;;  %v1560_v37 = vld [vmem:[%s1676_s15 + $0xd4] ss:$8 sps:$4 sm:$0xff]   ;;  %v1563_v39 = vld [vmem:[%s1676_s15 + $0xd0] ss:$8 sps:$4 sm:$0xff]  }
  0x19   : > { %1370 = vmatprep.subr.bf16.mxu0 %v1522_v10  ;;  %1477 = vmatprep.subr.bf16.mxu1 %v1522_v10  ;;  %v1564_v40 = vld [vmem:[%s1676_s15 + $0x64] ss:$8 sps:$4 sm:$0xff]   ;;  %v1568_v42 = vld [vmem:[%s1676_s15 + $0x60] ss:$8 sps:$4 sm:$0xff]   ;;  %v1570_v44 = vld [vmem:[%s1676_s15 + $0x74] ss:$8 sps:$4 sm:$0xff]  }
  0x1a   : > { %v1566_v41 = vld [vmem:[%s1676_s15 + $0xe4] ss:$8 sps:$4 sm:$0xff]   ;;  %v1569_v43 = vld [vmem:[%s1676_s15 + $0xe0] ss:$8 sps:$4 sm:$0xff]   ;;  %v1572_v45 = vld [vmem:[%s1676_s15 + $0xf4] ss:$8 sps:$4 sm:$0xff]  }
  0x1b   : > { %v1574_v46 = vld [vmem:[%s1676_s15 + $0x70] ss:$8 sps:$4 sm:$0xff]  }
  0x1c   : > { %1371 = vmatpush3.bf16.msra.mxu0 %v1523_v13  ;;  %1485 = vmatpush3.bf16.msra.mxu1 %v1523_v13  ;;  %v1575_v47 = vld [vmem:[%s1676_s15 + $0xf0] ss:$8 sps:$4 sm:$0xff]  }
  0x1d   : > { %1372 = vmatprep.subr.bf16.mxu0 %v1524_v14  ;;  %1478 = vmatprep.subr.bf16.mxu1 %v1524_v14 }
  0x20   : > { %1373 = vmatpush3.bf16.msra.mxu0 %v1525_v15  ;;  %1486 = vmatpush3.bf16.msra.mxu1 %v1525_v15 }
  0x21   : > { %1374 = vmatprep.subr.bf16.mxu0 %v1526_v16  ;;  %1479 = vmatprep.subr.bf16.mxu1 %v1526_v16 }
  0x24   : > { %1375 = vmatpush3.bf16.msra.mxu0 %v1527_v17  ;;  %1487 = vmatpush3.bf16.msra.mxu1 %v1527_v17 }
  0x27   : > { %623 = vmatmul.mubr.bf16.vlgmr.msra.gmra.mrb[0].mxu0 %v1528_v18  ;;  %687 = vmatmul.mubr.bf16.vlgmr.msra.gmra.mrb[0].mxu1 %v1531_v19 }
  0x28   : > { %630 = vmatprep.mubr.bf16.mxu0 %v1534_v20  ;;  %694 = vmatprep.mubr.bf16.mxu1 %v1536_v21 }
  0x2f   : > { %631 = vmatmul.mubr.bf16.gmra.mrb[4].mxu0 %v1538_v22  ;;  %695 = vmatmul.mubr.bf16.gmra.mrb[4].mxu1 %v1539_v23 }
  0x30   : > { %638 = vmatprep.mubr.bf16.mxu0 %v1540_v24  ;;  %702 = vmatprep.mubr.bf16.mxu1 %v1542_v25 }
  0x37   : > { %639 = vmatmul.mubr.bf16.gmra.mrb[8].mxu0 %v1544_v26  ;;  %703 = vmatmul.mubr.bf16.gmra.mrb[8].mxu1 %v1545_v27 }
  0x38   : > { %646 = vmatprep.mubr.bf16.mxu0 %v1546_v28  ;;  %710 = vmatprep.mubr.bf16.mxu1 %v1548_v29 }
  0x3f   : > { %647 = vmatmul.mubr.bf16.gmra.mrb[12].mxu0 %v1550_v30  ;;  %711 = vmatmul.mubr.bf16.gmra.mrb[12].mxu1 %v1551_v31 }
  0x40   : > { %654 = vmatprep.mubr.bf16.mxu0 %v1552_v32  ;;  %718 = vmatprep.mubr.bf16.mxu1 %v1554_v33 }
  0x47   : > { %655 = vmatmul.mubr.bf16.gmra.mrb[16].mxu0 %v1556_v34  ;;  %719 = vmatmul.mubr.bf16.gmra.mrb[16].mxu1 %v1557_v35 }
  0x48   : > { %662 = vmatprep.mubr.bf16.mxu0 %v1558_v36  ;;  %726 = vmatprep.mubr.bf16.mxu1 %v1560_v37 }
  0x4f   : > { %663 = vmatmul.mubr.bf16.gmra.mrb[20].mxu0 %v1562_v38  ;;  %727 = vmatmul.mubr.bf16.gmra.mrb[20].mxu1 %v1563_v39 }
  0x50   : > { %670 = vmatprep.mubr.bf16.mxu0 %v1564_v40  ;;  %734 = vmatprep.mubr.bf16.mxu1 %v1566_v41 }
  0x57   : > { %671 = vmatmul.mubr.bf16.gmra.mrb[24].mxu0 %v1568_v42  ;;  %735 = vmatmul.mubr.bf16.gmra.mrb[24].mxu1 %v1569_v43 }
  0x58   : > { %678 = vmatprep.mubr.bf16.mxu0 %v1570_v44  ;;  %742 = vmatprep.mubr.bf16.mxu1 %v1572_v45 }
  0x5f   : > { %679 = vmatmul.mubr.bf16.gmra.mrb[28].mxu0 %v1574_v46  ;;  %743 = vmatmul.mubr.bf16.gmra.mrb[28].mxu1 %v1575_v47 }
  0xfa   : > { %v1376_v48 = vpop.f32.mrb[0].mxu0  ;;  %v1424_v49 = vpop.f32.mrb[0].mxu1 }
  0xfb   : > { %v1377_v50 = vpop.f32.mrb[1].mxu0  ;;  %v1425_v52 = vpop.f32.mrb[1].mxu1 }
  0xfc   : > { %v1378_v53 = vadd.f32 %v1377_v50, %v1376_v48  ;;  %v1426_v54 = vadd.f32 %v1425_v52, %v1424_v49  ;;  %v1379_v55 = vpop.f32.mrb[2].mxu0  ;;  %v1427_v56 = vpop.f32.mrb[2].mxu1 }
  0xfd   : > { %v1380_v58 = vpop.f32.mrb[3].mxu0  ;;  %v1428_v59 = vpop.f32.mrb[3].mxu1 }
  0xfe   : > { %v758_v60 = vmul.f32 %v1378_v53, %v1734_v51  ;;  %v774_v61 = vmul.f32 %v1426_v54, %v1734_v51  ;;  %v1381_v62 = vadd.f32 %v1380_v58, %v1379_v55  ;;  %v1429_v63 = vadd.f32 %v1428_v59, %v1427_v56 }
 0x100   : > { %v797_v0 = vadd.f32 %v1739_v57, %v758_v60  ;;  %v813_v1 = vadd.f32 %v1739_v57, %v774_v61  ;;  %v759_v2 = vmul.f32 %v1381_v62, %v1734_v51  ;;  %v775_v3 = vmul.f32 %v1429_v63, %v1734_v51 }
 0x102   : > { %v798_v4 = vadd.f32 %v1739_v57, %v759_v2  ;;  %v814_v5 = vadd.f32 %v1739_v57, %v775_v3  ;;  %v1382_v6 = vpop.f32.mrb[4].mxu0  ;;  %v1430_v7 = vpop.f32.mrb[4].mxu1  ;;  %v829_v8 = vmax.f32 %v797_v0, 0.0  ;;  %v845_v9 = vmax.f32 %v813_v1, 0.0 }
 0x103   : > { %v1383_v10 = vpop.f32.mrb[5].mxu0  ;;  %v1431_v11 = vpop.f32.mrb[5].mxu1 }
 0x104   : > { %v830_v12 = vmax.f32 %v798_v4, 0.0  ;;  %v846_v13 = vmax.f32 %v814_v5, 0.0  ;;  %v1384_v14 = vadd.f32 %v1383_v10, %v1382_v6  ;;  %v1432_v15 = vadd.f32 %v1431_v11, %v1430_v7  ;;  %v1385_v16 = vpop.f32.mrb[6].mxu0  ;;  %v1433_v17 = vpop.f32.mrb[6].mxu1 }
 0x105   : > { %v1386_v18 = vpop.f32.mrb[7].mxu0  ;;  %v1434_v19 = vpop.f32.mrb[7].mxu1 }
 0x106   : > { %v1268_v20 = vpack.c.bf16 %v830_v12, %v829_v8  ;;  %v1308_v21 = vpack.c.bf16 %v846_v13, %v845_v9  ;;  %v760_v22 = vmul.f32 %v1384_v14, %v1734_v51  ;;  %v776_v23 = vmul.f32 %v1432_v15, %v1734_v51 }
 0x107   : > { %v1387_v24 = vadd.f32 %v1386_v18, %v1385_v16  ;;  %v1435_v25 = vadd.f32 %v1434_v19, %v1433_v17 }
 0x108   : > { %1269 = vst [vmem:[%s1753_s21] sm:$0xff] %v1268_v20   ;;  %1352 = vst [vmem:[%s1753_s21 + $0x40] sm:$0xff] %v1308_v21   ;;  %v799_v26 = vadd.f32 %v1739_v57, %v760_v22  ;;  %v815_v27 = vadd.f32 %v1739_v57, %v776_v23 }
 0x109   : > { %v761_v28 = vmul.f32 %v1387_v24, %v1734_v51  ;;  %v777_v29 = vmul.f32 %v1435_v25, %v1734_v51 }
 0x10a   : > { %v1388_v30 = vpop.f32.mrb[8].mxu0  ;;  %v1436_v31 = vpop.f32.mrb[8].mxu1  ;;  %v831_v40 = vmax.f32 %v799_v26, 0.0  ;;  %v847_v41 = vmax.f32 %v815_v27, 0.0 }
 0x10b   : > { %v800_v32 = vadd.f32 %v1739_v57, %v761_v28  ;;  %v816_v33 = vadd.f32 %v1739_v57, %v777_v29  ;;  %v1389_v34 = vpop.f32.mrb[9].mxu0  ;;  %v1437_v35 = vpop.f32.mrb[9].mxu1 }
 0x10c   : > { %v1390_v36 = vadd.f32 %v1389_v34, %v1388_v30  ;;  %v1438_v37 = vadd.f32 %v1437_v35, %v1436_v31  ;;  %v1391_v38 = vpop.f32.mrb[10].mxu0  ;;  %v1439_v39 = vpop.f32.mrb[10].mxu1 }
 0x10d   : > { %v832_v42 = vmax.f32 %v800_v32, 0.0  ;;  %v848_v43 = vmax.f32 %v816_v33, 0.0  ;;  %v1392_v44 = vpop.f32.mrb[11].mxu0  ;;  %v1440_v45 = vpop.f32.mrb[11].mxu1 }
 0x10e   : > { %v762_v46 = vmul.f32 %v1390_v36, %v1734_v51  ;;  %v778_v47 = vmul.f32 %v1438_v37, %v1734_v51  ;;  %v1393_v48 = vadd.f32 %v1392_v44, %v1391_v38  ;;  %v1441_v49 = vadd.f32 %v1440_v45, %v1439_v39 }
 0x10f   : > { %v1273_v50 = vpack.c.bf16 %v832_v42, %v831_v40  ;;  %v1313_v52 = vpack.c.bf16 %v848_v43, %v847_v41 }
 0x110   : > { %v801_v53 = vadd.f32 %v1739_v57, %v762_v46  ;;  %v817_v54 = vadd.f32 %v1739_v57, %v778_v47  ;;  %v763_v55 = vmul.f32 %v1393_v48, %v1734_v51  ;;  %v779_v56 = vmul.f32 %v1441_v49, %v1734_v51 }
 0x111   : > { %1345 = vst [vmem:[%s1753_s21 + $0x8] sm:$0xff] %v1273_v50   ;;  %1353 = vst [vmem:[%s1753_s21 + $0x48] sm:$0xff] %v1313_v52  }
 0x112   : > { %v802_v58 = vadd.f32 %v1739_v57, %v763_v55  ;;  %v818_v59 = vadd.f32 %v1739_v57, %v779_v56  ;;  %v1394_v60 = vpop.f32.mrb[12].mxu0  ;;  %v1442_v61 = vpop.f32.mrb[12].mxu1  ;;  %v833_v62 = vmax.f32 %v801_v53, 0.0  ;;  %v849_v63 = vmax.f32 %v817_v54, 0.0 }
 0x113   : > { %v1395_v0 = vpop.f32.mrb[13].mxu0  ;;  %v1443_v1 = vpop.f32.mrb[13].mxu1 }
 0x114   : > { %v834_v2 = vmax.f32 %v802_v58, 0.0  ;;  %v850_v3 = vmax.f32 %v818_v59, 0.0  ;;  %v1396_v4 = vadd.f32 %v1395_v0, %v1394_v60  ;;  %v1444_v5 = vadd.f32 %v1443_v1, %v1442_v61  ;;  %v1397_v6 = vpop.f32.mrb[14].mxu0  ;;  %v1445_v7 = vpop.f32.mrb[14].mxu1 }
 0x115   : > { %v1398_v8 = vpop.f32.mrb[15].mxu0  ;;  %v1446_v9 = vpop.f32.mrb[15].mxu1 }
 0x116   : > { %v1278_v10 = vpack.c.bf16 %v834_v2, %v833_v62  ;;  %v1318_v11 = vpack.c.bf16 %v850_v3, %v849_v63  ;;  %v764_v12 = vmul.f32 %v1396_v4, %v1734_v51  ;;  %v780_v13 = vmul.f32 %v1444_v5, %v1734_v51 }
 0x117   : > { %v1399_v14 = vadd.f32 %v1398_v8, %v1397_v6  ;;  %v1447_v15 = vadd.f32 %v1446_v9, %v1445_v7 }
 0x118   : > { %1346 = vst [vmem:[%s1753_s21 + $0x10] sm:$0xff] %v1278_v10   ;;  %1354 = vst [vmem:[%s1753_s21 + $0x50] sm:$0xff] %v1318_v11   ;;  %v803_v16 = vadd.f32 %v1739_v57, %v764_v12  ;;  %v819_v17 = vadd.f32 %v1739_v57, %v780_v13 }
 0x119   : > { %v765_v18 = vmul.f32 %v1399_v14, %v1734_v51  ;;  %v781_v19 = vmul.f32 %v1447_v15, %v1734_v51 }
 0x11a   : > { %v1400_v20 = vpop.f32.mrb[16].mxu0  ;;  %v1448_v21 = vpop.f32.mrb[16].mxu1  ;;  %v835_v30 = vmax.f32 %v803_v16, 0.0  ;;  %v851_v31 = vmax.f32 %v819_v17, 0.0 }
 0x11b   : > { %v804_v22 = vadd.f32 %v1739_v57, %v765_v18  ;;  %v820_v23 = vadd.f32 %v1739_v57, %v781_v19  ;;  %v1401_v24 = vpop.f32.mrb[17].mxu0  ;;  %v1449_v25 = vpop.f32.mrb[17].mxu1 }
 0x11c   : > { %v1402_v26 = vadd.f32 %v1401_v24, %v1400_v20  ;;  %v1450_v27 = vadd.f32 %v1449_v25, %v1448_v21  ;;  %v1403_v28 = vpop.f32.mrb[18].mxu0  ;;  %v1451_v29 = vpop.f32.mrb[18].mxu1 }
 0x11d   : > { %v836_v32 = vmax.f32 %v804_v22, 0.0  ;;  %v852_v33 = vmax.f32 %v820_v23, 0.0  ;;  %v1404_v34 = vpop.f32.mrb[19].mxu0  ;;  %v1452_v35 = vpop.f32.mrb[19].mxu1 }
 0x11e   : > { %v766_v36 = vmul.f32 %v1402_v26, %v1734_v51  ;;  %v782_v37 = vmul.f32 %v1450_v27, %v1734_v51  ;;  %v1405_v38 = vadd.f32 %v1404_v34, %v1403_v28  ;;  %v1453_v39 = vadd.f32 %v1452_v35, %v1451_v29 }
 0x11f   : > { %v1283_v40 = vpack.c.bf16 %v836_v32, %v835_v30  ;;  %v1323_v41 = vpack.c.bf16 %v852_v33, %v851_v31 }
 0x120   : > { %v805_v42 = vadd.f32 %v1739_v57, %v766_v36  ;;  %v821_v43 = vadd.f32 %v1739_v57, %v782_v37  ;;  %v767_v44 = vmul.f32 %v1405_v38, %v1734_v51  ;;  %v783_v45 = vmul.f32 %v1453_v39, %v1734_v51 }
 0x121   : > { %1347 = vst [vmem:[%s1753_s21 + $0x18] sm:$0xff] %v1283_v40   ;;  %1355 = vst [vmem:[%s1753_s21 + $0x58] sm:$0xff] %v1323_v41  }
 0x122   : > { %v806_v46 = vadd.f32 %v1739_v57, %v767_v44  ;;  %v822_v47 = vadd.f32 %v1739_v57, %v783_v45  ;;  %v1406_v48 = vpop.f32.mrb[20].mxu0  ;;  %v1454_v49 = vpop.f32.mrb[20].mxu1  ;;  %v837_v50 = vmax.f32 %v805_v42, 0.0  ;;  %v853_v52 = vmax.f32 %v821_v43, 0.0 }
 0x123   : > { %v1407_v53 = vpop.f32.mrb[21].mxu0  ;;  %v1455_v54 = vpop.f32.mrb[21].mxu1 }
 0x124   : > { %v838_v55 = vmax.f32 %v806_v46, 0.0  ;;  %v854_v56 = vmax.f32 %v822_v47, 0.0  ;;  %v1408_v58 = vadd.f32 %v1407_v53, %v1406_v48  ;;  %v1456_v59 = vadd.f32 %v1455_v54, %v1454_v49  ;;  %v1409_v60 = vpop.f32.mrb[22].mxu0  ;;  %v1457_v61 = vpop.f32.mrb[22].mxu1 }
 0x125   : > { %v1410_v62 = vpop.f32.mrb[23].mxu0  ;;  %v1458_v63 = vpop.f32.mrb[23].mxu1 }
 0x126   : > { %v1288_v0 = vpack.c.bf16 %v838_v55, %v837_v50  ;;  %v1328_v1 = vpack.c.bf16 %v854_v56, %v853_v52  ;;  %v768_v2 = vmul.f32 %v1408_v58, %v1734_v51  ;;  %v784_v3 = vmul.f32 %v1456_v59, %v1734_v51 }
 0x127   : > { %v1411_v4 = vadd.f32 %v1410_v62, %v1409_v60  ;;  %v1459_v5 = vadd.f32 %v1458_v63, %v1457_v61 }
 0x128   : > { %1348 = vst [vmem:[%s1753_s21 + $0x20] sm:$0xff] %v1288_v0   ;;  %1356 = vst [vmem:[%s1753_s21 + $0x60] sm:$0xff] %v1328_v1   ;;  %v807_v6 = vadd.f32 %v1739_v57, %v768_v2  ;;  %v823_v7 = vadd.f32 %v1739_v57, %v784_v3 }
 0x129   : > { %v769_v8 = vmul.f32 %v1411_v4, %v1734_v51  ;;  %v785_v9 = vmul.f32 %v1459_v5, %v1734_v51 }
 0x12a   : > { %v1412_v10 = vpop.f32.mrb[24].mxu0  ;;  %v1460_v11 = vpop.f32.mrb[24].mxu1  ;;  %v839_v20 = vmax.f32 %v807_v6, 0.0  ;;  %v855_v21 = vmax.f32 %v823_v7, 0.0 }
 0x12b   : > { %v808_v12 = vadd.f32 %v1739_v57, %v769_v8  ;;  %v824_v13 = vadd.f32 %v1739_v57, %v785_v9  ;;  %v1413_v14 = vpop.f32.mrb[25].mxu0  ;;  %v1461_v15 = vpop.f32.mrb[25].mxu1 }
 0x12c   : > { %v1414_v16 = vadd.f32 %v1413_v14, %v1412_v10  ;;  %v1462_v17 = vadd.f32 %v1461_v15, %v1460_v11  ;;  %v1415_v18 = vpop.f32.mrb[26].mxu0  ;;  %v1463_v19 = vpop.f32.mrb[26].mxu1 }
 0x12d   : > { %v840_v22 = vmax.f32 %v808_v12, 0.0  ;;  %v856_v23 = vmax.f32 %v824_v13, 0.0  ;;  %v1416_v24 = vpop.f32.mrb[27].mxu0  ;;  %v1464_v25 = vpop.f32.mrb[27].mxu1 }
 0x12e   : > { %v770_v26 = vmul.f32 %v1414_v16, %v1734_v51  ;;  %v786_v27 = vmul.f32 %v1462_v17, %v1734_v51  ;;  %v1417_v28 = vadd.f32 %v1416_v24, %v1415_v18  ;;  %v1465_v29 = vadd.f32 %v1464_v25, %v1463_v19 }
 0x12f   : > { %v1293_v30 = vpack.c.bf16 %v840_v22, %v839_v20  ;;  %v1333_v31 = vpack.c.bf16 %v856_v23, %v855_v21 }
 0x130   : > { %v809_v32 = vadd.f32 %v1739_v57, %v770_v26  ;;  %v825_v33 = vadd.f32 %v1739_v57, %v786_v27  ;;  %v771_v34 = vmul.f32 %v1417_v28, %v1734_v51  ;;  %v787_v35 = vmul.f32 %v1465_v29, %v1734_v51 }
 0x131   : > { %1349 = vst [vmem:[%s1753_s21 + $0x28] sm:$0xff] %v1293_v30   ;;  %1357 = vst [vmem:[%s1753_s21 + $0x68] sm:$0xff] %v1333_v31  }
 0x132   : > { %v810_v36 = vadd.f32 %v1739_v57, %v771_v34  ;;  %v826_v37 = vadd.f32 %v1739_v57, %v787_v35  ;;  %v1418_v38 = vpop.f32.mrb[28].mxu0  ;;  %v1466_v39 = vpop.f32.mrb[28].mxu1  ;;  %v841_v40 = vmax.f32 %v809_v32, 0.0  ;;  %v857_v41 = vmax.f32 %v825_v33, 0.0 }
 0x133   : > { %v1419_v42 = vpop.f32.mrb[29].mxu0  ;;  %v1467_v43 = vpop.f32.mrb[29].mxu1 }
 0x134   : > { %v842_v44 = vmax.f32 %v810_v36, 0.0  ;;  %v858_v45 = vmax.f32 %v826_v37, 0.0  ;;  %v1420_v46 = vadd.f32 %v1419_v42, %v1418_v38  ;;  %v1468_v47 = vadd.f32 %v1467_v43, %v1466_v39  ;;  %v1421_v48 = vpop.f32.mrb[30].mxu0  ;;  %v1469_v49 = vpop.f32.mrb[30].mxu1 }
 0x135   : > { %v1422_v50 = vpop.f32.mrb[31].mxu0  ;;  %v1470_v52 = vpop.f32.mrb[31].mxu1 }
 0x136   : > { %v1298_v53 = vpack.c.bf16 %v842_v44, %v841_v40  ;;  %v1338_v54 = vpack.c.bf16 %v858_v45, %v857_v41  ;;  %v772_v55 = vmul.f32 %v1420_v46, %v1734_v51  ;;  %v788_v56 = vmul.f32 %v1468_v47, %v1734_v51 }
 0x137   : > { %v1423_v58 = vadd.f32 %v1422_v50, %v1421_v48  ;;  %v1471_v59 = vadd.f32 %v1470_v52, %v1469_v49 }
 0x138   : > { %1350 = vst [vmem:[%s1753_s21 + $0x30] sm:$0xff] %v1298_v53   ;;  %1358 = vst [vmem:[%s1753_s21 + $0x70] sm:$0xff] %v1338_v54   ;;  %v811_v60 = vadd.f32 %v1739_v57, %v772_v55  ;;  %v827_v61 = vadd.f32 %v1739_v57, %v788_v56 }
 0x139   : > { %v773_v62 = vmul.f32 %v1423_v58, %v1734_v51  ;;  %v789_v63 = vmul.f32 %v1471_v59, %v1734_v51 }
 0x13a   : > { %v843_v2 = vmax.f32 %v811_v60, 0.0  ;;  %v859_v3 = vmax.f32 %v827_v61, 0.0 }
 0x13b   : > { %v812_v0 = vadd.f32 %v1739_v57, %v773_v62  ;;  %v828_v1 = vadd.f32 %v1739_v57, %v789_v63 }
 0x13d   : > { %v844_v4 = vmax.f32 %v812_v0, 0.0  ;;  %v860_v5 = vmax.f32 %v828_v1, 0.0 }
 0x13f   : > { %v1303_v6 = vpack.c.bf16 %v844_v4, %v843_v2  ;;  %v1343_v7 = vpack.c.bf16 %v860_v5, %v859_v3 }
 0x141   : > { %1351 = vst [vmem:[%s1753_s21 + $0x38] sm:$0xff] %v1303_v6   ;;  %1359 = vst [vmem:[%s1753_s21 + $0x78] sm:$0xff] %v1343_v7  }
 0x142 PF: > { %s14_s17 = sadd.s32 1, %s1598_s17   ;;  %s1841_s15 = smov %s1594_s16 }
 0x143   : > { %p11_p5 = scmp.ge.s32.totalorder %s14_s17, 23   ;;  %s1842_s16 = smov %s1844_s18 }
 0x145   :  { %13 = sbr.rel (!%p11_p5) target bundleno = 2 (0x2), region = 75 }

// kernel: stem_fwd.15
= control target key start
LH: loop header
LB: loop body
LE: loop exit
PB: predicated region body
PF: predicated region fallthrough
CT: control target
= control target key end

     0   :  { %s2802_s15 = smov 0   ;;  %s2804_s16 = smov 0   ;;  %s3247_s0 = inlined_call_operand.vmem [shape: bf16[5120,640], index: 0, kind: input, shape index: {}]   ;;  %s3248_s1 = inlined_call_operand.vmem [shape: bf16[640,128], index: 1, kind: input, shape index: {}]   ;;  %s3249_s2 = inlined_call_operand.vmem [shape: f32[1,128], index: 2, kind: input, shape index: {}]   ;;  %s3250_s3 = inlined_call_operand.vmem [shape: f32[1,128], index: 3, kind: input, shape index: {}]   ;;  %s3251_s4 = inlined_call_operand.vmem [shape: bf16[5120,128], index: 4, kind: output, shape index: {}]  }
   0x1   :  { %s2806_s17 = smov 0  }
   0x2 LB: > { %s26_s18 = sadd.s32 1, %s2771_s16  ;;  %p1976_p0 = scmp.ge.s32.totalorder %s2775_s17, 1  ;;  %s2775_s17 = sphi %s2806_s17, %s14_s17   ;;  %s2771_s16 = sphi %s2804_s16, %s3253_s16   ;;  %s2767_s15 = sphi %s2802_s15, %s3252_s15  }
   0x3   : > { %p28_p1 = scmp.ge.s32.totalorder %s26_s18, 20  ;;  %p203_p2 = scmp.lt.s32.totalorder %s2775_s17, 21 }
   0x5   : > { %s3255_s18 = smov (%p28_p1, %s26_s18), 0  ;;  %p204_p3 = pnand %p1976_p0, %p203_p2 }
   0x6   : > { %v2601_v0 = vld [vmem:[%s3248_s1 + $0x40] sm:$0xff] (!%p204_p3)   ;;  %s1977_s21 = sshll.u32 (!%p204_p3), %s2767_s15, 5  ;;  %v2603_v2 = vld [vmem:[%s3248_s1 + $0x48] sm:$0xff] (!%p204_p3)   ;;  %v2605_v4 = vld [vmem:[%s3248_s1 + $0x50] sm:$0xff] (!%p204_p3)  }
   0x7   : > { %207 = sbr.rel (%p204_p3) target bundleno = 421 (0x1a5), region = 36  ;;  %v2602_v1 = vld [vmem:[%s3248_s1] sm:$0xff] (!%p204_p3)   ;;  %2264 = vmatprep.subr.bf16.mxu0 (!%p204_p3), %v2601_v0  ;;  %2560 = vmatprep.subr.bf16.mxu1 (!%p204_p3), %v2601_v0  ;;  %p244_p4 = scmp.lt.s32.totalorder (!%p204_p3), %s1977_s21, 639  ;;  %v2604_v3 = vld [vmem:[%s3248_s1 + $0x8] sm:$0xff] (!%p204_p3)   ;;  %v2606_v5 = vld [vmem:[%s3248_s1 + $0x10] sm:$0xff] (!%p204_p3)  }
   0x8   : > { %2265 = vmatpush3.bf16.msra.mxu0 (!%p204_p3), %v2602_v1  ;;  %2568 = vmatpush3.bf16.msra.mxu1 (!%p204_p3), %v2602_v1  ;;  %v2607_v6 = vld [vmem:[%s3248_s1 + $0x58] sm:$0xff] (!%p204_p3)   ;;  %v2609_v8 = vld [vmem:[%s3248_s1 + $0x60] sm:$0xff] (!%p204_p3)   ;;  %v2611_v10 = vld [vmem:[%s3248_s1 + $0x68] sm:$0xff] (!%p204_p3)  }
   0x9   : > { %2266 = vmatprep.subr.bf16.mxu0 (!%p204_p3), %v2603_v2  ;;  %2561 = vmatprep.subr.bf16.mxu1 (!%p204_p3), %v2603_v2  ;;  %v2608_v7 = vld [vmem:[%s3248_s1 + $0x18] sm:$0xff] (!%p204_p3)   ;;  %v2610_v9 = vld [vmem:[%s3248_s1 + $0x20] sm:$0xff] (!%p204_p3)   ;;  %v2612_v13 = vld [vmem:[%s3248_s1 + $0x28] sm:$0xff] (!%p204_p3)  }
   0xa   : > { %v2613_v14 = vld [vmem:[%s3248_s1 + $0x70] sm:$0xff] (!%p204_p3)   ;;  %v2615_v16 = vld [vmem:[%s3248_s1 + $0x78] sm:$0xff] (!%p204_p3)   ;;  %v2623_v18 = vld [vmem:[%s3248_s1 + $0xc0] sm:$0xff] (!%p204_p3)  }
   0xb   : > { %v2614_v15 = vld [vmem:[%s3248_s1 + $0x30] sm:$0xff] (!%p204_p3)   ;;  %v2616_v17 = vld [vmem:[%s3248_s1 + $0x38] sm:$0xff] (!%p204_p3)   ;;  %v2626_v19 = vld [vmem:[%s3248_s1 + $0x100] sm:$0xff] (!%p204_p3)  }
   0xc   : > { %2267 = vmatpush3.bf16.msra.mxu0 (!%p204_p3), %v2604_v3  ;;  %2569 = vmatpush3.bf16.msra.mxu1 (!%p204_p3), %v2604_v3  ;;  %v2624_v22 = vld [vmem:[%s3248_s1 + $0x80] sm:$0xff] (!%p204_p3)   ;;  %v2625_v23 = vld [vmem:[%s3248_s1 + $0xc8] sm:$0xff] (!%p204_p3)   ;;  %v2634_v29 = vld [vmem:[%s3248_s1 + $0xd0] sm:$0xff] (!%p204_p3)  }
   0xd   : > { %2268 = vmatprep.subr.bf16.mxu0 (!%p204_p3), %v2605_v4  ;;  %2562 = vmatprep.subr.bf16.mxu1 (!%p204_p3), %v2605_v4  ;;  %v2645_v26 = vld [vmem:[%s3248_s1 + $0x108] sm:$0xff] (!%p204_p3)   ;;  %v2635_v31 = vld [vmem:[%s3248_s1 + $0x90] sm:$0xff] (!%p204_p3)   ;;  %v2636_v33 = vld [vmem:[%s3248_s1 + $0xd8] sm:$0xff] (!%p204_p3)  }
   0xe   : > { %s3257_s21 = smov (!%p244_p4, %s1977_s21), 639  ;;  %v2627_v27 = vld [vmem:[%s3248_s1 + $0x88] sm:$0xff]   ;;  %v2637_v35 = vld [vmem:[%s3248_s1 + $0x98] sm:$0xff]   ;;  %v2644_v36 = vld [vmem:[%s3248_s1 + $0xe0] sm:$0xff]  }
   0xf   : > { %s2576_s8 = smul.u32 20, %s3257_s21  ;;  %v2658_v38 = vld [vmem:[%s3248_s1 + $0x110] sm:$0xff]   ;;  %v2646_v40 = vld [vmem:[%s3248_s1 + $0xa0] sm:$0xff]   ;;  %v2647_v41 = vld [vmem:[%s3248_s1 + $0xe8] sm:$0xff]   ;;  %s1980_s22 = sshll.u32 %s3257_s21, 2 }
  0x10   : > { %2269 = vmatpush3.bf16.msra.mxu0 %v2606_v5  ;;  %2570 = vmatpush3.bf16.msra.mxu1 %v2606_v5  ;;  %v2648_v44 = vld [vmem:[%s3248_s1 + $0xa8] sm:$0xff]   ;;  %v2672_v45 = vld [vmem:[%s3248_s1 + $0x118] sm:$0xff]   ;;  %v2655_v48 = vld [vmem:[%s3248_s1 + $0xf0] sm:$0xff]   ;;  %s3125_s25 = scalar_lea.vmem %s3251_s4, %s1980_s22 }
  0x11   : > { %2270 = vmatprep.subr.bf16.mxu0 %v2607_v6  ;;  %2563 = vmatprep.subr.bf16.mxu1 %v2607_v6  ;;  %s2853_s15 = scalar_lea.vmem %s3247_s0, %s2576_s8  ;;  %v2656_v49 = vld [vmem:[%s3248_s1 + $0xb0] sm:$0xff]   ;;  %v2657_v50 = vld [vmem:[%s3248_s1 + $0xf8] sm:$0xff]   ;;  %v2679_v52 = vld [vmem:[%s3248_s1 + $0x120] sm:$0xff]  }
  0x12   : > { %v2619_v11 = vld [vmem:[%s2853_s15 + $0x4] ss:$20 sps:$4 sm:$0xff]   ;;  %v2617_v20 = vld [vmem:[%s2853_s15] ss:$20 sps:$4 sm:$0xff]   ;;  %v2632_v28 = vld [vmem:[%s2853_s15 + $0x28] ss:$20 sps:$4 sm:$0xff]  }
  0x13   : > { %v2622_v12 = vld [vmem:[%s2853_s15 + $0x1e4] ss:$20 sps:$4 sm:$0xff]   ;;  %1134 = vmatprep.mubr.bf16.mxu0 %v2619_v11  ;;  %v2620_v21 = vld [vmem:[%s2853_s15 + $0x1e0] ss:$20 sps:$4 sm:$0xff]   ;;  %v2633_v30 = vld [vmem:[%s2853_s15 + $0x208] ss:$20 sps:$4 sm:$0xff]  }
  0x14   : > { %2271 = vmatpush3.bf16.msra.mxu0 %v2608_v7  ;;  %2571 = vmatpush3.bf16.msra.mxu1 %v2608_v7  ;;  %v2628_v24 = vld [vmem:[%s2853_s15 + $0x2c] ss:$20 sps:$4 sm:$0xff]   ;;  %v2638_v32 = vld [vmem:[%s2853_s15 + $0x54] ss:$20 sps:$4 sm:$0xff]   ;;  %v2642_v37 = vld [vmem:[%s2853_s15 + $0x50] ss:$20 sps:$4 sm:$0xff]  }
  0x15   : > { %2272 = vmatprep.subr.bf16.mxu0 %v2609_v8  ;;  %2564 = vmatprep.subr.bf16.mxu1 %v2609_v8  ;;  %v2630_v25 = vld [vmem:[%s2853_s15 + $0x20c] ss:$20 sps:$4 sm:$0xff]   ;;  %v2640_v34 = vld [vmem:[%s2853_s15 + $0x234] ss:$20 sps:$4 sm:$0xff]   ;;  %v2643_v39 = vld [vmem:[%s2853_s15 + $0x230] ss:$20 sps:$4 sm:$0xff]  }
  0x16   : > { %1230 = vmatprep.mubr.bf16.mxu1 %v2622_v12  ;;  %v2649_v42 = vld [vmem:[%s2853_s15 + $0x7c] ss:$20 sps:$4 sm:$0xff]   ;;  %v2653_v46 = vld [vmem:[%s2853_s15 + $0x78] ss:$20 sps:$4 sm:$0xff]   ;;  %v2665_v56 = vld [vmem:[%s2853_s15 + $0xa0] ss:$20 sps:$4 sm:$0xff]  }
  0x17   : > { %v2651_v43 = vld [vmem:[%s2853_s15 + $0x25c] ss:$20 sps:$4 sm:$0xff]   ;;  %v2654_v47 = vld [vmem:[%s2853_s15 + $0x258] ss:$20 sps:$4 sm:$0xff]   ;;  %v2668_v59 = vld [vmem:[%s2853_s15 + $0x34] ss:$20 sps:$4 sm:$0xff]  }
  0x18   : > { %2273 = vmatpush3.bf16.msra.mxu0 %v2610_v9  ;;  %2572 = vmatpush3.bf16.msra.mxu1 %v2610_v9  ;;  %v2660_v51 = vld [vmem:[%s2853_s15 + $0xa4] ss:$20 sps:$4 sm:$0xff]   ;;  %v2664_v53 = vld [vmem:[%s2853_s15 + $0xc] ss:$20 sps:$4 sm:$0xff]   ;;  %v2662_v55 = vld [vmem:[%s2853_s15 + $0x8] ss:$20 sps:$4 sm:$0xff]  }
  0x19   : > { %2274 = vmatprep.subr.bf16.mxu0 %v2611_v10  ;;  %2565 = vmatprep.subr.bf16.mxu1 %v2611_v10  ;;  %v2659_v54 = vld [vmem:[%s3248_s1 + $0xb8] sm:$0xff]   ;;  %v2692_v57 = vld [vmem:[%s3248_s1 + $0x128] sm:$0xff]   ;;  %v2699_v60 = vld [vmem:[%s3248_s1 + $0x130] sm:$0xff]  }
  0x1a   : > { %v2666_v58 = vld [vmem:[%s2853_s15 + $0xcc] ss:$20 sps:$4 sm:$0xff]   ;;  %v2670_v61 = vld [vmem:[%s2853_s15 + $0xc8] ss:$20 sps:$4 sm:$0xff]   ;;  %v2671_v62 = vld [vmem:[%s2853_s15 + $0x30] ss:$20 sps:$4 sm:$0xff]  }
  0x1b   : > { %v2673_v63 = vld [vmem:[%s2853_s15 + $0xf4] ss:$20 sps:$4 sm:$0xff]   ;;  %v2675_v0 = vld [vmem:[%s2853_s15 + $0x5c] ss:$20 sps:$4 sm:$0xff]   ;;  %v2678_v3 = vld [vmem:[%s2853_s15 + $0x58] ss:$20 sps:$4 sm:$0xff]  }
  0x1c   : > { %2275 = vmatpush3.bf16.msra.mxu0 %v2612_v13  ;;  %2573 = vmatpush3.bf16.msra.mxu1 %v2612_v13  ;;  %v2712_v1 = vld [vmem:[%s3248_s1 + $0x138] sm:$0xff]   ;;  %v2677_v2 = vld [vmem:[%s2853_s15 + $0xf0] ss:$20 sps:$4 sm:$0xff]   ;;  %v2685_v7 = vld [vmem:[%s2853_s15 + $0x80] ss:$20 sps:$4 sm:$0xff]  }
  0x1d   : > { %2276 = vmatprep.subr.bf16.mxu0 %v2613_v14  ;;  %2566 = vmatprep.subr.bf16.mxu1 %v2613_v14  ;;  %v2680_v4 = vld [vmem:[%s2853_s15 + $0x11c] ss:$20 sps:$4 sm:$0xff]   ;;  %v2682_v5 = vld [vmem:[%s2853_s15 + $0x84] ss:$20 sps:$4 sm:$0xff]   ;;  %v2688_v9 = vld [vmem:[%s2853_s15 + $0xac] ss:$20 sps:$4 sm:$0xff]  }
  0x1e   : > { %v2684_v6 = vld [vmem:[%s2853_s15 + $0x118] ss:$20 sps:$4 sm:$0xff]   ;;  %v2690_v10 = vld [vmem:[%s2853_s15 + $0x140] ss:$20 sps:$4 sm:$0xff]   ;;  %v2691_v11 = vld [vmem:[%s2853_s15 + $0xa8] ss:$20 sps:$4 sm:$0xff]  }
  0x1f   : > { %v2686_v8 = vld [vmem:[%s2853_s15 + $0x144] ss:$20 sps:$4 sm:$0xff]   ;;  %v2693_v12 = vld [vmem:[%s2853_s15 + $0x16c] ss:$20 sps:$4 sm:$0xff]   ;;  %v2695_v13 = vld [vmem:[%s2853_s15 + $0xd4] ss:$20 sps:$4 sm:$0xff]  }
  0x20   : > { %2277 = vmatpush3.bf16.msra.mxu0 %v2614_v15  ;;  %2574 = vmatpush3.bf16.msra.mxu1 %v2614_v15  ;;  %v2697_v14 = vld [vmem:[%s2853_s15 + $0x168] ss:$20 sps:$4 sm:$0xff]   ;;  %v2698_v15 = vld [vmem:[%s2853_s15 + $0xd0] ss:$20 sps:$4 sm:$0xff]  }
  0x21   : > { %2278 = vmatprep.subr.bf16.mxu0 %v2615_v16  ;;  %2567 = vmatprep.subr.bf16.mxu1 %v2615_v16  ;;  %v2700_v16 = vld [vmem:[%s2853_s15 + $0x194] ss:$20 sps:$4 sm:$0xff]  }
  0x24   : > { %2279 = vmatpush3.bf16.msra.mxu0 %v2616_v17  ;;  %2575 = vmatpush3.bf16.msra.mxu1 %v2616_v17  ;;  %v2702_v17 = vld [vmem:[%s2853_s15 + $0xfc] ss:$20 sps:$4 sm:$0xff]  }
  0x25   : > { %2376 = vmatprep.subr.bf16.mxu1 %v2623_v18  ;;  %2512 = vmatprep.subr.bf16.mxu0 %v2626_v19  ;;  %v2704_v18 = vld [vmem:[%s2853_s15 + $0x190] ss:$20 sps:$4 sm:$0xff]  }
  0x27   : > { %1135 = vmatmul.mubr.bf16.vlgmr.msra.gmra.mrb[0].mxu0 %v2617_v20  ;;  %1231 = vmatmul.mubr.bf16.vlgmr.msra.gmra.mrb[0].mxu1 %v2620_v21  ;;  %v2706_v20 = vld [vmem:[%s2853_s15 + $0x1bc] ss:$20 sps:$4 sm:$0xff]   ;;  %v2708_v21 = vld [vmem:[%s2853_s15 + $0x124] ss:$20 sps:$4 sm:$0xff]  }
  0x28   : > { %2377 = vmatpush3.bf16.msra.mxu1 %v2624_v22  ;;  %2513 = vmatpush3.bf16.msra.mxu0 %v2626_v19  ;;  %v2705_v19 = vld [vmem:[%s2853_s15 + $0xf8] ss:$20 sps:$4 sm:$0xff]  }
  0x29   : > { %2378 = vmatprep.subr.bf16.mxu1 %v2625_v23  ;;  %1142 = vmatprep.mubr.bf16.mxu0 %v2628_v24  ;;  %v2710_v22 = vld [vmem:[%s2853_s15 + $0x1b8] ss:$20 sps:$4 sm:$0xff]   ;;  %v2711_v23 = vld [vmem:[%s2853_s15 + $0x120] ss:$20 sps:$4 sm:$0xff]  }
  0x2a   : > { %1238 = vmatprep.mubr.bf16.mxu1 %v2630_v25  ;;  %2514 = vmatprep.subr.bf16.mxu0 %v2645_v26  ;;  %v2713_v24 = vld [vmem:[%s2853_s15 + $0x14c] ss:$20 sps:$4 sm:$0xff]   ;;  %v2715_v25 = vld [vmem:[%s2853_s15 + $0x10] ss:$20 sps:$4 sm:$0xff]  }
  0x2c   : > { %2379 = vmatpush3.bf16.msra.mxu1 %v2627_v27  ;;  %2515 = vmatpush3.bf16.msra.mxu0 %v2645_v26  ;;  %v2716_v26 = vld [vmem:[%s2853_s15 + $0x148] ss:$20 sps:$4 sm:$0xff]   ;;  %v2717_v27 = vld [vmem:[%s2853_s15 + $0x38] ss:$20 sps:$4 sm:$0xff]  }
  0x2d   : > { %2380 = vmatprep.subr.bf16.mxu1 %v2634_v29  ;;  %2516 = vmatprep.subr.bf16.mxu0 %v2658_v38  ;;  %v2720_v29 = vld [vmem:[%s2853_s15 + $0x60] ss:$20 sps:$4 sm:$0xff]  }
  0x2f   : > { %1143 = vmatmul.mubr.bf16.gmra.mrb[4].mxu0 %v2632_v28  ;;  %1239 = vmatmul.mubr.bf16.gmra.mrb[4].mxu1 %v2633_v30  ;;  %v2718_v28 = vld [vmem:[%s2853_s15 + $0x174] ss:$20 sps:$4 sm:$0xff]   ;;  %v2721_v30 = vld [vmem:[%s2853_s15 + $0x170] ss:$20 sps:$4 sm:$0xff]  }
  0x30   : > { %2381 = vmatpush3.bf16.msra.mxu1 %v2635_v31  ;;  %1150 = vmatprep.mubr.bf16.mxu0 %v2638_v32  ;;  %v2722_v31 = vld [vmem:[%s2853_s15 + $0x88] ss:$20 sps:$4 sm:$0xff]  }
  0x31   : > { %2382 = vmatprep.subr.bf16.mxu1 %v2636_v33  ;;  %1246 = vmatprep.mubr.bf16.mxu1 %v2640_v34  ;;  %v2723_v32 = vld [vmem:[%s2853_s15 + $0x19c] ss:$20 sps:$4 sm:$0xff]   ;;  %v2726_v34 = vld [vmem:[%s2853_s15 + $0x198] ss:$20 sps:$4 sm:$0xff]  }
  0x32   : > { %2517 = vmatpush3.bf16.msra.mxu0 %v2658_v38  ;;  %v2725_v33 = vld [vmem:[%s2853_s15 + $0xb0] ss:$20 sps:$4 sm:$0xff]   ;;  %v2731_v38 = vld [vmem:[%s2853_s15 + $0x1c0] ss:$20 sps:$4 sm:$0xff]  }
  0x33   : > { %2518 = vmatprep.subr.bf16.mxu0 %v2672_v45 }
  0x34   : > { %2383 = vmatpush3.bf16.msra.mxu1 %v2637_v35  ;;  %v2727_v35 = vld [vmem:[%s2853_s15 + $0xd8] ss:$20 sps:$4 sm:$0xff]  }
  0x35   : > { %2384 = vmatprep.subr.bf16.mxu1 %v2644_v36  ;;  %v2728_v36 = vld [vmem:[%s2853_s15 + $0x1c4] ss:$20 sps:$4 sm:$0xff]  }
  0x36   : > { %2519 = vmatpush3.bf16.msra.mxu0 %v2672_v45  ;;  %v2740_v45 = vld [vmem:[%s2853_s15 + $0x1a0] ss:$20 sps:$4 sm:$0xff]  }
  0x37   : > { %1151 = vmatmul.mubr.bf16.gmra.mrb[8].mxu0 %v2642_v37  ;;  %1247 = vmatmul.mubr.bf16.gmra.mrb[8].mxu1 %v2643_v39  ;;  %v2730_v37 = vld [vmem:[%s2853_s15 + $0x100] ss:$20 sps:$4 sm:$0xff]   ;;  %v2732_v39 = vld [vmem:[%s2853_s15 + $0x128] ss:$20 sps:$4 sm:$0xff]  }
  0x38   : > { %2385 = vmatpush3.bf16.msra.mxu1 %v2646_v40  ;;  %1158 = vmatprep.mubr.bf16.mxu0 %v2649_v42  ;;  %v2733_v40 = vld [vmem:[%s2853_s15 + $0x1ec] ss:$20 sps:$4 sm:$0xff]   ;;  %v2736_v42 = vld [vmem:[%s2853_s15 + $0x1e8] ss:$20 sps:$4 sm:$0xff]  }
  0x39   : > { %2386 = vmatprep.subr.bf16.mxu1 %v2647_v41  ;;  %1254 = vmatprep.mubr.bf16.mxu1 %v2651_v43  ;;  %v2735_v41 = vld [vmem:[%s2853_s15 + $0x150] ss:$20 sps:$4 sm:$0xff]   ;;  %v2737_v43 = vld [vmem:[%s2853_s15 + $0x178] ss:$20 sps:$4 sm:$0xff]  }
  0x3a   : > { %2520 = vmatprep.subr.bf16.mxu0 %v2679_v52 }
  0x3b   : > { %2521 = vmatpush3.bf16.msra.mxu0 %v2679_v52  ;;  %v2748_v52 = vld [vmem:[%s2853_s15 + $0x264] ss:$20 sps:$4 sm:$0xff]  }
  0x3c   : > { %2387 = vmatpush3.bf16.msra.mxu1 %v2648_v44  ;;  %2522 = vmatprep.subr.bf16.mxu0 %v2692_v57  ;;  %v2738_v44 = vld [vmem:[%s2853_s15 + $0x214] ss:$20 sps:$4 sm:$0xff]  }
  0x3d   : > { %2388 = vmatprep.subr.bf16.mxu1 %v2655_v48  ;;  %v2743_v48 = vld [vmem:[%s2853_s15 + $0x23c] ss:$20 sps:$4 sm:$0xff]  }
  0x3f   : > { %1159 = vmatmul.mubr.bf16.gmra.mrb[12].mxu0 %v2653_v46  ;;  %1255 = vmatmul.mubr.bf16.gmra.mrb[12].mxu1 %v2654_v47  ;;  %v2741_v46 = vld [vmem:[%s2853_s15 + $0x210] ss:$20 sps:$4 sm:$0xff]   ;;  %v2742_v47 = vld [vmem:[%s2853_s15 + $0x1c8] ss:$20 sps:$4 sm:$0xff]  }
  0x40   : > { %2389 = vmatpush3.bf16.msra.mxu1 %v2656_v49  ;;  %1166 = vmatprep.mubr.bf16.mxu0 %v2660_v51  ;;  %v2745_v49 = vld [vmem:[%s2853_s15 + $0x1f0] ss:$20 sps:$4 sm:$0xff]   ;;  %v2747_v51 = vld [vmem:[%s2853_s15 + $0x218] ss:$20 sps:$4 sm:$0xff]  }
  0x41   : > { %2390 = vmatprep.subr.bf16.mxu1 %v2657_v50  ;;  %1295 = vmatprep.mubr.bf16.mxu1 %v2664_v53  ;;  %v2746_v50 = vld [vmem:[%s2853_s15 + $0x238] ss:$20 sps:$4 sm:$0xff]   ;;  %v2750_v53 = vld [vmem:[%s2853_s15 + $0x240] ss:$20 sps:$4 sm:$0xff]  }
  0x42   : > { %2523 = vmatpush3.bf16.msra.mxu0 %v2692_v57 }
  0x43   : > { %2524 = vmatprep.subr.bf16.mxu0 %v2699_v60 }
  0x44   : > { %2391 = vmatpush3.bf16.msra.mxu1 %v2659_v54  ;;  %v2751_v54 = vld [vmem:[%s2853_s15 + $0x260] ss:$20 sps:$4 sm:$0xff]  }
  0x46   : > { %2525 = vmatpush3.bf16.msra.mxu0 %v2699_v60 }
  0x47   : > { %1167 = vmatmul.mubr.bf16.gmra.mrb[16].mxu0 %v2665_v56  ;;  %1296 = vmatmul.mubr.bf16.vlgmr.msra.gmra.mrb[16].mxu1 %v2662_v55  ;;  %v2752_v55 = vld [vmem:[%s2853_s15 + $0x268] ss:$20 sps:$4 sm:$0xff]  }
  0x48   : > { %1174 = vmatprep.mubr.bf16.mxu0 %v2666_v58  ;;  %1303 = vmatprep.mubr.bf16.mxu1 %v2668_v59 }
  0x49   : > { %2526 = vmatprep.subr.bf16.mxu0 %v2712_v1 }
  0x4a   : > { %2527 = vmatpush3.bf16.msra.mxu0 %v2712_v1 }
  0x4f   : > { %1175 = vmatmul.mubr.bf16.gmra.mrb[20].mxu0 %v2670_v61  ;;  %1304 = vmatmul.mubr.bf16.gmra.mrb[20].mxu1 %v2671_v62 }
  0x50   : > { %1182 = vmatprep.mubr.bf16.mxu0 %v2673_v63  ;;  %1311 = vmatprep.mubr.bf16.mxu1 %v2675_v0 }
  0x57   : > { %1183 = vmatmul.mubr.bf16.gmra.mrb[24].mxu0 %v2677_v2  ;;  %1312 = vmatmul.mubr.bf16.gmra.mrb[24].mxu1 %v2678_v3 }
  0x58   : > { %1190 = vmatprep.mubr.bf16.mxu0 %v2680_v4  ;;  %1319 = vmatprep.mubr.bf16.mxu1 %v2682_v5 }
  0x5f   : > { %1191 = vmatmul.mubr.bf16.gmra.mrb[28].mxu0 %v2684_v6  ;;  %1320 = vmatmul.mubr.bf16.gmra.mrb[28].mxu1 %v2685_v7 }
  0x60   : > { %1198 = vmatprep.mubr.bf16.mxu0 %v2686_v8  ;;  %1327 = vmatprep.mubr.bf16.mxu1 %v2688_v9 }
  0x67   : > { %1199 = vmatmul.mubr.bf16.gmra.mrb[32].mxu0 %v2690_v10  ;;  %1328 = vmatmul.mubr.bf16.gmra.mrb[32].mxu1 %v2691_v11 }
  0x68   : > { %1206 = vmatprep.mubr.bf16.mxu0 %v2693_v12  ;;  %1335 = vmatprep.mubr.bf16.mxu1 %v2695_v13 }
  0x6f   : > { %1207 = vmatmul.mubr.bf16.gmra.mrb[36].mxu0 %v2697_v14  ;;  %1336 = vmatmul.mubr.bf16.gmra.mrb[36].mxu1 %v2698_v15 }
  0x70   : > { %1214 = vmatprep.mubr.bf16.mxu0 %v2700_v16  ;;  %1343 = vmatprep.mubr.bf16.mxu1 %v2702_v17 }
  0x77   : > { %1215 = vmatmul.mubr.bf16.gmra.mrb[40].mxu0 %v2704_v18  ;;  %1344 = vmatmul.mubr.bf16.gmra.mrb[40].mxu1 %v2705_v19 }
  0x78   : > { %1222 = vmatprep.mubr.bf16.mxu0 %v2706_v20  ;;  %1351 = vmatprep.mubr.bf16.mxu1 %v2708_v21 }
  0x7f   : > { %1223 = vmatmul.mubr.bf16.gmra.mrb[44].mxu0 %v2710_v22  ;;  %1352 = vmatmul.mubr.bf16.gmra.mrb[44].mxu1 %v2711_v23 }
  0x80   : > { %1359 = vmatprep.mubr.bf16.mxu1 %v2713_v24  ;;  %2528 = vmatprep.mubr.bf16.mxu0 %v2715_v25 }
  0x87   : > { %1360 = vmatmul.mubr.bf16.gmra.mrb[48].mxu1 %v2716_v26  ;;  %2529 = vmatmul.mubr.bf16.vlgmr.msra.gmra.mrb[48].mxu0 %v2717_v27 }
  0x88   : > { %1367 = vmatprep.mubr.bf16.mxu1 %v2718_v28  ;;  %2532 = vmatprep.mubr.bf16.mxu0 %v2720_v29 }
  0x8f   : > { %1368 = vmatmul.mubr.bf16.gmra.mrb[52].mxu1 %v2721_v30  ;;  %2533 = vmatmul.mubr.bf16.gmra.mrb[52].mxu0 %v2722_v31 }
  0x90   : > { %1375 = vmatprep.mubr.bf16.mxu1 %v2723_v32  ;;  %2536 = vmatprep.mubr.bf16.mxu0 %v2725_v33 }
  0x97   : > { %1376 = vmatmul.mubr.bf16.gmra.mrb[56].mxu1 %v2726_v34  ;;  %2537 = vmatmul.mubr.bf16.gmra.mrb[56].mxu0 %v2727_v35 }
  0x98   : > { %1383 = vmatprep.mubr.bf16.mxu1 %v2728_v36  ;;  %2540 = vmatprep.mubr.bf16.mxu0 %v2730_v37 }
  0x9f   : > { %1384 = vmatmul.mubr.bf16.gmra.mrb[60].mxu1 %v2731_v38  ;;  %2541 = vmatmul.mubr.bf16.gmra.mrb[60].mxu0 %v2732_v39 }
  0xa0   : > { %1391 = vmatprep.mubr.bf16.mxu1 %v2733_v40  ;;  %2544 = vmatprep.mubr.bf16.mxu0 %v2735_v41 }
  0xa7   : > { %1392 = vmatmul.mubr.bf16.gmra.mrb[64].mxu1 %v2736_v42  ;;  %2545 = vmatmul.mubr.bf16.gmra.mrb[64].mxu0 %v2737_v43 }
  0xa8   : > { %1399 = vmatprep.mubr.bf16.mxu1 %v2738_v44  ;;  %2548 = vmatprep.mubr.bf16.mxu0 %v2740_v45 }
  0xaf   : > { %1400 = vmatmul.mubr.bf16.gmra.mrb[68].mxu1 %v2741_v46  ;;  %2549 = vmatmul.mubr.bf16.gmra.mrb[68].mxu0 %v2742_v47 }
  0xb0   : > { %1407 = vmatprep.mubr.bf16.mxu1 %v2743_v48  ;;  %2552 = vmatprep.mubr.bf16.mxu0 %v2745_v49 }
  0xb7   : > { %1408 = vmatmul.mubr.bf16.gmra.mrb[72].mxu1 %v2746_v50  ;;  %2553 = vmatmul.mubr.bf16.gmra.mrb[72].mxu0 %v2747_v51 }
  0xb8   : > { %1415 = vmatprep.mubr.bf16.mxu1 %v2748_v52  ;;  %2556 = vmatprep.mubr.bf16.mxu0 %v2750_v53 }
  0xbf   : > { %1416 = vmatmul.mubr.bf16.gmra.mrb[76].mxu1 %v2751_v54  ;;  %2557 = vmatmul.mubr.bf16.gmra.mrb[76].mxu0 %v2752_v55 }
  0xfa   : > { %v2352_v56 = vpop.f32.mrb[0].mxu1  ;;  %v2280_v57 = vpop.f32.mrb[0].mxu0 }
  0xfb   : > { %v2353_v58 = vpop.f32.mrb[1].mxu1  ;;  %v2281_v59 = vpop.f32.mrb[1].mxu0 }
  0xfc   : > { %v3028_v60 = vadd.f32 %v2353_v58, %v2352_v56  ;;  %v2355_v61 = vpop.f32.mrb[2].mxu1  ;;  %v2282_v62 = vadd.f32 %v2281_v59, %v2280_v57  ;;  %v2283_v63 = vpop.f32.mrb[2].mxu0 }
  0xfd   : > { %v2356_v0 = vpop.f32.mrb[3].mxu1  ;;  %v2284_v1 = vpop.f32.mrb[3].mxu0 }
  0xfe   : > { %v3030_v2 = vadd.f32 %v2356_v0, %v2355_v61  ;;  %v2285_v3 = vadd.f32 %v2284_v1, %v2283_v63 }
 0x102   : > { %v2358_v4 = vpop.f32.mrb[4].mxu1  ;;  %v2286_v5 = vpop.f32.mrb[4].mxu0 }
 0x103   : > { %v2359_v6 = vpop.f32.mrb[5].mxu1  ;;  %v2287_v7 = vpop.f32.mrb[5].mxu0 }
 0x104   : > { %v3032_v8 = vadd.f32 %v2359_v6, %v2358_v4  ;;  %v2361_v9 = vpop.f32.mrb[6].mxu1  ;;  %v2288_v10 = vadd.f32 %v2287_v7, %v2286_v5  ;;  %v2289_v11 = vpop.f32.mrb[6].mxu0 }
 0x105   : > { %v2362_v12 = vpop.f32.mrb[7].mxu1  ;;  %v2290_v13 = vpop.f32.mrb[7].mxu0 }
 0x106   : > { %v3034_v14 = vadd.f32 %v2362_v12, %v2361_v9  ;;  %v2291_v15 = vadd.f32 %v2290_v13, %v2289_v11 }
 0x10a   : > { %v2364_v16 = vpop.f32.mrb[8].mxu1  ;;  %v2292_v17 = vpop.f32.mrb[8].mxu0 }
 0x10b   : > { %v2365_v18 = vpop.f32.mrb[9].mxu1  ;;  %v2293_v19 = vpop.f32.mrb[9].mxu0 }
 0x10c   : > { %v3036_v20 = vadd.f32 %v2365_v18, %v2364_v16  ;;  %v2367_v21 = vpop.f32.mrb[10].mxu1  ;;  %v2294_v22 = vadd.f32 %v2293_v19, %v2292_v17  ;;  %v2295_v23 = vpop.f32.mrb[10].mxu0 }
 0x10d   : > { %v2368_v24 = vpop.f32.mrb[11].mxu1  ;;  %v2296_v25 = vpop.f32.mrb[11].mxu0 }
 0x10e   : > { %v3038_v26 = vadd.f32 %v2368_v24, %v2367_v21  ;;  %v2297_v27 = vadd.f32 %v2296_v25, %v2295_v23 }
 0x112   : > { %v2370_v28 = vpop.f32.mrb[12].mxu1  ;;  %v2298_v29 = vpop.f32.mrb[12].mxu0 }
 0x113   : > { %v2371_v30 = vpop.f32.mrb[13].mxu1  ;;  %v2299_v31 = vpop.f32.mrb[13].mxu0 }
 0x114   : > { %v3040_v32 = vadd.f32 %v2371_v30, %v2370_v28  ;;  %v2373_v33 = vpop.f32.mrb[14].mxu1  ;;  %v2300_v34 = vadd.f32 %v2299_v31, %v2298_v29  ;;  %v2301_v35 = vpop.f32.mrb[14].mxu0 }
 0x115   : > { %v2374_v36 = vpop.f32.mrb[15].mxu1  ;;  %v2302_v37 = vpop.f32.mrb[15].mxu0 }
 0x116   : > { %v3042_v38 = vadd.f32 %v2374_v36, %v2373_v33  ;;  %v2303_v39 = vadd.f32 %v2302_v37, %v2301_v35 }
 0x11a   : > { %v2392_v40 = vpop.f32.mrb[16].mxu1  ;;  %v2304_v41 = vpop.f32.mrb[16].mxu0 }
 0x11b   : > { %v2393_v42 = vpop.f32.mrb[17].mxu1  ;;  %v2305_v43 = vpop.f32.mrb[17].mxu0 }
 0x11c   : > { %v2394_v44 = vadd.f32 %v2393_v42, %v2392_v40  ;;  %v2395_v45 = vpop.f32.mrb[18].mxu1  ;;  %v2306_v46 = vadd.f32 %v2305_v43, %v2304_v41  ;;  %v2307_v47 = vpop.f32.mrb[18].mxu0 }
 0x11d   : > { %v2396_v48 = vpop.f32.mrb[19].mxu1  ;;  %v2308_v49 = vpop.f32.mrb[19].mxu0 }
 0x11e   : > { %v2397_v50 = vadd.f32 %v2396_v48, %v2395_v45  ;;  %v2309_v51 = vadd.f32 %v2308_v49, %v2307_v47  ;;  %v3044_v52 = vadd.f32 %v2394_v44, %v2282_v62 }
 0x120   : > { %v3046_v53 = vadd.f32 %v2397_v50, %v2285_v3 }
 0x122   : > { %v2398_v54 = vpop.f32.mrb[20].mxu1  ;;  %v2310_v55 = vpop.f32.mrb[20].mxu0 }
 0x123   : > { %v2399_v56 = vpop.f32.mrb[21].mxu1  ;;  %v2311_v57 = vpop.f32.mrb[21].mxu0 }
 0x124   : > { %v2400_v58 = vadd.f32 %v2399_v56, %v2398_v54  ;;  %v2401_v59 = vpop.f32.mrb[22].mxu1  ;;  %v2312_v61 = vadd.f32 %v2311_v57, %v2310_v55  ;;  %v2313_v63 = vpop.f32.mrb[22].mxu0 }
 0x125   : > { %v2402_v0 = vpop.f32.mrb[23].mxu1  ;;  %v2314_v1 = vpop.f32.mrb[23].mxu0 }
 0x126   : > { %v2403_v4 = vadd.f32 %v2402_v0, %v2401_v59  ;;  %v2315_v5 = vadd.f32 %v2314_v1, %v2313_v63  ;;  %v3048_v6 = vadd.f32 %v2400_v58, %v2288_v10 }
 0x128   : > { %v3050_v7 = vadd.f32 %v2403_v4, %v2291_v15 }
 0x12a   : > { %v2404_v62 = vpop.f32.mrb[24].mxu1  ;;  %v2316_v9 = vpop.f32.mrb[24].mxu0 }
 0x12b   : > { %v2405_v3 = vpop.f32.mrb[25].mxu1  ;;  %v2317_v11 = vpop.f32.mrb[25].mxu0 }
 0x12c   : > { %v2406_v12 = vadd.f32 %v2405_v3, %v2404_v62  ;;  %v2407_v13 = vpop.f32.mrb[26].mxu1  ;;  %v2318_v16 = vadd.f32 %v2317_v11, %v2316_v9  ;;  %v2319_v17 = vpop.f32.mrb[26].mxu0 }
 0x12d   : > { %v2408_v18 = vpop.f32.mrb[27].mxu1  ;;  %v2320_v19 = vpop.f32.mrb[27].mxu0 }
 0x12e   : > { %v2409_v21 = vadd.f32 %v2408_v18, %v2407_v13  ;;  %v2321_v23 = vadd.f32 %v2320_v19, %v2319_v17  ;;  %v3052_v24 = vadd.f32 %v2406_v12, %v2294_v22 }
 0x130   : > { %v3054_v25 = vadd.f32 %v2409_v21, %v2297_v27 }
 0x132   : > { %v2410_v10 = vpop.f32.mrb[28].mxu1  ;;  %v2322_v28 = vpop.f32.mrb[28].mxu0 }
 0x133   : > { %v2411_v15 = vpop.f32.mrb[29].mxu1  ;;  %v2323_v29 = vpop.f32.mrb[29].mxu0 }
 0x134   : > { %v2412_v30 = vadd.f32 %v2411_v15, %v2410_v10  ;;  %v2413_v31 = vpop.f32.mrb[30].mxu1  ;;  %v2324_v33 = vadd.f32 %v2323_v29, %v2322_v28  ;;  %v2325_v35 = vpop.f32.mrb[30].mxu0 }
 0x135   : > { %v2414_v36 = vpop.f32.mrb[31].mxu1  ;;  %v2326_v37 = vpop.f32.mrb[31].mxu0 }
 0x136   : > { %v2415_v40 = vadd.f32 %v2414_v36, %v2413_v31  ;;  %v2327_v41 = vadd.f32 %v2326_v37, %v2325_v35  ;;  %v3056_v42 = vadd.f32 %v2412_v30, %v2300_v34 }
 0x138   : > { %v3058_v43 = vadd.f32 %v2415_v40, %v2303_v39 }
 0x13a   : > { %v2416_v22 = vpop.f32.mrb[32].mxu1  ;;  %v2328_v44 = vpop.f32.mrb[32].mxu0 }
 0x13b   : > { %v2417_v27 = vpop.f32.mrb[33].mxu1  ;;  %v2329_v45 = vpop.f32.mrb[33].mxu0 }
 0x13c   : > { %v2418_v47 = vadd.f32 %v2417_v27, %v2416_v22  ;;  %v2419_v48 = vpop.f32.mrb[34].mxu1  ;;  %v3060_v49 = vadd.f32 %v2329_v45, %v2328_v44  ;;  %v2331_v50 = vpop.f32.mrb[34].mxu0 }
 0x13d   : > { %v2420_v54 = vpop.f32.mrb[35].mxu1  ;;  %v2332_v55 = vpop.f32.mrb[35].mxu0 }
 0x13e   : > { %v2421_v56 = vadd.f32 %v2420_v54, %v2419_v48  ;;  %v3062_v57 = vadd.f32 %v2332_v55, %v2331_v50  ;;  %v3064_v58 = vadd.f32 %v2418_v47, %v2306_v46 }
 0x140   : > { %v3066_v34 = vadd.f32 %v2421_v56, %v2309_v51 }
 0x142   : > { %v2422_v39 = vpop.f32.mrb[36].mxu1  ;;  %v2334_v59 = vpop.f32.mrb[36].mxu0 }
 0x143   : > { %v2423_v63 = vpop.f32.mrb[37].mxu1  ;;  %v2335_v0 = vpop.f32.mrb[37].mxu0 }
 0x144   : > { %v2424_v1 = vadd.f32 %v2423_v63, %v2422_v39  ;;  %v2425_v4 = vpop.f32.mrb[38].mxu1  ;;  %v3068_v62 = vadd.f32 %v2335_v0, %v2334_v59  ;;  %v2337_v9 = vpop.f32.mrb[38].mxu0  ;;  %v3095_v63 = vld [vmem:[%s3249_s2] ss:$0 sm:$0xff] }
 0x145   : > { %v2426_v3 = vpop.f32.mrb[39].mxu1  ;;  %v2338_v11 = vpop.f32.mrb[39].mxu0 }
 0x146   : > { %v2427_v12 = vadd.f32 %v2426_v3, %v2425_v4  ;;  %v3070_v13 = vadd.f32 %v2338_v11, %v2337_v9  ;;  %v3072_v17 = vadd.f32 %v2424_v1, %v2312_v61  ;;  %v3101_v9 = vld [vmem:[%s3250_s3] ss:$0 sm:$0xff] }
 0x148   : > { %v3074_v46 = vadd.f32 %v2427_v12, %v2315_v5 }
 0x14a   : > { %v2428_v51 = vpop.f32.mrb[40].mxu1  ;;  %v2340_v18 = vpop.f32.mrb[40].mxu0 }
 0x14b   : > { %v2429_v19 = vpop.f32.mrb[41].mxu1  ;;  %v2341_v21 = vpop.f32.mrb[41].mxu0 }
 0x14c   : > { %v2430_v10 = vadd.f32 %v2429_v19, %v2428_v51  ;;  %v2431_v28 = vpop.f32.mrb[42].mxu1  ;;  %v3076_v15 = vadd.f32 %v2341_v21, %v2340_v18  ;;  %v2343_v29 = vpop.f32.mrb[42].mxu0 }
 0x14d   : > { %v2432_v30 = vpop.f32.mrb[43].mxu1  ;;  %v2344_v31 = vpop.f32.mrb[43].mxu0 }
 0x14e   : > { %v2433_v35 = vadd.f32 %v2432_v30, %v2431_v28  ;;  %v3078_v36 = vadd.f32 %v2344_v31, %v2343_v29  ;;  %v3080_v37 = vadd.f32 %v2430_v10, %v2318_v16 }
 0x150   : > { %v3082_v61 = vadd.f32 %v2433_v35, %v2321_v23 }
 0x152   : > { %v2434_v5 = vpop.f32.mrb[44].mxu1  ;;  %v2346_v40 = vpop.f32.mrb[44].mxu0 }
 0x153   : > { %v2435_v22 = vpop.f32.mrb[45].mxu1  ;;  %v2347_v44 = vpop.f32.mrb[45].mxu0 }
 0x154   : > { %v2436_v27 = vadd.f32 %v2435_v22, %v2434_v5  ;;  %v2437_v45 = vpop.f32.mrb[46].mxu1  ;;  %v3084_v47 = vadd.f32 %v2347_v44, %v2346_v40  ;;  %v2349_v48 = vpop.f32.mrb[46].mxu0 }
 0x155   : > { %v2438_v50 = vpop.f32.mrb[47].mxu1  ;;  %v2350_v54 = vpop.f32.mrb[47].mxu0 }
 0x156   : > { %v2439_v55 = vadd.f32 %v2438_v50, %v2437_v45  ;;  %v3086_v56 = vadd.f32 %v2350_v54, %v2349_v48  ;;  %v3088_v39 = vadd.f32 %v2436_v27, %v2324_v33 }
 0x158   : > { %v3090_v16 = vadd.f32 %v2439_v55, %v2327_v41 }
 0x15a   : > { %v2440_v23 = vpop.f32.mrb[48].mxu1  ;;  %v2530_v59 = vpop.f32.mrb[48].mxu0 }
 0x15b   : > { %v1467_v0 = vadd.f32 %v2530_v59, %v3048_v6  ;;  %v2441_v1 = vpop.f32.mrb[49].mxu1  ;;  %v1458_v4 = vpop.f32.mrb[49].mxu0 }
 0x15c   : > { %v2442_v33 = vadd.f32 %v2441_v1, %v2440_v23  ;;  %v1459_v41 = vadd.f32 %v1458_v4, %v3044_v52  ;;  %v2443_v3 = vpop.f32.mrb[50].mxu1  ;;  %v2531_v11 = vpop.f32.mrb[50].mxu0 }
 0x15d   : > { %v1594_v12 = vmul.f32 %v3095_v63, %v1467_v0  ;;  %v1470_v51 = vadd.f32 %v2531_v11, %v3050_v7  ;;  %v2444_v18 = vpop.f32.mrb[51].mxu1  ;;  %v1461_v19 = vpop.f32.mrb[51].mxu0 }
 0x15e   : > { %v1592_v6 = vmul.f32 %v3095_v63, %v1459_v41  ;;  %v2445_v21 = vadd.f32 %v2444_v18, %v2443_v3  ;;  %v1462_v10 = vadd.f32 %v1461_v19, %v3046_v53  ;;  %v3109_v28 = vadd.f32 %v2442_v33, %v3060_v49 }
 0x15f   : > { %v1633_v29 = vadd.f32 %v3101_v9, %v1594_v12  ;;  %v1595_v52 = vmul.f32 %v3095_v63, %v1470_v51 }
 0x160   : > { %v1631_v30 = vadd.f32 %v3101_v9, %v1592_v6  ;;  %v1593_v31 = vmul.f32 %v3095_v63, %v1462_v10  ;;  %v3116_v7 = vadd.f32 %v2445_v21, %v3062_v57 }
 0x161   : > { %v1634_v35 = vadd.f32 %v3101_v9, %v1595_v52  ;;  %v1665_v49 = vmax.f32 %v1633_v29, 0.0 }
 0x162   : > { %v1632_v5 = vadd.f32 %v3101_v9, %v1593_v31  ;;  %v2446_v53 = vpop.f32.mrb[52].mxu1  ;;  %v2534_v40 = vpop.f32.mrb[52].mxu0  ;;  %v1663_v48 = vmax.f32 %v1631_v30, 0.0 }
 0x163   : > { %v1666_v22 = vmax.f32 %v1634_v35, 0.0  ;;  %v1483_v44 = vadd.f32 %v2534_v40, %v3056_v42  ;;  %v2447_v27 = vpop.f32.mrb[53].mxu1  ;;  %v1474_v45 = vpop.f32.mrb[53].mxu0 }
 0x164   : > { %v1664_v57 = vmax.f32 %v1632_v5, 0.0  ;;  %v2448_v50 = vadd.f32 %v2447_v27, %v2446_v53  ;;  %v1475_v54 = vadd.f32 %v1474_v45, %v3052_v24  ;;  %v2449_v55 = vpop.f32.mrb[54].mxu1  ;;  %v2535_v23 = vpop.f32.mrb[54].mxu0 }
 0x165   : > { %v2177_v59 = vpack.c.bf16 %v1666_v22, %v1665_v49  ;;  %v1598_v0 = vmul.f32 %v3095_v63, %v1483_v44  ;;  %v1486_v42 = vadd.f32 %v2535_v23, %v3058_v43  ;;  %v2450_v1 = vpop.f32.mrb[55].mxu1  ;;  %v1477_v4 = vpop.f32.mrb[55].mxu0 }
 0x166   : > { %v2172_v33 = vpack.c.bf16 %v1664_v57, %v1663_v48  ;;  %v1596_v41 = vmul.f32 %v3095_v63, %v1475_v54  ;;  %v2451_v3 = vadd.f32 %v2450_v1, %v2449_v55  ;;  %v1478_v11 = vadd.f32 %v1477_v4, %v3054_v25 }
 0x167   : > { %2249 = vst [vmem:[%s3125_s25 + $0x8] sm:$0xff] %v2177_v59   ;;  %v1637_v12 = vadd.f32 %v3101_v9, %v1598_v0  ;;  %v1599_v24 = vmul.f32 %v3095_v63, %v1486_v42  ;;  %v3136_v51 = vadd.f32 %v2448_v50, %v3068_v62 }
 0x168   : > { %2173 = vst [vmem:[%s3125_s25] sm:$0xff] %v2172_v33   ;;  %v1635_v18 = vadd.f32 %v3101_v9, %v1596_v41  ;;  %v1597_v43 = vmul.f32 %v3095_v63, %v1478_v11  ;;  %v3142_v19 = vadd.f32 %v2451_v3, %v3070_v13 }
 0x169   : > { %v1638_v6 = vadd.f32 %v3101_v9, %v1599_v24  ;;  %v1669_v29 = vmax.f32 %v1637_v12, 0.0 }
 0x16a   : > { %v1636_v25 = vadd.f32 %v3101_v9, %v1597_v43  ;;  %v2452_v21 = vpop.f32.mrb[56].mxu1  ;;  %v2538_v10 = vpop.f32.mrb[56].mxu0  ;;  %v1667_v35 = vmax.f32 %v1635_v18, 0.0 }
 0x16b   : > { %v1670_v52 = vmax.f32 %v1638_v6, 0.0  ;;  %v1499_v30 = vadd.f32 %v2538_v10, %v3072_v17  ;;  %v2453_v62 = vpop.f32.mrb[57].mxu1  ;;  %v1490_v31 = vpop.f32.mrb[57].mxu0 }
 0x16c   : > { %v1668_v5 = vmax.f32 %v1636_v25, 0.0  ;;  %v2454_v53 = vadd.f32 %v2453_v62, %v2452_v21  ;;  %v1491_v40 = vadd.f32 %v1490_v31, %v3064_v58  ;;  %v2455_v13 = vpop.f32.mrb[58].mxu1  ;;  %v2539_v49 = vpop.f32.mrb[58].mxu0 }
 0x16d   : > { %v2187_v22 = vpack.c.bf16 %v1670_v52, %v1669_v29  ;;  %v1602_v44 = vmul.f32 %v3095_v63, %v1499_v30  ;;  %v1502_v27 = vadd.f32 %v2539_v49, %v3074_v46  ;;  %v2456_v45 = vpop.f32.mrb[59].mxu1  ;;  %v1493_v48 = vpop.f32.mrb[59].mxu0 }
 0x16e   : > { %v2182_v57 = vpack.c.bf16 %v1668_v5, %v1667_v35  ;;  %v1600_v17 = vmul.f32 %v3095_v63, %v1491_v40  ;;  %v2457_v50 = vadd.f32 %v2456_v45, %v2455_v13  ;;  %v1494_v54 = vadd.f32 %v1493_v48, %v3066_v34 }
 0x16f   : > { %2251 = vst [vmem:[%s3125_s25 + $0x18] sm:$0xff] %v2187_v22   ;;  %v1641_v55 = vadd.f32 %v3101_v9, %v1602_v44  ;;  %v1603_v58 = vmul.f32 %v3095_v63, %v1502_v27  ;;  %v3156_v23 = vadd.f32 %v2454_v53, %v3076_v15 }
 0x170   : > { %2250 = vst [vmem:[%s3125_s25 + $0x10] sm:$0xff] %v2182_v57   ;;  %v1639_v59 = vadd.f32 %v3101_v9, %v1600_v17  ;;  %v1601_v46 = vmul.f32 %v3095_v63, %v1494_v54  ;;  %v3162_v0 = vadd.f32 %v2457_v50, %v3078_v36 }
 0x171   : > { %v1642_v42 = vadd.f32 %v3101_v9, %v1603_v58  ;;  %v1673_v33 = vmax.f32 %v1641_v55, 0.0 }
 0x172   : > { %v1640_v34 = vadd.f32 %v3101_v9, %v1601_v46  ;;  %v2458_v1 = vpop.f32.mrb[60].mxu1  ;;  %v2542_v4 = vpop.f32.mrb[60].mxu0  ;;  %v1671_v12 = vmax.f32 %v1639_v59, 0.0 }
 0x173   : > { %v1674_v41 = vmax.f32 %v1642_v42, 0.0  ;;  %v1515_v3 = vadd.f32 %v2542_v4, %v3088_v39  ;;  %v2459_v15 = vpop.f32.mrb[61].mxu1  ;;  %v1506_v11 = vpop.f32.mrb[61].mxu0 }
 0x174   : > { %v1672_v24 = vmax.f32 %v1640_v34, 0.0  ;;  %v2460_v18 = vadd.f32 %v2459_v15, %v2458_v1  ;;  %v1507_v43 = vadd.f32 %v1506_v11, %v3080_v37  ;;  %v2461_v36 = vpop.f32.mrb[62].mxu1  ;;  %v2543_v6 = vpop.f32.mrb[62].mxu0 }
 0x175   : > { %v2197_v25 = vpack.c.bf16 %v1674_v41, %v1673_v33  ;;  %v1606_v21 = vmul.f32 %v3095_v63, %v1515_v3  ;;  %v1518_v10 = vadd.f32 %v2543_v6, %v3090_v16  ;;  %v2462_v29 = vpop.f32.mrb[63].mxu1  ;;  %v1509_v52 = vpop.f32.mrb[63].mxu0 }
 0x176   : > { %v2192_v30 = vpack.c.bf16 %v1672_v24, %v1671_v12  ;;  %v1604_v39 = vmul.f32 %v3095_v63, %v1507_v43  ;;  %v2463_v62 = vadd.f32 %v2462_v29, %v2461_v36  ;;  %v1510_v31 = vadd.f32 %v1509_v52, %v3082_v61 }
 0x177   : > { %2253 = vst [vmem:[%s3125_s25 + $0x28] sm:$0xff] %v2197_v25   ;;  %v1645_v35 = vadd.f32 %v3101_v9, %v1606_v21  ;;  %v1607_v37 = vmul.f32 %v3095_v63, %v1518_v10  ;;  %v1386_v5 = vadd.f32 %v2460_v18, %v3084_v47 }
 0x178   : > { %2252 = vst [vmem:[%s3125_s25 + $0x20] sm:$0xff] %v2192_v30   ;;  %v1643_v53 = vadd.f32 %v3101_v9, %v1604_v39  ;;  %v1605_v16 = vmul.f32 %v3095_v63, %v1510_v31  ;;  %v1389_v40 = vadd.f32 %v2463_v62, %v3086_v56 }
 0x179   : > { %v1646_v13 = vadd.f32 %v3101_v9, %v1607_v37  ;;  %v1677_v44 = vmax.f32 %v1645_v35, 0.0 }
 0x17a   : > { %v1644_v49 = vadd.f32 %v3101_v9, %v1605_v16  ;;  %v2464_v22 = vpop.f32.mrb[64].mxu1  ;;  %v2546_v61 = vpop.f32.mrb[64].mxu0  ;;  %v1675_v47 = vmax.f32 %v1643_v53, 0.0 }
 0x17b   : > { %v1678_v27 = vmax.f32 %v1646_v13, 0.0  ;;  %v1531_v45 = vadd.f32 %v2546_v61, %v3136_v51  ;;  %v2465_v48 = vpop.f32.mrb[65].mxu1  ;;  %v1522_v57 = vpop.f32.mrb[65].mxu0 }
 0x17c   : > { %v1676_v17 = vmax.f32 %v1644_v49, 0.0  ;;  %v2466_v50 = vadd.f32 %v2465_v48, %v2464_v22  ;;  %v1523_v54 = vadd.f32 %v1522_v57, %v3109_v28  ;;  %v2467_v56 = vpop.f32.mrb[66].mxu1  ;;  %v2547_v55 = vpop.f32.mrb[66].mxu0 }
 0x17d   : > { %v2207_v58 = vpack.c.bf16 %v1678_v27, %v1677_v44  ;;  %v1610_v59 = vmul.f32 %v3095_v63, %v1531_v45  ;;  %v1534_v46 = vadd.f32 %v2547_v55, %v3142_v19  ;;  %v2468_v42 = vpop.f32.mrb[67].mxu1  ;;  %v1525_v34 = vpop.f32.mrb[67].mxu0 }
 0x17e   : > { %v2202_v1 = vpack.c.bf16 %v1676_v17, %v1675_v47  ;;  %v1608_v51 = vmul.f32 %v3095_v63, %v1523_v54  ;;  %v2469_v4 = vadd.f32 %v2468_v42, %v2467_v56  ;;  %v1526_v33 = vadd.f32 %v1525_v34, %v3116_v7 }
 0x17f   : > { %2255 = vst [vmem:[%s3125_s25 + $0x38] sm:$0xff] %v2207_v58   ;;  %v1649_v41 = vadd.f32 %v3101_v9, %v1610_v59  ;;  %v1611_v28 = vmul.f32 %v3095_v63, %v1534_v46  ;;  %v1394_v3 = vadd.f32 %v2466_v50, %v3028_v60 }
 0x180   : > { %2254 = vst [vmem:[%s3125_s25 + $0x30] sm:$0xff] %v2202_v1   ;;  %v1647_v15 = vadd.f32 %v3101_v9, %v1608_v51  ;;  %v1609_v19 = vmul.f32 %v3095_v63, %v1526_v33  ;;  %v1397_v11 = vadd.f32 %v2469_v4, %v3030_v2 }
 0x181   : > { %v1650_v12 = vadd.f32 %v3101_v9, %v1611_v28  ;;  %v1681_v43 = vmax.f32 %v1649_v41, 0.0 }
 0x182   : > { %v1648_v24 = vadd.f32 %v3101_v9, %v1609_v19  ;;  %v2470_v18 = vpop.f32.mrb[68].mxu1  ;;  %v2550_v7 = vpop.f32.mrb[68].mxu0  ;;  %v1679_v60 = vmax.f32 %v1647_v15, 0.0 }
 0x183   : > { %v1682_v36 = vmax.f32 %v1650_v12, 0.0  ;;  %v1547_v6 = vadd.f32 %v2550_v7, %v1386_v5  ;;  %v2471_v25 = vpop.f32.mrb[69].mxu1  ;;  %v1538_v21 = vpop.f32.mrb[69].mxu0 }
 0x184   : > { %v1680_v10 = vmax.f32 %v1648_v24, 0.0  ;;  %v2472_v29 = vadd.f32 %v2471_v25, %v2470_v18  ;;  %v1539_v52 = vadd.f32 %v1538_v21, %v3156_v23  ;;  %v2473_v30 = vpop.f32.mrb[70].mxu1  ;;  %v2551_v2 = vpop.f32.mrb[70].mxu0 }
 0x185   : > { %v2217_v39 = vpack.c.bf16 %v1682_v36, %v1681_v43  ;;  %v1614_v62 = vmul.f32 %v3095_v63, %v1547_v6  ;;  %v1550_v31 = vadd.f32 %v2551_v2, %v1389_v40  ;;  %v2474_v35 = vpop.f32.mrb[71].mxu1  ;;  %v1541_v37 = vpop.f32.mrb[71].mxu0 }
 0x186   : > { %v2212_v53 = vpack.c.bf16 %v1680_v10, %v1679_v60  ;;  %v1612_v5 = vmul.f32 %v3095_v63, %v1539_v52  ;;  %v2475_v16 = vadd.f32 %v2474_v35, %v2473_v30  ;;  %v1542_v13 = vadd.f32 %v1541_v37, %v3162_v0 }
 0x187   : > { %2257 = vst [vmem:[%s3125_s25 + $0x48] sm:$0xff] %v2217_v39   ;;  %v1653_v49 = vadd.f32 %v3101_v9, %v1614_v62  ;;  %v1615_v23 = vmul.f32 %v3095_v63, %v1550_v31  ;;  %v1402_v22 = vadd.f32 %v2472_v29, %v3032_v8 }
 0x188   : > { %2256 = vst [vmem:[%s3125_s25 + $0x40] sm:$0xff] %v2212_v53   ;;  %v1651_v61 = vadd.f32 %v3101_v9, %v1612_v5  ;;  %v1613_v40 = vmul.f32 %v3095_v63, %v1542_v13  ;;  %v1405_v44 = vadd.f32 %v2475_v16, %v3034_v14 }
 0x189   : > { %v1654_v27 = vadd.f32 %v3101_v9, %v1615_v23  ;;  %v1685_v57 = vmax.f32 %v1653_v49, 0.0 }
 0x18a   : > { %v1652_v45 = vadd.f32 %v3101_v9, %v1613_v40  ;;  %v2476_v48 = vpop.f32.mrb[72].mxu1  ;;  %v2554_v0 = vpop.f32.mrb[72].mxu0  ;;  %v1683_v8 = vmax.f32 %v1651_v61, 0.0 }
 0x18b   : > { %v1686_v47 = vmax.f32 %v1654_v27, 0.0  ;;  %v1563_v17 = vadd.f32 %v2554_v0, %v1402_v22  ;;  %v2477_v50 = vpop.f32.mrb[73].mxu1  ;;  %v1554_v54 = vpop.f32.mrb[73].mxu0 }
 0x18c   : > { %v1684_v56 = vmax.f32 %v1652_v45, 0.0  ;;  %v2478_v55 = vadd.f32 %v2477_v50, %v2476_v48  ;;  %v1555_v58 = vadd.f32 %v1554_v54, %v1394_v3  ;;  %v2479_v59 = vpop.f32.mrb[74].mxu1  ;;  %v2555_v46 = vpop.f32.mrb[74].mxu0 }
 0x18d   : > { %v2227_v14 = vpack.c.bf16 %v1686_v47, %v1685_v57  ;;  %v1618_v42 = vmul.f32 %v3095_v63, %v1563_v17  ;;  %v1566_v34 = vadd.f32 %v2555_v46, %v1405_v44  ;;  %v2480_v1 = vpop.f32.mrb[75].mxu1  ;;  %v1557_v51 = vpop.f32.mrb[75].mxu0 }
 0x18e   : > { %v2222_v4 = vpack.c.bf16 %v1684_v56, %v1683_v8  ;;  %v1616_v33 = vmul.f32 %v3095_v63, %v1555_v58  ;;  %v2481_v41 = vadd.f32 %v2480_v1, %v2479_v59  ;;  %v1558_v28 = vadd.f32 %v1557_v51, %v1397_v11 }
 0x18f   : > { %2259 = vst [vmem:[%s3125_s25 + $0x58] sm:$0xff] %v2227_v14   ;;  %v1657_v15 = vadd.f32 %v3101_v9, %v1618_v42  ;;  %v1619_v19 = vmul.f32 %v3095_v63, %v1566_v34  ;;  %v1410_v3 = vadd.f32 %v2478_v55, %v3036_v20 }
 0x190   : > { %2258 = vst [vmem:[%s3125_s25 + $0x50] sm:$0xff] %v2222_v4   ;;  %v1655_v12 = vadd.f32 %v3101_v9, %v1616_v33  ;;  %v1617_v24 = vmul.f32 %v3095_v63, %v1558_v28  ;;  %v1413_v18 = vadd.f32 %v2481_v41, %v3038_v26 }
 0x191   : > { %v1658_v7 = vadd.f32 %v3101_v9, %v1619_v19  ;;  %v1689_v6 = vmax.f32 %v1657_v15, 0.0 }
 0x192   : > { %v1656_v43 = vadd.f32 %v3101_v9, %v1617_v24  ;;  %v2482_v36 = vpop.f32.mrb[76].mxu1  ;;  %v2558_v11 = vpop.f32.mrb[76].mxu0  ;;  %v1687_v20 = vmax.f32 %v1655_v12, 0.0 }
 0x193   : > { %v1690_v25 = vmax.f32 %v1658_v7, 0.0  ;;  %v2483_v21 = vpop.f32.mrb[77].mxu1  ;;  %v1570_v60 = vpop.f32.mrb[77].mxu0 }
 0x194   : > { %v1688_v10 = vmax.f32 %v1656_v43, 0.0  ;;  %v2484_v29 = vadd.f32 %v2483_v21, %v2482_v36  ;;  %v1571_v52 = vadd.f32 %v1570_v60, %v1410_v3  ;;  %v2485_v30 = vpop.f32.mrb[78].mxu1  ;;  %v2559_v2 = vpop.f32.mrb[78].mxu0 }
 0x195   : > { %v2237_v39 = vpack.c.bf16 %v1690_v25, %v1689_v6  ;;  %v2486_v26 = vpop.f32.mrb[79].mxu1  ;;  %v1573_v62 = vpop.f32.mrb[79].mxu0 }
 0x196   : > { %v2232_v31 = vpack.c.bf16 %v1688_v10, %v1687_v20  ;;  %v1418_v35 = vadd.f32 %v2484_v29, %v3040_v32  ;;  %v1620_v37 = vmul.f32 %v3095_v63, %v1571_v52  ;;  %v2487_v53 = vadd.f32 %v2486_v26, %v2485_v30 }
 0x197   : > { %2261 = vst [vmem:[%s3125_s25 + $0x68] sm:$0xff] %v2237_v39   ;;  %v1574_v5 = vadd.f32 %v1573_v62, %v1413_v18 }
 0x198   : > { %2260 = vst [vmem:[%s3125_s25 + $0x60] sm:$0xff] %v2232_v31   ;;  %v1579_v16 = vadd.f32 %v2558_v11, %v1418_v35  ;;  %v1421_v13 = vadd.f32 %v2487_v53, %v3042_v38  ;;  %v1659_v49 = vadd.f32 %v3101_v9, %v1620_v37 }
 0x199   : > { %v1621_v23 = vmul.f32 %v3095_v63, %v1574_v5 }
 0x19a   : > { %v1622_v22 = vmul.f32 %v3095_v63, %v1579_v16  ;;  %v1582_v61 = vadd.f32 %v2559_v2, %v1421_v13  ;;  %v1691_v27 = vmax.f32 %v1659_v49, 0.0 }
 0x19b   : > { %v1660_v32 = vadd.f32 %v3101_v9, %v1621_v23 }
 0x19c   : > { %v1661_v40 = vadd.f32 %v3101_v9, %v1622_v22  ;;  %v1623_v44 = vmul.f32 %v3095_v63, %v1582_v61 }
 0x19d   : > { %v1692_v45 = vmax.f32 %v1660_v32, 0.0 }
 0x19e   : > { %v1662_v48 = vadd.f32 %v3101_v9, %v1623_v44  ;;  %v1693_v38 = vmax.f32 %v1661_v40, 0.0 }
 0x19f   : > { %v2242_v0 = vpack.c.bf16 %v1692_v45, %v1691_v27 }
 0x1a0   : > { %v1694_v57 = vmax.f32 %v1662_v48, 0.0 }
 0x1a1   : > { %2262 = vst [vmem:[%s3125_s25 + $0x70] sm:$0xff] %v2242_v0  }
 0x1a2   : > { %v2247_v47 = vpack.c.bf16 %v1694_v57, %v1693_v38 }
 0x1a4   : > { %2263 = vst [vmem:[%s3125_s25 + $0x78] sm:$0xff] %v2247_v47  }
 0x1a5 PF: > { %s14_s17 = sadd.s32 1, %s2775_s17   ;;  %s3252_s15 = smov %s2771_s16 }
 0x1a6   : > { %p11_p5 = scmp.ge.s32.totalorder %s14_s17, 22   ;;  %s3253_s16 = smov %s3255_s18 }
 0x1a8   :  { %13 = sbr.rel (!%p11_p5) target bundleno = 2 (0x2), region = 75 }

// kernel: stem_fwd.16
= control target key start
LH: loop header
LB: loop body
LE: loop exit
PB: predicated region body
PF: predicated region fallthrough
CT: control target
= control target key end

     0   :  { %s2314_s15 = smov 0   ;;  %s2316_s16 = smov 0   ;;  %s2608_s0 = inlined_call_operand.vmem [shape: bf16[5376,512], index: 0, kind: input, shape index: {}]   ;;  %s2609_s1 = inlined_call_operand.vmem [shape: bf16[512,128], index: 1, kind: input, shape index: {}]   ;;  %s2610_s2 = inlined_call_operand.vmem [shape: f32[1,128], index: 2, kind: input, shape index: {}]   ;;  %s2611_s3 = inlined_call_operand.vmem [shape: f32[1,128], index: 3, kind: input, shape index: {}]   ;;  %s2612_s4 = inlined_call_operand.vmem [shape: bf16[5376,128], index: 4, kind: output, shape index: {}]  }
   0x1   :  { %s2318_s17 = smov 0  }
   0x2 LB: > { %s26_s18 = sadd.s32 1, %s2283_s16  ;;  %p1623_p0 = scmp.ge.s32.totalorder %s2287_s17, 1  ;;  %s2287_s17 = sphi %s2318_s17, %s14_s17   ;;  %s2283_s16 = sphi %s2316_s16, %s2614_s16   ;;  %s2279_s15 = sphi %s2314_s15, %s2613_s15  }
   0x3   : > { %p28_p1 = scmp.ge.s32.totalorder %s26_s18, 21  ;;  %p203_p2 = scmp.lt.s32.totalorder %s2287_s17, 22 }
   0x5   : > { %s2616_s18 = smov (%p28_p1, %s26_s18), 0  ;;  %p204_p3 = pnand %p1623_p0, %p203_p2 }
   0x6   : > { %v2137_v0 = vld [vmem:[%s2609_s1 + $0x40] sm:$0xff] (!%p204_p3)   ;;  %v2141_v4 = vld [vmem:[%s2609_s1 + $0x48] sm:$0xff] (!%p204_p3)   ;;  %v2145_v8 = vld [vmem:[%s2609_s1 + $0x50] sm:$0xff] (!%p204_p3)   ;;  %s1624_s29 = sshll.u32 (!%p204_p3), %s2279_s15, 5 }
   0x7   : > { %207 = sbr.rel (%p204_p3) target bundleno = 389 (0x185), region = 36  ;;  %v2138_v1 = vld [vmem:[%s2609_s1 + $0xc0] sm:$0xff] (!%p204_p3)   ;;  %1889 = vmatprep.subr.bf16.mxu0 (!%p204_p3), %v2137_v0  ;;  %v2142_v5 = vld [vmem:[%s2609_s1 + $0xc8] sm:$0xff] (!%p204_p3)   ;;  %v2146_v9 = vld [vmem:[%s2609_s1 + $0xd0] sm:$0xff] (!%p204_p3)   ;;  %p244_p4 = scmp.lt.s32.totalorder (!%p204_p3), %s1624_s29, 671 }
   0x8   : > { %v2139_v2 = vld [vmem:[%s2609_s1] sm:$0xff] (!%p204_p3)   ;;  %2001 = vmatprep.subr.bf16.mxu1 (!%p204_p3), %v2138_v1  ;;  %v2143_v6 = vld [vmem:[%s2609_s1 + $0x8] sm:$0xff] (!%p204_p3)   ;;  %v2147_v10 = vld [vmem:[%s2609_s1 + $0x10] sm:$0xff] (!%p204_p3)  }
   0x9   : > { %v2140_v3 = vld [vmem:[%s2609_s1 + $0x80] sm:$0xff] (!%p204_p3)   ;;  %1890 = vmatpush3.bf16.msra.mxu0 (!%p204_p3), %v2139_v2  ;;  %v2144_v7 = vld [vmem:[%s2609_s1 + $0x88] sm:$0xff] (!%p204_p3)   ;;  %v2148_v11 = vld [vmem:[%s2609_s1 + $0x90] sm:$0xff] (!%p204_p3)  }
   0xa   : > { %2002 = vmatpush3.bf16.msra.mxu1 (!%p204_p3), %v2140_v3  ;;  %1891 = vmatprep.subr.bf16.mxu0 (!%p204_p3), %v2141_v4  ;;  %v2149_v12 = vld [vmem:[%s2609_s1 + $0x58] sm:$0xff] (!%p204_p3)   ;;  %v2153_v16 = vld [vmem:[%s2609_s1 + $0x60] sm:$0xff] (!%p204_p3)   ;;  %v2157_v20 = vld [vmem:[%s2609_s1 + $0x68] sm:$0xff] (!%p204_p3)  }
   0xb   : > { %2003 = vmatprep.subr.bf16.mxu1 (!%p204_p3), %v2142_v5  ;;  %v2150_v13 = vld [vmem:[%s2609_s1 + $0xd8] sm:$0xff] (!%p204_p3)   ;;  %v2154_v17 = vld [vmem:[%s2609_s1 + $0xe0] sm:$0xff] (!%p204_p3)   ;;  %v2158_v21 = vld [vmem:[%s2609_s1 + $0xe8] sm:$0xff] (!%p204_p3)  }
   0xc   : > { %v2151_v14 = vld [vmem:[%s2609_s1 + $0x18] sm:$0xff] (!%p204_p3)   ;;  %v2155_v18 = vld [vmem:[%s2609_s1 + $0x20] sm:$0xff] (!%p204_p3)   ;;  %v2159_v22 = vld [vmem:[%s2609_s1 + $0x28] sm:$0xff] (!%p204_p3)  }
   0xd   : > { %1892 = vmatpush3.bf16.msra.mxu0 (!%p204_p3), %v2143_v6  ;;  %v2152_v15 = vld [vmem:[%s2609_s1 + $0x98] sm:$0xff] (!%p204_p3)   ;;  %v2156_v19 = vld [vmem:[%s2609_s1 + $0xa0] sm:$0xff] (!%p204_p3)   ;;  %v2160_v23 = vld [vmem:[%s2609_s1 + $0xa8] sm:$0xff] (!%p204_p3)  }
   0xe   : > { %2004 = vmatpush3.bf16.msra.mxu1 %v2144_v7  ;;  %1893 = vmatprep.subr.bf16.mxu0 %v2145_v8  ;;  %s2618_s29 = smov (!%p244_p4, %s1624_s29), 671  ;;  %v2161_v24 = vld [vmem:[%s2609_s1 + $0x70] sm:$0xff]   ;;  %v2165_v28 = vld [vmem:[%s2609_s1 + $0x78] sm:$0xff]  }
   0xf   : > { %2005 = vmatprep.subr.bf16.mxu1 %v2146_v9  ;;  %v2162_v25 = vld [vmem:[%s2609_s1 + $0xf0] sm:$0xff]   ;;  %s1761_s30 = sshll.u32 %s2618_s29, 4  ;;  %v2166_v29 = vld [vmem:[%s2609_s1 + $0xf8] sm:$0xff]   ;;  %s1628_s25 = sshll.u32 %s2618_s29, 2 }
  0x10   : > { %v2163_v26 = vld [vmem:[%s2609_s1 + $0x30] sm:$0xff]   ;;  %s2431_s12 = scalar_lea.vmem %s2608_s0, %s1761_s30  ;;  %v2167_v30 = vld [vmem:[%s2609_s1 + $0x38] sm:$0xff]   ;;  %s2521_s28 = scalar_lea.vmem %s2612_s4, %s1628_s25 }
  0x11   : > { %1894 = vmatpush3.bf16.msra.mxu0 %v2147_v10  ;;  %v2164_v27 = vld [vmem:[%s2609_s1 + $0xb0] sm:$0xff]   ;;  %v2168_v31 = vld [vmem:[%s2609_s1 + $0xb8] sm:$0xff]  }
  0x12   : > { %2006 = vmatpush3.bf16.msra.mxu1 %v2148_v11  ;;  %1895 = vmatprep.subr.bf16.mxu0 %v2149_v12  ;;  %v2169_v32 = vld [vmem:[%s2431_s12] ss:$16 sps:$4 sm:$0xff]   ;;  %v2171_v33 = vld [vmem:[%s2431_s12 + $0x4] ss:$16 sps:$4 sm:$0xff]   ;;  %v2172_v34 = vld [vmem:[%s2431_s12 + $0x8] ss:$16 sps:$4 sm:$0xff]  }
  0x13   : > { %2007 = vmatprep.subr.bf16.mxu1 %v2150_v13  ;;  %v2174_v35 = vld [vmem:[%s2431_s12 + $0xc] ss:$16 sps:$4 sm:$0xff]   ;;  %942 = vmatprep.mubr.bf16.mxu0 %v2171_v33  ;;  %v2175_v36 = vld [vmem:[%s2431_s12 + $0x24] ss:$16 sps:$4 sm:$0xff]   ;;  %v2179_v38 = vld [vmem:[%s2431_s12 + $0x20] ss:$16 sps:$4 sm:$0xff]  }
  0x14   : > { %1103 = vmatprep.mubr.bf16.mxu1 %v2174_v35  ;;  %v2177_v37 = vld [vmem:[%s2431_s12 + $0x2c] ss:$16 sps:$4 sm:$0xff]   ;;  %v2180_v39 = vld [vmem:[%s2431_s12 + $0x28] ss:$16 sps:$4 sm:$0xff]   ;;  %v2181_v40 = vld [vmem:[%s2431_s12 + $0x44] ss:$16 sps:$4 sm:$0xff]  }
  0x15   : > { %1896 = vmatpush3.bf16.msra.mxu0 %v2151_v14  ;;  %v2183_v41 = vld [vmem:[%s2431_s12 + $0x4c] ss:$16 sps:$4 sm:$0xff]   ;;  %v2185_v42 = vld [vmem:[%s2431_s12 + $0x40] ss:$16 sps:$4 sm:$0xff]   ;;  %v2186_v43 = vld [vmem:[%s2431_s12 + $0x48] ss:$16 sps:$4 sm:$0xff]  }
  0x16   : > { %2008 = vmatpush3.bf16.msra.mxu1 %v2152_v15  ;;  %1897 = vmatprep.subr.bf16.mxu0 %v2153_v16  ;;  %v2187_v44 = vld [vmem:[%s2431_s12 + $0x64] ss:$16 sps:$4 sm:$0xff]   ;;  %v2189_v45 = vld [vmem:[%s2431_s12 + $0x6c] ss:$16 sps:$4 sm:$0xff]   ;;  %v2191_v46 = vld [vmem:[%s2431_s12 + $0x60] ss:$16 sps:$4 sm:$0xff]  }
  0x17   : > { %2009 = vmatprep.subr.bf16.mxu1 %v2154_v17  ;;  %v2192_v47 = vld [vmem:[%s2431_s12 + $0x68] ss:$16 sps:$4 sm:$0xff]   ;;  %v2193_v48 = vld [vmem:[%s2431_s12 + $0x84] ss:$16 sps:$4 sm:$0xff]   ;;  %v2195_v49 = vld [vmem:[%s2431_s12 + $0x8c] ss:$16 sps:$4 sm:$0xff]  }
  0x18   : > { %v2197_v50 = vld [vmem:[%s2431_s12 + $0x80] ss:$16 sps:$4 sm:$0xff]   ;;  %v2198_v51 = vld [vmem:[%s2431_s12 + $0x88] ss:$16 sps:$4 sm:$0xff]   ;;  %v2199_v52 = vld [vmem:[%s2431_s12 + $0xa4] ss:$16 sps:$4 sm:$0xff]  }
  0x19   : > { %1898 = vmatpush3.bf16.msra.mxu0 %v2155_v18  ;;  %v2201_v53 = vld [vmem:[%s2431_s12 + $0xac] ss:$16 sps:$4 sm:$0xff]   ;;  %v2203_v54 = vld [vmem:[%s2431_s12 + $0xa0] ss:$16 sps:$4 sm:$0xff]   ;;  %v2204_v55 = vld [vmem:[%s2431_s12 + $0xa8] ss:$16 sps:$4 sm:$0xff]  }
  0x1a   : > { %2010 = vmatpush3.bf16.msra.mxu1 %v2156_v19  ;;  %1899 = vmatprep.subr.bf16.mxu0 %v2157_v20  ;;  %v2205_v56 = vld [vmem:[%s2431_s12 + $0xc4] ss:$16 sps:$4 sm:$0xff]   ;;  %v2207_v57 = vld [vmem:[%s2431_s12 + $0xcc] ss:$16 sps:$4 sm:$0xff]   ;;  %v2209_v58 = vld [vmem:[%s2431_s12 + $0xc0] ss:$16 sps:$4 sm:$0xff]  }
  0x1b   : > { %2011 = vmatprep.subr.bf16.mxu1 %v2158_v21  ;;  %v2210_v59 = vld [vmem:[%s2431_s12 + $0xc8] ss:$16 sps:$4 sm:$0xff]   ;;  %v2211_v60 = vld [vmem:[%s2431_s12 + $0xe4] ss:$16 sps:$4 sm:$0xff]   ;;  %v2213_v61 = vld [vmem:[%s2431_s12 + $0xec] ss:$16 sps:$4 sm:$0xff]  }
  0x1c   : > { %v2215_v62 = vld [vmem:[%s2431_s12 + $0xe0] ss:$16 sps:$4 sm:$0xff]   ;;  %v2216_v63 = vld [vmem:[%s2431_s12 + $0xe8] ss:$16 sps:$4 sm:$0xff]   ;;  %v2217_v0 = vld [vmem:[%s2431_s12 + $0x104] ss:$16 sps:$4 sm:$0xff]  }
  0x1d   : > { %1900 = vmatpush3.bf16.msra.mxu0 %v2159_v22  ;;  %v2219_v1 = vld [vmem:[%s2431_s12 + $0x10c] ss:$16 sps:$4 sm:$0xff]   ;;  %v2221_v2 = vld [vmem:[%s2431_s12 + $0x100] ss:$16 sps:$4 sm:$0xff]   ;;  %v2222_v3 = vld [vmem:[%s2431_s12 + $0x108] ss:$16 sps:$4 sm:$0xff]  }
  0x1e   : > { %2012 = vmatpush3.bf16.msra.mxu1 %v2160_v23  ;;  %1901 = vmatprep.subr.bf16.mxu0 %v2161_v24  ;;  %v2223_v4 = vld [vmem:[%s2431_s12 + $0x124] ss:$16 sps:$4 sm:$0xff]   ;;  %v2225_v5 = vld [vmem:[%s2431_s12 + $0x12c] ss:$16 sps:$4 sm:$0xff]   ;;  %v2227_v6 = vld [vmem:[%s2431_s12 + $0x120] ss:$16 sps:$4 sm:$0xff]  }
  0x1f   : > { %2013 = vmatprep.subr.bf16.mxu1 %v2162_v25  ;;  %v2228_v7 = vld [vmem:[%s2431_s12 + $0x128] ss:$16 sps:$4 sm:$0xff]   ;;  %v2229_v8 = vld [vmem:[%s2431_s12 + $0x144] ss:$16 sps:$4 sm:$0xff]   ;;  %v2231_v9 = vld [vmem:[%s2431_s12 + $0x14c] ss:$16 sps:$4 sm:$0xff]  }
  0x20   : > { %v2233_v10 = vld [vmem:[%s2431_s12 + $0x140] ss:$16 sps:$4 sm:$0xff]   ;;  %v2234_v11 = vld [vmem:[%s2431_s12 + $0x148] ss:$16 sps:$4 sm:$0xff]   ;;  %v2235_v12 = vld [vmem:[%s2431_s12 + $0x164] ss:$16 sps:$4 sm:$0xff]  }
  0x21   : > { %1902 = vmatpush3.bf16.msra.mxu0 %v2163_v26  ;;  %v2237_v13 = vld [vmem:[%s2431_s12 + $0x16c] ss:$16 sps:$4 sm:$0xff]   ;;  %v2239_v14 = vld [vmem:[%s2431_s12 + $0x160] ss:$16 sps:$4 sm:$0xff]   ;;  %v2240_v15 = vld [vmem:[%s2431_s12 + $0x168] ss:$16 sps:$4 sm:$0xff]  }
  0x22   : > { %2014 = vmatpush3.bf16.msra.mxu1 %v2164_v27  ;;  %1903 = vmatprep.subr.bf16.mxu0 %v2165_v28  ;;  %v2241_v16 = vld [vmem:[%s2431_s12 + $0x184] ss:$16 sps:$4 sm:$0xff]   ;;  %v2243_v17 = vld [vmem:[%s2431_s12 + $0x18c] ss:$16 sps:$4 sm:$0xff]   ;;  %v2245_v18 = vld [vmem:[%s2431_s12 + $0x180] ss:$16 sps:$4 sm:$0xff]  }
  0x23   : > { %2015 = vmatprep.subr.bf16.mxu1 %v2166_v29  ;;  %v2246_v19 = vld [vmem:[%s2431_s12 + $0x188] ss:$16 sps:$4 sm:$0xff]   ;;  %v2247_v20 = vld [vmem:[%s2431_s12 + $0x1a4] ss:$16 sps:$4 sm:$0xff]   ;;  %v2249_v21 = vld [vmem:[%s2431_s12 + $0x1ac] ss:$16 sps:$4 sm:$0xff]  }
  0x24   : > { %v2251_v22 = vld [vmem:[%s2431_s12 + $0x1a0] ss:$16 sps:$4 sm:$0xff]   ;;  %v2252_v23 = vld [vmem:[%s2431_s12 + $0x1a8] ss:$16 sps:$4 sm:$0xff]   ;;  %v2253_v24 = vld [vmem:[%s2431_s12 + $0x1c4] ss:$16 sps:$4 sm:$0xff]  }
  0x25   : > { %1904 = vmatpush3.bf16.msra.mxu0 %v2167_v30  ;;  %v2255_v25 = vld [vmem:[%s2431_s12 + $0x1cc] ss:$16 sps:$4 sm:$0xff]   ;;  %v2257_v26 = vld [vmem:[%s2431_s12 + $0x1c0] ss:$16 sps:$4 sm:$0xff]   ;;  %v2258_v27 = vld [vmem:[%s2431_s12 + $0x1c8] ss:$16 sps:$4 sm:$0xff]  }
  0x26   : > { %2016 = vmatpush3.bf16.msra.mxu1 %v2168_v31  ;;  %v2259_v28 = vld [vmem:[%s2431_s12 + $0x1e4] ss:$16 sps:$4 sm:$0xff]   ;;  %v2261_v29 = vld [vmem:[%s2431_s12 + $0x1ec] ss:$16 sps:$4 sm:$0xff]   ;;  %v2263_v30 = vld [vmem:[%s2431_s12 + $0x1e0] ss:$16 sps:$4 sm:$0xff]  }
  0x27   : > { %v2264_v31 = vld [vmem:[%s2431_s12 + $0x1e8] ss:$16 sps:$4 sm:$0xff]  }
  0x28   : > { %943 = vmatmul.mubr.bf16.vlgmr.msra.gmra.mrb[0].mxu0 %v2169_v32 }
  0x29   : > { %1104 = vmatmul.mubr.bf16.vlgmr.msra.gmra.mrb[0].mxu1 %v2172_v34  ;;  %950 = vmatprep.mubr.bf16.mxu0 %v2175_v36 }
  0x2a   : > { %1111 = vmatprep.mubr.bf16.mxu1 %v2177_v37 }
  0x30   : > { %951 = vmatmul.mubr.bf16.gmra.mrb[4].mxu0 %v2179_v38 }
  0x31   : > { %1112 = vmatmul.mubr.bf16.gmra.mrb[4].mxu1 %v2180_v39  ;;  %958 = vmatprep.mubr.bf16.mxu0 %v2181_v40 }
  0x32   : > { %1119 = vmatprep.mubr.bf16.mxu1 %v2183_v41  ;;  %v2506_v41 = vld [vmem:[%s2610_s2] ss:$0 sm:$0xff] }
  0x38   : > { %959 = vmatmul.mubr.bf16.gmra.mrb[8].mxu0 %v2185_v42 }
  0x39   : > { %1120 = vmatmul.mubr.bf16.gmra.mrb[8].mxu1 %v2186_v43  ;;  %966 = vmatprep.mubr.bf16.mxu0 %v2187_v44 }
  0x3a   : > { %1127 = vmatprep.mubr.bf16.mxu1 %v2189_v45 }
  0x40   : > { %967 = vmatmul.mubr.bf16.gmra.mrb[12].mxu0 %v2191_v46  ;;  %v2511_v46 = vld [vmem:[%s2611_s3] ss:$0 sm:$0xff] }
  0x41   : > { %1128 = vmatmul.mubr.bf16.gmra.mrb[12].mxu1 %v2192_v47  ;;  %974 = vmatprep.mubr.bf16.mxu0 %v2193_v48 }
  0x42   : > { %1135 = vmatprep.mubr.bf16.mxu1 %v2195_v49 }
  0x48   : > { %975 = vmatmul.mubr.bf16.gmra.mrb[16].mxu0 %v2197_v50 }
  0x49   : > { %1136 = vmatmul.mubr.bf16.gmra.mrb[16].mxu1 %v2198_v51  ;;  %982 = vmatprep.mubr.bf16.mxu0 %v2199_v52 }
  0x4a   : > { %1143 = vmatprep.mubr.bf16.mxu1 %v2201_v53 }
  0x50   : > { %983 = vmatmul.mubr.bf16.gmra.mrb[20].mxu0 %v2203_v54 }
  0x51   : > { %1144 = vmatmul.mubr.bf16.gmra.mrb[20].mxu1 %v2204_v55  ;;  %990 = vmatprep.mubr.bf16.mxu0 %v2205_v56 }
  0x52   : > { %1151 = vmatprep.mubr.bf16.mxu1 %v2207_v57 }
  0x58   : > { %991 = vmatmul.mubr.bf16.gmra.mrb[24].mxu0 %v2209_v58 }
  0x59   : > { %1152 = vmatmul.mubr.bf16.gmra.mrb[24].mxu1 %v2210_v59  ;;  %998 = vmatprep.mubr.bf16.mxu0 %v2211_v60 }
  0x5a   : > { %1159 = vmatprep.mubr.bf16.mxu1 %v2213_v61 }
  0x60   : > { %999 = vmatmul.mubr.bf16.gmra.mrb[28].mxu0 %v2215_v62 }
  0x61   : > { %1160 = vmatmul.mubr.bf16.gmra.mrb[28].mxu1 %v2216_v63  ;;  %1006 = vmatprep.mubr.bf16.mxu0 %v2217_v0 }
  0x62   : > { %1167 = vmatprep.mubr.bf16.mxu1 %v2219_v1 }
  0x68   : > { %1007 = vmatmul.mubr.bf16.gmra.mrb[32].mxu0 %v2221_v2 }
  0x69   : > { %1168 = vmatmul.mubr.bf16.gmra.mrb[32].mxu1 %v2222_v3  ;;  %1014 = vmatprep.mubr.bf16.mxu0 %v2223_v4 }
  0x6a   : > { %1175 = vmatprep.mubr.bf16.mxu1 %v2225_v5 }
  0x70   : > { %1015 = vmatmul.mubr.bf16.gmra.mrb[36].mxu0 %v2227_v6 }
  0x71   : > { %1176 = vmatmul.mubr.bf16.gmra.mrb[36].mxu1 %v2228_v7  ;;  %1022 = vmatprep.mubr.bf16.mxu0 %v2229_v8 }
  0x72   : > { %1183 = vmatprep.mubr.bf16.mxu1 %v2231_v9 }
  0x78   : > { %1023 = vmatmul.mubr.bf16.gmra.mrb[40].mxu0 %v2233_v10 }
  0x79   : > { %1184 = vmatmul.mubr.bf16.gmra.mrb[40].mxu1 %v2234_v11  ;;  %1030 = vmatprep.mubr.bf16.mxu0 %v2235_v12 }
  0x7a   : > { %1191 = vmatprep.mubr.bf16.mxu1 %v2237_v13 }
  0x80   : > { %1031 = vmatmul.mubr.bf16.gmra.mrb[44].mxu0 %v2239_v14 }
  0x81   : > { %1192 = vmatmul.mubr.bf16.gmra.mrb[44].mxu1 %v2240_v15  ;;  %1038 = vmatprep.mubr.bf16.mxu0 %v2241_v16 }
  0x82   : > { %1199 = vmatprep.mubr.bf16.mxu1 %v2243_v17 }
  0x88   : > { %1039 = vmatmul.mubr.bf16.gmra.mrb[48].mxu0 %v2245_v18 }
  0x89   : > { %1200 = vmatmul.mubr.bf16.gmra.mrb[48].mxu1 %v2246_v19  ;;  %1046 = vmatprep.mubr.bf16.mxu0 %v2247_v20 }
  0x8a   : > { %1207 = vmatprep.mubr.bf16.mxu1 %v2249_v21 }
  0x90   : > { %1047 = vmatmul.mubr.bf16.gmra.mrb[52].mxu0 %v2251_v22 }
  0x91   : > { %1208 = vmatmul.mubr.bf16.gmra.mrb[52].mxu1 %v2252_v23  ;;  %1054 = vmatprep.mubr.bf16.mxu0 %v2253_v24 }
  0x92   : > { %1215 = vmatprep.mubr.bf16.mxu1 %v2255_v25 }
  0x98   : > { %1055 = vmatmul.mubr.bf16.gmra.mrb[56].mxu0 %v2257_v26 }
  0x99   : > { %1216 = vmatmul.mubr.bf16.gmra.mrb[56].mxu1 %v2258_v27  ;;  %1062 = vmatprep.mubr.bf16.mxu0 %v2259_v28 }
  0x9a   : > { %1223 = vmatprep.mubr.bf16.mxu1 %v2261_v29 }
  0xa0   : > { %1063 = vmatmul.mubr.bf16.gmra.mrb[60].mxu0 %v2263_v30 }
  0xa1   : > { %1224 = vmatmul.mubr.bf16.gmra.mrb[60].mxu1 %v2264_v31 }
  0xfb   : > { %v1905_v32 = vpop.f32.mrb[0].mxu0 }
  0xfc   : > { %v2017_v33 = vpop.f32.mrb[0].mxu1  ;;  %v1906_v34 = vpop.f32.mrb[1].mxu0 }
  0xfd   : > { %v1907_v35 = vadd.f32 %v1906_v34, %v1905_v32  ;;  %v2018_v36 = vpop.f32.mrb[1].mxu1  ;;  %v1908_v37 = vpop.f32.mrb[2].mxu0 }
  0xfe   : > { %v2019_v38 = vadd.f32 %v2018_v36, %v2017_v33  ;;  %v2020_v39 = vpop.f32.mrb[2].mxu1  ;;  %v1909_v40 = vpop.f32.mrb[3].mxu0 }
  0xff   : > { %v1910_v42 = vadd.f32 %v1909_v40, %v1908_v37  ;;  %v2021_v43 = vpop.f32.mrb[3].mxu1 }
 0x100   : > { %v1106_v44 = vadd.f32 %v2019_v38, %v1907_v35  ;;  %v2022_v45 = vadd.f32 %v2021_v43, %v2020_v39 }
 0x102   : > { %v1239_v47 = vmul.f32 %v2506_v41, %v1106_v44  ;;  %v1109_v48 = vadd.f32 %v2022_v45, %v1910_v42 }
 0x103   : > { %v1911_v49 = vpop.f32.mrb[4].mxu0 }
 0x104   : > { %v1278_v50 = vadd.f32 %v2511_v46, %v1239_v47  ;;  %v1240_v51 = vmul.f32 %v2506_v41, %v1109_v48  ;;  %v2023_v52 = vpop.f32.mrb[4].mxu1  ;;  %v1912_v53 = vpop.f32.mrb[5].mxu0 }
 0x105   : > { %v1913_v54 = vadd.f32 %v1912_v53, %v1911_v49  ;;  %v2024_v55 = vpop.f32.mrb[5].mxu1  ;;  %v1914_v56 = vpop.f32.mrb[6].mxu0 }
 0x106   : > { %v1279_v57 = vadd.f32 %v2511_v46, %v1240_v51  ;;  %v2025_v58 = vadd.f32 %v2024_v55, %v2023_v52  ;;  %v2026_v59 = vpop.f32.mrb[6].mxu1  ;;  %v1915_v60 = vpop.f32.mrb[7].mxu0  ;;  %v1310_v63 = vmax.f32 %v1278_v50, 0.0 }
 0x107   : > { %v1916_v61 = vadd.f32 %v1915_v60, %v1914_v56  ;;  %v2027_v62 = vpop.f32.mrb[7].mxu1 }
 0x108   : > { %v1311_v0 = vmax.f32 %v1279_v57, 0.0  ;;  %v1114_v1 = vadd.f32 %v2025_v58, %v1913_v54  ;;  %v2028_v2 = vadd.f32 %v2027_v62, %v2026_v59 }
 0x10a   : > { %v1797_v3 = vpack.c.bf16 %v1311_v0, %v1310_v63  ;;  %v1241_v4 = vmul.f32 %v2506_v41, %v1114_v1  ;;  %v1117_v5 = vadd.f32 %v2028_v2, %v1916_v61 }
 0x10b   : > { %v1917_v6 = vpop.f32.mrb[8].mxu0 }
 0x10c   : > { %1798 = vst [vmem:[%s2521_s28] sm:$0xff] %v1797_v3   ;;  %v1280_v7 = vadd.f32 %v2511_v46, %v1241_v4  ;;  %v1242_v8 = vmul.f32 %v2506_v41, %v1117_v5  ;;  %v2029_v9 = vpop.f32.mrb[8].mxu1  ;;  %v1918_v10 = vpop.f32.mrb[9].mxu0 }
 0x10d   : > { %v1919_v11 = vadd.f32 %v1918_v10, %v1917_v6  ;;  %v2030_v12 = vpop.f32.mrb[9].mxu1  ;;  %v1920_v13 = vpop.f32.mrb[10].mxu0 }
 0x10e   : > { %v1281_v14 = vadd.f32 %v2511_v46, %v1242_v8  ;;  %v2031_v15 = vadd.f32 %v2030_v12, %v2029_v9  ;;  %v2032_v16 = vpop.f32.mrb[10].mxu1  ;;  %v1921_v17 = vpop.f32.mrb[11].mxu0  ;;  %v1312_v20 = vmax.f32 %v1280_v7, 0.0 }
 0x10f   : > { %v1922_v18 = vadd.f32 %v1921_v17, %v1920_v13  ;;  %v2033_v19 = vpop.f32.mrb[11].mxu1 }
 0x110   : > { %v1313_v21 = vmax.f32 %v1281_v14, 0.0  ;;  %v1122_v22 = vadd.f32 %v2031_v15, %v1919_v11  ;;  %v2034_v23 = vadd.f32 %v2033_v19, %v2032_v16 }
 0x112   : > { %v1802_v24 = vpack.c.bf16 %v1313_v21, %v1312_v20  ;;  %v1243_v25 = vmul.f32 %v2506_v41, %v1122_v22  ;;  %v1125_v26 = vadd.f32 %v2034_v23, %v1922_v18 }
 0x113   : > { %v1923_v27 = vpop.f32.mrb[12].mxu0 }
 0x114   : > { %1874 = vst [vmem:[%s2521_s28 + $0x8] sm:$0xff] %v1802_v24   ;;  %v1282_v28 = vadd.f32 %v2511_v46, %v1243_v25  ;;  %v1244_v29 = vmul.f32 %v2506_v41, %v1125_v26  ;;  %v2035_v30 = vpop.f32.mrb[12].mxu1  ;;  %v1924_v31 = vpop.f32.mrb[13].mxu0 }
 0x115   : > { %v1925_v32 = vadd.f32 %v1924_v31, %v1923_v27  ;;  %v2036_v33 = vpop.f32.mrb[13].mxu1  ;;  %v1926_v34 = vpop.f32.mrb[14].mxu0 }
 0x116   : > { %v1283_v35 = vadd.f32 %v2511_v46, %v1244_v29  ;;  %v2037_v36 = vadd.f32 %v2036_v33, %v2035_v30  ;;  %v2038_v37 = vpop.f32.mrb[14].mxu1  ;;  %v1927_v38 = vpop.f32.mrb[15].mxu0  ;;  %v1314_v42 = vmax.f32 %v1282_v28, 0.0 }
 0x117   : > { %v1928_v39 = vadd.f32 %v1927_v38, %v1926_v34  ;;  %v2039_v40 = vpop.f32.mrb[15].mxu1 }
 0x118   : > { %v1315_v43 = vmax.f32 %v1283_v35, 0.0  ;;  %v1130_v44 = vadd.f32 %v2037_v36, %v1925_v32  ;;  %v2040_v45 = vadd.f32 %v2039_v40, %v2038_v37 }
 0x11a   : > { %v1807_v47 = vpack.c.bf16 %v1315_v43, %v1314_v42  ;;  %v1245_v48 = vmul.f32 %v2506_v41, %v1130_v44  ;;  %v1133_v49 = vadd.f32 %v2040_v45, %v1928_v39 }
 0x11b   : > { %v1929_v50 = vpop.f32.mrb[16].mxu0 }
 0x11c   : > { %1875 = vst [vmem:[%s2521_s28 + $0x10] sm:$0xff] %v1807_v47   ;;  %v1284_v51 = vadd.f32 %v2511_v46, %v1245_v48  ;;  %v1246_v52 = vmul.f32 %v2506_v41, %v1133_v49  ;;  %v2041_v53 = vpop.f32.mrb[16].mxu1  ;;  %v1930_v54 = vpop.f32.mrb[17].mxu0 }
 0x11d   : > { %v1931_v55 = vadd.f32 %v1930_v54, %v1929_v50  ;;  %v2042_v56 = vpop.f32.mrb[17].mxu1  ;;  %v1932_v57 = vpop.f32.mrb[18].mxu0 }
 0x11e   : > { %v1285_v58 = vadd.f32 %v2511_v46, %v1246_v52  ;;  %v2043_v59 = vadd.f32 %v2042_v56, %v2041_v53  ;;  %v2044_v60 = vpop.f32.mrb[18].mxu1  ;;  %v1933_v61 = vpop.f32.mrb[19].mxu0  ;;  %v1316_v0 = vmax.f32 %v1284_v51, 0.0 }
 0x11f   : > { %v1934_v62 = vadd.f32 %v1933_v61, %v1932_v57  ;;  %v2045_v63 = vpop.f32.mrb[19].mxu1 }
 0x120   : > { %v1317_v1 = vmax.f32 %v1285_v58, 0.0  ;;  %v1138_v2 = vadd.f32 %v2043_v59, %v1931_v55  ;;  %v2046_v3 = vadd.f32 %v2045_v63, %v2044_v60 }
 0x122   : > { %v1812_v4 = vpack.c.bf16 %v1317_v1, %v1316_v0  ;;  %v1247_v5 = vmul.f32 %v2506_v41, %v1138_v2  ;;  %v1141_v6 = vadd.f32 %v2046_v3, %v1934_v62 }
 0x123   : > { %v1935_v7 = vpop.f32.mrb[20].mxu0 }
 0x124   : > { %1876 = vst [vmem:[%s2521_s28 + $0x18] sm:$0xff] %v1812_v4   ;;  %v1286_v8 = vadd.f32 %v2511_v46, %v1247_v5  ;;  %v1248_v9 = vmul.f32 %v2506_v41, %v1141_v6  ;;  %v2047_v10 = vpop.f32.mrb[20].mxu1  ;;  %v1936_v11 = vpop.f32.mrb[21].mxu0 }
 0x125   : > { %v1937_v12 = vadd.f32 %v1936_v11, %v1935_v7  ;;  %v2048_v13 = vpop.f32.mrb[21].mxu1  ;;  %v1938_v14 = vpop.f32.mrb[22].mxu0 }
 0x126   : > { %v1287_v15 = vadd.f32 %v2511_v46, %v1248_v9  ;;  %v2049_v16 = vadd.f32 %v2048_v13, %v2047_v10  ;;  %v2050_v17 = vpop.f32.mrb[22].mxu1  ;;  %v1939_v18 = vpop.f32.mrb[23].mxu0  ;;  %v1318_v21 = vmax.f32 %v1286_v8, 0.0 }
 0x127   : > { %v1940_v19 = vadd.f32 %v1939_v18, %v1938_v14  ;;  %v2051_v20 = vpop.f32.mrb[23].mxu1 }
 0x128   : > { %v1319_v22 = vmax.f32 %v1287_v15, 0.0  ;;  %v1146_v23 = vadd.f32 %v2049_v16, %v1937_v12  ;;  %v2052_v24 = vadd.f32 %v2051_v20, %v2050_v17 }
 0x12a   : > { %v1817_v25 = vpack.c.bf16 %v1319_v22, %v1318_v21  ;;  %v1249_v26 = vmul.f32 %v2506_v41, %v1146_v23  ;;  %v1149_v27 = vadd.f32 %v2052_v24, %v1940_v19 }
 0x12b   : > { %v1941_v28 = vpop.f32.mrb[24].mxu0 }
 0x12c   : > { %1877 = vst [vmem:[%s2521_s28 + $0x20] sm:$0xff] %v1817_v25   ;;  %v1288_v29 = vadd.f32 %v2511_v46, %v1249_v26  ;;  %v1250_v30 = vmul.f32 %v2506_v41, %v1149_v27  ;;  %v2053_v31 = vpop.f32.mrb[24].mxu1  ;;  %v1942_v32 = vpop.f32.mrb[25].mxu0 }
 0x12d   : > { %v1943_v33 = vadd.f32 %v1942_v32, %v1941_v28  ;;  %v2054_v34 = vpop.f32.mrb[25].mxu1  ;;  %v1944_v35 = vpop.f32.mrb[26].mxu0 }
 0x12e   : > { %v1289_v36 = vadd.f32 %v2511_v46, %v1250_v30  ;;  %v2055_v37 = vadd.f32 %v2054_v34, %v2053_v31  ;;  %v2056_v38 = vpop.f32.mrb[26].mxu1  ;;  %v1945_v39 = vpop.f32.mrb[27].mxu0  ;;  %v1320_v43 = vmax.f32 %v1288_v29, 0.0 }
 0x12f   : > { %v1946_v40 = vadd.f32 %v1945_v39, %v1944_v35  ;;  %v2057_v42 = vpop.f32.mrb[27].mxu1 }
 0x130   : > { %v1321_v44 = vmax.f32 %v1289_v36, 0.0  ;;  %v1154_v45 = vadd.f32 %v2055_v37, %v1943_v33  ;;  %v2058_v47 = vadd.f32 %v2057_v42, %v2056_v38 }
 0x132   : > { %v1822_v48 = vpack.c.bf16 %v1321_v44, %v1320_v43  ;;  %v1251_v49 = vmul.f32 %v2506_v41, %v1154_v45  ;;  %v1157_v50 = vadd.f32 %v2058_v47, %v1946_v40 }
 0x133   : > { %v1947_v51 = vpop.f32.mrb[28].mxu0 }
 0x134   : > { %1878 = vst [vmem:[%s2521_s28 + $0x28] sm:$0xff] %v1822_v48   ;;  %v1290_v52 = vadd.f32 %v2511_v46, %v1251_v49  ;;  %v1252_v53 = vmul.f32 %v2506_v41, %v1157_v50  ;;  %v2059_v54 = vpop.f32.mrb[28].mxu1  ;;  %v1948_v55 = vpop.f32.mrb[29].mxu0 }
 0x135   : > { %v1949_v56 = vadd.f32 %v1948_v55, %v1947_v51  ;;  %v2060_v57 = vpop.f32.mrb[29].mxu1  ;;  %v1950_v58 = vpop.f32.mrb[30].mxu0 }
 0x136   : > { %v1291_v59 = vadd.f32 %v2511_v46, %v1252_v53  ;;  %v2061_v60 = vadd.f32 %v2060_v57, %v2059_v54  ;;  %v2062_v61 = vpop.f32.mrb[30].mxu1  ;;  %v1951_v62 = vpop.f32.mrb[31].mxu0  ;;  %v1322_v1 = vmax.f32 %v1290_v52, 0.0 }
 0x137   : > { %v1952_v63 = vadd.f32 %v1951_v62, %v1950_v58  ;;  %v2063_v0 = vpop.f32.mrb[31].mxu1 }
 0x138   : > { %v1323_v2 = vmax.f32 %v1291_v59, 0.0  ;;  %v1162_v3 = vadd.f32 %v2061_v60, %v1949_v56  ;;  %v2064_v4 = vadd.f32 %v2063_v0, %v2062_v61 }
 0x13a   : > { %v1827_v5 = vpack.c.bf16 %v1323_v2, %v1322_v1  ;;  %v1253_v6 = vmul.f32 %v2506_v41, %v1162_v3  ;;  %v1165_v7 = vadd.f32 %v2064_v4, %v1952_v63 }
 0x13b   : > { %v1953_v8 = vpop.f32.mrb[32].mxu0 }
 0x13c   : > { %1879 = vst [vmem:[%s2521_s28 + $0x30] sm:$0xff] %v1827_v5   ;;  %v1292_v9 = vadd.f32 %v2511_v46, %v1253_v6  ;;  %v1254_v10 = vmul.f32 %v2506_v41, %v1165_v7  ;;  %v2065_v11 = vpop.f32.mrb[32].mxu1  ;;  %v1954_v12 = vpop.f32.mrb[33].mxu0 }
 0x13d   : > { %v1955_v13 = vadd.f32 %v1954_v12, %v1953_v8  ;;  %v2066_v14 = vpop.f32.mrb[33].mxu1  ;;  %v1956_v15 = vpop.f32.mrb[34].mxu0 }
 0x13e   : > { %v1293_v16 = vadd.f32 %v2511_v46, %v1254_v10  ;;  %v2067_v17 = vadd.f32 %v2066_v14, %v2065_v11  ;;  %v2068_v18 = vpop.f32.mrb[34].mxu1  ;;  %v1957_v19 = vpop.f32.mrb[35].mxu0  ;;  %v1324_v22 = vmax.f32 %v1292_v9, 0.0 }
 0x13f   : > { %v1958_v20 = vadd.f32 %v1957_v19, %v1956_v15  ;;  %v2069_v21 = vpop.f32.mrb[35].mxu1 }
 0x140   : > { %v1325_v23 = vmax.f32 %v1293_v16, 0.0  ;;  %v1170_v24 = vadd.f32 %v2067_v17, %v1955_v13  ;;  %v2070_v25 = vadd.f32 %v2069_v21, %v2068_v18 }
 0x142   : > { %v1832_v26 = vpack.c.bf16 %v1325_v23, %v1324_v22  ;;  %v1255_v27 = vmul.f32 %v2506_v41, %v1170_v24  ;;  %v1173_v28 = vadd.f32 %v2070_v25, %v1958_v20 }
 0x143   : > { %v1959_v29 = vpop.f32.mrb[36].mxu0 }
 0x144   : > { %1880 = vst [vmem:[%s2521_s28 + $0x38] sm:$0xff] %v1832_v26   ;;  %v1294_v30 = vadd.f32 %v2511_v46, %v1255_v27  ;;  %v1256_v31 = vmul.f32 %v2506_v41, %v1173_v28  ;;  %v2071_v32 = vpop.f32.mrb[36].mxu1  ;;  %v1960_v33 = vpop.f32.mrb[37].mxu0 }
 0x145   : > { %v1961_v34 = vadd.f32 %v1960_v33, %v1959_v29  ;;  %v2072_v35 = vpop.f32.mrb[37].mxu1  ;;  %v1962_v36 = vpop.f32.mrb[38].mxu0 }
 0x146   : > { %v1295_v37 = vadd.f32 %v2511_v46, %v1256_v31  ;;  %v2073_v38 = vadd.f32 %v2072_v35, %v2071_v32  ;;  %v2074_v39 = vpop.f32.mrb[38].mxu1  ;;  %v1963_v40 = vpop.f32.mrb[39].mxu0  ;;  %v1326_v44 = vmax.f32 %v1294_v30, 0.0 }
 0x147   : > { %v1964_v42 = vadd.f32 %v1963_v40, %v1962_v36  ;;  %v2075_v43 = vpop.f32.mrb[39].mxu1 }
 0x148   : > { %v1327_v45 = vmax.f32 %v1295_v37, 0.0  ;;  %v1178_v47 = vadd.f32 %v2073_v38, %v1961_v34  ;;  %v2076_v48 = vadd.f32 %v2075_v43, %v2074_v39 }
 0x14a   : > { %v1837_v49 = vpack.c.bf16 %v1327_v45, %v1326_v44  ;;  %v1257_v50 = vmul.f32 %v2506_v41, %v1178_v47  ;;  %v1181_v51 = vadd.f32 %v2076_v48, %v1964_v42 }
 0x14b   : > { %v1965_v52 = vpop.f32.mrb[40].mxu0 }
 0x14c   : > { %1881 = vst [vmem:[%s2521_s28 + $0x40] sm:$0xff] %v1837_v49   ;;  %v1296_v53 = vadd.f32 %v2511_v46, %v1257_v50  ;;  %v1258_v54 = vmul.f32 %v2506_v41, %v1181_v51  ;;  %v2077_v55 = vpop.f32.mrb[40].mxu1  ;;  %v1966_v56 = vpop.f32.mrb[41].mxu0 }
 0x14d   : > { %v1967_v57 = vadd.f32 %v1966_v56, %v1965_v52  ;;  %v2078_v58 = vpop.f32.mrb[41].mxu1  ;;  %v1968_v59 = vpop.f32.mrb[42].mxu0 }
 0x14e   : > { %v1297_v60 = vadd.f32 %v2511_v46, %v1258_v54  ;;  %v2079_v61 = vadd.f32 %v2078_v58, %v2077_v55  ;;  %v2080_v62 = vpop.f32.mrb[42].mxu1  ;;  %v1969_v63 = vpop.f32.mrb[43].mxu0  ;;  %v1328_v2 = vmax.f32 %v1296_v53, 0.0 }
 0x14f   : > { %v1970_v0 = vadd.f32 %v1969_v63, %v1968_v59  ;;  %v2081_v1 = vpop.f32.mrb[43].mxu1 }
 0x150   : > { %v1329_v3 = vmax.f32 %v1297_v60, 0.0  ;;  %v1186_v4 = vadd.f32 %v2079_v61, %v1967_v57  ;;  %v2082_v5 = vadd.f32 %v2081_v1, %v2080_v62 }
 0x152   : > { %v1842_v6 = vpack.c.bf16 %v1329_v3, %v1328_v2  ;;  %v1259_v7 = vmul.f32 %v2506_v41, %v1186_v4  ;;  %v1189_v8 = vadd.f32 %v2082_v5, %v1970_v0 }
 0x153   : > { %v1971_v9 = vpop.f32.mrb[44].mxu0 }
 0x154   : > { %1882 = vst [vmem:[%s2521_s28 + $0x48] sm:$0xff] %v1842_v6   ;;  %v1298_v10 = vadd.f32 %v2511_v46, %v1259_v7  ;;  %v1260_v11 = vmul.f32 %v2506_v41, %v1189_v8  ;;  %v2083_v12 = vpop.f32.mrb[44].mxu1  ;;  %v1972_v13 = vpop.f32.mrb[45].mxu0 }
 0x155   : > { %v1973_v14 = vadd.f32 %v1972_v13, %v1971_v9  ;;  %v2084_v15 = vpop.f32.mrb[45].mxu1  ;;  %v1974_v16 = vpop.f32.mrb[46].mxu0 }
 0x156   : > { %v1299_v17 = vadd.f32 %v2511_v46, %v1260_v11  ;;  %v2085_v18 = vadd.f32 %v2084_v15, %v2083_v12  ;;  %v2086_v19 = vpop.f32.mrb[46].mxu1  ;;  %v1975_v20 = vpop.f32.mrb[47].mxu0  ;;  %v1330_v23 = vmax.f32 %v1298_v10, 0.0 }
 0x157   : > { %v1976_v21 = vadd.f32 %v1975_v20, %v1974_v16  ;;  %v2087_v22 = vpop.f32.mrb[47].mxu1 }
 0x158   : > { %v1331_v24 = vmax.f32 %v1299_v17, 0.0  ;;  %v1194_v25 = vadd.f32 %v2085_v18, %v1973_v14  ;;  %v2088_v26 = vadd.f32 %v2087_v22, %v2086_v19 }
 0x15a   : > { %v1847_v27 = vpack.c.bf16 %v1331_v24, %v1330_v23  ;;  %v1261_v28 = vmul.f32 %v2506_v41, %v1194_v25  ;;  %v1197_v29 = vadd.f32 %v2088_v26, %v1976_v21 }
 0x15b   : > { %v1977_v30 = vpop.f32.mrb[48].mxu0 }
 0x15c   : > { %1883 = vst [vmem:[%s2521_s28 + $0x50] sm:$0xff] %v1847_v27   ;;  %v1300_v31 = vadd.f32 %v2511_v46, %v1261_v28  ;;  %v1262_v32 = vmul.f32 %v2506_v41, %v1197_v29  ;;  %v2089_v33 = vpop.f32.mrb[48].mxu1  ;;  %v1978_v34 = vpop.f32.mrb[49].mxu0 }
 0x15d   : > { %v1979_v35 = vadd.f32 %v1978_v34, %v1977_v30  ;;  %v2090_v36 = vpop.f32.mrb[49].mxu1  ;;  %v1980_v37 = vpop.f32.mrb[50].mxu0 }
 0x15e   : > { %v1301_v38 = vadd.f32 %v2511_v46, %v1262_v32  ;;  %v2091_v39 = vadd.f32 %v2090_v36, %v2089_v33  ;;  %v2092_v40 = vpop.f32.mrb[50].mxu1  ;;  %v1981_v42 = vpop.f32.mrb[51].mxu0  ;;  %v1332_v45 = vmax.f32 %v1300_v31, 0.0 }
 0x15f   : > { %v1982_v43 = vadd.f32 %v1981_v42, %v1980_v37  ;;  %v2093_v44 = vpop.f32.mrb[51].mxu1 }
 0x160   : > { %v1333_v47 = vmax.f32 %v1301_v38, 0.0  ;;  %v1202_v48 = vadd.f32 %v2091_v39, %v1979_v35  ;;  %v2094_v49 = vadd.f32 %v2093_v44, %v2092_v40 }
 0x162   : > { %v1852_v50 = vpack.c.bf16 %v1333_v47, %v1332_v45  ;;  %v1263_v51 = vmul.f32 %v2506_v41, %v1202_v48  ;;  %v1205_v52 = vadd.f32 %v2094_v49, %v1982_v43 }
 0x163   : > { %v1983_v53 = vpop.f32.mrb[52].mxu0 }
 0x164   : > { %1884 = vst [vmem:[%s2521_s28 + $0x58] sm:$0xff] %v1852_v50   ;;  %v1302_v54 = vadd.f32 %v2511_v46, %v1263_v51  ;;  %v1264_v55 = vmul.f32 %v2506_v41, %v1205_v52  ;;  %v2095_v56 = vpop.f32.mrb[52].mxu1  ;;  %v1984_v57 = vpop.f32.mrb[53].mxu0 }
 0x165   : > { %v1985_v58 = vadd.f32 %v1984_v57, %v1983_v53  ;;  %v2096_v59 = vpop.f32.mrb[53].mxu1  ;;  %v1986_v60 = vpop.f32.mrb[54].mxu0 }
 0x166   : > { %v1303_v61 = vadd.f32 %v2511_v46, %v1264_v55  ;;  %v2097_v62 = vadd.f32 %v2096_v59, %v2095_v56  ;;  %v2098_v63 = vpop.f32.mrb[54].mxu1  ;;  %v1987_v0 = vpop.f32.mrb[55].mxu0  ;;  %v1334_v3 = vmax.f32 %v1302_v54, 0.0 }
 0x167   : > { %v1988_v1 = vadd.f32 %v1987_v0, %v1986_v60  ;;  %v2099_v2 = vpop.f32.mrb[55].mxu1 }
 0x168   : > { %v1335_v4 = vmax.f32 %v1303_v61, 0.0  ;;  %v1210_v5 = vadd.f32 %v2097_v62, %v1985_v58  ;;  %v2100_v6 = vadd.f32 %v2099_v2, %v2098_v63 }
 0x16a   : > { %v1857_v7 = vpack.c.bf16 %v1335_v4, %v1334_v3  ;;  %v1265_v8 = vmul.f32 %v2506_v41, %v1210_v5  ;;  %v1213_v9 = vadd.f32 %v2100_v6, %v1988_v1 }
 0x16b   : > { %v1989_v10 = vpop.f32.mrb[56].mxu0 }
 0x16c   : > { %1885 = vst [vmem:[%s2521_s28 + $0x60] sm:$0xff] %v1857_v7   ;;  %v1304_v11 = vadd.f32 %v2511_v46, %v1265_v8  ;;  %v1266_v12 = vmul.f32 %v2506_v41, %v1213_v9  ;;  %v2101_v13 = vpop.f32.mrb[56].mxu1  ;;  %v1990_v14 = vpop.f32.mrb[57].mxu0 }
 0x16d   : > { %v1991_v15 = vadd.f32 %v1990_v14, %v1989_v10  ;;  %v2102_v16 = vpop.f32.mrb[57].mxu1  ;;  %v1992_v17 = vpop.f32.mrb[58].mxu0 }
 0x16e   : > { %v1305_v18 = vadd.f32 %v2511_v46, %v1266_v12  ;;  %v2103_v19 = vadd.f32 %v2102_v16, %v2101_v13  ;;  %v2104_v20 = vpop.f32.mrb[58].mxu1  ;;  %v1993_v21 = vpop.f32.mrb[59].mxu0  ;;  %v1336_v24 = vmax.f32 %v1304_v11, 0.0 }
 0x16f   : > { %v1994_v22 = vadd.f32 %v1993_v21, %v1992_v17  ;;  %v2105_v23 = vpop.f32.mrb[59].mxu1 }
 0x170   : > { %v1337_v25 = vmax.f32 %v1305_v18, 0.0  ;;  %v1218_v26 = vadd.f32 %v2103_v19, %v1991_v15  ;;  %v2106_v27 = vadd.f32 %v2105_v23, %v2104_v20 }
 0x172   : > { %v1862_v28 = vpack.c.bf16 %v1337_v25, %v1336_v24  ;;  %v1267_v29 = vmul.f32 %v2506_v41, %v1218_v26  ;;  %v1221_v30 = vadd.f32 %v2106_v27, %v1994_v22 }
 0x173   : > { %v1995_v31 = vpop.f32.mrb[60].mxu0 }
 0x174   : > { %1886 = vst [vmem:[%s2521_s28 + $0x68] sm:$0xff] %v1862_v28   ;;  %v1306_v32 = vadd.f32 %v2511_v46, %v1267_v29  ;;  %v1268_v33 = vmul.f32 %v2506_v41, %v1221_v30  ;;  %v2107_v34 = vpop.f32.mrb[60].mxu1  ;;  %v1996_v35 = vpop.f32.mrb[61].mxu0 }
 0x175   : > { %v1997_v36 = vadd.f32 %v1996_v35, %v1995_v31  ;;  %v2108_v37 = vpop.f32.mrb[61].mxu1  ;;  %v1998_v38 = vpop.f32.mrb[62].mxu0 }
 0x176   : > { %v1307_v39 = vadd.f32 %v2511_v46, %v1268_v33  ;;  %v2109_v40 = vadd.f32 %v2108_v37, %v2107_v34  ;;  %v2110_v42 = vpop.f32.mrb[62].mxu1  ;;  %v1999_v43 = vpop.f32.mrb[63].mxu0  ;;  %v1338_v47 = vmax.f32 %v1306_v32, 0.0 }
 0x177   : > { %v2000_v44 = vadd.f32 %v1999_v43, %v1998_v38  ;;  %v2111_v45 = vpop.f32.mrb[63].mxu1 }
 0x178   : > { %v1339_v48 = vmax.f32 %v1307_v39, 0.0  ;;  %v1226_v49 = vadd.f32 %v2109_v40, %v1997_v36  ;;  %v2112_v50 = vadd.f32 %v2111_v45, %v2110_v42 }
 0x17a   : > { %v1867_v51 = vpack.c.bf16 %v1339_v48, %v1338_v47  ;;  %v1269_v52 = vmul.f32 %v2506_v41, %v1226_v49  ;;  %v1229_v53 = vadd.f32 %v2112_v50, %v2000_v44 }
 0x17c   : > { %1887 = vst [vmem:[%s2521_s28 + $0x70] sm:$0xff] %v1867_v51   ;;  %v1308_v54 = vadd.f32 %v2511_v46, %v1269_v52  ;;  %v1270_v55 = vmul.f32 %v2506_v41, %v1229_v53 }
 0x17e   : > { %v1309_v56 = vadd.f32 %v2511_v46, %v1270_v55  ;;  %v1340_v57 = vmax.f32 %v1308_v54, 0.0 }
 0x180   : > { %v1341_v58 = vmax.f32 %v1309_v56, 0.0 }
 0x182   : > { %v1872_v59 = vpack.c.bf16 %v1341_v58, %v1340_v57 }
 0x184   : > { %1888 = vst [vmem:[%s2521_s28 + $0x78] sm:$0xff] %v1872_v59  }
 0x185 PF: > { %s14_s17 = sadd.s32 1, %s2287_s17   ;;  %s2613_s15 = smov %s2283_s16 }
 0x186   : > { %p11_p5 = scmp.ge.s32.totalorder %s14_s17, 23   ;;  %s2614_s16 = smov %s2616_s18 }
 0x188   :  { %13 = sbr.rel (!%p11_p5) target bundleno = 2 (0x2), region = 75 }

// kernel: stem_fwd.19
= control target key start
LH: loop header
LB: loop body
LE: loop exit
PB: predicated region body
PF: predicated region fallthrough
CT: control target
= control target key end

     0   :  { %s6613_s15 = smov 0   ;;  %s6615_s16 = smov 0   ;;  %s7904_s0 = inlined_call_operand.vmem [shape: bf16[1280,1792], index: 0, kind: input, shape index: {}]   ;;  %s7905_s1 = inlined_call_operand.vmem [shape: bf16[1792,256], index: 1, kind: input, shape index: {}]   ;;  %s7906_s2 = inlined_call_operand.vmem [shape: f32[1,256], index: 2, kind: input, shape index: {}]   ;;  %s7907_s3 = inlined_call_operand.vmem [shape: f32[1,256], index: 3, kind: input, shape index: {}]   ;;  %s7908_s4 = inlined_call_operand.vmem [shape: bf16[1280,256], index: 4, kind: output, shape index: {}]  }
   0x1   :  { %s6617_s17 = smov 0  }
   0x2 LB: > { %s26_s18 = sadd.s32 1, %s6582_s16  ;;  %p4898_p0 = scmp.ge.s32.totalorder %s6586_s17, 1  ;;  %s6586_s17 = sphi %s6617_s17, %s14_s17   ;;  %s6582_s16 = sphi %s6615_s16, %s7910_s16   ;;  %s6578_s15 = sphi %s6613_s15, %s7909_s15  }
   0x3   : > { %p28_p1 = scmp.ge.s32.totalorder %s26_s18, 5  ;;  %p209_p2 = scmp.lt.s32.totalorder %s6586_s17, 6 }
   0x5   : > { %s7912_s18 = smov (%p28_p1, %s26_s18), 0  ;;  %p210_p3 = pnand %p4898_p0, %p209_p2 }
   0x6   : > { %v5860_v0 = vld [vmem:[%s7905_s1 + $0x4] ss:$8 sps:$4 sm:$0xff] (!%p210_p3)   ;;  %v5864_v2 = vld [vmem:[%s7905_s1] ss:$8 sps:$4 sm:$0xff] (!%p210_p3)   ;;  %v5866_v4 = vld [vmem:[%s7905_s1 + $0x14] ss:$8 sps:$4 sm:$0xff] (!%p210_p3)  }
   0x7   : > { %213 = sbr.rel (%p210_p3) target bundleno = 738 (0x2e2), region = 36  ;;  %v5862_v1 = vld [vmem:[%s7905_s1 + $0x304] ss:$8 sps:$4 sm:$0xff] (!%p210_p3)   ;;  %2977 = vmatprep.subr.bf16.mxu1 (!%p210_p3), %v5860_v0  ;;  %v5865_v3 = vld [vmem:[%s7905_s1 + $0x300] ss:$8 sps:$4 sm:$0xff] (!%p210_p3)   ;;  %s4899_s9 = sshll.u32 (!%p210_p3), %s6578_s15, 5 }
   0x8   : > { %3556 = vmatprep.subr.bf16.mxu0 (!%p210_p3), %v5862_v1  ;;  %2978 = vmatpush1.bf16.msra.mxu1 (!%p210_p3), %v5864_v2  ;;  %v5868_v5 = vld [vmem:[%s7905_s1 + $0x314] ss:$8 sps:$4 sm:$0xff] (!%p210_p3)   ;;  %v5870_v6 = vld [vmem:[%s7905_s1 + $0x10] ss:$8 sps:$4 sm:$0xff] (!%p210_p3)   ;;  %v5872_v8 = vld [vmem:[%s7905_s1 + $0x24] ss:$8 sps:$4 sm:$0xff] (!%p210_p3)  }
   0x9   : > { %3557 = vmatpush1.bf16.msra.mxu0 (!%p210_p3), %v5865_v3  ;;  %2979 = vmatprep.subr.bf16.mxu1 (!%p210_p3), %v5866_v4  ;;  %v5871_v7 = vld [vmem:[%s7905_s1 + $0x310] ss:$8 sps:$4 sm:$0xff] (!%p210_p3)   ;;  %v5874_v9 = vld [vmem:[%s7905_s1 + $0x324] ss:$8 sps:$4 sm:$0xff] (!%p210_p3)   ;;  %v5876_v10 = vld [vmem:[%s7905_s1 + $0x20] ss:$8 sps:$4 sm:$0xff] (!%p210_p3)  }
   0xa   : > { %3558 = vmatprep.subr.bf16.mxu0 (!%p210_p3), %v5868_v5  ;;  %v5877_v11 = vld [vmem:[%s7905_s1 + $0x320] ss:$8 sps:$4 sm:$0xff] (!%p210_p3)   ;;  %v5878_v12 = vld [vmem:[%s7905_s1 + $0x34] ss:$8 sps:$4 sm:$0xff] (!%p210_p3)   ;;  %v5882_v14 = vld [vmem:[%s7905_s1 + $0x30] ss:$8 sps:$4 sm:$0xff] (!%p210_p3)  }
   0xb   : > { %v5880_v13 = vld [vmem:[%s7905_s1 + $0x334] ss:$8 sps:$4 sm:$0xff] (!%p210_p3)   ;;  %v5883_v15 = vld [vmem:[%s7905_s1 + $0x330] ss:$8 sps:$4 sm:$0xff] (!%p210_p3)   ;;  %v5884_v16 = vld [vmem:[%s7905_s1 + $0x44] ss:$8 sps:$4 sm:$0xff] (!%p210_p3)  }
   0xc   : > { %2980 = vmatpush1.bf16.msra.mxu1 (!%p210_p3), %v5870_v6  ;;  %v5886_v17 = vld [vmem:[%s7905_s1 + $0x344] ss:$8 sps:$4 sm:$0xff] (!%p210_p3)   ;;  %v5888_v18 = vld [vmem:[%s7905_s1 + $0x40] ss:$8 sps:$4 sm:$0xff] (!%p210_p3)   ;;  %v5890_v20 = vld [vmem:[%s7905_s1 + $0x54] ss:$8 sps:$4 sm:$0xff] (!%p210_p3)  }
   0xd   : > { %3559 = vmatpush1.bf16.msra.mxu0 (!%p210_p3), %v5871_v7  ;;  %2981 = vmatprep.subr.bf16.mxu1 (!%p210_p3), %v5872_v8  ;;  %v5889_v19 = vld [vmem:[%s7905_s1 + $0x340] ss:$8 sps:$4 sm:$0xff] (!%p210_p3)   ;;  %v5892_v21 = vld [vmem:[%s7905_s1 + $0x354] ss:$8 sps:$4 sm:$0xff] (!%p210_p3)   ;;  %v5894_v22 = vld [vmem:[%s7905_s1 + $0x50] ss:$8 sps:$4 sm:$0xff] (!%p210_p3)  }
   0xe   : > { %3560 = vmatprep.subr.bf16.mxu0 %v5874_v9  ;;  %v5895_v23 = vld [vmem:[%s7905_s1 + $0x350] ss:$8 sps:$4 sm:$0xff]   ;;  %v5896_v24 = vld [vmem:[%s7905_s1 + $0x64] ss:$8 sps:$4 sm:$0xff]   ;;  %v5900_v26 = vld [vmem:[%s7905_s1 + $0x60] ss:$8 sps:$4 sm:$0xff]  }
   0xf   : > { %v5898_v25 = vld [vmem:[%s7905_s1 + $0x364] ss:$8 sps:$4 sm:$0xff]   ;;  %v5901_v27 = vld [vmem:[%s7905_s1 + $0x360] ss:$8 sps:$4 sm:$0xff]   ;;  %v5902_v28 = vld [vmem:[%s7905_s1 + $0x74] ss:$8 sps:$4 sm:$0xff]  }
  0x10   : > { %2982 = vmatpush1.bf16.msra.mxu1 %v5876_v10  ;;  %v5904_v29 = vld [vmem:[%s7905_s1 + $0x374] ss:$8 sps:$4 sm:$0xff]   ;;  %v5906_v30 = vld [vmem:[%s7905_s1 + $0x70] ss:$8 sps:$4 sm:$0xff]   ;;  %v5908_v32 = vld [vmem:[%s7905_s1 + $0x84] ss:$8 sps:$4 sm:$0xff]  }
  0x11   : > { %3561 = vmatpush1.bf16.msra.mxu0 %v5877_v11  ;;  %2983 = vmatprep.subr.bf16.mxu1 %v5878_v12  ;;  %v5907_v31 = vld [vmem:[%s7905_s1 + $0x370] ss:$8 sps:$4 sm:$0xff]   ;;  %p255_p4 = scmp.lt.s32.totalorder %s4899_s9, 159  ;;  %v5910_v33 = vld [vmem:[%s7905_s1 + $0x384] ss:$8 sps:$4 sm:$0xff]  }
  0x12   : > { %3562 = vmatprep.subr.bf16.mxu0 %v5880_v13  ;;  %v5912_v34 = vld [vmem:[%s7905_s1 + $0x80] ss:$8 sps:$4 sm:$0xff]   ;;  %v5914_v36 = vld [vmem:[%s7905_s1 + $0x94] ss:$8 sps:$4 sm:$0xff]   ;;  %v5918_v38 = vld [vmem:[%s7905_s1 + $0x90] ss:$8 sps:$4 sm:$0xff]  }
  0x13   : > { %v5913_v35 = vld [vmem:[%s7905_s1 + $0x380] ss:$8 sps:$4 sm:$0xff]   ;;  %s7914_s9 = smov (!%p255_p4, %s4899_s9), 159  ;;  %v5916_v37 = vld [vmem:[%s7905_s1 + $0x394] ss:$8 sps:$4 sm:$0xff]  }
  0x14   : > { %2984 = vmatpush1.bf16.msra.mxu1 %v5882_v14  ;;  %v5919_v39 = vld [vmem:[%s7905_s1 + $0x390] ss:$8 sps:$4 sm:$0xff]   ;;  %v5920_v40 = vld [vmem:[%s7905_s1 + $0xa4] ss:$8 sps:$4 sm:$0xff]   ;;  %s5835_s10 = smul.u32 56, %s7914_s9  ;;  %s5386_s30 = sshll.u32 %s7914_s9, 3 }
  0x15   : > { %3563 = vmatpush1.bf16.msra.mxu0 %v5883_v15  ;;  %2985 = vmatprep.subr.bf16.mxu1 %v5884_v16  ;;  %v5922_v41 = vld [vmem:[%s7905_s1 + $0x3a4] ss:$8 sps:$4 sm:$0xff]   ;;  %v5924_v42 = vld [vmem:[%s7905_s1 + $0xa0] ss:$8 sps:$4 sm:$0xff]   ;;  %v5926_v44 = vld [vmem:[%s7905_s1 + $0xb4] ss:$8 sps:$4 sm:$0xff]   ;;  %s7714_s7 = scalar_lea.vmem %s7908_s4, %s5386_s30 }
  0x16   : > { %3564 = vmatprep.subr.bf16.mxu0 %v5886_v17  ;;  %v5925_v43 = vld [vmem:[%s7905_s1 + $0x3a0] ss:$8 sps:$4 sm:$0xff]   ;;  %s6775_s24 = scalar_lea.vmem %s7904_s0, %s5835_s10  ;;  %v5928_v45 = vld [vmem:[%s7905_s1 + $0x3b4] ss:$8 sps:$4 sm:$0xff]   ;;  %v5930_v46 = vld [vmem:[%s7905_s1 + $0xb0] ss:$8 sps:$4 sm:$0xff]  }
  0x17   : > { %v5931_v47 = vld [vmem:[%s7905_s1 + $0x3b0] ss:$8 sps:$4 sm:$0xff]   ;;  %v5932_v48 = vld [vmem:[%s7905_s1 + $0xc4] ss:$8 sps:$4 sm:$0xff]   ;;  %v5961_v51 = vld [vmem:[%s6775_s24 + $0x1c] ss:$56 sps:$4 sm:$0xff]  }
  0x18   : > { %2986 = vmatpush1.bf16.msra.mxu1 %v5888_v18  ;;  %v5958_v49 = vld [vmem:[%s6775_s24 + $0x4] ss:$56 sps:$4 sm:$0xff]   ;;  %v5936_v52 = vld [vmem:[%s7905_s1 + $0xc0] ss:$8 sps:$4 sm:$0xff]   ;;  %3588 = vmatprep.mubr.bf16.mxu0 %v5961_v51  ;;  %v5942_v56 = vld [vmem:[%s7905_s1 + $0xd0] ss:$8 sps:$4 sm:$0xff]  }
  0x19   : > { %3565 = vmatpush1.bf16.msra.mxu0 %v5889_v19  ;;  %2987 = vmatprep.subr.bf16.mxu1 %v5890_v20  ;;  %v5934_v50 = vld [vmem:[%s7905_s1 + $0x3c4] ss:$8 sps:$4 sm:$0xff]   ;;  %v5937_v53 = vld [vmem:[%s7905_s1 + $0x3c0] ss:$8 sps:$4 sm:$0xff]   ;;  %v5938_v54 = vld [vmem:[%s7905_s1 + $0xd4] ss:$8 sps:$4 sm:$0xff]  }
  0x1a   : > { %3566 = vmatprep.subr.bf16.mxu0 %v5892_v21  ;;  %3009 = vmatprep.mubr.bf16.mxu1 %v5958_v49  ;;  %v5940_v55 = vld [vmem:[%s7905_s1 + $0x3d4] ss:$8 sps:$4 sm:$0xff]   ;;  %v5943_v57 = vld [vmem:[%s7905_s1 + $0x3d0] ss:$8 sps:$4 sm:$0xff]   ;;  %v5944_v58 = vld [vmem:[%s7905_s1 + $0xe4] ss:$8 sps:$4 sm:$0xff]  }
  0x1b   : > { %v5946_v59 = vld [vmem:[%s7905_s1 + $0x3e4] ss:$8 sps:$4 sm:$0xff]   ;;  %v5948_v60 = vld [vmem:[%s7905_s1 + $0xe0] ss:$8 sps:$4 sm:$0xff]   ;;  %v5950_v62 = vld [vmem:[%s7905_s1 + $0xf4] ss:$8 sps:$4 sm:$0xff]  }
  0x1c   : > { %2988 = vmatpush1.bf16.msra.mxu1 %v5894_v22  ;;  %v5949_v61 = vld [vmem:[%s7905_s1 + $0x3e0] ss:$8 sps:$4 sm:$0xff]   ;;  %v5952_v63 = vld [vmem:[%s7905_s1 + $0x3f4] ss:$8 sps:$4 sm:$0xff]   ;;  %v5954_v0 = vld [vmem:[%s7905_s1 + $0xf0] ss:$8 sps:$4 sm:$0xff]  }
  0x1d   : > { %3567 = vmatpush1.bf16.msra.mxu0 %v5895_v23  ;;  %2989 = vmatprep.subr.bf16.mxu1 %v5896_v24  ;;  %v5955_v1 = vld [vmem:[%s7905_s1 + $0x3f0] ss:$8 sps:$4 sm:$0xff]   ;;  %v5964_v2 = vld [vmem:[%s7905_s1 + $0x104] ss:$8 sps:$4 sm:$0xff]   ;;  %v5962_v6 = vld [vmem:[%s7905_s1 + $0x100] ss:$8 sps:$4 sm:$0xff]  }
  0x1e   : > { %3568 = vmatprep.subr.bf16.mxu0 %v5898_v25  ;;  %v5967_v3 = vld [vmem:[%s7905_s1 + $0x404] ss:$8 sps:$4 sm:$0xff]   ;;  %v5956_v4 = vld [vmem:[%s6775_s24] ss:$56 sps:$4 sm:$0xff]   ;;  %v5970_v8 = vld [vmem:[%s7905_s1 + $0x414] ss:$8 sps:$4 sm:$0xff]  }
  0x1f   : > { %v5959_v5 = vld [vmem:[%s6775_s24 + $0x18] ss:$56 sps:$4 sm:$0xff]   ;;  %v5965_v7 = vld [vmem:[%s7905_s1 + $0x400] ss:$8 sps:$4 sm:$0xff]   ;;  %v5971_v9 = vld [vmem:[%s6775_s24 + $0x74] ss:$56 sps:$4 sm:$0xff]  }
  0x20   : > { %2990 = vmatpush1.bf16.msra.mxu1 %v5900_v26  ;;  %v5973_v10 = vld [vmem:[%s6775_s24 + $0x8c] ss:$56 sps:$4 sm:$0xff]   ;;  %v5978_v11 = vld [vmem:[%s7905_s1 + $0x114] ss:$8 sps:$4 sm:$0xff]   ;;  %v5968_v12 = vld [vmem:[%s7905_s1 + $0x410] ss:$8 sps:$4 sm:$0xff]  }
  0x21   : > { %3569 = vmatpush1.bf16.msra.mxu0 %v5901_v27  ;;  %2991 = vmatprep.subr.bf16.mxu1 %v5902_v28  ;;  %v5976_v13 = vld [vmem:[%s7905_s1 + $0x110] ss:$8 sps:$4 sm:$0xff]   ;;  %v5982_v14 = vld [vmem:[%s7905_s1 + $0x424] ss:$8 sps:$4 sm:$0xff]   ;;  %v5979_v17 = vld [vmem:[%s6775_s24 + $0x88] ss:$56 sps:$4 sm:$0xff]  }
  0x22   : > { %3570 = vmatprep.subr.bf16.mxu0 %v5904_v29  ;;  %v5993_v15 = vld [vmem:[%s7905_s1 + $0x124] ss:$8 sps:$4 sm:$0xff]   ;;  %v5975_v16 = vld [vmem:[%s6775_s24 + $0x70] ss:$56 sps:$4 sm:$0xff]   ;;  %v5985_v19 = vld [vmem:[%s7905_s1 + $0x434] ss:$8 sps:$4 sm:$0xff]  }
  0x23   : > { %v5980_v18 = vld [vmem:[%s7905_s1 + $0x420] ss:$8 sps:$4 sm:$0xff]   ;;  %v5986_v20 = vld [vmem:[%s6775_s24 + $0xe4] ss:$56 sps:$4 sm:$0xff]   ;;  %v5983_v24 = vld [vmem:[%s7905_s1 + $0x430] ss:$8 sps:$4 sm:$0xff]  }
  0x24   : > { %2992 = vmatpush1.bf16.msra.mxu1 %v5906_v30  ;;  %v5988_v21 = vld [vmem:[%s6775_s24 + $0xfc] ss:$56 sps:$4 sm:$0xff]   ;;  %v5991_v22 = vld [vmem:[%s7905_s1 + $0x120] ss:$8 sps:$4 sm:$0xff]   ;;  %v5997_v26 = vld [vmem:[%s7905_s1 + $0x444] ss:$8 sps:$4 sm:$0xff]  }
  0x25   : > { %3571 = vmatpush1.bf16.msra.mxu0 %v5907_v31  ;;  %2993 = vmatprep.subr.bf16.mxu1 %v5908_v32  ;;  %v6008_v23 = vld [vmem:[%s7905_s1 + $0x134] ss:$8 sps:$4 sm:$0xff]   ;;  %v5990_v25 = vld [vmem:[%s6775_s24 + $0xe0] ss:$56 sps:$4 sm:$0xff]   ;;  %v6003_v32 = vld [vmem:[%s6775_s24 + $0x16c] ss:$56 sps:$4 sm:$0xff]  }
  0x26   : > { %3572 = vmatprep.subr.bf16.mxu0 %v5910_v33  ;;  %v6006_v27 = vld [vmem:[%s7905_s1 + $0x130] ss:$8 sps:$4 sm:$0xff]   ;;  %v5995_v29 = vld [vmem:[%s7905_s1 + $0x440] ss:$8 sps:$4 sm:$0xff]   ;;  %v6000_v30 = vld [vmem:[%s7905_s1 + $0x454] ss:$8 sps:$4 sm:$0xff]  }
  0x27   : > { %v5994_v28 = vld [vmem:[%s6775_s24 + $0xf8] ss:$56 sps:$4 sm:$0xff]   ;;  %v6001_v31 = vld [vmem:[%s6775_s24 + $0x154] ss:$56 sps:$4 sm:$0xff]   ;;  %v6025_v51 = vld [vmem:[%s7905_s1 + $0x480] ss:$8 sps:$4 sm:$0xff]  }
  0x28   : > { %2994 = vmatpush1.bf16.msra.mxu1 %v5912_v34  ;;  %v6023_v33 = vld [vmem:[%s7905_s1 + $0x144] ss:$8 sps:$4 sm:$0xff]   ;;  %v6021_v34 = vld [vmem:[%s7905_s1 + $0x140] ss:$8 sps:$4 sm:$0xff]   ;;  %v6024_v49 = vld [vmem:[%s6775_s24 + $0x1d8] ss:$56 sps:$4 sm:$0xff]  }
  0x29   : > { %3573 = vmatpush1.bf16.msra.mxu0 %v5913_v35  ;;  %2995 = vmatprep.subr.bf16.mxu1 %v5914_v36  ;;  %v5998_v35 = vld [vmem:[%s7905_s1 + $0x450] ss:$8 sps:$4 sm:$0xff]   ;;  %v6038_v36 = vld [vmem:[%s7905_s1 + $0x154] ss:$8 sps:$4 sm:$0xff]  }
  0x2a   : > { %3574 = vmatprep.subr.bf16.mxu0 %v5916_v37  ;;  %v6012_v37 = vld [vmem:[%s7905_s1 + $0x464] ss:$8 sps:$4 sm:$0xff]  }
  0x2c   : > { %2996 = vmatpush1.bf16.msra.mxu1 %v5918_v38  ;;  %v6005_v38 = vld [vmem:[%s6775_s24 + $0x150] ss:$56 sps:$4 sm:$0xff]  }
  0x2d   : > { %3575 = vmatpush1.bf16.msra.mxu0 %v5919_v39  ;;  %2997 = vmatprep.subr.bf16.mxu1 %v5920_v40  ;;  %v6009_v39 = vld [vmem:[%s6775_s24 + $0x168] ss:$56 sps:$4 sm:$0xff]  }
  0x2e   : > { %3576 = vmatprep.subr.bf16.mxu0 %v5922_v41  ;;  %v6010_v40 = vld [vmem:[%s7905_s1 + $0x460] ss:$8 sps:$4 sm:$0xff]   ;;  %v6015_v41 = vld [vmem:[%s7905_s1 + $0x474] ss:$8 sps:$4 sm:$0xff]  }
  0x30   : > { %2998 = vmatpush1.bf16.msra.mxu1 %v5924_v42  ;;  %v6016_v42 = vld [vmem:[%s6775_s24 + $0x1c4] ss:$56 sps:$4 sm:$0xff]  }
  0x31   : > { %3577 = vmatpush1.bf16.msra.mxu0 %v5925_v43  ;;  %2999 = vmatprep.subr.bf16.mxu1 %v5926_v44  ;;  %v6018_v43 = vld [vmem:[%s6775_s24 + $0x1dc] ss:$56 sps:$4 sm:$0xff]   ;;  %v6036_v44 = vld [vmem:[%s7905_s1 + $0x150] ss:$8 sps:$4 sm:$0xff]  }
  0x32   : > { %3578 = vmatprep.subr.bf16.mxu0 %v5928_v45  ;;  %v6053_v45 = vld [vmem:[%s7905_s1 + $0x164] ss:$8 sps:$4 sm:$0xff]  }
  0x34   : > { %3000 = vmatpush1.bf16.msra.mxu1 %v5930_v46  ;;  %v6013_v46 = vld [vmem:[%s7905_s1 + $0x470] ss:$8 sps:$4 sm:$0xff]  }
  0x35   : > { %3579 = vmatpush1.bf16.msra.mxu0 %v5931_v47  ;;  %3001 = vmatprep.subr.bf16.mxu1 %v5932_v48  ;;  %v6020_v47 = vld [vmem:[%s6775_s24 + $0x1c0] ss:$56 sps:$4 sm:$0xff]   ;;  %v6027_v48 = vld [vmem:[%s7905_s1 + $0x484] ss:$8 sps:$4 sm:$0xff]  }
  0x36   : > { %3580 = vmatprep.subr.bf16.mxu0 %v5934_v50  ;;  %v6051_v50 = vld [vmem:[%s7905_s1 + $0x160] ss:$8 sps:$4 sm:$0xff]  }
  0x38   : > { %3002 = vmatpush1.bf16.msra.mxu1 %v5936_v52  ;;  %v6030_v52 = vld [vmem:[%s7905_s1 + $0x494] ss:$8 sps:$4 sm:$0xff]  }
  0x39   : > { %3581 = vmatpush1.bf16.msra.mxu0 %v5937_v53  ;;  %3003 = vmatprep.subr.bf16.mxu1 %v5938_v54  ;;  %v6031_v53 = vld [vmem:[%s6775_s24 + $0x234] ss:$56 sps:$4 sm:$0xff]  }
  0x3a   : > { %3582 = vmatprep.subr.bf16.mxu0 %v5940_v55  ;;  %v6033_v54 = vld [vmem:[%s6775_s24 + $0x24c] ss:$56 sps:$4 sm:$0xff]   ;;  %v6068_v55 = vld [vmem:[%s7905_s1 + $0x174] ss:$8 sps:$4 sm:$0xff]  }
  0x3c   : > { %3004 = vmatpush1.bf16.msra.mxu1 %v5942_v56  ;;  %v6028_v56 = vld [vmem:[%s7905_s1 + $0x490] ss:$8 sps:$4 sm:$0xff]  }
  0x3d   : > { %3583 = vmatpush1.bf16.msra.mxu0 %v5943_v57  ;;  %3005 = vmatprep.subr.bf16.mxu1 %v5944_v58  ;;  %v6066_v57 = vld [vmem:[%s7905_s1 + $0x170] ss:$8 sps:$4 sm:$0xff]   ;;  %v6084_v58 = vld [vmem:[%s7905_s1 + $0x184] ss:$8 sps:$4 sm:$0xff]  }
  0x3e   : > { %3584 = vmatprep.subr.bf16.mxu0 %v5946_v59  ;;  %v6042_v59 = vld [vmem:[%s7905_s1 + $0x4a4] ss:$8 sps:$4 sm:$0xff]  }
  0x40   : > { %3006 = vmatpush1.bf16.msra.mxu1 %v5948_v60  ;;  %v6035_v60 = vld [vmem:[%s6775_s24 + $0x230] ss:$56 sps:$4 sm:$0xff]  }
  0x41   : > { %3585 = vmatpush1.bf16.msra.mxu0 %v5949_v61  ;;  %3007 = vmatprep.subr.bf16.mxu1 %v5950_v62  ;;  %v6039_v61 = vld [vmem:[%s6775_s24 + $0x248] ss:$56 sps:$4 sm:$0xff]  }
  0x42   : > { %3586 = vmatprep.subr.bf16.mxu0 %v5952_v63  ;;  %v6040_v62 = vld [vmem:[%s7905_s1 + $0x4a0] ss:$8 sps:$4 sm:$0xff]   ;;  %v6045_v63 = vld [vmem:[%s7905_s1 + $0x4b4] ss:$8 sps:$4 sm:$0xff]  }
  0x44   : > { %3008 = vmatpush1.bf16.msra.mxu1 %v5954_v0  ;;  %v6046_v0 = vld [vmem:[%s6775_s24 + $0x2a4] ss:$56 sps:$4 sm:$0xff]  }
  0x45   : > { %3587 = vmatpush1.bf16.msra.mxu0 %v5955_v1  ;;  %3170 = vmatprep.subr.bf16.mxu1 %v5964_v2  ;;  %v6048_v1 = vld [vmem:[%s6775_s24 + $0x2bc] ss:$56 sps:$4 sm:$0xff]   ;;  %v6082_v2 = vld [vmem:[%s7905_s1 + $0x180] ss:$8 sps:$4 sm:$0xff]  }
  0x46   : > { %3749 = vmatprep.subr.bf16.mxu0 %v5967_v3  ;;  %v6095_v3 = vld [vmem:[%s7905_s1 + $0x194] ss:$8 sps:$4 sm:$0xff]  }
  0x47   : > { %3010 = vmatmul.mubr.bf16.vlgmr.msra.gmra.mrb[0].mxu1 %v5956_v4  ;;  %v6043_v4 = vld [vmem:[%s7905_s1 + $0x4b0] ss:$8 sps:$4 sm:$0xff]  }
  0x48   : > { %3589 = vmatmul.mubr.bf16.vlgmr.msra.gmra.mrb[0].mxu0 %v5959_v5  ;;  %3171 = vmatpush1.bf16.msra.mxu1 %v5962_v6  ;;  %v6050_v5 = vld [vmem:[%s6775_s24 + $0x2a0] ss:$56 sps:$4 sm:$0xff]   ;;  %v6057_v6 = vld [vmem:[%s7905_s1 + $0x4c4] ss:$8 sps:$4 sm:$0xff]  }
  0x49   : > { %3750 = vmatpush1.bf16.msra.mxu0 %v5965_v7  ;;  %3019 = vmatprep.mubr.bf16.mxu1 %v5971_v9  ;;  %v6054_v7 = vld [vmem:[%s6775_s24 + $0x2b8] ss:$56 sps:$4 sm:$0xff]   ;;  %v6055_v9 = vld [vmem:[%s7905_s1 + $0x4c0] ss:$8 sps:$4 sm:$0xff]  }
  0x4a   : > { %3751 = vmatprep.subr.bf16.mxu0 %v5970_v8  ;;  %3598 = vmatprep.mubr.bf16.mxu0 %v5973_v10  ;;  %v6093_v8 = vld [vmem:[%s7905_s1 + $0x190] ss:$8 sps:$4 sm:$0xff]   ;;  %v6060_v10 = vld [vmem:[%s7905_s1 + $0x4d4] ss:$8 sps:$4 sm:$0xff]  }
  0x4b   : > { %3172 = vmatprep.subr.bf16.mxu1 %v5978_v11  ;;  %v6061_v11 = vld [vmem:[%s6775_s24 + $0x314] ss:$56 sps:$4 sm:$0xff]  }
  0x4c   : > { %3173 = vmatpush1.bf16.msra.mxu1 %v5976_v13  ;;  %v6107_v13 = vld [vmem:[%s7905_s1 + $0x1a4] ss:$8 sps:$4 sm:$0xff]  }
  0x4d   : > { %3752 = vmatpush1.bf16.msra.mxu0 %v5968_v12  ;;  %3174 = vmatprep.subr.bf16.mxu1 %v5993_v15  ;;  %v6063_v12 = vld [vmem:[%s6775_s24 + $0x32c] ss:$56 sps:$4 sm:$0xff]   ;;  %v6105_v15 = vld [vmem:[%s7905_s1 + $0x1a0] ss:$8 sps:$4 sm:$0xff]  }
  0x4e   : > { %3753 = vmatprep.subr.bf16.mxu0 %v5982_v14  ;;  %v6058_v14 = vld [vmem:[%s7905_s1 + $0x4d0] ss:$8 sps:$4 sm:$0xff]  }
  0x4f   : > { %3020 = vmatmul.mubr.bf16.gmra.mrb[4].mxu1 %v5975_v16  ;;  %v6119_v16 = vld [vmem:[%s7905_s1 + $0x1b4] ss:$8 sps:$4 sm:$0xff]  }
  0x50   : > { %3599 = vmatmul.mubr.bf16.gmra.mrb[4].mxu0 %v5979_v17  ;;  %3029 = vmatprep.mubr.bf16.mxu1 %v5986_v20  ;;  %v6072_v17 = vld [vmem:[%s7905_s1 + $0x4e4] ss:$8 sps:$4 sm:$0xff]   ;;  %v6070_v20 = vld [vmem:[%s7905_s1 + $0x4e0] ss:$8 sps:$4 sm:$0xff]  }
  0x51   : > { %3754 = vmatpush1.bf16.msra.mxu0 %v5980_v18  ;;  %3608 = vmatprep.mubr.bf16.mxu0 %v5988_v21  ;;  %v6065_v18 = vld [vmem:[%s6775_s24 + $0x310] ss:$56 sps:$4 sm:$0xff]   ;;  %v6075_v21 = vld [vmem:[%s7905_s1 + $0x4f4] ss:$8 sps:$4 sm:$0xff]  }
  0x52   : > { %3755 = vmatprep.subr.bf16.mxu0 %v5985_v19  ;;  %3175 = vmatpush1.bf16.msra.mxu1 %v5991_v22  ;;  %v6069_v19 = vld [vmem:[%s6775_s24 + $0x328] ss:$56 sps:$4 sm:$0xff]   ;;  %v6076_v22 = vld [vmem:[%s6775_s24 + $0x384] ss:$56 sps:$4 sm:$0xff]  }
  0x53   : > { %3176 = vmatprep.subr.bf16.mxu1 %v6008_v23  ;;  %v6080_v23 = vld [vmem:[%s6775_s24 + $0x24] ss:$56 sps:$4 sm:$0xff]  }
  0x55   : > { %3756 = vmatpush1.bf16.msra.mxu0 %v5983_v24  ;;  %v6117_v24 = vld [vmem:[%s7905_s1 + $0x1b0] ss:$8 sps:$4 sm:$0xff]  }
  0x56   : > { %3757 = vmatprep.subr.bf16.mxu0 %v5997_v26  ;;  %3177 = vmatpush1.bf16.msra.mxu1 %v6006_v27  ;;  %v6073_v26 = vld [vmem:[%s7905_s1 + $0x4f0] ss:$8 sps:$4 sm:$0xff]  }
  0x57   : > { %3030 = vmatmul.mubr.bf16.gmra.mrb[8].mxu1 %v5990_v25  ;;  %3178 = vmatprep.subr.bf16.mxu1 %v6023_v33  ;;  %v6131_v25 = vld [vmem:[%s7905_s1 + $0x1c4] ss:$8 sps:$4 sm:$0xff]   ;;  %v6078_v27 = vld [vmem:[%s6775_s24 + $0x20] ss:$56 sps:$4 sm:$0xff]  }
  0x58   : > { %3609 = vmatmul.mubr.bf16.gmra.mrb[8].mxu0 %v5994_v28  ;;  %3039 = vmatprep.mubr.bf16.mxu1 %v6001_v31  ;;  %v6087_v28 = vld [vmem:[%s7905_s1 + $0x504] ss:$8 sps:$4 sm:$0xff]   ;;  %v6085_v31 = vld [vmem:[%s7905_s1 + $0x500] ss:$8 sps:$4 sm:$0xff]  }
  0x59   : > { %3758 = vmatpush1.bf16.msra.mxu0 %v5995_v29  ;;  %3618 = vmatprep.mubr.bf16.mxu0 %v6003_v32  ;;  %v6081_v29 = vld [vmem:[%s6775_s24 + $0x380] ss:$56 sps:$4 sm:$0xff]   ;;  %v6088_v32 = vld [vmem:[%s6775_s24 + $0x3f4] ss:$56 sps:$4 sm:$0xff]  }
  0x5a   : > { %3759 = vmatprep.subr.bf16.mxu0 %v6000_v30  ;;  %3179 = vmatpush1.bf16.msra.mxu1 %v6021_v34  ;;  %v6129_v30 = vld [vmem:[%s7905_s1 + $0x1c0] ss:$8 sps:$4 sm:$0xff]   ;;  %v6090_v33 = vld [vmem:[%s6775_s24 + $0x94] ss:$56 sps:$4 sm:$0xff]  }
  0x5b   : > { %3180 = vmatprep.subr.bf16.mxu1 %v6038_v36  ;;  %v6099_v34 = vld [vmem:[%s7905_s1 + $0x514] ss:$8 sps:$4 sm:$0xff]   ;;  %v6097_v36 = vld [vmem:[%s7905_s1 + $0x510] ss:$8 sps:$4 sm:$0xff]  }
  0x5d   : > { %3760 = vmatpush1.bf16.msra.mxu0 %v5998_v35  ;;  %v6143_v35 = vld [vmem:[%s7905_s1 + $0x1d4] ss:$8 sps:$4 sm:$0xff]  }
  0x5e   : > { %3761 = vmatprep.subr.bf16.mxu0 %v6012_v37  ;;  %3181 = vmatpush1.bf16.msra.mxu1 %v6036_v44  ;;  %v6141_v37 = vld [vmem:[%s7905_s1 + $0x1d0] ss:$8 sps:$4 sm:$0xff]   ;;  %v6109_v44 = vld [vmem:[%s7905_s1 + $0x520] ss:$8 sps:$4 sm:$0xff]  }
  0x5f   : > { %3040 = vmatmul.mubr.bf16.gmra.mrb[12].mxu1 %v6005_v38  ;;  %3182 = vmatprep.subr.bf16.mxu1 %v6053_v45  ;;  %v6155_v38 = vld [vmem:[%s7905_s1 + $0x1e4] ss:$8 sps:$4 sm:$0xff]   ;;  %v6153_v45 = vld [vmem:[%s7905_s1 + $0x1e0] ss:$8 sps:$4 sm:$0xff]  }
  0x60   : > { %3619 = vmatmul.mubr.bf16.gmra.mrb[12].mxu0 %v6009_v39  ;;  %3049 = vmatprep.mubr.bf16.mxu1 %v6016_v42  ;;  %v6111_v39 = vld [vmem:[%s7905_s1 + $0x524] ss:$8 sps:$4 sm:$0xff]  }
  0x61   : > { %3762 = vmatpush1.bf16.msra.mxu0 %v6010_v40  ;;  %3628 = vmatprep.mubr.bf16.mxu0 %v6018_v43  ;;  %v6092_v40 = vld [vmem:[%s6775_s24 + $0x3f0] ss:$56 sps:$4 sm:$0xff]   ;;  %v6100_v42 = vld [vmem:[%s6775_s24 + $0x464] ss:$56 sps:$4 sm:$0xff]  }
  0x62   : > { %3763 = vmatprep.subr.bf16.mxu0 %v6015_v41  ;;  %3183 = vmatpush1.bf16.msra.mxu1 %v6051_v50  ;;  %v6096_v41 = vld [vmem:[%s6775_s24 + $0x90] ss:$56 sps:$4 sm:$0xff]   ;;  %v6102_v43 = vld [vmem:[%s6775_s24 + $0x104] ss:$56 sps:$4 sm:$0xff]  }
  0x63   : > { %3184 = vmatprep.subr.bf16.mxu1 %v6068_v55  ;;  %v6165_v50 = vld [vmem:[%s7905_s1 + $0x1f0] ss:$8 sps:$4 sm:$0xff]   ;;  %v6114_v55 = vld [vmem:[%s6775_s24 + $0x174] ss:$56 sps:$4 sm:$0xff]  }
  0x65   : > { %3764 = vmatpush1.bf16.msra.mxu0 %v6013_v46  ;;  %v6123_v46 = vld [vmem:[%s7905_s1 + $0x534] ss:$8 sps:$4 sm:$0xff]  }
  0x66   : > { %3765 = vmatprep.subr.bf16.mxu0 %v6027_v48  ;;  %3185 = vmatpush1.bf16.msra.mxu1 %v6066_v57  ;;  %v6121_v48 = vld [vmem:[%s7905_s1 + $0x530] ss:$8 sps:$4 sm:$0xff]   ;;  %v6147_v57 = vld [vmem:[%s7905_s1 + $0x554] ss:$8 sps:$4 sm:$0xff]  }
  0x67   : > { %3050 = vmatmul.mubr.bf16.gmra.mrb[16].mxu1 %v6020_v47  ;;  %3186 = vmatprep.subr.bf16.mxu1 %v6084_v58  ;;  %v6167_v47 = vld [vmem:[%s7905_s1 + $0x1f4] ss:$8 sps:$4 sm:$0xff]   ;;  %v6145_v58 = vld [vmem:[%s7905_s1 + $0x550] ss:$8 sps:$4 sm:$0xff]  }
  0x68   : > { %3629 = vmatmul.mubr.bf16.gmra.mrb[16].mxu0 %v6024_v49  ;;  %3059 = vmatprep.mubr.bf16.mxu1 %v6031_v53  ;;  %v6104_v49 = vld [vmem:[%s6775_s24 + $0x460] ss:$56 sps:$4 sm:$0xff]  }
  0x69   : > { %3766 = vmatpush1.bf16.msra.mxu0 %v6025_v51  ;;  %3638 = vmatprep.mubr.bf16.mxu0 %v6033_v54  ;;  %v6135_v51 = vld [vmem:[%s7905_s1 + $0x544] ss:$8 sps:$4 sm:$0xff]   ;;  %v6108_v53 = vld [vmem:[%s6775_s24 + $0x100] ss:$56 sps:$4 sm:$0xff]  }
  0x6a   : > { %3767 = vmatprep.subr.bf16.mxu0 %v6030_v52  ;;  %3187 = vmatpush1.bf16.msra.mxu1 %v6082_v2  ;;  %v6179_v52 = vld [vmem:[%s7905_s1 + $0x204] ss:$8 sps:$4 sm:$0xff]   ;;  %v6169_v2 = vld [vmem:[%s7905_s1 + $0x570] ss:$8 sps:$4 sm:$0xff]  }
  0x6b   : > { %3188 = vmatprep.subr.bf16.mxu1 %v6095_v3  ;;  %v6112_v54 = vld [vmem:[%s6775_s24 + $0x4d4] ss:$56 sps:$4 sm:$0xff]   ;;  %v6128_v3 = vld [vmem:[%s6775_s24 + $0x540] ss:$56 sps:$4 sm:$0xff]  }
  0x6d   : > { %3768 = vmatpush1.bf16.msra.mxu0 %v6028_v56  ;;  %v6133_v56 = vld [vmem:[%s7905_s1 + $0x540] ss:$8 sps:$4 sm:$0xff]  }
  0x6e   : > { %3769 = vmatprep.subr.bf16.mxu0 %v6042_v59  ;;  %3189 = vmatpush1.bf16.msra.mxu1 %v6093_v8  ;;  %v6159_v59 = vld [vmem:[%s7905_s1 + $0x564] ss:$8 sps:$4 sm:$0xff]   ;;  %v6181_v8 = vld [vmem:[%s7905_s1 + $0x580] ss:$8 sps:$4 sm:$0xff]  }
  0x6f   : > { %3060 = vmatmul.mubr.bf16.gmra.mrb[20].mxu1 %v6035_v60  ;;  %3190 = vmatprep.subr.bf16.mxu1 %v6107_v13  ;;  %v6116_v60 = vld [vmem:[%s6775_s24 + $0x4d0] ss:$56 sps:$4 sm:$0xff]  }
  0x70   : > { %3639 = vmatmul.mubr.bf16.gmra.mrb[20].mxu0 %v6039_v61  ;;  %3069 = vmatprep.mubr.bf16.mxu1 %v6046_v0  ;;  %v6120_v61 = vld [vmem:[%s6775_s24 + $0x170] ss:$56 sps:$4 sm:$0xff]  }
  0x71   : > { %3770 = vmatpush1.bf16.msra.mxu0 %v6040_v62  ;;  %3648 = vmatprep.mubr.bf16.mxu0 %v6048_v1  ;;  %v6124_v62 = vld [vmem:[%s6775_s24 + $0x544] ss:$56 sps:$4 sm:$0xff]   ;;  %v6157_v0 = vld [vmem:[%s7905_s1 + $0x560] ss:$8 sps:$4 sm:$0xff]  }
  0x72   : > { %3771 = vmatprep.subr.bf16.mxu0 %v6045_v63  ;;  %3191 = vmatpush1.bf16.msra.mxu1 %v6105_v15  ;;  %v6126_v63 = vld [vmem:[%s6775_s24 + $0x1e4] ss:$56 sps:$4 sm:$0xff]   ;;  %v6144_v13 = vld [vmem:[%s6775_s24 + $0x250] ss:$56 sps:$4 sm:$0xff]  }
  0x73   : > { %3192 = vmatprep.subr.bf16.mxu1 %v6119_v16  ;;  %v6171_v1 = vld [vmem:[%s7905_s1 + $0x574] ss:$8 sps:$4 sm:$0xff]   ;;  %v6205_v16 = vld [vmem:[%s7905_s1 + $0x5a0] ss:$8 sps:$4 sm:$0xff]  }
  0x74   : > { %v6150_v15 = vld [vmem:[%s6775_s24 + $0x2c4] ss:$56 sps:$4 sm:$0xff]  }
  0x75   : > { %3772 = vmatpush1.bf16.msra.mxu0 %v6043_v4  ;;  %v6183_v4 = vld [vmem:[%s7905_s1 + $0x584] ss:$8 sps:$4 sm:$0xff]  }
  0x76   : > { %3773 = vmatprep.subr.bf16.mxu0 %v6057_v6  ;;  %3193 = vmatpush1.bf16.msra.mxu1 %v6117_v24  ;;  %v6136_v6 = vld [vmem:[%s6775_s24 + $0x5b4] ss:$56 sps:$4 sm:$0xff]   ;;  %v6229_v24 = vld [vmem:[%s7905_s1 + $0x5c0] ss:$8 sps:$4 sm:$0xff]  }
  0x77   : > { %3070 = vmatmul.mubr.bf16.gmra.mrb[24].mxu1 %v6050_v5  ;;  %3194 = vmatprep.subr.bf16.mxu1 %v6131_v25  ;;  %v6132_v5 = vld [vmem:[%s6775_s24 + $0x1e0] ss:$56 sps:$4 sm:$0xff]   ;;  %v6243_v25 = vld [vmem:[%s7905_s1 + $0x5d4] ss:$8 sps:$4 sm:$0xff]  }
  0x78   : > { %3649 = vmatmul.mubr.bf16.gmra.mrb[24].mxu0 %v6054_v7  ;;  %3079 = vmatprep.mubr.bf16.mxu1 %v6061_v11  ;;  %v6138_v7 = vld [vmem:[%s6775_s24 + $0x254] ss:$56 sps:$4 sm:$0xff]  }
  0x79   : > { %3774 = vmatpush1.bf16.msra.mxu0 %v6055_v9  ;;  %3658 = vmatprep.mubr.bf16.mxu0 %v6063_v12  ;;  %v6195_v9 = vld [vmem:[%s7905_s1 + $0x594] ss:$8 sps:$4 sm:$0xff]   ;;  %v6207_v11 = vld [vmem:[%s7905_s1 + $0x5a4] ss:$8 sps:$4 sm:$0xff]   ;;  %v6140_v12 = vld [vmem:[%s6775_s24 + $0x5b0] ss:$56 sps:$4 sm:$0xff]  }
  0x7a   : > { %3775 = vmatprep.subr.bf16.mxu0 %v6060_v10  ;;  %3195 = vmatpush1.bf16.msra.mxu1 %v6129_v30  ;;  %v6193_v10 = vld [vmem:[%s7905_s1 + $0x590] ss:$8 sps:$4 sm:$0xff]   ;;  %v6174_v30 = vld [vmem:[%s6775_s24 + $0xc] ss:$56 sps:$4 sm:$0xff]  }
  0x7b   : > { %3196 = vmatprep.subr.bf16.mxu1 %v6143_v35  ;;  %v6265_v35 = vld [vmem:[%s7905_s1 + $0x5f0] ss:$8 sps:$4 sm:$0xff]  }
  0x7d   : > { %3776 = vmatpush1.bf16.msra.mxu0 %v6058_v14  ;;  %v6148_v14 = vld [vmem:[%s6775_s24 + $0x624] ss:$56 sps:$4 sm:$0xff]  }
  0x7e   : > { %3777 = vmatprep.subr.bf16.mxu0 %v6072_v17  ;;  %3197 = vmatpush1.bf16.msra.mxu1 %v6141_v37  ;;  %v6219_v17 = vld [vmem:[%s7905_s1 + $0x5b4] ss:$8 sps:$4 sm:$0xff]   ;;  %v6279_v37 = vld [vmem:[%s7905_s1 + $0x604] ss:$8 sps:$4 sm:$0xff]  }
  0x7f   : > { %3080 = vmatmul.mubr.bf16.gmra.mrb[28].mxu1 %v6065_v18  ;;  %3198 = vmatprep.subr.bf16.mxu1 %v6155_v38  ;;  %v6217_v18 = vld [vmem:[%s7905_s1 + $0x5b0] ss:$8 sps:$4 sm:$0xff]  }
  0x80   : > { %3659 = vmatmul.mubr.bf16.gmra.mrb[28].mxu0 %v6069_v19  ;;  %3089 = vmatprep.mubr.bf16.mxu1 %v6076_v22  ;;  %v6152_v19 = vld [vmem:[%s6775_s24 + $0x620] ss:$56 sps:$4 sm:$0xff]   ;;  %v6160_v22 = vld [vmem:[%s6775_s24 + $0x694] ss:$56 sps:$4 sm:$0xff]  }
  0x81   : > { %3778 = vmatpush1.bf16.msra.mxu0 %v6070_v20  ;;  %3781 = vmatprep.mubr.bf16.mxu0 %v6080_v23  ;;  %v6231_v20 = vld [vmem:[%s7905_s1 + $0x5c4] ss:$8 sps:$4 sm:$0xff]   ;;  %v6180_v38 = vld [vmem:[%s6775_s24 + $0x3a0] ss:$56 sps:$4 sm:$0xff]  }
  0x82   : > { %3779 = vmatprep.subr.bf16.mxu0 %v6075_v21  ;;  %3199 = vmatpush1.bf16.msra.mxu1 %v6153_v45  ;;  %v6156_v21 = vld [vmem:[%s6775_s24 + $0x2c0] ss:$56 sps:$4 sm:$0xff]   ;;  %v6162_v23 = vld [vmem:[%s6775_s24 + $0x334] ss:$56 sps:$4 sm:$0xff]   ;;  %v6192_v45 = vld [vmem:[%s6775_s24 + $0x410] ss:$56 sps:$4 sm:$0xff]  }
  0x83   : > { %3200 = vmatprep.subr.bf16.mxu1 %v6167_v47  ;;  %v6198_v47 = vld [vmem:[%s6775_s24 + $0x484] ss:$56 sps:$4 sm:$0xff]  }
  0x85   : > { %3780 = vmatpush1.bf16.msra.mxu0 %v6073_v26  ;;  %v6241_v26 = vld [vmem:[%s7905_s1 + $0x5d0] ss:$8 sps:$4 sm:$0xff]  }
  0x86   : > { %3942 = vmatprep.subr.bf16.mxu0 %v6087_v28  ;;  %3201 = vmatpush1.bf16.msra.mxu1 %v6165_v50  ;;  %v6164_v28 = vld [vmem:[%s6775_s24 + $0x690] ss:$56 sps:$4 sm:$0xff]  }
  0x87   : > { %3090 = vmatmul.mubr.bf16.gmra.mrb[32].mxu1 %v6081_v29  ;;  %3363 = vmatprep.subr.bf16.mxu1 %v6179_v52  ;;  %v6168_v29 = vld [vmem:[%s6775_s24 + $0x330] ss:$56 sps:$4 sm:$0xff]   ;;  %v6227_v52 = vld [vmem:[%s7905_s1 + $0x244] ss:$8 sps:$4 sm:$0xff]  }
  0x88   : > { %3782 = vmatmul.mubr.bf16.vlgmr.msra.gmra.mrb[0].mxu0 %v6078_v27  ;;  %3099 = vmatprep.mubr.bf16.mxu1 %v6088_v32  ;;  %v6255_v27 = vld [vmem:[%s7905_s1 + $0x5e4] ss:$8 sps:$4 sm:$0xff]   ;;  %v6253_v32 = vld [vmem:[%s7905_s1 + $0x5e0] ss:$8 sps:$4 sm:$0xff]   ;;  %v6213_v50 = vld [vmem:[%s7905_s1 + $0x230] ss:$8 sps:$4 sm:$0xff]  }
  0x89   : > { %3943 = vmatpush1.bf16.msra.mxu0 %v6085_v31  ;;  %3791 = vmatprep.mubr.bf16.mxu0 %v6090_v33  ;;  %v6175_v31 = vld [vmem:[%s6775_s24 + $0x3a4] ss:$56 sps:$4 sm:$0xff]  }
  0x8a   : > { %3944 = vmatprep.subr.bf16.mxu0 %v6099_v34  ;;  %v6267_v33 = vld [vmem:[%s7905_s1 + $0x5f4] ss:$8 sps:$4 sm:$0xff]   ;;  %v6172_v34 = vld [vmem:[%s6775_s24 + $0x8] ss:$56 sps:$4 sm:$0xff]  }
  0x8d   : > { %3945 = vmatpush1.bf16.msra.mxu0 %v6097_v36  ;;  %v6177_v36 = vld [vmem:[%s7905_s1 + $0x200] ss:$8 sps:$4 sm:$0xff]  }
  0x8e   : > { %3946 = vmatprep.subr.bf16.mxu0 %v6111_v39  ;;  %v6184_v39 = vld [vmem:[%s6775_s24 + $0x7c] ss:$56 sps:$4 sm:$0xff]  }
  0x8f   : > { %3100 = vmatmul.mubr.bf16.gmra.mrb[36].mxu1 %v6092_v40  ;;  %v6186_v40 = vld [vmem:[%s6775_s24 + $0x414] ss:$56 sps:$4 sm:$0xff]  }
  0x90   : > { %3792 = vmatmul.mubr.bf16.gmra.mrb[4].mxu0 %v6096_v41  ;;  %3109 = vmatprep.mubr.bf16.mxu1 %v6100_v42  ;;  %v6191_v41 = vld [vmem:[%s7905_s1 + $0x214] ss:$8 sps:$4 sm:$0xff]   ;;  %v6189_v42 = vld [vmem:[%s7905_s1 + $0x210] ss:$8 sps:$4 sm:$0xff]  }
  0x91   : > { %3801 = vmatprep.mubr.bf16.mxu0 %v6102_v43  ;;  %3947 = vmatpush1.bf16.msra.mxu0 %v6109_v44  ;;  %v6203_v43 = vld [vmem:[%s7905_s1 + $0x224] ss:$8 sps:$4 sm:$0xff]   ;;  %v6188_v44 = vld [vmem:[%s6775_s24 + $0x78] ss:$56 sps:$4 sm:$0xff]  }
  0x92   : > { %3948 = vmatprep.subr.bf16.mxu0 %v6123_v46  ;;  %v6196_v46 = vld [vmem:[%s6775_s24 + $0xec] ss:$56 sps:$4 sm:$0xff]  }
  0x95   : > { %3949 = vmatpush1.bf16.msra.mxu0 %v6121_v48  ;;  %v6201_v48 = vld [vmem:[%s7905_s1 + $0x220] ss:$8 sps:$4 sm:$0xff]  }
  0x96   : > { %3950 = vmatprep.subr.bf16.mxu0 %v6135_v51  ;;  %v6200_v51 = vld [vmem:[%s6775_s24 + $0xe8] ss:$56 sps:$4 sm:$0xff]  }
  0x97   : > { %3110 = vmatmul.mubr.bf16.gmra.mrb[40].mxu1 %v6104_v49  ;;  %v6215_v49 = vld [vmem:[%s7905_s1 + $0x234] ss:$8 sps:$4 sm:$0xff]  }
  0x98   : > { %3802 = vmatmul.mubr.bf16.gmra.mrb[8].mxu0 %v6108_v53  ;;  %3119 = vmatprep.mubr.bf16.mxu1 %v6112_v54  ;;  %v6204_v53 = vld [vmem:[%s6775_s24 + $0x480] ss:$56 sps:$4 sm:$0xff]   ;;  %v6208_v54 = vld [vmem:[%s6775_s24 + $0x15c] ss:$56 sps:$4 sm:$0xff]  }
  0x99   : > { %3811 = vmatprep.mubr.bf16.mxu0 %v6114_v55  ;;  %3951 = vmatpush1.bf16.msra.mxu0 %v6133_v56  ;;  %v6210_v55 = vld [vmem:[%s6775_s24 + $0x4f4] ss:$56 sps:$4 sm:$0xff]   ;;  %v6225_v56 = vld [vmem:[%s7905_s1 + $0x240] ss:$8 sps:$4 sm:$0xff]  }
  0x9a   : > { %3952 = vmatprep.subr.bf16.mxu0 %v6147_v57  ;;  %v6239_v57 = vld [vmem:[%s7905_s1 + $0x254] ss:$8 sps:$4 sm:$0xff]  }
  0x9d   : > { %3953 = vmatpush1.bf16.msra.mxu0 %v6145_v58  ;;  %v6237_v58 = vld [vmem:[%s7905_s1 + $0x250] ss:$8 sps:$4 sm:$0xff]  }
  0x9e   : > { %3954 = vmatprep.subr.bf16.mxu0 %v6159_v59  ;;  %v6251_v59 = vld [vmem:[%s7905_s1 + $0x264] ss:$8 sps:$4 sm:$0xff]  }
  0x9f   : > { %3120 = vmatmul.mubr.bf16.gmra.mrb[44].mxu1 %v6116_v60  ;;  %v6212_v60 = vld [vmem:[%s6775_s24 + $0x158] ss:$56 sps:$4 sm:$0xff]  }
  0xa0   : > { %3812 = vmatmul.mubr.bf16.gmra.mrb[12].mxu0 %v6120_v61  ;;  %3129 = vmatprep.mubr.bf16.mxu1 %v6124_v62  ;;  %v6216_v61 = vld [vmem:[%s6775_s24 + $0x4f0] ss:$56 sps:$4 sm:$0xff]   ;;  %v6220_v62 = vld [vmem:[%s6775_s24 + $0x1cc] ss:$56 sps:$4 sm:$0xff]  }
  0xa1   : > { %3821 = vmatprep.mubr.bf16.mxu0 %v6126_v63  ;;  %3955 = vmatpush1.bf16.msra.mxu0 %v6157_v0  ;;  %v6222_v63 = vld [vmem:[%s6775_s24 + $0x564] ss:$56 sps:$4 sm:$0xff]   ;;  %v6249_v0 = vld [vmem:[%s7905_s1 + $0x260] ss:$8 sps:$4 sm:$0xff]  }
  0xa2   : > { %3956 = vmatprep.subr.bf16.mxu0 %v6171_v1  ;;  %v6263_v1 = vld [vmem:[%s7905_s1 + $0x274] ss:$8 sps:$4 sm:$0xff]  }
  0xa5   : > { %3957 = vmatpush1.bf16.msra.mxu0 %v6169_v2  ;;  %v6261_v2 = vld [vmem:[%s7905_s1 + $0x270] ss:$8 sps:$4 sm:$0xff]  }
  0xa6   : > { %3958 = vmatprep.subr.bf16.mxu0 %v6183_v4  ;;  %v6276_v4 = vld [vmem:[%s7905_s1 + $0x284] ss:$8 sps:$4 sm:$0xff]  }
  0xa7   : > { %3130 = vmatmul.mubr.bf16.gmra.mrb[48].mxu1 %v6128_v3  ;;  %v6224_v3 = vld [vmem:[%s6775_s24 + $0x1c8] ss:$56 sps:$4 sm:$0xff]  }
  0xa8   : > { %3822 = vmatmul.mubr.bf16.gmra.mrb[16].mxu0 %v6132_v5  ;;  %3139 = vmatprep.mubr.bf16.mxu1 %v6136_v6  ;;  %v6228_v5 = vld [vmem:[%s6775_s24 + $0x560] ss:$56 sps:$4 sm:$0xff]   ;;  %v6232_v6 = vld [vmem:[%s6775_s24 + $0x23c] ss:$56 sps:$4 sm:$0xff]  }
  0xa9   : > { %3831 = vmatprep.mubr.bf16.mxu0 %v6138_v7  ;;  %3959 = vmatpush1.bf16.msra.mxu0 %v6181_v8  ;;  %v6234_v7 = vld [vmem:[%s6775_s24 + $0x5d4] ss:$56 sps:$4 sm:$0xff]   ;;  %v6274_v8 = vld [vmem:[%s7905_s1 + $0x280] ss:$8 sps:$4 sm:$0xff]  }
  0xaa   : > { %3960 = vmatprep.subr.bf16.mxu0 %v6195_v9  ;;  %v6287_v9 = vld [vmem:[%s7905_s1 + $0x294] ss:$8 sps:$4 sm:$0xff]  }
  0xad   : > { %3961 = vmatpush1.bf16.msra.mxu0 %v6193_v10  ;;  %v6285_v10 = vld [vmem:[%s7905_s1 + $0x290] ss:$8 sps:$4 sm:$0xff]  }
  0xae   : > { %3962 = vmatprep.subr.bf16.mxu0 %v6207_v11  ;;  %v6236_v11 = vld [vmem:[%s6775_s24 + $0x238] ss:$56 sps:$4 sm:$0xff]  }
  0xaf   : > { %3140 = vmatmul.mubr.bf16.gmra.mrb[52].mxu1 %v6140_v12  ;;  %v6299_v12 = vld [vmem:[%s7905_s1 + $0x2a4] ss:$8 sps:$4 sm:$0xff]  }
  0xb0   : > { %3832 = vmatmul.mubr.bf16.gmra.mrb[20].mxu0 %v6144_v13  ;;  %3149 = vmatprep.mubr.bf16.mxu1 %v6148_v14  ;;  %v6240_v13 = vld [vmem:[%s6775_s24 + $0x5d0] ss:$56 sps:$4 sm:$0xff]   ;;  %v6244_v14 = vld [vmem:[%s6775_s24 + $0x2ac] ss:$56 sps:$4 sm:$0xff]  }
  0xb1   : > { %3841 = vmatprep.mubr.bf16.mxu0 %v6150_v15  ;;  %3963 = vmatpush1.bf16.msra.mxu0 %v6205_v16  ;;  %v6246_v15 = vld [vmem:[%s6775_s24 + $0x644] ss:$56 sps:$4 sm:$0xff]   ;;  %v6297_v16 = vld [vmem:[%s7905_s1 + $0x2a0] ss:$8 sps:$4 sm:$0xff]  }
  0xb2   : > { %3964 = vmatprep.subr.bf16.mxu0 %v6219_v17  ;;  %v6311_v17 = vld [vmem:[%s7905_s1 + $0x2b4] ss:$8 sps:$4 sm:$0xff]  }
  0xb5   : > { %3965 = vmatpush1.bf16.msra.mxu0 %v6217_v18  ;;  %v6309_v18 = vld [vmem:[%s7905_s1 + $0x2b0] ss:$8 sps:$4 sm:$0xff]  }
  0xb6   : > { %3966 = vmatprep.subr.bf16.mxu0 %v6231_v20  ;;  %v6323_v20 = vld [vmem:[%s7905_s1 + $0x2c4] ss:$8 sps:$4 sm:$0xff]  }
  0xb7   : > { %3150 = vmatmul.mubr.bf16.gmra.mrb[56].mxu1 %v6152_v19  ;;  %v6248_v19 = vld [vmem:[%s6775_s24 + $0x2a8] ss:$56 sps:$4 sm:$0xff]  }
  0xb8   : > { %3842 = vmatmul.mubr.bf16.gmra.mrb[24].mxu0 %v6156_v21  ;;  %3159 = vmatprep.mubr.bf16.mxu1 %v6160_v22  ;;  %v6252_v21 = vld [vmem:[%s6775_s24 + $0x640] ss:$56 sps:$4 sm:$0xff]   ;;  %v6256_v22 = vld [vmem:[%s6775_s24 + $0x31c] ss:$56 sps:$4 sm:$0xff]  }
  0xb9   : > { %3851 = vmatprep.mubr.bf16.mxu0 %v6162_v23  ;;  %3967 = vmatpush1.bf16.msra.mxu0 %v6229_v24  ;;  %v6258_v23 = vld [vmem:[%s6775_s24 + $0x6b4] ss:$56 sps:$4 sm:$0xff]   ;;  %v6321_v24 = vld [vmem:[%s7905_s1 + $0x2c0] ss:$8 sps:$4 sm:$0xff]  }
  0xba   : > { %3968 = vmatprep.subr.bf16.mxu0 %v6243_v25  ;;  %v6335_v25 = vld [vmem:[%s7905_s1 + $0x2d4] ss:$8 sps:$4 sm:$0xff]  }
  0xbd   : > { %3969 = vmatpush1.bf16.msra.mxu0 %v6241_v26  ;;  %v6333_v26 = vld [vmem:[%s7905_s1 + $0x2d0] ss:$8 sps:$4 sm:$0xff]  }
  0xbe   : > { %3970 = vmatprep.subr.bf16.mxu0 %v6255_v27  ;;  %v6260_v27 = vld [vmem:[%s6775_s24 + $0x318] ss:$56 sps:$4 sm:$0xff]  }
  0xbf   : > { %3160 = vmatmul.mubr.bf16.gmra.mrb[60].mxu1 %v6164_v28  ;;  %v6347_v28 = vld [vmem:[%s7905_s1 + $0x2e4] ss:$8 sps:$4 sm:$0xff]  }
  0xc0   : > { %3852 = vmatmul.mubr.bf16.gmra.mrb[28].mxu0 %v6168_v29  ;;  %3202 = vmatprep.mubr.bf16.mxu1 %v6174_v30  ;;  %v6264_v29 = vld [vmem:[%s6775_s24 + $0x6b0] ss:$56 sps:$4 sm:$0xff]   ;;  %v6268_v30 = vld [vmem:[%s6775_s24 + $0x38c] ss:$56 sps:$4 sm:$0xff]  }
  0xc1   : > { %3861 = vmatprep.mubr.bf16.mxu0 %v6175_v31  ;;  %3971 = vmatpush1.bf16.msra.mxu0 %v6253_v32  ;;  %v6272_v31 = vld [vmem:[%s6775_s24 + $0x2c] ss:$56 sps:$4 sm:$0xff]   ;;  %v6345_v32 = vld [vmem:[%s7905_s1 + $0x2e0] ss:$8 sps:$4 sm:$0xff]  }
  0xc2   : > { %3972 = vmatprep.subr.bf16.mxu0 %v6267_v33  ;;  %v6359_v33 = vld [vmem:[%s7905_s1 + $0x2f4] ss:$8 sps:$4 sm:$0xff]  }
  0xc5   : > { %3973 = vmatpush1.bf16.msra.mxu0 %v6265_v35  ;;  %v6270_v35 = vld [vmem:[%s6775_s24 + $0x28] ss:$56 sps:$4 sm:$0xff]  }
  0xc6   : > { %4135 = vmatprep.subr.bf16.mxu0 %v6279_v37  ;;  %v6277_v37 = vld [vmem:[%s7905_s1 + $0x600] ss:$8 sps:$4 sm:$0xff]  }
  0xc7   : > { %3203 = vmatmul.mubr.bf16.vlgmr.msra.gmra.mrb[0].mxu1 %v6172_v34  ;;  %v6357_v34 = vld [vmem:[%s7905_s1 + $0x2f0] ss:$8 sps:$4 sm:$0xff]  }
  0xc8   : > { %3862 = vmatmul.mubr.bf16.gmra.mrb[32].mxu0 %v6180_v38  ;;  %3364 = vmatpush1.bf16.msra.mxu1 %v6177_v36  ;;  %v6273_v36 = vld [vmem:[%s6775_s24 + $0x388] ss:$56 sps:$4 sm:$0xff]   ;;  %v6280_v38 = vld [vmem:[%s6775_s24 + $0x3fc] ss:$56 sps:$4 sm:$0xff]  }
  0xc9   : > { %3212 = vmatprep.mubr.bf16.mxu1 %v6184_v39  ;;  %3871 = vmatprep.mubr.bf16.mxu0 %v6186_v40  ;;  %v6282_v39 = vld [vmem:[%s6775_s24 + $0x9c] ss:$56 sps:$4 sm:$0xff]  }
  0xca   : > { %3365 = vmatprep.subr.bf16.mxu1 %v6191_v41  ;;  %v6291_v40 = vld [vmem:[%s7905_s1 + $0x614] ss:$8 sps:$4 sm:$0xff]   ;;  %v6532_v41 = vld [vmem:[%s7905_s1 + $0x304] ss:$8 sps:$4 sm:$0xff]  }
  0xcc   : > { %3366 = vmatpush1.bf16.msra.mxu1 %v6189_v42  ;;  %v6289_v42 = vld [vmem:[%s7905_s1 + $0x610] ss:$8 sps:$4 sm:$0xff]  }
  0xcd   : > { %3367 = vmatprep.subr.bf16.mxu1 %v6203_v43  ;;  %v6303_v43 = vld [vmem:[%s7905_s1 + $0x624] ss:$8 sps:$4 sm:$0xff]  }
  0xcf   : > { %3213 = vmatmul.mubr.bf16.gmra.mrb[4].mxu1 %v6188_v44  ;;  %v6284_v44 = vld [vmem:[%s6775_s24 + $0x3f8] ss:$56 sps:$4 sm:$0xff]  }
  0xd0   : > { %3872 = vmatmul.mubr.bf16.gmra.mrb[36].mxu0 %v6192_v45  ;;  %3222 = vmatprep.mubr.bf16.mxu1 %v6196_v46  ;;  %v6288_v45 = vld [vmem:[%s6775_s24 + $0x98] ss:$56 sps:$4 sm:$0xff]   ;;  %v6292_v46 = vld [vmem:[%s6775_s24 + $0x46c] ss:$56 sps:$4 sm:$0xff]  }
  0xd1   : > { %3881 = vmatprep.mubr.bf16.mxu0 %v6198_v47  ;;  %3368 = vmatpush1.bf16.msra.mxu1 %v6201_v48  ;;  %v6294_v47 = vld [vmem:[%s6775_s24 + $0x10c] ss:$56 sps:$4 sm:$0xff]   ;;  %v6301_v48 = vld [vmem:[%s7905_s1 + $0x620] ss:$8 sps:$4 sm:$0xff]  }
  0xd2   : > { %3369 = vmatprep.subr.bf16.mxu1 %v6215_v49  ;;  %v6315_v49 = vld [vmem:[%s7905_s1 + $0x634] ss:$8 sps:$4 sm:$0xff]  }
  0xd5   : > { %3370 = vmatpush1.bf16.msra.mxu1 %v6213_v50  ;;  %v6313_v50 = vld [vmem:[%s7905_s1 + $0x630] ss:$8 sps:$4 sm:$0xff]  }
  0xd6   : > { %3371 = vmatprep.subr.bf16.mxu1 %v6227_v52  ;;  %v6296_v52 = vld [vmem:[%s6775_s24 + $0x468] ss:$56 sps:$4 sm:$0xff]  }
  0xd7   : > { %3223 = vmatmul.mubr.bf16.gmra.mrb[8].mxu1 %v6200_v51  ;;  %v6327_v51 = vld [vmem:[%s7905_s1 + $0x644] ss:$8 sps:$4 sm:$0xff]  }
  0xd8   : > { %3882 = vmatmul.mubr.bf16.gmra.mrb[40].mxu0 %v6204_v53  ;;  %3232 = vmatprep.mubr.bf16.mxu1 %v6208_v54  ;;  %v6300_v53 = vld [vmem:[%s6775_s24 + $0x108] ss:$56 sps:$4 sm:$0xff]   ;;  %v6304_v54 = vld [vmem:[%s6775_s24 + $0x4dc] ss:$56 sps:$4 sm:$0xff]  }
  0xd9   : > { %3891 = vmatprep.mubr.bf16.mxu0 %v6210_v55  ;;  %3372 = vmatpush1.bf16.msra.mxu1 %v6225_v56  ;;  %v6306_v55 = vld [vmem:[%s6775_s24 + $0x17c] ss:$56 sps:$4 sm:$0xff]   ;;  %v6325_v56 = vld [vmem:[%s7905_s1 + $0x640] ss:$8 sps:$4 sm:$0xff]  }
  0xda   : > { %3373 = vmatprep.subr.bf16.mxu1 %v6239_v57  ;;  %v6339_v57 = vld [vmem:[%s7905_s1 + $0x654] ss:$8 sps:$4 sm:$0xff]  }
  0xdd   : > { %3374 = vmatpush1.bf16.msra.mxu1 %v6237_v58  ;;  %v6337_v58 = vld [vmem:[%s7905_s1 + $0x650] ss:$8 sps:$4 sm:$0xff]  }
  0xde   : > { %3375 = vmatprep.subr.bf16.mxu1 %v6251_v59  ;;  %v6351_v59 = vld [vmem:[%s7905_s1 + $0x664] ss:$8 sps:$4 sm:$0xff]  }
  0xdf   : > { %3233 = vmatmul.mubr.bf16.gmra.mrb[12].mxu1 %v6212_v60  ;;  %v6308_v60 = vld [vmem:[%s6775_s24 + $0x4d8] ss:$56 sps:$4 sm:$0xff]  }
  0xe0   : > { %3892 = vmatmul.mubr.bf16.gmra.mrb[44].mxu0 %v6216_v61  ;;  %3242 = vmatprep.mubr.bf16.mxu1 %v6220_v62  ;;  %v6312_v61 = vld [vmem:[%s6775_s24 + $0x178] ss:$56 sps:$4 sm:$0xff]   ;;  %v6316_v62 = vld [vmem:[%s6775_s24 + $0x54c] ss:$56 sps:$4 sm:$0xff]  }
  0xe1   : > { %3901 = vmatprep.mubr.bf16.mxu0 %v6222_v63  ;;  %3376 = vmatpush1.bf16.msra.mxu1 %v6249_v0  ;;  %v6318_v63 = vld [vmem:[%s6775_s24 + $0x1ec] ss:$56 sps:$4 sm:$0xff]   ;;  %v6349_v0 = vld [vmem:[%s7905_s1 + $0x660] ss:$8 sps:$4 sm:$0xff]  }
  0xe2   : > { %3377 = vmatprep.subr.bf16.mxu1 %v6263_v1  ;;  %v6363_v1 = vld [vmem:[%s7905_s1 + $0x674] ss:$8 sps:$4 sm:$0xff]  }
  0xe5   : > { %3378 = vmatpush1.bf16.msra.mxu1 %v6261_v2  ;;  %v6361_v2 = vld [vmem:[%s7905_s1 + $0x670] ss:$8 sps:$4 sm:$0xff]  }
  0xe6   : > { %3379 = vmatprep.subr.bf16.mxu1 %v6276_v4  ;;  %v6320_v4 = vld [vmem:[%s6775_s24 + $0x548] ss:$56 sps:$4 sm:$0xff]  }
  0xe7   : > { %3243 = vmatmul.mubr.bf16.gmra.mrb[16].mxu1 %v6224_v3  ;;  %v6372_v3 = vld [vmem:[%s7905_s1 + $0x684] ss:$8 sps:$4 sm:$0xff]  }
  0xe8   : > { %3902 = vmatmul.mubr.bf16.gmra.mrb[48].mxu0 %v6228_v5  ;;  %3252 = vmatprep.mubr.bf16.mxu1 %v6232_v6  ;;  %v6324_v5 = vld [vmem:[%s6775_s24 + $0x1e8] ss:$56 sps:$4 sm:$0xff]   ;;  %v6328_v6 = vld [vmem:[%s6775_s24 + $0x5bc] ss:$56 sps:$4 sm:$0xff]  }
  0xe9   : > { %3911 = vmatprep.mubr.bf16.mxu0 %v6234_v7  ;;  %3380 = vmatpush1.bf16.msra.mxu1 %v6274_v8  ;;  %v6330_v7 = vld [vmem:[%s6775_s24 + $0x25c] ss:$56 sps:$4 sm:$0xff]   ;;  %v6370_v8 = vld [vmem:[%s7905_s1 + $0x680] ss:$8 sps:$4 sm:$0xff]  }
  0xea   : > { %3381 = vmatprep.subr.bf16.mxu1 %v6287_v9  ;;  %v6381_v9 = vld [vmem:[%s7905_s1 + $0x694] ss:$8 sps:$4 sm:$0xff]  }
  0xed   : > { %3382 = vmatpush1.bf16.msra.mxu1 %v6285_v10  ;;  %v6379_v10 = vld [vmem:[%s7905_s1 + $0x690] ss:$8 sps:$4 sm:$0xff]  }
  0xee   : > { %3383 = vmatprep.subr.bf16.mxu1 %v6299_v12  ;;  %v6332_v12 = vld [vmem:[%s6775_s24 + $0x5b8] ss:$56 sps:$4 sm:$0xff]  }
  0xef   : > { %3253 = vmatmul.mubr.bf16.gmra.mrb[20].mxu1 %v6236_v11  ;;  %v6390_v11 = vld [vmem:[%s7905_s1 + $0x6a4] ss:$8 sps:$4 sm:$0xff]  }
  0xf0   : > { %3912 = vmatmul.mubr.bf16.gmra.mrb[52].mxu0 %v6240_v13  ;;  %3262 = vmatprep.mubr.bf16.mxu1 %v6244_v14  ;;  %v6336_v13 = vld [vmem:[%s6775_s24 + $0x258] ss:$56 sps:$4 sm:$0xff]   ;;  %v6340_v14 = vld [vmem:[%s6775_s24 + $0x62c] ss:$56 sps:$4 sm:$0xff]  }
  0xf1   : > { %3921 = vmatprep.mubr.bf16.mxu0 %v6246_v15  ;;  %3384 = vmatpush1.bf16.msra.mxu1 %v6297_v16  ;;  %v6342_v15 = vld [vmem:[%s6775_s24 + $0x2cc] ss:$56 sps:$4 sm:$0xff]   ;;  %v6388_v16 = vld [vmem:[%s7905_s1 + $0x6a0] ss:$8 sps:$4 sm:$0xff]  }
  0xf2   : > { %3385 = vmatprep.subr.bf16.mxu1 %v6311_v17  ;;  %v6399_v17 = vld [vmem:[%s7905_s1 + $0x6b4] ss:$8 sps:$4 sm:$0xff]  }
  0xf5   : > { %3386 = vmatpush1.bf16.msra.mxu1 %v6309_v18  ;;  %v6397_v18 = vld [vmem:[%s7905_s1 + $0x6b0] ss:$8 sps:$4 sm:$0xff]  }
  0xf6   : > { %3387 = vmatprep.subr.bf16.mxu1 %v6323_v20  ;;  %v6344_v20 = vld [vmem:[%s6775_s24 + $0x628] ss:$56 sps:$4 sm:$0xff]  }
  0xf7   : > { %3263 = vmatmul.mubr.bf16.gmra.mrb[24].mxu1 %v6248_v19  ;;  %v6408_v19 = vld [vmem:[%s7905_s1 + $0x6c4] ss:$8 sps:$4 sm:$0xff]  }
  0xf8   : > { %3922 = vmatmul.mubr.bf16.gmra.mrb[56].mxu0 %v6252_v21  ;;  %3272 = vmatprep.mubr.bf16.mxu1 %v6256_v22  ;;  %v6348_v21 = vld [vmem:[%s6775_s24 + $0x2c8] ss:$56 sps:$4 sm:$0xff]   ;;  %v6352_v22 = vld [vmem:[%s6775_s24 + $0x69c] ss:$56 sps:$4 sm:$0xff]  }
  0xf9   : > { %3931 = vmatprep.mubr.bf16.mxu0 %v6258_v23  ;;  %3388 = vmatpush1.bf16.msra.mxu1 %v6321_v24  ;;  %v6354_v23 = vld [vmem:[%s6775_s24 + $0x33c] ss:$56 sps:$4 sm:$0xff]   ;;  %v6406_v24 = vld [vmem:[%s7905_s1 + $0x6c0] ss:$8 sps:$4 sm:$0xff]  }
  0xfa   : > { %3389 = vmatprep.subr.bf16.mxu1 %v6335_v25  ;;  %v6417_v25 = vld [vmem:[%s7905_s1 + $0x6d4] ss:$8 sps:$4 sm:$0xff]  }
  0xfd   : > { %3390 = vmatpush1.bf16.msra.mxu1 %v6333_v26  ;;  %v6415_v26 = vld [vmem:[%s7905_s1 + $0x6d0] ss:$8 sps:$4 sm:$0xff]  }
  0xfe   : > { %3391 = vmatprep.subr.bf16.mxu1 %v6347_v28  ;;  %v6356_v28 = vld [vmem:[%s6775_s24 + $0x698] ss:$56 sps:$4 sm:$0xff]  }
  0xff   : > { %3273 = vmatmul.mubr.bf16.gmra.mrb[28].mxu1 %v6260_v27  ;;  %v6426_v27 = vld [vmem:[%s7905_s1 + $0x6e4] ss:$8 sps:$4 sm:$0xff]  }
 0x100   : > { %3932 = vmatmul.mubr.bf16.gmra.mrb[60].mxu0 %v6264_v29  ;;  %3282 = vmatprep.mubr.bf16.mxu1 %v6268_v30  ;;  %v6360_v29 = vld [vmem:[%s6775_s24 + $0x338] ss:$56 sps:$4 sm:$0xff]   ;;  %v6366_v30 = vld [vmem:[%s6775_s24 + $0x14] ss:$56 sps:$4 sm:$0xff]  }
 0x101   : > { %3974 = vmatprep.mubr.bf16.mxu0 %v6272_v31  ;;  %3392 = vmatpush1.bf16.msra.mxu1 %v6345_v32  ;;  %v6367_v31 = vld [vmem:[%s6775_s24 + $0x3ac] ss:$56 sps:$4 sm:$0xff]   ;;  %v6424_v32 = vld [vmem:[%s7905_s1 + $0x6e0] ss:$8 sps:$4 sm:$0xff]  }
 0x102   : > { %3393 = vmatprep.subr.bf16.mxu1 %v6359_v33  ;;  %v6435_v33 = vld [vmem:[%s7905_s1 + $0x6f4] ss:$8 sps:$4 sm:$0xff]  }
 0x105   : > { %3394 = vmatpush1.bf16.msra.mxu1 %v6357_v34  ;;  %v6433_v34 = vld [vmem:[%s7905_s1 + $0x6f0] ss:$8 sps:$4 sm:$0xff]  }
 0x106   : > { %5419 = vmatprep.subr.bf16.mxu1 %v6532_v41  ;;  %v6377_v41 = vld [vmem:[%s6775_s24 + $0x80] ss:$56 sps:$4 sm:$0xff]  }
 0x107   : > { %3283 = vmatmul.mubr.bf16.gmra.mrb[32].mxu1 %v6273_v36  ;;  %v6369_v36 = vld [vmem:[%s6775_s24 + $0x3a8] ss:$56 sps:$4 sm:$0xff]  }
 0x108   : > { %3975 = vmatmul.mubr.bf16.vlgmr.msra.gmra.mrb[0].mxu0 %v6270_v35  ;;  %3292 = vmatprep.mubr.bf16.mxu1 %v6280_v38  ;;  %v6364_v35 = vld [vmem:[%s6775_s24 + $0x10] ss:$56 sps:$4 sm:$0xff]   ;;  %v6375_v38 = vld [vmem:[%s6775_s24 + $0x41c] ss:$56 sps:$4 sm:$0xff]  }
 0x109   : > { %4136 = vmatpush1.bf16.msra.mxu0 %v6277_v37  ;;  %3984 = vmatprep.mubr.bf16.mxu0 %v6282_v39  ;;  %v6373_v37 = vld [vmem:[%s6775_s24 + $0x84] ss:$56 sps:$4 sm:$0xff]   ;;  %v6533_v39 = vld [vmem:[%s7905_s1 + $0x300] ss:$8 sps:$4 sm:$0xff]  }
 0x10a   : > { %4137 = vmatprep.subr.bf16.mxu0 %v6291_v40  ;;  %v6534_v40 = vld [vmem:[%s7905_s1 + $0x314] ss:$8 sps:$4 sm:$0xff]  }
 0x10d   : > { %4138 = vmatpush1.bf16.msra.mxu0 %v6289_v42  ;;  %v6378_v42 = vld [vmem:[%s6775_s24 + $0x418] ss:$56 sps:$4 sm:$0xff]  }
 0x10e   : > { %4139 = vmatprep.subr.bf16.mxu0 %v6303_v43  ;;  %v6535_v43 = vld [vmem:[%s7905_s1 + $0x310] ss:$8 sps:$4 sm:$0xff]  }
 0x10f   : > { %3293 = vmatmul.mubr.bf16.gmra.mrb[36].mxu1 %v6284_v44  ;;  %v6382_v44 = vld [vmem:[%s6775_s24 + $0xf4] ss:$56 sps:$4 sm:$0xff]  }
 0x110   : > { %3985 = vmatmul.mubr.bf16.gmra.mrb[4].mxu0 %v6288_v45  ;;  %3302 = vmatprep.mubr.bf16.mxu1 %v6292_v46  ;;  %v6384_v45 = vld [vmem:[%s6775_s24 + $0x48c] ss:$56 sps:$4 sm:$0xff]  }
 0x111   : > { %3994 = vmatprep.mubr.bf16.mxu0 %v6294_v47  ;;  %4140 = vmatpush1.bf16.msra.mxu0 %v6301_v48  ;;  %v6536_v46 = vld [vmem:[%s7905_s1 + $0x324] ss:$8 sps:$4 sm:$0xff]   ;;  %v6537_v47 = vld [vmem:[%s7905_s1 + $0x320] ss:$8 sps:$4 sm:$0xff]   ;;  %v6538_v48 = vld [vmem:[%s7905_s1 + $0x334] ss:$8 sps:$4 sm:$0xff]  }
 0x112   : > { %4141 = vmatprep.subr.bf16.mxu0 %v6315_v49  ;;  %v6386_v49 = vld [vmem:[%s6775_s24 + $0xf0] ss:$56 sps:$4 sm:$0xff]  }
 0x115   : > { %4142 = vmatpush1.bf16.msra.mxu0 %v6313_v50  ;;  %v6387_v50 = vld [vmem:[%s6775_s24 + $0x488] ss:$56 sps:$4 sm:$0xff]  }
 0x116   : > { %4143 = vmatprep.subr.bf16.mxu0 %v6327_v51  ;;  %v6391_v51 = vld [vmem:[%s6775_s24 + $0x164] ss:$56 sps:$4 sm:$0xff]  }
 0x117   : > { %3303 = vmatmul.mubr.bf16.gmra.mrb[40].mxu1 %v6296_v52  ;;  %v6393_v52 = vld [vmem:[%s6775_s24 + $0x4fc] ss:$56 sps:$4 sm:$0xff]  }
 0x118   : > { %3995 = vmatmul.mubr.bf16.gmra.mrb[8].mxu0 %v6300_v53  ;;  %3312 = vmatprep.mubr.bf16.mxu1 %v6304_v54  ;;  %v6539_v53 = vld [vmem:[%s7905_s1 + $0x330] ss:$8 sps:$4 sm:$0xff]   ;;  %v6540_v54 = vld [vmem:[%s7905_s1 + $0x344] ss:$8 sps:$4 sm:$0xff]  }
 0x119   : > { %4004 = vmatprep.mubr.bf16.mxu0 %v6306_v55  ;;  %4144 = vmatpush1.bf16.msra.mxu0 %v6325_v56  ;;  %v6541_v55 = vld [vmem:[%s7905_s1 + $0x340] ss:$8 sps:$4 sm:$0xff]   ;;  %v6542_v56 = vld [vmem:[%s7905_s1 + $0x354] ss:$8 sps:$4 sm:$0xff]  }
 0x11a   : > { %4145 = vmatprep.subr.bf16.mxu0 %v6339_v57  ;;  %v6395_v57 = vld [vmem:[%s6775_s24 + $0x160] ss:$56 sps:$4 sm:$0xff]  }
 0x11d   : > { %4146 = vmatpush1.bf16.msra.mxu0 %v6337_v58  ;;  %v6396_v58 = vld [vmem:[%s6775_s24 + $0x4f8] ss:$56 sps:$4 sm:$0xff]  }
 0x11e   : > { %4147 = vmatprep.subr.bf16.mxu0 %v6351_v59  ;;  %v6400_v59 = vld [vmem:[%s6775_s24 + $0x1d4] ss:$56 sps:$4 sm:$0xff]  }
 0x11f   : > { %3313 = vmatmul.mubr.bf16.gmra.mrb[44].mxu1 %v6308_v60  ;;  %v6402_v60 = vld [vmem:[%s6775_s24 + $0x56c] ss:$56 sps:$4 sm:$0xff]  }
 0x120   : > { %4005 = vmatmul.mubr.bf16.gmra.mrb[12].mxu0 %v6312_v61  ;;  %3322 = vmatprep.mubr.bf16.mxu1 %v6316_v62  ;;  %v6543_v61 = vld [vmem:[%s7905_s1 + $0x350] ss:$8 sps:$4 sm:$0xff]   ;;  %v6544_v62 = vld [vmem:[%s7905_s1 + $0x364] ss:$8 sps:$4 sm:$0xff]  }
 0x121   : > { %4014 = vmatprep.mubr.bf16.mxu0 %v6318_v63  ;;  %4148 = vmatpush1.bf16.msra.mxu0 %v6349_v0  ;;  %v6545_v63 = vld [vmem:[%s7905_s1 + $0x360] ss:$8 sps:$4 sm:$0xff]   ;;  %v6546_v0 = vld [vmem:[%s7905_s1 + $0x374] ss:$8 sps:$4 sm:$0xff]  }
 0x122   : > { %4149 = vmatprep.subr.bf16.mxu0 %v6363_v1  ;;  %v6404_v1 = vld [vmem:[%s6775_s24 + $0x1d0] ss:$56 sps:$4 sm:$0xff]  }
 0x125   : > { %4150 = vmatpush1.bf16.msra.mxu0 %v6361_v2  ;;  %v6405_v2 = vld [vmem:[%s6775_s24 + $0x568] ss:$56 sps:$4 sm:$0xff]  }
 0x126   : > { %4151 = vmatprep.subr.bf16.mxu0 %v6372_v3  ;;  %v6409_v3 = vld [vmem:[%s6775_s24 + $0x244] ss:$56 sps:$4 sm:$0xff]  }
 0x127   : > { %3323 = vmatmul.mubr.bf16.gmra.mrb[48].mxu1 %v6320_v4  ;;  %v6411_v4 = vld [vmem:[%s6775_s24 + $0x5dc] ss:$56 sps:$4 sm:$0xff]  }
 0x128   : > { %4015 = vmatmul.mubr.bf16.gmra.mrb[16].mxu0 %v6324_v5  ;;  %3332 = vmatprep.mubr.bf16.mxu1 %v6328_v6  ;;  %v6547_v5 = vld [vmem:[%s7905_s1 + $0x370] ss:$8 sps:$4 sm:$0xff]   ;;  %v6548_v6 = vld [vmem:[%s7905_s1 + $0x384] ss:$8 sps:$4 sm:$0xff]  }
 0x129   : > { %4024 = vmatprep.mubr.bf16.mxu0 %v6330_v7  ;;  %4152 = vmatpush1.bf16.msra.mxu0 %v6370_v8  ;;  %v6549_v7 = vld [vmem:[%s7905_s1 + $0x380] ss:$8 sps:$4 sm:$0xff]   ;;  %v6550_v8 = vld [vmem:[%s7905_s1 + $0x394] ss:$8 sps:$4 sm:$0xff]  }
 0x12a   : > { %4153 = vmatprep.subr.bf16.mxu0 %v6381_v9  ;;  %v6413_v9 = vld [vmem:[%s6775_s24 + $0x240] ss:$56 sps:$4 sm:$0xff]  }
 0x12d   : > { %4154 = vmatpush1.bf16.msra.mxu0 %v6379_v10  ;;  %v6414_v10 = vld [vmem:[%s6775_s24 + $0x5d8] ss:$56 sps:$4 sm:$0xff]  }
 0x12e   : > { %4155 = vmatprep.subr.bf16.mxu0 %v6390_v11  ;;  %v6418_v11 = vld [vmem:[%s6775_s24 + $0x2b4] ss:$56 sps:$4 sm:$0xff]  }
 0x12f   : > { %3333 = vmatmul.mubr.bf16.gmra.mrb[52].mxu1 %v6332_v12  ;;  %v6420_v12 = vld [vmem:[%s6775_s24 + $0x64c] ss:$56 sps:$4 sm:$0xff]  }
 0x130   : > { %4025 = vmatmul.mubr.bf16.gmra.mrb[20].mxu0 %v6336_v13  ;;  %3342 = vmatprep.mubr.bf16.mxu1 %v6340_v14  ;;  %v6551_v13 = vld [vmem:[%s7905_s1 + $0x390] ss:$8 sps:$4 sm:$0xff]   ;;  %v6552_v14 = vld [vmem:[%s7905_s1 + $0x3a4] ss:$8 sps:$4 sm:$0xff]  }
 0x131   : > { %4034 = vmatprep.mubr.bf16.mxu0 %v6342_v15  ;;  %4156 = vmatpush1.bf16.msra.mxu0 %v6388_v16  ;;  %v6553_v15 = vld [vmem:[%s7905_s1 + $0x3a0] ss:$8 sps:$4 sm:$0xff]   ;;  %v6554_v16 = vld [vmem:[%s7905_s1 + $0x3b4] ss:$8 sps:$4 sm:$0xff]  }
 0x132   : > { %4157 = vmatprep.subr.bf16.mxu0 %v6399_v17  ;;  %v6422_v17 = vld [vmem:[%s6775_s24 + $0x2b0] ss:$56 sps:$4 sm:$0xff]  }
 0x135   : > { %4158 = vmatpush1.bf16.msra.mxu0 %v6397_v18  ;;  %v6423_v18 = vld [vmem:[%s6775_s24 + $0x648] ss:$56 sps:$4 sm:$0xff]  }
 0x136   : > { %4159 = vmatprep.subr.bf16.mxu0 %v6408_v19  ;;  %v6427_v19 = vld [vmem:[%s6775_s24 + $0x324] ss:$56 sps:$4 sm:$0xff]  }
 0x137   : > { %3343 = vmatmul.mubr.bf16.gmra.mrb[56].mxu1 %v6344_v20  ;;  %v6429_v20 = vld [vmem:[%s6775_s24 + $0x6bc] ss:$56 sps:$4 sm:$0xff]  }
 0x138   : > { %4035 = vmatmul.mubr.bf16.gmra.mrb[24].mxu0 %v6348_v21  ;;  %3352 = vmatprep.mubr.bf16.mxu1 %v6352_v22  ;;  %v6555_v21 = vld [vmem:[%s7905_s1 + $0x3b0] ss:$8 sps:$4 sm:$0xff]   ;;  %v6556_v22 = vld [vmem:[%s7905_s1 + $0x3c4] ss:$8 sps:$4 sm:$0xff]  }
 0x139   : > { %4044 = vmatprep.mubr.bf16.mxu0 %v6354_v23  ;;  %4160 = vmatpush1.bf16.msra.mxu0 %v6406_v24  ;;  %v6557_v23 = vld [vmem:[%s7905_s1 + $0x3c0] ss:$8 sps:$4 sm:$0xff]   ;;  %v6558_v24 = vld [vmem:[%s7905_s1 + $0x3d4] ss:$8 sps:$4 sm:$0xff]  }
 0x13a   : > { %4161 = vmatprep.subr.bf16.mxu0 %v6417_v25  ;;  %v6431_v25 = vld [vmem:[%s6775_s24 + $0x320] ss:$56 sps:$4 sm:$0xff]  }
 0x13d   : > { %4162 = vmatpush1.bf16.msra.mxu0 %v6415_v26  ;;  %v6432_v26 = vld [vmem:[%s6775_s24 + $0x6b8] ss:$56 sps:$4 sm:$0xff]  }
 0x13e   : > { %4163 = vmatprep.subr.bf16.mxu0 %v6426_v27  ;;  %v6436_v27 = vld [vmem:[%s6775_s24 + $0x394] ss:$56 sps:$4 sm:$0xff]  }
 0x13f   : > { %3353 = vmatmul.mubr.bf16.gmra.mrb[60].mxu1 %v6356_v28  ;;  %v6440_v28 = vld [vmem:[%s6775_s24 + $0x34] ss:$56 sps:$4 sm:$0xff]  }
 0x140   : > { %4045 = vmatmul.mubr.bf16.gmra.mrb[28].mxu0 %v6360_v29  ;;  %3395 = vmatprep.mubr.bf16.mxu1 %v6366_v30  ;;  %v6559_v29 = vld [vmem:[%s7905_s1 + $0x3d0] ss:$8 sps:$4 sm:$0xff]   ;;  %v6560_v30 = vld [vmem:[%s7905_s1 + $0x3e4] ss:$8 sps:$4 sm:$0xff]  }
 0x141   : > { %4054 = vmatprep.mubr.bf16.mxu0 %v6367_v31  ;;  %4164 = vmatpush1.bf16.msra.mxu0 %v6424_v32  ;;  %v6561_v31 = vld [vmem:[%s7905_s1 + $0x3e0] ss:$8 sps:$4 sm:$0xff]   ;;  %v6562_v32 = vld [vmem:[%s7905_s1 + $0x3f4] ss:$8 sps:$4 sm:$0xff]  }
 0x142   : > { %4165 = vmatprep.subr.bf16.mxu0 %v6435_v33  ;;  %v6438_v33 = vld [vmem:[%s6775_s24 + $0x30] ss:$56 sps:$4 sm:$0xff]  }
 0x145   : > { %4166 = vmatpush1.bf16.msra.mxu0 %v6433_v34  ;;  %v6441_v34 = vld [vmem:[%s6775_s24 + $0x390] ss:$56 sps:$4 sm:$0xff]  }
 0x147   : > { %3396 = vmatmul.mubr.bf16.vlgmr.msra.gmra.mrb[0].mxu1 %v6364_v35  ;;  %v6442_v35 = vld [vmem:[%s6775_s24 + $0x404] ss:$56 sps:$4 sm:$0xff]  }
 0x148   : > { %4055 = vmatmul.mubr.bf16.gmra.mrb[32].mxu0 %v6369_v36  ;;  %5435 = vmatpush1.bf16.msra.mxu1 %v6533_v39  ;;  %v6444_v36 = vld [vmem:[%s6775_s24 + $0xa4] ss:$56 sps:$4 sm:$0xff]   ;;  %v6447_v39 = vld [vmem:[%s6775_s24 + $0xa0] ss:$56 sps:$4 sm:$0xff]  }
 0x149   : > { %3405 = vmatprep.mubr.bf16.mxu1 %v6373_v37  ;;  %4064 = vmatprep.mubr.bf16.mxu0 %v6375_v38  ;;  %v6563_v37 = vld [vmem:[%s7905_s1 + $0x3f0] ss:$8 sps:$4 sm:$0xff]  }
 0x14a   : > { %5420 = vmatprep.subr.bf16.mxu1 %v6534_v40  ;;  %v6446_v38 = vld [vmem:[%s6775_s24 + $0x400] ss:$56 sps:$4 sm:$0xff]   ;;  %v6448_v40 = vld [vmem:[%s6775_s24 + $0x474] ss:$56 sps:$4 sm:$0xff]  }
 0x14c   : > { %5436 = vmatpush1.bf16.msra.mxu1 %v6535_v43  ;;  %v6453_v43 = vld [vmem:[%s6775_s24 + $0x110] ss:$56 sps:$4 sm:$0xff]  }
 0x14d   : > { %5421 = vmatprep.subr.bf16.mxu1 %v6536_v46  ;;  %v6458_v46 = vld [vmem:[%s6775_s24 + $0x4e0] ss:$56 sps:$4 sm:$0xff]  }
 0x14f   : > { %3406 = vmatmul.mubr.bf16.gmra.mrb[4].mxu1 %v6377_v41  ;;  %v6450_v41 = vld [vmem:[%s6775_s24 + $0x114] ss:$56 sps:$4 sm:$0xff]  }
 0x150   : > { %4065 = vmatmul.mubr.bf16.gmra.mrb[36].mxu0 %v6378_v42  ;;  %3415 = vmatprep.mubr.bf16.mxu1 %v6382_v44  ;;  %v6452_v42 = vld [vmem:[%s6775_s24 + $0x470] ss:$56 sps:$4 sm:$0xff]   ;;  %v6454_v44 = vld [vmem:[%s6775_s24 + $0x4e4] ss:$56 sps:$4 sm:$0xff]  }
 0x151   : > { %4074 = vmatprep.mubr.bf16.mxu0 %v6384_v45  ;;  %5437 = vmatpush1.bf16.msra.mxu1 %v6537_v47  ;;  %v6456_v45 = vld [vmem:[%s6775_s24 + $0x184] ss:$56 sps:$4 sm:$0xff]   ;;  %v6459_v47 = vld [vmem:[%s6775_s24 + $0x180] ss:$56 sps:$4 sm:$0xff]  }
 0x152   : > { %5422 = vmatprep.subr.bf16.mxu1 %v6538_v48  ;;  %v6460_v48 = vld [vmem:[%s6775_s24 + $0x554] ss:$56 sps:$4 sm:$0xff]  }
 0x155   : > { %5438 = vmatpush1.bf16.msra.mxu1 %v6539_v53  ;;  %v6468_v53 = vld [vmem:[%s6775_s24 + $0x264] ss:$56 sps:$4 sm:$0xff]  }
 0x156   : > { %5423 = vmatprep.subr.bf16.mxu1 %v6540_v54  ;;  %v6470_v54 = vld [vmem:[%s6775_s24 + $0x5c0] ss:$56 sps:$4 sm:$0xff]  }
 0x157   : > { %3416 = vmatmul.mubr.bf16.gmra.mrb[8].mxu1 %v6386_v49  ;;  %v6462_v49 = vld [vmem:[%s6775_s24 + $0x1f4] ss:$56 sps:$4 sm:$0xff]  }
 0x158   : > { %4075 = vmatmul.mubr.bf16.gmra.mrb[40].mxu0 %v6387_v50  ;;  %3425 = vmatprep.mubr.bf16.mxu1 %v6391_v51  ;;  %v6464_v50 = vld [vmem:[%s6775_s24 + $0x550] ss:$56 sps:$4 sm:$0xff]  }
 0x159   : > { %4084 = vmatprep.mubr.bf16.mxu0 %v6393_v52  ;;  %5439 = vmatpush1.bf16.msra.mxu1 %v6541_v55  ;;  %v6465_v51 = vld [vmem:[%s6775_s24 + $0x1f0] ss:$56 sps:$4 sm:$0xff]   ;;  %v6466_v52 = vld [vmem:[%s6775_s24 + $0x5c4] ss:$56 sps:$4 sm:$0xff]   ;;  %v6471_v55 = vld [vmem:[%s6775_s24 + $0x260] ss:$56 sps:$4 sm:$0xff]  }
 0x15a   : > { %5424 = vmatprep.subr.bf16.mxu1 %v6542_v56  ;;  %v6472_v56 = vld [vmem:[%s6775_s24 + $0x634] ss:$56 sps:$4 sm:$0xff]  }
 0x15d   : > { %5440 = vmatpush1.bf16.msra.mxu1 %v6543_v61  ;;  %v6480_v61 = vld [vmem:[%s6775_s24 + $0x344] ss:$56 sps:$4 sm:$0xff]  }
 0x15e   : > { %5425 = vmatprep.subr.bf16.mxu1 %v6544_v62  ;;  %v6482_v62 = vld [vmem:[%s6775_s24 + $0x6a0] ss:$56 sps:$4 sm:$0xff]  }
 0x15f   : > { %3426 = vmatmul.mubr.bf16.gmra.mrb[12].mxu1 %v6395_v57  ;;  %v6474_v57 = vld [vmem:[%s6775_s24 + $0x2d4] ss:$56 sps:$4 sm:$0xff]  }
 0x160   : > { %4085 = vmatmul.mubr.bf16.gmra.mrb[44].mxu0 %v6396_v58  ;;  %3435 = vmatprep.mubr.bf16.mxu1 %v6400_v59  ;;  %v6476_v58 = vld [vmem:[%s6775_s24 + $0x630] ss:$56 sps:$4 sm:$0xff]  }
 0x161   : > { %4094 = vmatprep.mubr.bf16.mxu0 %v6402_v60  ;;  %5441 = vmatpush1.bf16.msra.mxu1 %v6545_v63  ;;  %v6477_v59 = vld [vmem:[%s6775_s24 + $0x2d0] ss:$56 sps:$4 sm:$0xff]   ;;  %v6478_v60 = vld [vmem:[%s6775_s24 + $0x6a4] ss:$56 sps:$4 sm:$0xff]   ;;  %v6483_v63 = vld [vmem:[%s6775_s24 + $0x340] ss:$56 sps:$4 sm:$0xff]  }
 0x162   : > { %5426 = vmatprep.subr.bf16.mxu1 %v6546_v0  ;;  %v6486_v0 = vld [vmem:[%s6775_s24 + $0x39c] ss:$56 sps:$4 sm:$0xff]  }
 0x165   : > { %5442 = vmatpush1.bf16.msra.mxu1 %v6547_v5  ;;  %v6492_v5 = vld [vmem:[%s6775_s24 + $0x424] ss:$56 sps:$4 sm:$0xff]  }
 0x166   : > { %5427 = vmatprep.subr.bf16.mxu1 %v6548_v6  ;;  %v6494_v6 = vld [vmem:[%s6775_s24 + $0x408] ss:$56 sps:$4 sm:$0xff]  }
 0x167   : > { %3436 = vmatmul.mubr.bf16.gmra.mrb[16].mxu1 %v6404_v1  ;;  %v6487_v1 = vld [vmem:[%s6775_s24 + $0x3b4] ss:$56 sps:$4 sm:$0xff]  }
 0x168   : > { %4095 = vmatmul.mubr.bf16.gmra.mrb[48].mxu0 %v6405_v2  ;;  %3445 = vmatprep.mubr.bf16.mxu1 %v6409_v3  ;;  %v6484_v2 = vld [vmem:[%s6775_s24 + $0x398] ss:$56 sps:$4 sm:$0xff]  }
 0x169   : > { %4104 = vmatprep.mubr.bf16.mxu0 %v6411_v4  ;;  %5443 = vmatpush1.bf16.msra.mxu1 %v6549_v7  ;;  %v6489_v3 = vld [vmem:[%s6775_s24 + $0x3b0] ss:$56 sps:$4 sm:$0xff]   ;;  %v6490_v4 = vld [vmem:[%s6775_s24 + $0x40c] ss:$56 sps:$4 sm:$0xff]   ;;  %v6495_v7 = vld [vmem:[%s6775_s24 + $0x420] ss:$56 sps:$4 sm:$0xff]  }
 0x16a   : > { %5428 = vmatprep.subr.bf16.mxu1 %v6550_v8  ;;  %v6496_v8 = vld [vmem:[%s6775_s24 + $0x47c] ss:$56 sps:$4 sm:$0xff]  }
 0x16d   : > { %5444 = vmatpush1.bf16.msra.mxu1 %v6551_v13  ;;  %v6504_v13 = vld [vmem:[%s6775_s24 + $0x504] ss:$56 sps:$4 sm:$0xff]  }
 0x16e   : > { %5429 = vmatprep.subr.bf16.mxu1 %v6552_v14  ;;  %v6506_v14 = vld [vmem:[%s6775_s24 + $0x4e8] ss:$56 sps:$4 sm:$0xff]  }
 0x16f   : > { %3446 = vmatmul.mubr.bf16.gmra.mrb[20].mxu1 %v6413_v9  ;;  %v6498_v9 = vld [vmem:[%s6775_s24 + $0x494] ss:$56 sps:$4 sm:$0xff]  }
 0x170   : > { %4105 = vmatmul.mubr.bf16.gmra.mrb[52].mxu0 %v6414_v10  ;;  %3455 = vmatprep.mubr.bf16.mxu1 %v6418_v11  ;;  %v6500_v10 = vld [vmem:[%s6775_s24 + $0x478] ss:$56 sps:$4 sm:$0xff]  }
 0x171   : > { %4114 = vmatprep.mubr.bf16.mxu0 %v6420_v12  ;;  %5445 = vmatpush1.bf16.msra.mxu1 %v6553_v15  ;;  %v6501_v11 = vld [vmem:[%s6775_s24 + $0x490] ss:$56 sps:$4 sm:$0xff]   ;;  %v6502_v12 = vld [vmem:[%s6775_s24 + $0x4ec] ss:$56 sps:$4 sm:$0xff]   ;;  %v6507_v15 = vld [vmem:[%s6775_s24 + $0x500] ss:$56 sps:$4 sm:$0xff]  }
 0x172   : > { %5430 = vmatprep.subr.bf16.mxu1 %v6554_v16  ;;  %v6508_v16 = vld [vmem:[%s6775_s24 + $0x55c] ss:$56 sps:$4 sm:$0xff]  }
 0x175   : > { %5446 = vmatpush1.bf16.msra.mxu1 %v6555_v21  ;;  %v6516_v21 = vld [vmem:[%s6775_s24 + $0x5e4] ss:$56 sps:$4 sm:$0xff]  }
 0x176   : > { %5431 = vmatprep.subr.bf16.mxu1 %v6556_v22  ;;  %v6518_v22 = vld [vmem:[%s6775_s24 + $0x5c8] ss:$56 sps:$4 sm:$0xff]  }
 0x177   : > { %3456 = vmatmul.mubr.bf16.gmra.mrb[24].mxu1 %v6422_v17  ;;  %v6510_v17 = vld [vmem:[%s6775_s24 + $0x574] ss:$56 sps:$4 sm:$0xff]  }
 0x178   : > { %4115 = vmatmul.mubr.bf16.gmra.mrb[56].mxu0 %v6423_v18  ;;  %3465 = vmatprep.mubr.bf16.mxu1 %v6427_v19  ;;  %v6512_v18 = vld [vmem:[%s6775_s24 + $0x558] ss:$56 sps:$4 sm:$0xff]  }
 0x179   : > { %4124 = vmatprep.mubr.bf16.mxu0 %v6429_v20  ;;  %5447 = vmatpush1.bf16.msra.mxu1 %v6557_v23  ;;  %v6513_v19 = vld [vmem:[%s6775_s24 + $0x570] ss:$56 sps:$4 sm:$0xff]   ;;  %v6514_v20 = vld [vmem:[%s6775_s24 + $0x5cc] ss:$56 sps:$4 sm:$0xff]   ;;  %v6519_v23 = vld [vmem:[%s6775_s24 + $0x5e0] ss:$56 sps:$4 sm:$0xff]  }
 0x17a   : > { %5432 = vmatprep.subr.bf16.mxu1 %v6558_v24  ;;  %v6520_v24 = vld [vmem:[%s6775_s24 + $0x63c] ss:$56 sps:$4 sm:$0xff]  }
 0x17d   : > { %5448 = vmatpush1.bf16.msra.mxu1 %v6559_v29  ;;  %v6528_v29 = vld [vmem:[%s6775_s24 + $0x6c4] ss:$56 sps:$4 sm:$0xff]  }
 0x17e   : > { %5433 = vmatprep.subr.bf16.mxu1 %v6560_v30  ;;  %v6530_v30 = vld [vmem:[%s6775_s24 + $0x6a8] ss:$56 sps:$4 sm:$0xff]  }
 0x17f   : > { %3466 = vmatmul.mubr.bf16.gmra.mrb[28].mxu1 %v6431_v25  ;;  %v6522_v25 = vld [vmem:[%s6775_s24 + $0x654] ss:$56 sps:$4 sm:$0xff]  }
 0x180   : > { %4125 = vmatmul.mubr.bf16.gmra.mrb[60].mxu0 %v6432_v26  ;;  %3475 = vmatprep.mubr.bf16.mxu1 %v6436_v27  ;;  %v6524_v26 = vld [vmem:[%s6775_s24 + $0x638] ss:$56 sps:$4 sm:$0xff]  }
 0x181   : > { %4167 = vmatprep.mubr.bf16.mxu0 %v6440_v28  ;;  %5449 = vmatpush1.bf16.msra.mxu1 %v6561_v31  ;;  %v6525_v27 = vld [vmem:[%s6775_s24 + $0x650] ss:$56 sps:$4 sm:$0xff]   ;;  %v6526_v28 = vld [vmem:[%s6775_s24 + $0x6ac] ss:$56 sps:$4 sm:$0xff]   ;;  %v6531_v31 = vld [vmem:[%s6775_s24 + $0x6c0] ss:$56 sps:$4 sm:$0xff]  }
 0x182   : > { %5434 = vmatprep.subr.bf16.mxu1 %v6562_v32 }
 0x185   : > { %5450 = vmatpush1.bf16.msra.mxu1 %v6563_v37 }
 0x187   : > { %3476 = vmatmul.mubr.bf16.gmra.mrb[32].mxu1 %v6441_v34 }
 0x188   : > { %4168 = vmatmul.mubr.bf16.vlgmr.msra.gmra.mrb[0].mxu0 %v6438_v33  ;;  %3485 = vmatprep.mubr.bf16.mxu1 %v6442_v35 }
 0x189   : > { %4177 = vmatprep.mubr.bf16.mxu0 %v6444_v36 }
 0x18f   : > { %3486 = vmatmul.mubr.bf16.gmra.mrb[36].mxu1 %v6446_v38 }
 0x190   : > { %4178 = vmatmul.mubr.bf16.gmra.mrb[4].mxu0 %v6447_v39  ;;  %3495 = vmatprep.mubr.bf16.mxu1 %v6448_v40 }
 0x191   : > { %4187 = vmatprep.mubr.bf16.mxu0 %v6450_v41 }
 0x197   : > { %3496 = vmatmul.mubr.bf16.gmra.mrb[40].mxu1 %v6452_v42 }
 0x198   : > { %4188 = vmatmul.mubr.bf16.gmra.mrb[8].mxu0 %v6453_v43  ;;  %3505 = vmatprep.mubr.bf16.mxu1 %v6454_v44 }
 0x199   : > { %4197 = vmatprep.mubr.bf16.mxu0 %v6456_v45 }
 0x19f   : > { %3506 = vmatmul.mubr.bf16.gmra.mrb[44].mxu1 %v6458_v46 }
 0x1a0   : > { %4198 = vmatmul.mubr.bf16.gmra.mrb[12].mxu0 %v6459_v47  ;;  %3515 = vmatprep.mubr.bf16.mxu1 %v6460_v48 }
 0x1a1   : > { %4207 = vmatprep.mubr.bf16.mxu0 %v6462_v49 }
 0x1a7   : > { %3516 = vmatmul.mubr.bf16.gmra.mrb[48].mxu1 %v6464_v50 }
 0x1a8   : > { %4208 = vmatmul.mubr.bf16.gmra.mrb[16].mxu0 %v6465_v51  ;;  %3525 = vmatprep.mubr.bf16.mxu1 %v6466_v52 }
 0x1a9   : > { %4217 = vmatprep.mubr.bf16.mxu0 %v6468_v53 }
 0x1af   : > { %3526 = vmatmul.mubr.bf16.gmra.mrb[52].mxu1 %v6470_v54 }
 0x1b0   : > { %4218 = vmatmul.mubr.bf16.gmra.mrb[20].mxu0 %v6471_v55  ;;  %3535 = vmatprep.mubr.bf16.mxu1 %v6472_v56 }
 0x1b1   : > { %4227 = vmatprep.mubr.bf16.mxu0 %v6474_v57 }
 0x1b7   : > { %3536 = vmatmul.mubr.bf16.gmra.mrb[56].mxu1 %v6476_v58 }
 0x1b8   : > { %4228 = vmatmul.mubr.bf16.gmra.mrb[24].mxu0 %v6477_v59  ;;  %3545 = vmatprep.mubr.bf16.mxu1 %v6478_v60  ;;  %v4330_v60 = vlaneseq }
 0x1b9   : > { %4237 = vmatprep.mubr.bf16.mxu0 %v6480_v61 }
 0x1ba   : > { %v4331_v61 = vshrl.u32 %v4330_v60, 7 }
 0x1bf   : > { %3546 = vmatmul.mubr.bf16.gmra.mrb[60].mxu1 %v6482_v62 }
 0x1c0   : > { %4238 = vmatmul.mubr.bf16.gmra.mrb[28].mxu0 %v6483_v63  ;;  %3668 = vmatprep.mubr.bf16.mxu1 %v6486_v0 }
 0x1c1   : > { %4247 = vmatprep.mubr.bf16.mxu0 %v6487_v1 }
 0x1c7   : > { %3669 = vmatmul.mubr.bf16.vlgmr.msra.gmra.mrb[32].mxu1 %v6484_v2  ;;  %v4332_v2 = vsub.s32 0, %v4331_v61 }
 0x1c8   : > { %4248 = vmatmul.mubr.bf16.gmra.mrb[32].mxu0 %v6489_v3  ;;  %3678 = vmatprep.mubr.bf16.mxu1 %v6490_v4  ;;  %v4328_v3 = vld [vmem:[%s7906_s2] sm:$0x3]  ;;  %v4336_v4 = vsub.s32 1, %v4331_v61 }
 0x1c9   : > { %4257 = vmatprep.mubr.bf16.mxu0 %v6492_v5  ;;  %v4404_v5 = vld [vmem:[%s7907_s3] sm:$0x3] }
 0x1cf   : > { %3679 = vmatmul.mubr.bf16.gmra.mrb[36].mxu1 %v6494_v6  ;;  %v7694_v6 = vrot.slane %v4328_v3, %v4332_v2 }
 0x1d0   : > { %4258 = vmatmul.mubr.bf16.gmra.mrb[36].mxu0 %v6495_v7  ;;  %3688 = vmatprep.mubr.bf16.mxu1 %v6496_v8  ;;  %v7696_v8 = vrot.slane %v4328_v3, %v4336_v4 }
 0x1d1   : > { %4267 = vmatprep.mubr.bf16.mxu0 %v6498_v9 }
 0x1d7   : > { %3689 = vmatmul.mubr.bf16.gmra.mrb[40].mxu1 %v6500_v10  ;;  %v7698_v10 = vrot.slane %v4404_v5, %v4332_v2 }
 0x1d8   : > { %4268 = vmatmul.mubr.bf16.gmra.mrb[40].mxu0 %v6501_v11  ;;  %3698 = vmatprep.mubr.bf16.mxu1 %v6502_v12 }
 0x1d9   : > { %4277 = vmatprep.mubr.bf16.mxu0 %v6504_v13  ;;  %v7700_v13 = vrot.slane %v4404_v5, %v4336_v4 }
 0x1df   : > { %3699 = vmatmul.mubr.bf16.gmra.mrb[44].mxu1 %v6506_v14 }
 0x1e0   : > { %4278 = vmatmul.mubr.bf16.gmra.mrb[44].mxu0 %v6507_v15  ;;  %3708 = vmatprep.mubr.bf16.mxu1 %v6508_v16 }
 0x1e1   : > { %4287 = vmatprep.mubr.bf16.mxu0 %v6510_v17 }
 0x1e7   : > { %3709 = vmatmul.mubr.bf16.gmra.mrb[48].mxu1 %v6512_v18 }
 0x1e8   : > { %4288 = vmatmul.mubr.bf16.gmra.mrb[48].mxu0 %v6513_v19  ;;  %3718 = vmatprep.mubr.bf16.mxu1 %v6514_v20 }
 0x1e9   : > { %4297 = vmatprep.mubr.bf16.mxu0 %v6516_v21 }
 0x1ef   : > { %3719 = vmatmul.mubr.bf16.gmra.mrb[52].mxu1 %v6518_v22 }
 0x1f0   : > { %4298 = vmatmul.mubr.bf16.gmra.mrb[52].mxu0 %v6519_v23  ;;  %3728 = vmatprep.mubr.bf16.mxu1 %v6520_v24 }
 0x1f1   : > { %4307 = vmatprep.mubr.bf16.mxu0 %v6522_v25 }
 0x1f7   : > { %3729 = vmatmul.mubr.bf16.gmra.mrb[56].mxu1 %v6524_v26 }
 0x1f8   : > { %4308 = vmatmul.mubr.bf16.gmra.mrb[56].mxu0 %v6525_v27  ;;  %3738 = vmatprep.mubr.bf16.mxu1 %v6526_v28 }
 0x1f9   : > { %4317 = vmatprep.mubr.bf16.mxu0 %v6528_v29 }
 0x1ff   : > { %3739 = vmatmul.mubr.bf16.gmra.mrb[60].mxu1 %v6530_v30 }
 0x200   : > { %4318 = vmatmul.mubr.bf16.gmra.mrb[60].mxu0 %v6531_v31 }
 0x21a   : > { %v3397_v32 = vpop.f32.mrb[0].mxu1 }
 0x21b   : > { %v3399_v33 = vpop.f32.mrb[1].mxu1 }
 0x21c   : > { %v3401_v34 = vpop.f32.mrb[2].mxu1 }
 0x21d   : > { %v3403_v35 = vpop.f32.mrb[3].mxu1 }
 0x222   : > { %v3407_v36 = vpop.f32.mrb[4].mxu1 }
 0x223   : > { %v7634_v37 = vpop.f32.mrb[5].mxu1 }
 0x224   : > { %v7636_v38 = vpop.f32.mrb[6].mxu1 }
 0x225   : > { %v7638_v39 = vpop.f32.mrb[7].mxu1 }
 0x22a   : > { %v7640_v40 = vpop.f32.mrb[8].mxu1 }
 0x22b   : > { %v7642_v41 = vpop.f32.mrb[9].mxu1 }
 0x22c   : > { %v7644_v42 = vpop.f32.mrb[10].mxu1 }
 0x22d   : > { %v7646_v43 = vpop.f32.mrb[11].mxu1 }
 0x232   : > { %v7648_v44 = vpop.f32.mrb[12].mxu1 }
 0x233   : > { %v7650_v45 = vpop.f32.mrb[13].mxu1 }
 0x234   : > { %v7652_v46 = vpop.f32.mrb[14].mxu1 }
 0x235   : > { %v7654_v47 = vpop.f32.mrb[15].mxu1 }
 0x23a   : > { %v7656_v48 = vpop.f32.mrb[16].mxu1 }
 0x23b   : > { %v7658_v49 = vpop.f32.mrb[17].mxu1 }
 0x23c   : > { %v7660_v50 = vpop.f32.mrb[18].mxu1 }
 0x23d   : > { %v7662_v51 = vpop.f32.mrb[19].mxu1 }
 0x242   : > { %v7664_v52 = vpop.f32.mrb[20].mxu1 }
 0x243   : > { %v7666_v53 = vpop.f32.mrb[21].mxu1 }
 0x244   : > { %v7668_v54 = vpop.f32.mrb[22].mxu1 }
 0x245   : > { %v7670_v55 = vpop.f32.mrb[23].mxu1 }
 0x24a   : > { %v7672_v56 = vpop.f32.mrb[24].mxu1 }
 0x24b   : > { %v7674_v57 = vpop.f32.mrb[25].mxu1 }
 0x24c   : > { %v7676_v58 = vpop.f32.mrb[26].mxu1 }
 0x24d   : > { %v7678_v59 = vpop.f32.mrb[27].mxu1 }
 0x252   : > { %v7680_v62 = vpop.f32.mrb[28].mxu1 }
 0x253   : > { %v7682_v63 = vpop.f32.mrb[29].mxu1 }
 0x254   : > { %v7684_v0 = vpop.f32.mrb[30].mxu1 }
 0x255   : > { %v7686_v1 = vpop.f32.mrb[31].mxu1 }
 0x25b   : > { %v4169_v7 = vpop.f32.mrb[0].mxu0 }
 0x25c   : > { %v5451_v9 = vadd.f32 %v4169_v7, %v3397_v32  ;;  %v4171_v11 = vpop.f32.mrb[1].mxu0 }
 0x25d   : > { %v5452_v12 = vadd.f32 %v4171_v11, %v3399_v33  ;;  %v4173_v14 = vpop.f32.mrb[2].mxu0 }
 0x25e   : > { %v4340_v15 = vmul.f32 %v5451_v9, %v7694_v6  ;;  %v5453_v16 = vadd.f32 %v4173_v14, %v3401_v34  ;;  %v4175_v17 = vpop.f32.mrb[3].mxu0 }
 0x25f   : > { %v4341_v18 = vmul.f32 %v5452_v12, %v7696_v8  ;;  %v5454_v19 = vadd.f32 %v4175_v17, %v3403_v35 }
 0x260   : > { %v4416_v20 = vadd.f32 %v7698_v10, %v4340_v15  ;;  %v4342_v21 = vmul.f32 %v5453_v16, %v7694_v6 }
 0x261   : > { %v4417_v22 = vadd.f32 %v7700_v13, %v4341_v18  ;;  %v4343_v23 = vmul.f32 %v5454_v19, %v7696_v8 }
 0x262   : > { %v4480_v24 = vmax.f32 %v4416_v20, 0.0  ;;  %v4418_v25 = vadd.f32 %v7698_v10, %v4342_v21 }
 0x263   : > { %v4481_v26 = vmax.f32 %v4417_v22, 0.0  ;;  %v4419_v27 = vadd.f32 %v7700_v13, %v4343_v23  ;;  %v4179_v28 = vpop.f32.mrb[4].mxu0 }
 0x264   : > { %v4482_v29 = vmax.f32 %v4418_v25, 0.0  ;;  %v5455_v30 = vadd.f32 %v4179_v28, %v3407_v36  ;;  %v4181_v31 = vpop.f32.mrb[5].mxu0 }
 0x265   : > { %v5387_v32 = vpack.c.bf16 %v4481_v26, %v4480_v24  ;;  %v4483_v33 = vmax.f32 %v4419_v27, 0.0  ;;  %v5456_v34 = vadd.f32 %v4181_v31, %v7634_v37  ;;  %v4183_v35 = vpop.f32.mrb[6].mxu0 }
 0x266   : > { %v4344_v60 = vmul.f32 %v5455_v30, %v7694_v6  ;;  %v5457_v61 = vadd.f32 %v4183_v35, %v7636_v38  ;;  %v4185_v2 = vpop.f32.mrb[7].mxu0 }
 0x267   : > { %4736 = vst [vmem:[%s7714_s7] sm:$0xff] %v5387_v32  ;;  %v5388_v3 = vpack.c.bf16 %v4483_v33, %v4482_v29  ;;  %v4345_v4 = vmul.f32 %v5456_v34, %v7696_v8  ;;  %v5458_v5 = vadd.f32 %v4185_v2, %v7638_v39 }
 0x268   : > { %v4420_v7 = vadd.f32 %v7698_v10, %v4344_v60  ;;  %v4346_v36 = vmul.f32 %v5457_v61, %v7694_v6 }
 0x269   : > { %4737 = vst [vmem:[%s7714_s7 + $0x8] sm:$0xff] %v5388_v3  ;;  %v4421_v9 = vadd.f32 %v7700_v13, %v4345_v4  ;;  %v4347_v37 = vmul.f32 %v5458_v5, %v7696_v8 }
 0x26a   : > { %v4484_v11 = vmax.f32 %v4420_v7, 0.0  ;;  %v4422_v38 = vadd.f32 %v7698_v10, %v4346_v36 }
 0x26b   : > { %v4485_v12 = vmax.f32 %v4421_v9, 0.0  ;;  %v4423_v14 = vadd.f32 %v7700_v13, %v4347_v37  ;;  %v4189_v15 = vpop.f32.mrb[8].mxu0 }
 0x26c   : > { %v4486_v16 = vmax.f32 %v4422_v38, 0.0  ;;  %v5459_v39 = vadd.f32 %v4189_v15, %v7640_v40  ;;  %v4191_v17 = vpop.f32.mrb[9].mxu0 }
 0x26d   : > { %v5389_v18 = vpack.c.bf16 %v4485_v12, %v4484_v11  ;;  %v4487_v19 = vmax.f32 %v4423_v14, 0.0  ;;  %v5460_v20 = vadd.f32 %v4191_v17, %v7642_v41  ;;  %v4193_v21 = vpop.f32.mrb[10].mxu0 }
 0x26e   : > { %v4348_v22 = vmul.f32 %v5459_v39, %v7694_v6  ;;  %v5461_v23 = vadd.f32 %v4193_v21, %v7644_v42  ;;  %v4195_v24 = vpop.f32.mrb[11].mxu0 }
 0x26f   : > { %4738 = vst [vmem:[%s7714_s7 + $0x10] sm:$0xff] %v5389_v18  ;;  %v5390_v25 = vpack.c.bf16 %v4487_v19, %v4486_v16  ;;  %v4349_v26 = vmul.f32 %v5460_v20, %v7696_v8  ;;  %v5462_v27 = vadd.f32 %v4195_v24, %v7646_v43 }
 0x270   : > { %v4424_v28 = vadd.f32 %v7698_v10, %v4348_v22  ;;  %v4350_v40 = vmul.f32 %v5461_v23, %v7694_v6 }
 0x271   : > { %4739 = vst [vmem:[%s7714_s7 + $0x18] sm:$0xff] %v5390_v25  ;;  %v4425_v29 = vadd.f32 %v7700_v13, %v4349_v26  ;;  %v4351_v41 = vmul.f32 %v5462_v27, %v7696_v8 }
 0x272   : > { %v4488_v30 = vmax.f32 %v4424_v28, 0.0  ;;  %v4426_v42 = vadd.f32 %v7698_v10, %v4350_v40 }
 0x273   : > { %v4489_v31 = vmax.f32 %v4425_v29, 0.0  ;;  %v4427_v32 = vadd.f32 %v7700_v13, %v4351_v41  ;;  %v4199_v33 = vpop.f32.mrb[12].mxu0 }
 0x274   : > { %v4490_v34 = vmax.f32 %v4426_v42, 0.0  ;;  %v5463_v43 = vadd.f32 %v4199_v33, %v7648_v44  ;;  %v4201_v35 = vpop.f32.mrb[13].mxu0 }
 0x275   : > { %v5391_v60 = vpack.c.bf16 %v4489_v31, %v4488_v30  ;;  %v4491_v61 = vmax.f32 %v4427_v32, 0.0  ;;  %v5464_v2 = vadd.f32 %v4201_v35, %v7650_v45  ;;  %v4203_v3 = vpop.f32.mrb[14].mxu0 }
 0x276   : > { %v4352_v4 = vmul.f32 %v5463_v43, %v7694_v6  ;;  %v5465_v5 = vadd.f32 %v4203_v3, %v7652_v46  ;;  %v4205_v7 = vpop.f32.mrb[15].mxu0 }
 0x277   : > { %4740 = vst [vmem:[%s7714_s7 + $0x20] sm:$0xff] %v5391_v60  ;;  %v5392_v36 = vpack.c.bf16 %v4491_v61, %v4490_v34  ;;  %v4353_v9 = vmul.f32 %v5464_v2, %v7696_v8  ;;  %v5466_v37 = vadd.f32 %v4205_v7, %v7654_v47 }
 0x278   : > { %v4428_v11 = vadd.f32 %v7698_v10, %v4352_v4  ;;  %v4354_v44 = vmul.f32 %v5465_v5, %v7694_v6 }
 0x279   : > { %4741 = vst [vmem:[%s7714_s7 + $0x28] sm:$0xff] %v5392_v36  ;;  %v4429_v38 = vadd.f32 %v7700_v13, %v4353_v9  ;;  %v4355_v45 = vmul.f32 %v5466_v37, %v7696_v8 }
 0x27a   : > { %v4492_v12 = vmax.f32 %v4428_v11, 0.0  ;;  %v4430_v46 = vadd.f32 %v7698_v10, %v4354_v44 }
 0x27b   : > { %v4493_v14 = vmax.f32 %v4429_v38, 0.0  ;;  %v4431_v15 = vadd.f32 %v7700_v13, %v4355_v45  ;;  %v4209_v16 = vpop.f32.mrb[16].mxu0 }
 0x27c   : > { %v4494_v39 = vmax.f32 %v4430_v46, 0.0  ;;  %v5467_v47 = vadd.f32 %v4209_v16, %v7656_v48  ;;  %v4211_v17 = vpop.f32.mrb[17].mxu0 }
 0x27d   : > { %v5393_v18 = vpack.c.bf16 %v4493_v14, %v4492_v12  ;;  %v4495_v19 = vmax.f32 %v4431_v15, 0.0  ;;  %v5468_v20 = vadd.f32 %v4211_v17, %v7658_v49  ;;  %v4213_v21 = vpop.f32.mrb[18].mxu0 }
 0x27e   : > { %v4356_v22 = vmul.f32 %v5467_v47, %v7694_v6  ;;  %v5469_v23 = vadd.f32 %v4213_v21, %v7660_v50  ;;  %v4215_v24 = vpop.f32.mrb[19].mxu0 }
 0x27f   : > { %4742 = vst [vmem:[%s7714_s7 + $0x30] sm:$0xff] %v5393_v18  ;;  %v5394_v25 = vpack.c.bf16 %v4495_v19, %v4494_v39  ;;  %v4357_v26 = vmul.f32 %v5468_v20, %v7696_v8  ;;  %v5470_v27 = vadd.f32 %v4215_v24, %v7662_v51 }
 0x280   : > { %v4432_v28 = vadd.f32 %v7698_v10, %v4356_v22  ;;  %v4358_v48 = vmul.f32 %v5469_v23, %v7694_v6 }
 0x281   : > { %4743 = vst [vmem:[%s7714_s7 + $0x38] sm:$0xff] %v5394_v25  ;;  %v4433_v40 = vadd.f32 %v7700_v13, %v4357_v26  ;;  %v4359_v49 = vmul.f32 %v5470_v27, %v7696_v8 }
 0x282   : > { %v4496_v29 = vmax.f32 %v4432_v28, 0.0  ;;  %v4434_v50 = vadd.f32 %v7698_v10, %v4358_v48 }
 0x283   : > { %v4497_v41 = vmax.f32 %v4433_v40, 0.0  ;;  %v4435_v30 = vadd.f32 %v7700_v13, %v4359_v49  ;;  %v4219_v42 = vpop.f32.mrb[20].mxu0 }
 0x284   : > { %v4498_v31 = vmax.f32 %v4434_v50, 0.0  ;;  %v5471_v51 = vadd.f32 %v4219_v42, %v7664_v52  ;;  %v4221_v32 = vpop.f32.mrb[21].mxu0 }
 0x285   : > { %v5395_v33 = vpack.c.bf16 %v4497_v41, %v4496_v29  ;;  %v4499_v34 = vmax.f32 %v4435_v30, 0.0  ;;  %v5472_v43 = vadd.f32 %v4221_v32, %v7666_v53  ;;  %v4223_v35 = vpop.f32.mrb[22].mxu0 }
 0x286   : > { %v4360_v60 = vmul.f32 %v5471_v51, %v7694_v6  ;;  %v5473_v61 = vadd.f32 %v4223_v35, %v7668_v54  ;;  %v4225_v2 = vpop.f32.mrb[23].mxu0 }
 0x287   : > { %4744 = vst [vmem:[%s7714_s7 + $0x40] sm:$0xff] %v5395_v33  ;;  %v5396_v3 = vpack.c.bf16 %v4499_v34, %v4498_v31  ;;  %v4361_v4 = vmul.f32 %v5472_v43, %v7696_v8  ;;  %v5474_v5 = vadd.f32 %v4225_v2, %v7670_v55 }
 0x288   : > { %v4436_v7 = vadd.f32 %v7698_v10, %v4360_v60  ;;  %v4362_v52 = vmul.f32 %v5473_v61, %v7694_v6 }
 0x289   : > { %4745 = vst [vmem:[%s7714_s7 + $0x48] sm:$0xff] %v5396_v3  ;;  %v4437_v36 = vadd.f32 %v7700_v13, %v4361_v4  ;;  %v4363_v53 = vmul.f32 %v5474_v5, %v7696_v8 }
 0x28a   : > { %v4500_v9 = vmax.f32 %v4436_v7, 0.0  ;;  %v4438_v54 = vadd.f32 %v7698_v10, %v4362_v52 }
 0x28b   : > { %v4501_v37 = vmax.f32 %v4437_v36, 0.0  ;;  %v4439_v11 = vadd.f32 %v7700_v13, %v4363_v53  ;;  %v4229_v44 = vpop.f32.mrb[24].mxu0 }
 0x28c   : > { %v4502_v38 = vmax.f32 %v4438_v54, 0.0  ;;  %v5475_v55 = vadd.f32 %v4229_v44, %v7672_v56  ;;  %v4231_v45 = vpop.f32.mrb[25].mxu0 }
 0x28d   : > { %v5397_v12 = vpack.c.bf16 %v4501_v37, %v4500_v9  ;;  %v4503_v46 = vmax.f32 %v4439_v11, 0.0  ;;  %v5476_v14 = vadd.f32 %v4231_v45, %v7674_v57  ;;  %v4233_v15 = vpop.f32.mrb[26].mxu0 }
 0x28e   : > { %v4364_v16 = vmul.f32 %v5475_v55, %v7694_v6  ;;  %v5477_v39 = vadd.f32 %v4233_v15, %v7676_v58  ;;  %v4235_v47 = vpop.f32.mrb[27].mxu0 }
 0x28f   : > { %4746 = vst [vmem:[%s7714_s7 + $0x50] sm:$0xff] %v5397_v12  ;;  %v5398_v17 = vpack.c.bf16 %v4503_v46, %v4502_v38  ;;  %v4365_v18 = vmul.f32 %v5476_v14, %v7696_v8  ;;  %v5478_v19 = vadd.f32 %v4235_v47, %v7678_v59 }
 0x290   : > { %v4440_v20 = vadd.f32 %v7698_v10, %v4364_v16  ;;  %v4366_v56 = vmul.f32 %v5477_v39, %v7694_v6 }
 0x291   : > { %4747 = vst [vmem:[%s7714_s7 + $0x58] sm:$0xff] %v5398_v17  ;;  %v4441_v21 = vadd.f32 %v7700_v13, %v4365_v18  ;;  %v4367_v57 = vmul.f32 %v5478_v19, %v7696_v8 }
 0x292   : > { %v4504_v22 = vmax.f32 %v4440_v20, 0.0  ;;  %v4442_v58 = vadd.f32 %v7698_v10, %v4366_v56 }
 0x293   : > { %v4505_v23 = vmax.f32 %v4441_v21, 0.0  ;;  %v4443_v24 = vadd.f32 %v7700_v13, %v4367_v57  ;;  %v4239_v25 = vpop.f32.mrb[28].mxu0 }
 0x294   : > { %v4506_v26 = vmax.f32 %v4442_v58, 0.0  ;;  %v5479_v59 = vadd.f32 %v4239_v25, %v7680_v62  ;;  %v4241_v27 = vpop.f32.mrb[29].mxu0 }
 0x295   : > { %v5399_v28 = vpack.c.bf16 %v4505_v23, %v4504_v22  ;;  %v4507_v48 = vmax.f32 %v4443_v24, 0.0  ;;  %v5480_v40 = vadd.f32 %v4241_v27, %v7682_v63  ;;  %v4243_v49 = vpop.f32.mrb[30].mxu0 }
 0x296   : > { %v4368_v29 = vmul.f32 %v5479_v59, %v7694_v6  ;;  %v5481_v50 = vadd.f32 %v4243_v49, %v7684_v0  ;;  %v4245_v41 = vpop.f32.mrb[31].mxu0 }
 0x297   : > { %4748 = vst [vmem:[%s7714_s7 + $0x60] sm:$0xff] %v5399_v28  ;;  %v5400_v30 = vpack.c.bf16 %v4507_v48, %v4506_v26  ;;  %v4369_v42 = vmul.f32 %v5480_v40, %v7696_v8  ;;  %v5482_v31 = vadd.f32 %v4245_v41, %v7686_v1 }
 0x298   : > { %v4444_v51 = vadd.f32 %v7698_v10, %v4368_v29  ;;  %v4370_v62 = vmul.f32 %v5481_v50, %v7694_v6 }
 0x299   : > { %4749 = vst [vmem:[%s7714_s7 + $0x68] sm:$0xff] %v5400_v30  ;;  %v4445_v32 = vadd.f32 %v7700_v13, %v4369_v42  ;;  %v4371_v63 = vmul.f32 %v5482_v31, %v7696_v8 }
 0x29a   : > { %v4508_v33 = vmax.f32 %v4444_v51, 0.0  ;;  %v4446_v34 = vadd.f32 %v7698_v10, %v4370_v62  ;;  %v3670_v35 = vpop.f32.mrb[32].mxu1 }
 0x29b   : > { %v4509_v0 = vmax.f32 %v4445_v32, 0.0  ;;  %v4447_v43 = vadd.f32 %v7700_v13, %v4371_v63  ;;  %v4249_v60 = vpop.f32.mrb[32].mxu0  ;;  %v3672_v2 = vpop.f32.mrb[33].mxu1 }
 0x29c   : > { %v4510_v61 = vmax.f32 %v4446_v34, 0.0  ;;  %v5483_v1 = vadd.f32 %v4249_v60, %v3670_v35  ;;  %v4251_v3 = vpop.f32.mrb[33].mxu0  ;;  %v3674_v52 = vpop.f32.mrb[34].mxu1 }
 0x29d   : > { %v5401_v4 = vpack.c.bf16 %v4509_v0, %v4508_v33  ;;  %v4511_v5 = vmax.f32 %v4447_v43, 0.0  ;;  %v5484_v7 = vadd.f32 %v4251_v3, %v3672_v2  ;;  %v4253_v36 = vpop.f32.mrb[34].mxu0  ;;  %v3676_v54 = vpop.f32.mrb[35].mxu1 }
 0x29e   : > { %v4372_v53 = vmul.f32 %v5483_v1, %v7694_v6  ;;  %v5485_v9 = vadd.f32 %v4253_v36, %v3674_v52  ;;  %v4255_v37 = vpop.f32.mrb[35].mxu0 }
 0x29f   : > { %4750 = vst [vmem:[%s7714_s7 + $0x70] sm:$0xff] %v5401_v4  ;;  %v5402_v11 = vpack.c.bf16 %v4511_v5, %v4510_v61  ;;  %v4373_v44 = vmul.f32 %v5484_v7, %v7696_v8  ;;  %v5486_v38 = vadd.f32 %v4255_v37, %v3676_v54 }
 0x2a0   : > { %v4448_v55 = vadd.f32 %v7698_v10, %v4372_v53  ;;  %v4374_v45 = vmul.f32 %v5485_v9, %v7694_v6 }
 0x2a1   : > { %4751 = vst [vmem:[%s7714_s7 + $0x78] sm:$0xff] %v5402_v11  ;;  %v4449_v12 = vadd.f32 %v7700_v13, %v4373_v44  ;;  %v4375_v46 = vmul.f32 %v5486_v38, %v7696_v8 }
 0x2a2   : > { %v4512_v14 = vmax.f32 %v4448_v55, 0.0  ;;  %v4450_v15 = vadd.f32 %v7698_v10, %v4374_v45  ;;  %v3680_v47 = vpop.f32.mrb[36].mxu1 }
 0x2a3   : > { %v4513_v16 = vmax.f32 %v4449_v12, 0.0  ;;  %v4451_v39 = vadd.f32 %v7700_v13, %v4375_v46  ;;  %v4259_v17 = vpop.f32.mrb[36].mxu0  ;;  %v3682_v20 = vpop.f32.mrb[37].mxu1 }
 0x2a4   : > { %v4514_v18 = vmax.f32 %v4450_v15, 0.0  ;;  %v5487_v19 = vadd.f32 %v4259_v17, %v3680_v47  ;;  %v4261_v56 = vpop.f32.mrb[37].mxu0  ;;  %v3684_v58 = vpop.f32.mrb[38].mxu1 }
 0x2a5   : > { %v5403_v21 = vpack.c.bf16 %v4513_v16, %v4512_v14  ;;  %v4515_v57 = vmax.f32 %v4451_v39, 0.0  ;;  %v5488_v22 = vadd.f32 %v4261_v56, %v3682_v20  ;;  %v4263_v23 = vpop.f32.mrb[38].mxu0  ;;  %v3686_v26 = vpop.f32.mrb[39].mxu1 }
 0x2a6   : > { %v4376_v24 = vmul.f32 %v5487_v19, %v7694_v6  ;;  %v5489_v25 = vadd.f32 %v4263_v23, %v3684_v58  ;;  %v4265_v59 = vpop.f32.mrb[39].mxu0 }
 0x2a7   : > { %4752 = vst [vmem:[%s7714_s7 + $0x80] sm:$0xff] %v5403_v21  ;;  %v5404_v27 = vpack.c.bf16 %v4515_v57, %v4514_v18  ;;  %v4377_v28 = vmul.f32 %v5488_v22, %v7696_v8  ;;  %v5490_v48 = vadd.f32 %v4265_v59, %v3686_v26 }
 0x2a8   : > { %v4452_v40 = vadd.f32 %v7698_v10, %v4376_v24  ;;  %v4378_v49 = vmul.f32 %v5489_v25, %v7694_v6 }
 0x2a9   : > { %4753 = vst [vmem:[%s7714_s7 + $0x88] sm:$0xff] %v5404_v27  ;;  %v4453_v29 = vadd.f32 %v7700_v13, %v4377_v28  ;;  %v4379_v50 = vmul.f32 %v5490_v48, %v7696_v8 }
 0x2aa   : > { %v4516_v41 = vmax.f32 %v4452_v40, 0.0  ;;  %v4454_v30 = vadd.f32 %v7698_v10, %v4378_v49  ;;  %v3690_v51 = vpop.f32.mrb[40].mxu1 }
 0x2ab   : > { %v4517_v42 = vmax.f32 %v4453_v29, 0.0  ;;  %v4455_v31 = vadd.f32 %v7700_v13, %v4379_v50  ;;  %v4269_v62 = vpop.f32.mrb[40].mxu0  ;;  %v3692_v33 = vpop.f32.mrb[41].mxu1 }
 0x2ac   : > { %v4518_v32 = vmax.f32 %v4454_v30, 0.0  ;;  %v5491_v63 = vadd.f32 %v4269_v62, %v3690_v51  ;;  %v4271_v34 = vpop.f32.mrb[41].mxu0  ;;  %v3694_v60 = vpop.f32.mrb[42].mxu1 }
 0x2ad   : > { %v5405_v0 = vpack.c.bf16 %v4517_v42, %v4516_v41  ;;  %v4519_v43 = vmax.f32 %v4455_v31, 0.0  ;;  %v5492_v35 = vadd.f32 %v4271_v34, %v3692_v33  ;;  %v4273_v61 = vpop.f32.mrb[42].mxu0  ;;  %v3696_v3 = vpop.f32.mrb[43].mxu1 }
 0x2ae   : > { %v4380_v1 = vmul.f32 %v5491_v63, %v7694_v6  ;;  %v5493_v2 = vadd.f32 %v4273_v61, %v3694_v60  ;;  %v4275_v4 = vpop.f32.mrb[43].mxu0 }
 0x2af   : > { %4754 = vst [vmem:[%s7714_s7 + $0x90] sm:$0xff] %v5405_v0  ;;  %v5406_v5 = vpack.c.bf16 %v4519_v43, %v4518_v32  ;;  %v4381_v7 = vmul.f32 %v5492_v35, %v7696_v8  ;;  %v5494_v52 = vadd.f32 %v4275_v4, %v3696_v3 }
 0x2b0   : > { %v4456_v36 = vadd.f32 %v7698_v10, %v4380_v1  ;;  %v4382_v53 = vmul.f32 %v5493_v2, %v7694_v6 }
 0x2b1   : > { %4755 = vst [vmem:[%s7714_s7 + $0x98] sm:$0xff] %v5406_v5  ;;  %v4457_v9 = vadd.f32 %v7700_v13, %v4381_v7  ;;  %v4383_v54 = vmul.f32 %v5494_v52, %v7696_v8 }
 0x2b2   : > { %v4520_v37 = vmax.f32 %v4456_v36, 0.0  ;;  %v4458_v11 = vadd.f32 %v7698_v10, %v4382_v53  ;;  %v3700_v55 = vpop.f32.mrb[44].mxu1 }
 0x2b3   : > { %v4521_v44 = vmax.f32 %v4457_v9, 0.0  ;;  %v4459_v38 = vadd.f32 %v7700_v13, %v4383_v54  ;;  %v4279_v45 = vpop.f32.mrb[44].mxu0  ;;  %v3702_v14 = vpop.f32.mrb[45].mxu1 }
 0x2b4   : > { %v4522_v12 = vmax.f32 %v4458_v11, 0.0  ;;  %v5495_v46 = vadd.f32 %v4279_v45, %v3700_v55  ;;  %v4281_v15 = vpop.f32.mrb[45].mxu0  ;;  %v3704_v17 = vpop.f32.mrb[46].mxu1 }
 0x2b5   : > { %v5407_v16 = vpack.c.bf16 %v4521_v44, %v4520_v37  ;;  %v4523_v39 = vmax.f32 %v4459_v38, 0.0  ;;  %v5496_v47 = vadd.f32 %v4281_v15, %v3702_v14  ;;  %v4283_v18 = vpop.f32.mrb[46].mxu0  ;;  %v3706_v56 = vpop.f32.mrb[47].mxu1 }
 0x2b6   : > { %v4384_v19 = vmul.f32 %v5495_v46, %v7694_v6  ;;  %v5497_v20 = vadd.f32 %v4283_v18, %v3704_v17  ;;  %v4285_v21 = vpop.f32.mrb[47].mxu0 }
 0x2b7   : > { %4756 = vst [vmem:[%s7714_s7 + $0xa0] sm:$0xff] %v5407_v16  ;;  %v5408_v57 = vpack.c.bf16 %v4523_v39, %v4522_v12  ;;  %v4385_v22 = vmul.f32 %v5496_v47, %v7696_v8  ;;  %v5498_v58 = vadd.f32 %v4285_v21, %v3706_v56 }
 0x2b8   : > { %v4460_v23 = vadd.f32 %v7698_v10, %v4384_v19  ;;  %v4386_v24 = vmul.f32 %v5497_v20, %v7694_v6 }
 0x2b9   : > { %4757 = vst [vmem:[%s7714_s7 + $0xa8] sm:$0xff] %v5408_v57  ;;  %v4461_v25 = vadd.f32 %v7700_v13, %v4385_v22  ;;  %v4387_v26 = vmul.f32 %v5498_v58, %v7696_v8 }
 0x2ba   : > { %v4524_v59 = vmax.f32 %v4460_v23, 0.0  ;;  %v4462_v27 = vadd.f32 %v7698_v10, %v4386_v24  ;;  %v3710_v40 = vpop.f32.mrb[48].mxu1 }
 0x2bb   : > { %v4525_v28 = vmax.f32 %v4461_v25, 0.0  ;;  %v4463_v48 = vadd.f32 %v7700_v13, %v4387_v26  ;;  %v4289_v49 = vpop.f32.mrb[48].mxu0  ;;  %v3712_v41 = vpop.f32.mrb[49].mxu1 }
 0x2bc   : > { %v4526_v29 = vmax.f32 %v4462_v27, 0.0  ;;  %v5499_v50 = vadd.f32 %v4289_v49, %v3710_v40  ;;  %v4291_v30 = vpop.f32.mrb[49].mxu0  ;;  %v3714_v62 = vpop.f32.mrb[50].mxu1 }
 0x2bd   : > { %v5409_v42 = vpack.c.bf16 %v4525_v28, %v4524_v59  ;;  %v4527_v31 = vmax.f32 %v4463_v48, 0.0  ;;  %v5500_v51 = vadd.f32 %v4291_v30, %v3712_v41  ;;  %v4293_v32 = vpop.f32.mrb[50].mxu0  ;;  %v3716_v34 = vpop.f32.mrb[51].mxu1 }
 0x2be   : > { %v4388_v63 = vmul.f32 %v5499_v50, %v7694_v6  ;;  %v5501_v33 = vadd.f32 %v4293_v32, %v3714_v62  ;;  %v4295_v0 = vpop.f32.mrb[51].mxu0 }
 0x2bf   : > { %4758 = vst [vmem:[%s7714_s7 + $0xb0] sm:$0xff] %v5409_v42  ;;  %v5410_v43 = vpack.c.bf16 %v4527_v31, %v4526_v29  ;;  %v4389_v35 = vmul.f32 %v5500_v51, %v7696_v8  ;;  %v5502_v60 = vadd.f32 %v4295_v0, %v3716_v34 }
 0x2c0   : > { %v4464_v61 = vadd.f32 %v7698_v10, %v4388_v63  ;;  %v4390_v1 = vmul.f32 %v5501_v33, %v7694_v6 }
 0x2c1   : > { %4759 = vst [vmem:[%s7714_s7 + $0xb8] sm:$0xff] %v5410_v43  ;;  %v4465_v2 = vadd.f32 %v7700_v13, %v4389_v35  ;;  %v4391_v3 = vmul.f32 %v5502_v60, %v7696_v8 }
 0x2c2   : > { %v4528_v4 = vmax.f32 %v4464_v61, 0.0  ;;  %v4466_v5 = vadd.f32 %v7698_v10, %v4390_v1  ;;  %v3720_v36 = vpop.f32.mrb[52].mxu1 }
 0x2c3   : > { %v4529_v7 = vmax.f32 %v4465_v2, 0.0  ;;  %v4467_v52 = vadd.f32 %v7700_v13, %v4391_v3  ;;  %v4299_v53 = vpop.f32.mrb[52].mxu0  ;;  %v3722_v37 = vpop.f32.mrb[53].mxu1 }
 0x2c4   : > { %v4530_v9 = vmax.f32 %v4466_v5, 0.0  ;;  %v5503_v54 = vadd.f32 %v4299_v53, %v3720_v36  ;;  %v4301_v11 = vpop.f32.mrb[53].mxu0  ;;  %v3724_v45 = vpop.f32.mrb[54].mxu1 }
 0x2c5   : > { %v5411_v44 = vpack.c.bf16 %v4529_v7, %v4528_v4  ;;  %v4531_v38 = vmax.f32 %v4467_v52, 0.0  ;;  %v5504_v55 = vadd.f32 %v4301_v11, %v3722_v37  ;;  %v4303_v12 = vpop.f32.mrb[54].mxu0  ;;  %v3726_v15 = vpop.f32.mrb[55].mxu1 }
 0x2c6   : > { %v4392_v46 = vmul.f32 %v5503_v54, %v7694_v6  ;;  %v5505_v14 = vadd.f32 %v4303_v12, %v3724_v45  ;;  %v4305_v16 = vpop.f32.mrb[55].mxu0 }
 0x2c7   : > { %4760 = vst [vmem:[%s7714_s7 + $0xc0] sm:$0xff] %v5411_v44  ;;  %v5412_v39 = vpack.c.bf16 %v4531_v38, %v4530_v9  ;;  %v4393_v47 = vmul.f32 %v5504_v55, %v7696_v8  ;;  %v5506_v17 = vadd.f32 %v4305_v16, %v3726_v15 }
 0x2c8   : > { %v4468_v18 = vadd.f32 %v7698_v10, %v4392_v46  ;;  %v4394_v19 = vmul.f32 %v5505_v14, %v7694_v6 }
 0x2c9   : > { %4761 = vst [vmem:[%s7714_s7 + $0xc8] sm:$0xff] %v5412_v39  ;;  %v4469_v20 = vadd.f32 %v7700_v13, %v4393_v47  ;;  %v4395_v56 = vmul.f32 %v5506_v17, %v7696_v8 }
 0x2ca   : > { %v4532_v21 = vmax.f32 %v4468_v18, 0.0  ;;  %v4470_v57 = vadd.f32 %v7698_v10, %v4394_v19  ;;  %v3730_v23 = vpop.f32.mrb[56].mxu1 }
 0x2cb   : > { %v4533_v22 = vmax.f32 %v4469_v20, 0.0  ;;  %v4471_v58 = vadd.f32 %v7700_v13, %v4395_v56  ;;  %v4309_v24 = vpop.f32.mrb[56].mxu0  ;;  %v3732_v59 = vpop.f32.mrb[57].mxu1 }
 0x2cc   : > { %v4534_v25 = vmax.f32 %v4470_v57, 0.0  ;;  %v5507_v26 = vadd.f32 %v4309_v24, %v3730_v23  ;;  %v4311_v27 = vpop.f32.mrb[57].mxu0  ;;  %v3734_v49 = vpop.f32.mrb[58].mxu1 }
 0x2cd   : > { %v5413_v28 = vpack.c.bf16 %v4533_v22, %v4532_v21  ;;  %v4535_v48 = vmax.f32 %v4471_v58, 0.0  ;;  %v5508_v40 = vadd.f32 %v4311_v27, %v3732_v59  ;;  %v4313_v29 = vpop.f32.mrb[58].mxu0  ;;  %v3736_v30 = vpop.f32.mrb[59].mxu1 }
 0x2ce   : > { %v4396_v50 = vmul.f32 %v5507_v26, %v7694_v6  ;;  %v5509_v41 = vadd.f32 %v4313_v29, %v3734_v49  ;;  %v4315_v42 = vpop.f32.mrb[59].mxu0 }
 0x2cf   : > { %4762 = vst [vmem:[%s7714_s7 + $0xd0] sm:$0xff] %v5413_v28  ;;  %v5414_v31 = vpack.c.bf16 %v4535_v48, %v4534_v25  ;;  %v4397_v51 = vmul.f32 %v5508_v40, %v7696_v8  ;;  %v5510_v62 = vadd.f32 %v4315_v42, %v3736_v30 }
 0x2d0   : > { %v4472_v32 = vadd.f32 %v7698_v10, %v4396_v50  ;;  %v4398_v63 = vmul.f32 %v5509_v41, %v7694_v6 }
 0x2d1   : > { %4763 = vst [vmem:[%s7714_s7 + $0xd8] sm:$0xff] %v5414_v31  ;;  %v4473_v33 = vadd.f32 %v7700_v13, %v4397_v51  ;;  %v4399_v34 = vmul.f32 %v5510_v62, %v7696_v8 }
 0x2d2   : > { %v4536_v0 = vmax.f32 %v4472_v32, 0.0  ;;  %v4474_v43 = vadd.f32 %v7698_v10, %v4398_v63  ;;  %v3740_v61 = vpop.f32.mrb[60].mxu1 }
 0x2d3   : > { %v4537_v35 = vmax.f32 %v4473_v33, 0.0  ;;  %v4475_v60 = vadd.f32 %v7700_v13, %v4399_v34  ;;  %v4319_v1 = vpop.f32.mrb[60].mxu0  ;;  %v3742_v4 = vpop.f32.mrb[61].mxu1 }
 0x2d4   : > { %v4538_v2 = vmax.f32 %v4474_v43, 0.0  ;;  %v5511_v3 = vadd.f32 %v4319_v1, %v3740_v61  ;;  %v4321_v5 = vpop.f32.mrb[61].mxu0  ;;  %v3744_v53 = vpop.f32.mrb[62].mxu1 }
 0x2d5   : > { %v5415_v7 = vpack.c.bf16 %v4537_v35, %v4536_v0  ;;  %v4539_v52 = vmax.f32 %v4475_v60, 0.0  ;;  %v5512_v36 = vadd.f32 %v4321_v5, %v3742_v4  ;;  %v4323_v9 = vpop.f32.mrb[62].mxu0  ;;  %v3746_v11 = vpop.f32.mrb[63].mxu1 }
 0x2d6   : > { %v4400_v54 = vmul.f32 %v5511_v3, %v7694_v6  ;;  %v5513_v37 = vadd.f32 %v4323_v9, %v3744_v53  ;;  %v4325_v44 = vpop.f32.mrb[63].mxu0 }
 0x2d7   : > { %4764 = vst [vmem:[%s7714_s7 + $0xe0] sm:$0xff] %v5415_v7  ;;  %v5416_v38 = vpack.c.bf16 %v4539_v52, %v4538_v2  ;;  %v4401_v55 = vmul.f32 %v5512_v36, %v7696_v8  ;;  %v5514_v45 = vadd.f32 %v4325_v44, %v3746_v11 }
 0x2d8   : > { %v4476_v12 = vadd.f32 %v7698_v10, %v4400_v54  ;;  %v4402_v46 = vmul.f32 %v5513_v37, %v7694_v6 }
 0x2d9   : > { %4765 = vst [vmem:[%s7714_s7 + $0xe8] sm:$0xff] %v5416_v38  ;;  %v4477_v14 = vadd.f32 %v7700_v13, %v4401_v55  ;;  %v4403_v15 = vmul.f32 %v5514_v45, %v7696_v8 }
 0x2da   : > { %v4540_v16 = vmax.f32 %v4476_v12, 0.0  ;;  %v4478_v39 = vadd.f32 %v7698_v10, %v4402_v46 }
 0x2db   : > { %v4541_v47 = vmax.f32 %v4477_v14, 0.0  ;;  %v4479_v17 = vadd.f32 %v7700_v13, %v4403_v15 }
 0x2dc   : > { %v4542_v18 = vmax.f32 %v4478_v39, 0.0 }
 0x2dd   : > { %v5417_v19 = vpack.c.bf16 %v4541_v47, %v4540_v16  ;;  %v4543_v20 = vmax.f32 %v4479_v17, 0.0 }
 0x2df   : > { %4766 = vst [vmem:[%s7714_s7 + $0xf0] sm:$0xff] %v5417_v19  ;;  %v5418_v56 = vpack.c.bf16 %v4543_v20, %v4542_v18 }
 0x2e1   : > { %4767 = vst [vmem:[%s7714_s7 + $0xf8] sm:$0xff] %v5418_v56 }
 0x2e2 PF: > { %s14_s17 = sadd.s32 1, %s6586_s17   ;;  %s7909_s15 = smov %s6582_s16 }
 0x2e3   : > { %p11_p5 = scmp.ge.s32.totalorder %s14_s17, 7   ;;  %s7910_s16 = smov %s7912_s18 }
 0x2e5   :  { %13 = sbr.rel (!%p11_p5) target bundleno = 2 (0x2), region = 75 }

</bundles_post_ra>
